<compile_context>
chip_gen: v5e
topology: v5e:2x2
jax: 0.10.0
libtpu: 0.0.40
codegen_flags: <defaults>
</compile_context>

<pallas_src>
import functools
import math

import jax
import jax.numpy as jnp
from jax.experimental import pallas as pl
from jax.experimental.pallas import tpu as pltpu

INPUT_WIDTH = 16           # scaled down from the original 64 for a small, fast test
_COMPUTE_DTYPE = jnp.bfloat16


def _round_up(x, m):
    return ((x + m - 1) // m) * m


# ---------------------------------------------------------------------------
# Chip / generation info (budgets, core count, quantized weight dtype).
# ---------------------------------------------------------------------------
@functools.lru_cache(maxsize=1)
def _chip_info():
    kind = ""
    try:
        kind = jax.devices()[0].device_kind.lower()
    except Exception:
        pass
    is_v7 = "v7" in kind
    is_v5e = ("v5e" in kind) or ("v5 lite" in kind) or ("v5lite" in kind)
    # v7x / v4 / v5p expose two TensorCores per chip; v5e / v6e have one.
    multi_core = is_v7 or ("v4" in kind) or ("v5p" in kind)

    try:
        phys_vmem = int(pltpu.get_tpu_info().vmem_capacity_bytes)
    except Exception:
        phys_vmem = (64 << 20) if is_v7 else (128 << 20)

    # fp8 where the MXU has fp8 but no int paths (v7x); int8 elsewhere.
    fp8 = getattr(jnp, "float8_e4m3fn", None)
    weight_dtype = fp8 if (is_v7 and fp8 is not None) else jnp.int8

    return dict(
        multi_core=multi_core,
        # Platform default scoped-VMEM limit: 16 MiB on v5e, 32 MiB on v6e/v7x.
        default_scoped=(16 << 20) if is_v5e else (32 << 20),
        # Double-buffered full-K weight slabs must stay well inside physical VMEM.
        weight_budget=phys_vmem // 3,
        vmem_ceiling=(phys_vmem * 3) // 4,
        weight_dtype=weight_dtype,
    )


# ---------------------------------------------------------------------------
# Pallas kernel: y_tile = (x @ dequant(W_tile)) * scale_tile + b_tile, opt. ReLU.
# Grid = (N_tiles,) — full-K blocks, so no accumulator / init / finalize.
# ---------------------------------------------------------------------------
def _linear_kernel(x_ref, w_ref, s_ref, b_ref, o_ref, *, apply_relu):
    w = w_ref[...]
    if w.dtype != x_ref.dtype:
        # Dequant cast (int8 / fp8 storage -> bf16 compute).  Pure VPU filler:
        # the kernel is weight-HBM-bandwidth bound at small batch.
        w = w.astype(jnp.float32).astype(x_ref.dtype)
    acc = jnp.dot(x_ref[...], w, preferred_element_type=jnp.float32)
    out = acc * s_ref[...] + b_ref[...]          # per-channel dequant scale + bias
    if apply_relu:
        out = jnp.maximum(out, 0.0)
    o_ref[...] = out.astype(o_ref.dtype)


def _pick_tn(n_pad, k, w_itemsize, *, multi_core, weight_budget_bytes, cap=8192):
    """Largest N-tile (multiple of 128 dividing n_pad) whose double-buffered
    full-K weight slab fits the per-generation VMEM budget.

    On multi-TC chips (v7x) keep >= 2 grid steps and prefer an EVEN step count
    so both cores stream equal weight traffic; on single-TC chips (v5e/v6e) a
    single full-width step is strictly better (no per-step overhead)."""
    limit = min(cap, n_pad, weight_budget_bytes // max(1, 2 * k * w_itemsize))
    if multi_core and n_pad > 128:
        limit = min(limit, n_pad // 2)
    limit = max(128, (limit // 128) * 128)
    fallback = 128
    for t in range(limit, 127, -128):
        if n_pad % t:
            continue
        if not multi_core:
            return t
        if (n_pad // t) % 2 == 0:
            return t                 # even step count: equal work per TensorCore
        if fallback == 128:
            fallback = t             # largest valid tile (odd step count)
    return fallback


def linear_pallas(x, w_q, scale, b, *, apply_relu=False, out_dtype=jnp.float32):
    """y = (x @ dequant(w_q)) * scale + b.

    x:     (B, K)              activations (any float dtype; cast to bf16)
    w_q:   (K, N)              pre-transposed, lane-padded, quantized weights
    scale: (1, N) float32      per-output-channel dequant scale
    b:     (1, N) float32      bias
    Returns (B, N) in out_dtype.
    """
    B, K = x.shape
    K2, N = w_q.shape
    assert K == K2, (K, K2)
    assert N % 128 == 0, "weights must be lane-padded at init time"
    # TODO(synk): if B ever grows past ~256, add an M grid axis (tile 128/256,
    # 'parallel') instead of the full (B, K) activation block.

    info = _chip_info()
    if x.dtype != _COMPUTE_DTYPE:
        x = x.astype(_COMPUTE_DTYPE)

    w_itemsize = jnp.dtype(w_q.dtype).itemsize
    tn = _pick_tn(N, K, w_itemsize,
                  multi_core=info["multi_core"],
                  weight_budget_bytes=info["weight_budget"])
    grid = (N // tn,)

    # Rough double-buffered VMEM need (x + weight + scale + bias + out tiles).
    x_bytes = B * K * jnp.dtype(x.dtype).itemsize
    out_bytes = B * tn * jnp.dtype(out_dtype).itemsize
    vmem_needed = 2 * (x_bytes + K * tn * w_itemsize + 2 * tn * 4 + out_bytes)

    cp_kwargs = dict(dimension_semantics=("parallel",))
    if int(vmem_needed * 1.2) > info["default_scoped"]:
        # Never set the limit BELOW the platform default scoped VMEM; cap at a
        # generation-aware fraction of physical VMEM so pipelining stays alive.
        cp_kwargs["vmem_limit_bytes"] = min(
            max(info["default_scoped"], int(vmem_needed * 1.2)),
            info["vmem_ceiling"])

    return pl.pallas_call(
        functools.partial(_linear_kernel, apply_relu=apply_relu),
        out_shape=jax.ShapeDtypeStruct((B, N), out_dtype),
        grid=grid,
        in_specs=[
            pl.BlockSpec((B, K), lambda j: (0, 0)),    # activations (full K, resident)
            pl.BlockSpec((K, tn), lambda j: (0, j)),   # quantized weight tile (full K)
            pl.BlockSpec((1, tn), lambda j: (0, j)),   # dequant scale tile
            pl.BlockSpec((1, tn), lambda j: (0, j)),   # bias tile
        ],
        out_specs=pl.BlockSpec((B, tn), lambda j: (0, j)),
        compiler_params=pltpu.CompilerParams(**cp_kwargs),
    )(x, w_q, scale, b)


# ---------------------------------------------------------------------------
# ClsNetwork: deterministic parameter init + forward (eval mode).
# ---------------------------------------------------------------------------
def _quantize_per_channel(w_t, qdtype):
    """Per-output-channel (column) symmetric quantization of (K, N) weights."""
    qdt = jnp.dtype(qdtype)
    if qdt in (jnp.dtype(jnp.bfloat16), jnp.dtype(jnp.float32)):
        return w_t.astype(qdtype), jnp.ones((1, w_t.shape[1]), jnp.float32)
    absmax = jnp.max(jnp.abs(w_t), axis=0, keepdims=True)          # (1, N)
    qmax = 127.0 if qdt == jnp.dtype(jnp.int8) else 448.0           # e4m3 max
    scale = jnp.maximum(absmax / qmax, jnp.float32(1e-12))
    if qdt == jnp.dtype(jnp.int8):
        wq = jnp.clip(jnp.round(w_t / scale), -qmax, qmax).astype(jnp.int8)
    else:
        wq = (w_t / scale).astype(qdtype)
    return wq, scale.astype(jnp.float32)


def init_cls_network_params(key, n_class=10, input_dim=1, n_layers=1,
                            hidden_dim=1000, weight_dtype=None):
    """Mimics nn.Linear default init: U(-1/sqrt(fan_in), 1/sqrt(fan_in)).

    Weights are stored PRE-TRANSPOSED as (fan_in, fan_out), lane-padded to
    multiples of 128 once at init, and quantized (int8 on v5e/v6e, fp8 on v7x)
    with a per-output-channel f32 scale.  Pass weight_dtype=jnp.bfloat16 (or
    float32) to disable quantization.  Biases stay float32.
    """
    assert n_layers >= 1
    if weight_dtype is None:
        weight_dtype = _chip_info()["weight_dtype"]

    in_dim = (input_dim + 1) * INPUT_WIDTH * INPUT_WIDTH
    out_dim = n_class * INPUT_WIDTH * INPUT_WIDTH
    if n_layers == 1:
        dims = [(in_dim, out_dim)]
    else:
        dims = ([(in_dim, hidden_dim)]
                + [(hidden_dim, hidden_dim)] * (n_layers - 2)
                + [(hidden_dim, out_dim)])

    params = []
    for fan_in, fan_out in dims:
        key, kw, kb = jax.random.split(key, 3)
        bound = 1.0 / math.sqrt(fan_in)
        w = jax.random.uniform(kw, (fan_out, fan_in), jnp.float32, -bound, bound)
        b = jax.random.uniform(kb, (fan_out,), jnp.float32, -bound, bound)
        k_pad = _round_up(fan_in, 128)
        n_pad = _round_up(fan_out, 128)
        w_t = jnp.zeros((k_pad, n_pad), jnp.float32).at[:fan_in, :fan_out].set(w.T)
        b_p = jnp.zeros((1, n_pad), jnp.float32).at[0, :fan_out].set(b)
        w_q, scale = _quantize_per_channel(w_t, weight_dtype)
        params.append((w_q, scale, b_p))
    return params


def cls_network_forward(x, params, *, n_class=10):
    """x: (B, input_dim+1, W, W) NCHW.  Returns float32 (B, n_class, W, W)."""
    batch_size = x.shape[0]
    h = x.reshape(batch_size, -1)

    n_linear = len(params)
    # TODO(synk): for n_layers > 1 the small hidden (hxh) layers could be fused
    # into a single pallas_call with weights VMEM-resident; kept per-layer here.
    for i, (w_q, scale, b) in enumerate(params):
        k_pad = w_q.shape[0]
        if h.shape[1] != k_pad:                    # only possible for layer 0
            h = jnp.pad(h, ((0, 0), (0, k_pad - h.shape[1])))
        last = (i == n_linear - 1)
        # ReLU follows every linear except the last one (only when n_layers>1).
        # Hidden layers are emitted directly in bf16 (no wrapper-side casts).
        # TODO(synk): nn.Dropout is identity in eval mode; train-mode dropout
        # (random masking) is not implemented here.
        h = linear_pallas(h, w_q, scale, b,
                          apply_relu=(n_linear > 1 and not last),
                          out_dtype=jnp.float32 if last else jnp.bfloat16)

    n_out = n_class * INPUT_WIDTH * INPUT_WIDTH
    if h.shape[1] != n_out:
        h = h[:, :n_out]
    return h.reshape(batch_size, n_class, INPUT_WIDTH, INPUT_WIDTH)


# ---------------------------------------------------------------------------
# Demo / smoke test
# ---------------------------------------------------------------------------
if __name__ == "__main__":
    key = jax.random.PRNGKey(0)
    k_p1, k_p2, k_x = jax.random.split(key, 3)

    n_class, input_dim, B = 10, 1, 2
    x = jax.random.normal(
        k_x, (B, input_dim + 1, INPUT_WIDTH, INPUT_WIDTH), dtype=jnp.float32)
    x_flat = x.reshape(B, -1).astype(jnp.bfloat16).astype(jnp.float32)
    n_out = n_class * INPUT_WIDTH * INPUT_WIDTH

    def dequant(w_q, scale):
        return w_q.astype(jnp.float32) * scale

    # ---- n_layers == 1 (single Linear) --------------------------------------
    params1 = init_cls_network_params(
        k_p1, n_class=n_class, input_dim=input_dim, n_layers=1)
    out1 = jax.block_until_ready(cls_network_forward(x, params1, n_class=n_class))
    w_q0, s0, b0 = params1[0]
    ref1 = (x_flat @ dequant(w_q0, s0) + b0)[:, :n_out].reshape(
        B, n_class, INPUT_WIDTH, INPUT_WIDTH)
    assert out1.shape == (B, n_class, INPUT_WIDTH, INPUT_WIDTH)
    assert jnp.allclose(out1, ref1, atol=5e-3, rtol=5e-3), \
        float(jnp.max(jnp.abs(out1 - ref1)))

    # ---- n_layers == 2 (Linear -> ReLU -> Dropout(eval) -> Linear) ----------
    params2 = init_cls_network_params(
        k_p2, n_class=n_class, input_dim=input_dim, n_layers=2, hidden_dim=1024)
    out2 = jax.block_until_ready(cls_network_forward(x, params2, n_class=n_class))
    (wq1, s1, b1), (wq2, s2, b2) = params2
    h_ref = jnp.maximum(x_flat @ dequant(wq1, s1) + b1, 0.0)
    h_ref = h_ref.astype(jnp.bfloat16).astype(jnp.float32)   # hidden emitted in bf16
    ref2 = (h_ref @ dequant(wq2, s2) + b2)[:, :n_out].reshape(
        B, n_class, INPUT_WIDTH, INPUT_WIDTH)
    assert out2.shape == (B, n_class, INPUT_WIDTH, INPUT_WIDTH)
    assert jnp.allclose(out2, ref2, atol=2e-2, rtol=2e-2), \
        float(jnp.max(jnp.abs(out2 - ref2)))

    print("KERNEL_OK")
</pallas_src>

<mosaic_0001>
module attributes {stable_mosaic.version = 11 : i64} {
  func.func @_linear_kernel(%arg0: i32, %arg1: memref<2x512xbf16, #tpu.memory_space<vmem>>, %arg2: memref<512x2560xi8, #tpu.memory_space<vmem>>, %arg3: memref<1x2560xf32, #tpu.memory_space<vmem>>, %arg4: memref<1x2560xf32, #tpu.memory_space<vmem>>, %arg5: memref<2x2560xf32, #tpu.memory_space<vmem>>) attributes {dimension_semantics = [#tpu.dimension_semantics<parallel>], iteration_bounds = array<i64: 1>, scalar_prefetch = 0 : i64, scratch_operands = 0 : i64, tpu.core_type = #tpu.core_type<tc>, window_params = [{pipeline_mode = #tpu.pipeline_mode<synchronous>, transform_indices = @transform_0, window_bounds = array<i64: 2, 512>}, {transform_indices = @transform_1, window_bounds = array<i64: 512, 2560>}, {transform_indices = @transform_2, window_bounds = array<i64: 1, 2560>}, {transform_indices = @transform_3, window_bounds = array<i64: 1, 2560>}, {transform_indices = @transform_4, window_bounds = array<i64: 2, 2560>}]} {
    %c0 = arith.constant 0 : index
    %c0_0 = arith.constant 0 : index
    %0 = vector.load %arg2[%c0, %c0_0] : memref<512x2560xi8, #tpu.memory_space<vmem>>, vector<512x2560xi8>
    %1 = arith.sitofp %0 : vector<512x2560xi8> to vector<512x2560xf32>
    %2 = arith.truncf %1 : vector<512x2560xf32> to vector<512x2560xbf16>
    %c0_1 = arith.constant 0 : index
    %c0_2 = arith.constant 0 : index
    %3 = vector.load %arg1[%c0_1, %c0_2] : memref<2x512xbf16, #tpu.memory_space<vmem>>, vector<2x512xbf16>
    %cst = arith.constant dense<0.000000e+00> : vector<2x2560xf32>
    %4 = tpu.matmul %3, %2, %cst {dimension_numbers = #tpu.dot_dimension_numbers<[1], [0], [0], [1], [0, 0, 1, 1], [], []>} : vector<2x512xbf16>, vector<512x2560xbf16>, vector<2x2560xf32> -> vector<2x2560xf32>
    %c0_3 = arith.constant 0 : index
    %c0_4 = arith.constant 0 : index
    %5 = vector.load %arg3[%c0_3, %c0_4] : memref<1x2560xf32, #tpu.memory_space<vmem>>, vector<1x2560xf32>
    %6 = vector.broadcast %5 : vector<1x2560xf32> to vector<2x2560xf32>
    %7 = arith.mulf %4, %6 : vector<2x2560xf32>
    %c0_5 = arith.constant 0 : index
    %c0_6 = arith.constant 0 : index
    %8 = vector.load %arg4[%c0_5, %c0_6] : memref<1x2560xf32, #tpu.memory_space<vmem>>, vector<1x2560xf32>
    %9 = vector.broadcast %8 : vector<1x2560xf32> to vector<2x2560xf32>
    %10 = arith.addf %7, %9 : vector<2x2560xf32>
    %c0_7 = arith.constant 0 : index
    %c0_8 = arith.constant 0 : index
    %11 = vector.load %arg5[%c0_7, %c0_8] : memref<2x2560xf32, #tpu.memory_space<vmem>>, vector<2x2560xf32>
    tpu.vector_store %arg5[%c0_7, %c0_8], %10 {strides = array<i32>} : memref<2x2560xf32, #tpu.memory_space<vmem>>, vector<2x2560xf32>,
    return
  }
  func.func @transform_0(%arg0: i32) -> (i32, i32) {
    %c0_i32 = arith.constant 0 : i32
    %c0_i32_0 = arith.constant 0 : i32
    %c0_i32_1 = arith.constant 0 : i32
    return %c0_i32, %c0_i32_0 : i32, i32
  }
  func.func @transform_1(%arg0: i32) -> (i32, i32) {
    %c0_i32 = arith.constant 0 : i32
    %c0_i32_0 = arith.constant 0 : i32
    return %c0_i32, %arg0 : i32, i32
  }
  func.func @transform_2(%arg0: i32) -> (i32, i32) {
    %c0_i32 = arith.constant 0 : i32
    %c0_i32_0 = arith.constant 0 : i32
    return %c0_i32, %arg0 : i32, i32
  }
  func.func @transform_3(%arg0: i32) -> (i32, i32) {
    %c0_i32 = arith.constant 0 : i32
    %c0_i32_0 = arith.constant 0 : i32
    return %c0_i32, %arg0 : i32, i32
  }
  func.func @transform_4(%arg0: i32) -> (i32, i32) {
    %c0_i32 = arith.constant 0 : i32
    %c0_i32_0 = arith.constant 0 : i32
    return %c0_i32, %arg0 : i32, i32
  }
}

</mosaic_0001>

<bundles_post_ra>
// kernel: tpu_custom_call.1
= control target key start
LH: loop header
LB: loop body
LE: loop exit
PB: predicated region body
PF: predicated region fallthrough
CT: control target
= control target key end

     0   :  { %9 = vsyncpa [#allocation3], 0  ;;  %s5741_s0 = inlined_call_operand.hbm [shape: bf16[2,512], index: 0, kind: input, shape index: {}]   ;;  %s5742_s1 = inlined_call_operand.hbm [shape: s8[512,2560], index: 1, kind: input, shape index: {}]   ;;  %s5743_s2 = inlined_call_operand.hbm [shape: f32[1,2560], index: 2, kind: input, shape index: {}]   ;;  %s5744_s3 = inlined_call_operand.hbm [shape: f32[1,2560], index: 3, kind: input, shape index: {}]   ;;  %s5745_s4 = inlined_call_operand.hbm [shape: f32[2,2560], index: 4, kind: output, shape index: {}]  }
   0x1   :  { %10 = vsyncpa [#allocation6], 0 }
   0x2   :  { %11 = vsyncpa [#allocation9], 0  ;;  %s28_s17 = sshll.u32 %s5742_s1, 4  ;;  %s29_s17 = int_to_ptr.hbm [resolvable:$true] %s28_s17 }
   0x3   :  { %12 = vsyncpa [#allocation4], 0  ;;  %s5027_s18 = smov [#allocation5]   ;;  %s18_s22 = sshll.u32 %s5741_s0, 4  ;;  %s19_s22 = int_to_ptr.hbm [resolvable:$true] %s18_s22 }
   0x4   :  { %s30_s19 = sshll.u32 %s5027_s18, 4  ;;  %s5028_s23 = smov 2560   ;;  %s31_s19 = int_to_ptr.vmem [resolvable:$true] %s30_s19 }
   0x5   :  { %s5029_s24 = smov 160   ;;  %s5030_s25 = smov [#allocation2]  }
   0x6   :  { %36 = dma.hbm_to_vmem [thread:$0]  %s29_s17, 40960, %s31_s19, [#allocation6], %s5028_s23, %s5028_s23, %s5029_s24  }
   0x7   :  { %s20_s26 = sshll.u32 %s5030_s25, 4  ;;  %s42_s29 = sshll.u32 %s5743_s2, 4  ;;  %s21_s26 = int_to_ptr.vmem [resolvable:$true] %s20_s26  ;;  %s43_s29 = int_to_ptr.hbm [resolvable:$true] %s42_s29 }
   0x8   :  { %23 = dma.hbm_to_vmem [thread:$0]  %s19_s22, 64, %s21_s26, [#allocation3]  }
   0x9   :  { %s53_s5 = sshll.u32 %s5744_s3, 4  ;;  %s5031_s6 = smov [#allocation7]   ;;  %s54_s5 = int_to_ptr.hbm [resolvable:$true] %s53_s5 }
   0xa   :  { %s44_s7 = sshll.u32 %s5031_s6, 4  ;;  %s5032_s0 = smov [#allocation8]   ;;  %s45_s7 = int_to_ptr.vmem [resolvable:$true] %s44_s7 }
   0xb   :  { %47 = dma.hbm_to_vmem [thread:$0]  %s43_s29, 320, %s45_s7, [#allocation6]  }
   0xc   :  { %s55_s8 = sshll.u32 %s5032_s0, 4  ;;  %s56_s8 = int_to_ptr.vmem [resolvable:$true] %s55_s8 }
   0xd   :  { %58 = dma.hbm_to_vmem [thread:$0]  %s54_s5, 320, %s56_s8, [#allocation9]  }
   0xe   :  { %5019 = dma.done.wait [#allocation3], 64  }
   0xf   :  { %5020 = vsyncadd [#allocation3], 4294967232 }
  0x10   :  { %5021 = dma.done.wait [#allocation6], 41280  }
  0x11   :  { %5022 = vsyncadd [#allocation6], 4294926016 }
  0x12   :  { %5023 = dma.done.wait [#allocation9], 320  }
  0x13   :  { %5024 = vsyncadd [#allocation9], 4294966976  ;;  %v135_v0 = vld [vmem:[#allocation5 + $0x1e0] sm:$0xff]  ;;  %vm4813_vm0 = vcmask 1041408   ;;  %vm4815_vm1 = vcmask 1045508   ;;  %vm4817_vm2 = vcmask 1043456  }
  0x14   :  { %v215_v1 = vld [vmem:[#allocation5 + $0x460] sm:$0xff]  ;;  %v675_v3 = vunpack.c.2.s8 %v135_v0  ;;  %v695_v4 = vunpack.c.3.s8 %v135_v0  ;;  %v635_v22 = vunpack.c.0.s8 %v135_v0  ;;  %v655_v23 = vunpack.c.1.s8 %v135_v0  ;;  %s5033_s2 = smov [#allocation10]   ;;  %s4848_s11 = sshll.u32 %s5745_s4, 4  ;;  %s4849_s11 = int_to_ptr.hbm [resolvable:$true] %s4848_s11 }
  0x15   :  { %v295_v2 = vld [vmem:[#allocation5 + $0x6e0] sm:$0xff]  ;;  %v995_v5 = vunpack.c.2.s8 %v215_v1  ;;  %v1015_v6 = vunpack.c.3.s8 %v215_v1  ;;  %v955_v26 = vunpack.c.0.s8 %v215_v1  ;;  %v975_v27 = vunpack.c.1.s8 %v215_v1  ;;  %s4846_s3 = sshll.u32 %s5033_s2, 4  ;;  %s4847_s3 = int_to_ptr.vmem [resolvable:$true] %s4846_s3 }
  0x16   :  { %v375_v7 = vld [vmem:[#allocation5 + $0x960] sm:$0xff]  ;;  %v1315_v8 = vunpack.c.2.s8 %v295_v2  ;;  %v1335_v9 = vunpack.c.3.s8 %v295_v2  ;;  %v1955_v12 = vcvt.s32.f32 %v675_v3  ;;  %v1975_v13 = vcvt.s32.f32 %v695_v4 }
  0x17   :  { %v1635_v10 = vunpack.c.2.s8 %v375_v7  ;;  %v1655_v11 = vunpack.c.3.s8 %v375_v7  ;;  %v2275_v14 = vcvt.s32.f32 %v995_v5  ;;  %v2295_v15 = vcvt.s32.f32 %v1015_v6  ;;  %v115_v28 = vld [vmem:[#allocation5 + $0x140] sm:$0xff] }
  0x18   :  { %v2595_v16 = vcvt.s32.f32 %v1315_v8  ;;  %v2615_v17 = vcvt.s32.f32 %v1335_v9  ;;  %v3095_v20 = vpack.c.bf16 %v1975_v13, %v1955_v12  ;;  %v1915_v29 = vcvt.s32.f32 %v635_v22  ;;  %v195_v37 = vld [vmem:[#allocation5 + $0x3c0] sm:$0xff] }
  0x19   :  { %v2915_v18 = vcvt.s32.f32 %v1635_v10  ;;  %v2935_v19 = vcvt.s32.f32 %v1655_v11  ;;  %v3255_v21 = vpack.c.bf16 %v2295_v15, %v2275_v14  ;;  %v1935_v30 = vcvt.s32.f32 %v655_v23  ;;  %v275_v42 = vld [vmem:[#allocation5 + $0x640] sm:$0xff] }
  0x1a   :  { %v3415_v24 = vpack.c.bf16 %v2615_v17, %v2595_v16  ;;  %3606 = vmatpush.bf16.msra.mxu0 %v3095_v20  ;;  %v1275_v31 = vunpack.c.0.s8 %v295_v2  ;;  %v1295_v32 = vunpack.c.1.s8 %v295_v2  ;;  %v2235_v33 = vcvt.s32.f32 %v955_v26  ;;  %v355_v47 = vld [vmem:[#allocation5 + $0x8c0] sm:$0xff] }
  0x1b   :  { %v3575_v25 = vpack.c.bf16 %v2935_v19, %v2915_v18  ;;  %3619 = vmatpush.bf16.msra.mxu1 %v3255_v21  ;;  %v2255_v34 = vcvt.s32.f32 %v975_v27  ;;  %v1595_v35 = vunpack.c.0.s8 %v375_v7  ;;  %v1615_v36 = vunpack.c.1.s8 %v375_v7  ;;  %v95_v8 = vld [vmem:[#allocation5 + $0xa0] sm:$0xff] }
  0x1c   :  { %3632 = vmatpush.bf16.msra.mxu2 %v3415_v24  ;;  %v3075_v38 = vpack.c.bf16 %v1935_v30, %v1915_v29  ;;  %v2555_v39 = vcvt.s32.f32 %v1275_v31  ;;  %v2575_v40 = vcvt.s32.f32 %v1295_v32  ;;  %v595_v41 = vunpack.c.2.s8 %v115_v28  ;;  %v175_v17 = vld [vmem:[#allocation5 + $0x320] sm:$0xff] }
  0x1d   :  { %3645 = vmatpush.bf16.msra.mxu3 %v3575_v25  ;;  %v3235_v43 = vpack.c.bf16 %v2255_v34, %v2235_v33  ;;  %v2875_v44 = vcvt.s32.f32 %v1595_v35  ;;  %v2895_v45 = vcvt.s32.f32 %v1615_v36  ;;  %v615_v46 = vunpack.c.3.s8 %v115_v28  ;;  %v255_v22 = vld [vmem:[#allocation5 + $0x5a0] sm:$0xff] }
  0x1e   :  { %3607 = vmatpush.bf16.msra.mxu0 %v3075_v38  ;;  %v3395_v48 = vpack.c.bf16 %v2575_v40, %v2555_v39  ;;  %v1875_v49 = vcvt.s32.f32 %v595_v41  ;;  %v915_v50 = vunpack.c.2.s8 %v195_v37  ;;  %v935_v51 = vunpack.c.3.s8 %v195_v37  ;;  %v335_v27 = vld [vmem:[#allocation5 + $0x820] sm:$0xff] }
  0x1f   :  { %3620 = vmatpush.bf16.msra.mxu1 %v3235_v43  ;;  %v3555_v52 = vpack.c.bf16 %v2895_v45, %v2875_v44  ;;  %v1895_v53 = vcvt.s32.f32 %v615_v46  ;;  %v1235_v54 = vunpack.c.2.s8 %v275_v42  ;;  %v1255_v55 = vunpack.c.3.s8 %v275_v42 }
  0x20   :  { %3633 = vmatpush.bf16.msra.mxu2 %v3395_v48  ;;  %v2195_v56 = vcvt.s32.f32 %v915_v50  ;;  %v2215_v57 = vcvt.s32.f32 %v935_v51  ;;  %v1555_v58 = vunpack.c.2.s8 %v355_v47  ;;  %v1575_v59 = vunpack.c.3.s8 %v355_v47 }
  0x21   :  { %3646 = vmatpush.bf16.msra.mxu3 %v3555_v52  ;;  %v3055_v60 = vpack.c.bf16 %v1895_v53, %v1875_v49  ;;  %v2515_v61 = vcvt.s32.f32 %v1235_v54  ;;  %v2535_v62 = vcvt.s32.f32 %v1255_v55  ;;  %v555_v63 = vunpack.c.0.s8 %v115_v28  ;;  %v75_v52 = vld [vmem:[#allocation5] sm:$0xff]  ;;  %v3595_v53 = vld [vmem:[#allocation2] sm:$0xf] }
  0x22   :  { %v3215_v0 = vpack.c.bf16 %v2215_v57, %v2195_v56  ;;  %v2835_v1 = vcvt.s32.f32 %v1555_v58  ;;  %v2855_v2 = vcvt.s32.f32 %v1575_v59  ;;  %v575_v3 = vunpack.c.1.s8 %v115_v28  ;;  %3597 = vst [vmem:[#allocation1] ss:$9 sm:$0xff] %v3595_v53 }
  0x23   :  { %3608 = vmatpush.bf16.msra.mxu0 %v3055_v60  ;;  %v3375_v4 = vpack.c.bf16 %v2535_v62, %v2515_v61  ;;  %v1835_v5 = vcvt.s32.f32 %v555_v63  ;;  %v875_v6 = vunpack.c.0.s8 %v195_v37  ;;  %v895_v7 = vunpack.c.1.s8 %v195_v37  ;;  %v155_v62 = vld [vmem:[#allocation5 + $0x280] sm:$0xff] }
  0x24   :  { %3621 = vmatpush.bf16.msra.mxu1 %v3215_v0  ;;  %v3535_v9 = vpack.c.bf16 %v2855_v2, %v2835_v1  ;;  %v1855_v10 = vcvt.s32.f32 %v575_v3  ;;  %v1195_v11 = vunpack.c.0.s8 %v275_v42  ;;  %v1215_v12 = vunpack.c.1.s8 %v275_v42  ;;  %v235_v3 = vld [vmem:[#allocation5 + $0x500] sm:$0xff] }
  0x25   :  { %3634 = vmatpush.bf16.msra.mxu2 %v3375_v4  ;;  %v2155_v13 = vcvt.s32.f32 %v875_v6  ;;  %v2175_v14 = vcvt.s32.f32 %v895_v7  ;;  %v1515_v15 = vunpack.c.0.s8 %v355_v47  ;;  %v1535_v16 = vunpack.c.1.s8 %v355_v47 }
  0x26   :  { %3647 = vmatpush.bf16.msra.mxu3 %v3535_v9  ;;  %v3035_v18 = vpack.c.bf16 %v1855_v10, %v1835_v5  ;;  %v2475_v19 = vcvt.s32.f32 %v1195_v11  ;;  %v2495_v20 = vcvt.s32.f32 %v1215_v12  ;;  %v515_v21 = vunpack.c.2.s8 %v95_v8 }
  0x27   :  { %v3195_v23 = vpack.c.bf16 %v2175_v14, %v2155_v13  ;;  %v2795_v24 = vcvt.s32.f32 %v1515_v15  ;;  %v2815_v25 = vcvt.s32.f32 %v1535_v16  ;;  %v535_v26 = vunpack.c.3.s8 %v95_v8 }
  0x28   :  { %3609 = vmatpush.bf16.msra.mxu0 %v3035_v18  ;;  %v3355_v28 = vpack.c.bf16 %v2495_v20, %v2475_v19  ;;  %v1795_v29 = vcvt.s32.f32 %v515_v21  ;;  %v835_v30 = vunpack.c.2.s8 %v175_v17  ;;  %v855_v31 = vunpack.c.3.s8 %v175_v17 }
  0x29   :  { %3622 = vmatpush.bf16.msra.mxu1 %v3195_v23  ;;  %v3515_v32 = vpack.c.bf16 %v2815_v25, %v2795_v24  ;;  %v1815_v33 = vcvt.s32.f32 %v535_v26  ;;  %v1155_v34 = vunpack.c.2.s8 %v255_v22  ;;  %v1175_v35 = vunpack.c.3.s8 %v255_v22 }
  0x2a   :  { %3635 = vmatpush.bf16.msra.mxu2 %v3355_v28  ;;  %v2115_v36 = vcvt.s32.f32 %v835_v30  ;;  %v2135_v37 = vcvt.s32.f32 %v855_v31  ;;  %v1475_v38 = vunpack.c.2.s8 %v335_v27  ;;  %v1495_v39 = vunpack.c.3.s8 %v335_v27 }
  0x2b   :  { %3648 = vmatpush.bf16.msra.mxu3 %v3515_v32  ;;  %v3015_v40 = vpack.c.bf16 %v1815_v33, %v1795_v29  ;;  %v2435_v41 = vcvt.s32.f32 %v1155_v34  ;;  %v2455_v42 = vcvt.s32.f32 %v1175_v35  ;;  %v475_v43 = vunpack.c.0.s8 %v95_v8  ;;  %v136_v33 = vld [vmem:[#allocation5 + $0x1e8] sm:$0xff] }
  0x2c   :  { %v3175_v44 = vpack.c.bf16 %v2135_v37, %v2115_v36  ;;  %v2755_v45 = vcvt.s32.f32 %v1475_v38  ;;  %v2775_v46 = vcvt.s32.f32 %v1495_v39  ;;  %v495_v47 = vunpack.c.1.s8 %v95_v8  ;;  %v315_v8 = vld [vmem:[#allocation5 + $0x780] sm:$0xff] }
  0x2d   :  { %3610 = vmatpush.bf16.msra.mxu0 %v3015_v40  ;;  %v3335_v48 = vpack.c.bf16 %v2455_v42, %v2435_v41  ;;  %v1755_v49 = vcvt.s32.f32 %v475_v43  ;;  %v795_v50 = vunpack.c.0.s8 %v175_v17  ;;  %v815_v51 = vunpack.c.1.s8 %v175_v17  ;;  %v216_v42 = vld [vmem:[#allocation5 + $0x468] sm:$0xff] }
  0x2e   :  { %3623 = vmatpush.bf16.msra.mxu1 %v3175_v44  ;;  %v3495_v54 = vpack.c.bf16 %v2775_v46, %v2755_v45  ;;  %v1775_v55 = vcvt.s32.f32 %v495_v47  ;;  %v1115_v56 = vunpack.c.0.s8 %v255_v22  ;;  %v1135_v57 = vunpack.c.1.s8 %v255_v22  ;;  %v296_v47 = vld [vmem:[#allocation5 + $0x6e8] sm:$0xff] }
  0x2f   :  { %3636 = vmatpush.bf16.msra.mxu2 %v3335_v48  ;;  %v2075_v58 = vcvt.s32.f32 %v795_v50  ;;  %v2095_v59 = vcvt.s32.f32 %v815_v51  ;;  %v1435_v60 = vunpack.c.0.s8 %v335_v27  ;;  %v1455_v61 = vunpack.c.1.s8 %v335_v27 }
  0x30   :  { %3649 = vmatpush.bf16.msra.mxu3 %v3495_v54  ;;  %v2995_v63 = vpack.c.bf16 %v1775_v55, %v1755_v49  ;;  %v2395_v0 = vcvt.s32.f32 %v1115_v56  ;;  %v2415_v1 = vcvt.s32.f32 %v1135_v57  ;;  %v435_v2 = vunpack.c.2.s8 %v75_v52  ;;  %v5071_v57 = vld [vmem:[#allocation1] sm:$0xff] }
  0x31   :  { %v3155_v4 = vpack.c.bf16 %v2095_v59, %v2075_v58  ;;  %v2715_v5 = vcvt.s32.f32 %v1435_v60  ;;  %v2735_v6 = vcvt.s32.f32 %v1455_v61  ;;  %v455_v7 = vunpack.c.3.s8 %v75_v52 }
  0x32   :  { %3611 = vmatpush.bf16.msra.mxu0 %v2995_v63  ;;  %v3315_v9 = vpack.c.bf16 %v2415_v1, %v2395_v0  ;;  %v1715_v10 = vcvt.s32.f32 %v435_v2  ;;  %v755_v11 = vunpack.c.2.s8 %v155_v62  ;;  %v775_v12 = vunpack.c.3.s8 %v155_v62 }
  0x33   :  { %3624 = vmatpush.bf16.msra.mxu1 %v3155_v4  ;;  %v3475_v13 = vpack.c.bf16 %v2735_v6, %v2715_v5  ;;  %v1735_v14 = vcvt.s32.f32 %v455_v7  ;;  %v1075_v15 = vunpack.c.2.s8 %v235_v3  ;;  %v1095_v16 = vunpack.c.3.s8 %v235_v3 }
  0x34   :  { %3637 = vmatpush.bf16.msra.mxu2 %v3315_v9  ;;  %v2035_v17 = vcvt.s32.f32 %v755_v11  ;;  %v2055_v18 = vcvt.s32.f32 %v775_v12  ;;  %v1395_v19 = vunpack.c.2.s8 %v315_v8  ;;  %v1415_v20 = vunpack.c.3.s8 %v315_v8 }
  0x35   :  { %3650 = vmatpush.bf16.msra.mxu3 %v3475_v13  ;;  %v2975_v21 = vpack.c.bf16 %v1735_v14, %v1715_v10  ;;  %v2355_v22 = vcvt.s32.f32 %v1075_v15  ;;  %v2375_v23 = vcvt.s32.f32 %v1095_v16  ;;  %v395_v24 = vunpack.c.0.s8 %v75_v52 }
  0x36   :  { %v3135_v25 = vpack.c.bf16 %v2055_v18, %v2035_v17  ;;  %v2675_v26 = vcvt.s32.f32 %v1395_v19  ;;  %v2695_v27 = vcvt.s32.f32 %v1415_v20  ;;  %v415_v28 = vunpack.c.1.s8 %v75_v52  ;;  %v376_v52 = vld [vmem:[#allocation5 + $0x968] sm:$0xff] }
  0x37   :  { %3612 = vmatpush.bf16.msra.mxu0 %v2975_v21  ;;  %v3295_v29 = vpack.c.bf16 %v2375_v23, %v2355_v22  ;;  %v1675_v30 = vcvt.s32.f32 %v395_v24  ;;  %v715_v31 = vunpack.c.0.s8 %v155_v62  ;;  %v735_v32 = vunpack.c.1.s8 %v155_v62  ;;  %v5073_v62 = vld [vmem:[#allocation1 + $0x9] sm:$0xff]  ;;  %v116_v17 = vld [vmem:[#allocation5 + $0x148] sm:$0xff] }
  0x38   :  { %3625 = vmatpush.bf16.msra.mxu1 %v3135_v25  ;;  %v3455_v34 = vpack.c.bf16 %v2695_v27, %v2675_v26  ;;  %v1695_v35 = vcvt.s32.f32 %v415_v28  ;;  %v1035_v36 = vunpack.c.0.s8 %v235_v3  ;;  %v1055_v37 = vunpack.c.1.s8 %v235_v3  ;;  %v5075_v3 = vld [vmem:[#allocation1 + $0x12] sm:$0xff] }
  0x39   :  { %3638 = vmatpush.bf16.msra.mxu2 %v3295_v29  ;;  %v1995_v38 = vcvt.s32.f32 %v715_v31  ;;  %v2015_v39 = vcvt.s32.f32 %v735_v32  ;;  %v1355_v40 = vunpack.c.0.s8 %v315_v8  ;;  %v1375_v41 = vunpack.c.1.s8 %v315_v8  ;;  %v5077_v8 = vld [vmem:[#allocation1 + $0x1b] sm:$0xff] }
  0x3a   :  { %3651 = vmatpush.bf16.msra.mxu3 %v3455_v34  ;;  %v2955_v43 = vpack.c.bf16 %v1695_v35, %v1675_v30  ;;  %v2315_v44 = vcvt.s32.f32 %v1035_v36  ;;  %v2335_v45 = vcvt.s32.f32 %v1055_v37  ;;  %v676_v46 = vunpack.c.2.s8 %v136_v33  ;;  %v196_v26 = vld [vmem:[#allocation5 + $0x3c8] sm:$0xff] }
  0x3b   :  { %v3115_v48 = vpack.c.bf16 %v2015_v39, %v1995_v38  ;;  %v2635_v49 = vcvt.s32.f32 %v1355_v40  ;;  %v2655_v50 = vcvt.s32.f32 %v1375_v41  ;;  %v696_v51 = vunpack.c.3.s8 %v136_v33  ;;  %v276_v31 = vld [vmem:[#allocation5 + $0x648] sm:$0xff] }
  0x3c   :  { %3613 = vmatpush.bf16.msra.mxu0 %v2955_v43  ;;  %v3275_v53 = vpack.c.bf16 %v2335_v45, %v2315_v44  ;;  %v1956_v54 = vcvt.s32.f32 %v676_v46  ;;  %v996_v55 = vunpack.c.2.s8 %v216_v42  ;;  %v1016_v56 = vunpack.c.3.s8 %v216_v42  ;;  %v356_v36 = vld [vmem:[#allocation5 + $0x8c8] sm:$0xff] }
  0x3d   :  { %3626 = vmatpush.bf16.msra.mxu1 %v3115_v48  ;;  %v3435_v58 = vpack.c.bf16 %v2655_v50, %v2635_v49  ;;  %v1976_v59 = vcvt.s32.f32 %v696_v51  ;;  %v1316_v60 = vunpack.c.2.s8 %v296_v47  ;;  %v1336_v61 = vunpack.c.3.s8 %v296_v47 }
  0x3e   :  { %3639 = vmatpush.bf16.msra.mxu2 %v3275_v53  ;;  %v2276_v63 = vcvt.s32.f32 %v996_v55  ;;  %v2296_v0 = vcvt.s32.f32 %v1016_v56  ;;  %v1636_v1 = vunpack.c.2.s8 %v376_v52  ;;  %v1656_v2 = vunpack.c.3.s8 %v376_v52 }
  0x3f   :  { %3652 = vmatpush.bf16.msra.mxu3 %v3435_v58  ;;  %v3096_v4 = vpack.c.bf16 %v1976_v59, %v1956_v54  ;;  %v2596_v5 = vcvt.s32.f32 %v1316_v60  ;;  %v2616_v6 = vcvt.s32.f32 %v1336_v61  ;;  %v636_v7 = vunpack.c.0.s8 %v136_v33  ;;  %3614 = vmatmul.bf16.vlgmr.msra.gmra.mxu0 %v5071_v57 }
  0x40   :  { %v3256_v9 = vpack.c.bf16 %v2296_v0, %v2276_v63  ;;  %v2916_v10 = vcvt.s32.f32 %v1636_v1  ;;  %v2936_v11 = vcvt.s32.f32 %v1656_v2  ;;  %v656_v12 = vunpack.c.1.s8 %v136_v33  ;;  %3627 = vmatmul.bf16.vlgmr.msra.gmra.mxu1 %v5073_v62  ;;  %v96_v63 = vld [vmem:[#allocation5 + $0xa8] sm:$0xff] }
  0x41   :  { %3658 = vmatpush.bf16.msrb.mxu0 %v3096_v4  ;;  %v3416_v13 = vpack.c.bf16 %v2616_v6, %v2596_v5  ;;  %v1916_v14 = vcvt.s32.f32 %v636_v7  ;;  %v956_v15 = vunpack.c.0.s8 %v216_v42  ;;  %v976_v16 = vunpack.c.1.s8 %v216_v42  ;;  %3640 = vmatmul.bf16.vlgmr.msra.gmra.mxu2 %v5075_v3 }
  0x42   :  { %3671 = vmatpush.bf16.msrb.mxu1 %v3256_v9  ;;  %v3576_v18 = vpack.c.bf16 %v2936_v11, %v2916_v10  ;;  %v1936_v19 = vcvt.s32.f32 %v656_v12  ;;  %v1276_v20 = vunpack.c.0.s8 %v296_v47  ;;  %v1296_v21 = vunpack.c.1.s8 %v296_v47  ;;  %3653 = vmatmul.bf16.vlgmr.msra.gmra.mxu3 %v5077_v8  ;;  %v176_v10 = vld [vmem:[#allocation5 + $0x328] sm:$0xff] }
  0x43   :  { %3684 = vmatpush.bf16.msrb.mxu2 %v3416_v13  ;;  %v2236_v22 = vcvt.s32.f32 %v956_v15  ;;  %v2256_v23 = vcvt.s32.f32 %v976_v16  ;;  %v1596_v24 = vunpack.c.0.s8 %v376_v52  ;;  %v1616_v25 = vunpack.c.1.s8 %v376_v52  ;;  %v256_v15 = vld [vmem:[#allocation5 + $0x5a8] sm:$0xff] }
  0x44   :  { %3697 = vmatpush.bf16.msrb.mxu3 %v3576_v18  ;;  %v3076_v27 = vpack.c.bf16 %v1936_v19, %v1916_v14  ;;  %v2556_v28 = vcvt.s32.f32 %v1276_v20  ;;  %v2576_v29 = vcvt.s32.f32 %v1296_v21  ;;  %v596_v30 = vunpack.c.2.s8 %v116_v17  ;;  %v336_v20 = vld [vmem:[#allocation5 + $0x828] sm:$0xff] }
  0x45   :  { %v3236_v32 = vpack.c.bf16 %v2256_v23, %v2236_v22  ;;  %v2876_v33 = vcvt.s32.f32 %v1596_v24  ;;  %v2896_v34 = vcvt.s32.f32 %v1616_v25  ;;  %v616_v35 = vunpack.c.3.s8 %v116_v17 }
  0x46   :  { %3659 = vmatpush.bf16.msrb.mxu0 %v3076_v27  ;;  %v3396_v37 = vpack.c.bf16 %v2576_v29, %v2556_v28  ;;  %v1876_v38 = vcvt.s32.f32 %v596_v30  ;;  %v916_v39 = vunpack.c.2.s8 %v196_v26  ;;  %v936_v40 = vunpack.c.3.s8 %v196_v26 }
  0x47   :  { %3672 = vmatpush.bf16.msrb.mxu1 %v3236_v32  ;;  %v3556_v41 = vpack.c.bf16 %v2896_v34, %v2876_v33  ;;  %v1896_v42 = vcvt.s32.f32 %v616_v35  ;;  %v1236_v43 = vunpack.c.2.s8 %v276_v31  ;;  %v1256_v44 = vunpack.c.3.s8 %v276_v31 }
  0x48   :  { %3685 = vmatpush.bf16.msrb.mxu2 %v3396_v37  ;;  %v2196_v45 = vcvt.s32.f32 %v916_v39  ;;  %v2216_v46 = vcvt.s32.f32 %v936_v40  ;;  %v1556_v47 = vunpack.c.2.s8 %v356_v36  ;;  %v1576_v48 = vunpack.c.3.s8 %v356_v36 }
  0x49   :  { %3698 = vmatpush.bf16.msrb.mxu3 %v3556_v41  ;;  %v3056_v49 = vpack.c.bf16 %v1896_v42, %v1876_v38  ;;  %v2516_v50 = vcvt.s32.f32 %v1236_v43  ;;  %v2536_v51 = vcvt.s32.f32 %v1256_v44  ;;  %v556_v52 = vunpack.c.0.s8 %v116_v17 }
  0x4a   :  { %v3216_v53 = vpack.c.bf16 %v2216_v46, %v2196_v45  ;;  %v2836_v54 = vcvt.s32.f32 %v1556_v47  ;;  %v2856_v55 = vcvt.s32.f32 %v1576_v48  ;;  %v576_v56 = vunpack.c.1.s8 %v116_v17  ;;  %v76_v45 = vld [vmem:[#allocation5 + $0x8] sm:$0xff] }
  0x4b   :  { %3660 = vmatpush.bf16.msrb.mxu0 %v3056_v49  ;;  %v3376_v58 = vpack.c.bf16 %v2536_v51, %v2516_v50  ;;  %v1836_v59 = vcvt.s32.f32 %v556_v52  ;;  %v876_v60 = vunpack.c.0.s8 %v196_v26  ;;  %v896_v61 = vunpack.c.1.s8 %v196_v26 }
  0x4c   :  { %3673 = vmatpush.bf16.msrb.mxu1 %v3216_v53  ;;  %v3536_v0 = vpack.c.bf16 %v2856_v55, %v2836_v54  ;;  %v1856_v1 = vcvt.s32.f32 %v576_v56  ;;  %v1196_v2 = vunpack.c.0.s8 %v276_v31  ;;  %v1216_v4 = vunpack.c.1.s8 %v276_v31  ;;  %v156_v54 = vld [vmem:[#allocation5 + $0x288] sm:$0xff] }
  0x4d   :  { %3686 = vmatpush.bf16.msrb.mxu2 %v3376_v58  ;;  %v2156_v5 = vcvt.s32.f32 %v876_v60  ;;  %v2176_v6 = vcvt.s32.f32 %v896_v61  ;;  %v1516_v7 = vunpack.c.0.s8 %v356_v36  ;;  %v1536_v9 = vunpack.c.1.s8 %v356_v36  ;;  %v236_v60 = vld [vmem:[#allocation5 + $0x508] sm:$0xff] }
  0x4e   :  { %3699 = vmatpush.bf16.msrb.mxu3 %v3536_v0  ;;  %v3036_v11 = vpack.c.bf16 %v1856_v1, %v1836_v59  ;;  %v2476_v12 = vcvt.s32.f32 %v1196_v2  ;;  %v2496_v13 = vcvt.s32.f32 %v1216_v4  ;;  %v516_v14 = vunpack.c.2.s8 %v96_v63  ;;  %v316_v2 = vld [vmem:[#allocation5 + $0x788] sm:$0xff] }
  0x4f   :  { %v3196_v16 = vpack.c.bf16 %v2176_v6, %v2156_v5  ;;  %v2796_v17 = vcvt.s32.f32 %v1516_v7  ;;  %v2816_v18 = vcvt.s32.f32 %v1536_v9  ;;  %v536_v19 = vunpack.c.3.s8 %v96_v63 }
  0x50   :  { %3661 = vmatpush.bf16.msrb.mxu0 %v3036_v11  ;;  %v3356_v21 = vpack.c.bf16 %v2496_v13, %v2476_v12  ;;  %v1796_v22 = vcvt.s32.f32 %v516_v14  ;;  %v836_v23 = vunpack.c.2.s8 %v176_v10  ;;  %v856_v24 = vunpack.c.3.s8 %v176_v10 }
  0x51   :  { %3674 = vmatpush.bf16.msrb.mxu1 %v3196_v16  ;;  %v3516_v25 = vpack.c.bf16 %v2816_v18, %v2796_v17  ;;  %v1816_v26 = vcvt.s32.f32 %v536_v19  ;;  %v1156_v27 = vunpack.c.2.s8 %v256_v15  ;;  %v1176_v28 = vunpack.c.3.s8 %v256_v15 }
  0x52   :  { %3687 = vmatpush.bf16.msrb.mxu2 %v3356_v21  ;;  %v2116_v29 = vcvt.s32.f32 %v836_v23  ;;  %v2136_v30 = vcvt.s32.f32 %v856_v24  ;;  %v1476_v31 = vunpack.c.2.s8 %v336_v20  ;;  %v1496_v32 = vunpack.c.3.s8 %v336_v20 }
  0x53   :  { %3700 = vmatpush.bf16.msrb.mxu3 %v3516_v25  ;;  %v3016_v33 = vpack.c.bf16 %v1816_v26, %v1796_v22  ;;  %v2436_v34 = vcvt.s32.f32 %v1156_v27  ;;  %v2456_v35 = vcvt.s32.f32 %v1176_v28  ;;  %v476_v36 = vunpack.c.0.s8 %v96_v63 }
  0x54   :  { %v3176_v37 = vpack.c.bf16 %v2136_v30, %v2116_v29  ;;  %v2756_v38 = vcvt.s32.f32 %v1476_v31  ;;  %v2776_v39 = vcvt.s32.f32 %v1496_v32  ;;  %v496_v40 = vunpack.c.1.s8 %v96_v63  ;;  %v137_v29 = vld [vmem:[#allocation5 + $0x1f0] sm:$0xff] }
  0x55   :  { %3662 = vmatpush.bf16.msrb.mxu0 %v3016_v33  ;;  %v3336_v41 = vpack.c.bf16 %v2456_v35, %v2436_v34  ;;  %v1756_v42 = vcvt.s32.f32 %v476_v36  ;;  %v796_v43 = vunpack.c.0.s8 %v176_v10  ;;  %v816_v44 = vunpack.c.1.s8 %v176_v10 }
  0x56   :  { %3675 = vmatpush.bf16.msrb.mxu1 %v3176_v37  ;;  %v3496_v46 = vpack.c.bf16 %v2776_v39, %v2756_v38  ;;  %v1776_v47 = vcvt.s32.f32 %v496_v40  ;;  %v1116_v48 = vunpack.c.0.s8 %v256_v15  ;;  %v1136_v49 = vunpack.c.1.s8 %v256_v15  ;;  %v217_v38 = vld [vmem:[#allocation5 + $0x470] sm:$0xff] }
  0x57   :  { %3688 = vmatpush.bf16.msrb.mxu2 %v3336_v41  ;;  %v2076_v50 = vcvt.s32.f32 %v796_v43  ;;  %v2096_v51 = vcvt.s32.f32 %v816_v44  ;;  %v1436_v52 = vunpack.c.0.s8 %v336_v20  ;;  %v1456_v53 = vunpack.c.1.s8 %v336_v20  ;;  %v297_v43 = vld [vmem:[#allocation5 + $0x6f0] sm:$0xff] }
  0x58   :  { %3701 = vmatpush.bf16.msrb.mxu3 %v3496_v46  ;;  %v2996_v55 = vpack.c.bf16 %v1776_v47, %v1756_v42  ;;  %v2396_v56 = vcvt.s32.f32 %v1116_v48  ;;  %v2416_v58 = vcvt.s32.f32 %v1136_v49  ;;  %v436_v59 = vunpack.c.2.s8 %v76_v45  ;;  %v377_v48 = vld [vmem:[#allocation5 + $0x970] sm:$0xff] }
  0x59   :  { %v3156_v61 = vpack.c.bf16 %v2096_v51, %v2076_v50  ;;  %v2716_v63 = vcvt.s32.f32 %v1436_v52  ;;  %v2736_v0 = vcvt.s32.f32 %v1456_v53  ;;  %v456_v1 = vunpack.c.3.s8 %v76_v45 }
  0x5a   :  { %3663 = vmatpush.bf16.msrb.mxu0 %v2996_v55  ;;  %v3316_v4 = vpack.c.bf16 %v2416_v58, %v2396_v56  ;;  %v1716_v5 = vcvt.s32.f32 %v436_v59  ;;  %v756_v6 = vunpack.c.2.s8 %v156_v54  ;;  %v776_v7 = vunpack.c.3.s8 %v156_v54 }
  0x5b   :  { %3676 = vmatpush.bf16.msrb.mxu1 %v3156_v61  ;;  %v3476_v9 = vpack.c.bf16 %v2736_v0, %v2716_v63  ;;  %v1736_v10 = vcvt.s32.f32 %v456_v1  ;;  %v1076_v11 = vunpack.c.2.s8 %v236_v60  ;;  %v1096_v12 = vunpack.c.3.s8 %v236_v60 }
  0x5c   :  { %3689 = vmatpush.bf16.msrb.mxu2 %v3316_v4  ;;  %v2036_v13 = vcvt.s32.f32 %v756_v6  ;;  %v2056_v14 = vcvt.s32.f32 %v776_v7  ;;  %v1396_v15 = vunpack.c.2.s8 %v316_v2  ;;  %v1416_v16 = vunpack.c.3.s8 %v316_v2 }
  0x5d   :  { %3702 = vmatpush.bf16.msrb.mxu3 %v3476_v9  ;;  %v2976_v17 = vpack.c.bf16 %v1736_v10, %v1716_v5  ;;  %v2356_v18 = vcvt.s32.f32 %v1076_v11  ;;  %v2376_v19 = vcvt.s32.f32 %v1096_v12  ;;  %v396_v20 = vunpack.c.0.s8 %v76_v45 }
  0x5e   :  { %v3136_v21 = vpack.c.bf16 %v2056_v14, %v2036_v13  ;;  %v2676_v22 = vcvt.s32.f32 %v1396_v15  ;;  %v2696_v23 = vcvt.s32.f32 %v1416_v16  ;;  %v416_v24 = vunpack.c.1.s8 %v76_v45  ;;  %v117_v13 = vld [vmem:[#allocation5 + $0x150] sm:$0xff] }
  0x5f   :  { %3664 = vmatpush.bf16.msrb.mxu0 %v2976_v17  ;;  %v3296_v25 = vpack.c.bf16 %v2376_v19, %v2356_v18  ;;  %v1676_v26 = vcvt.s32.f32 %v396_v20  ;;  %v716_v27 = vunpack.c.0.s8 %v156_v54  ;;  %v736_v28 = vunpack.c.1.s8 %v156_v54 }
  0x60   :  { %3677 = vmatpush.bf16.msrb.mxu1 %v3136_v21  ;;  %v3456_v30 = vpack.c.bf16 %v2696_v23, %v2676_v22  ;;  %v1696_v31 = vcvt.s32.f32 %v416_v24  ;;  %v1036_v32 = vunpack.c.0.s8 %v236_v60  ;;  %v1056_v33 = vunpack.c.1.s8 %v236_v60  ;;  %v197_v22 = vld [vmem:[#allocation5 + $0x3d0] sm:$0xff] }
  0x61   :  { %3690 = vmatpush.bf16.msrb.mxu2 %v3296_v25  ;;  %v1996_v34 = vcvt.s32.f32 %v716_v27  ;;  %v2016_v35 = vcvt.s32.f32 %v736_v28  ;;  %v1356_v36 = vunpack.c.0.s8 %v316_v2  ;;  %v1376_v37 = vunpack.c.1.s8 %v316_v2  ;;  %v277_v27 = vld [vmem:[#allocation5 + $0x650] sm:$0xff] }
  0x62   :  { %3703 = vmatpush.bf16.msrb.mxu3 %v3456_v30  ;;  %v2956_v39 = vpack.c.bf16 %v1696_v31, %v1676_v26  ;;  %v2316_v40 = vcvt.s32.f32 %v1036_v32  ;;  %v2336_v41 = vcvt.s32.f32 %v1056_v33  ;;  %v677_v42 = vunpack.c.2.s8 %v137_v29  ;;  %v357_v32 = vld [vmem:[#allocation5 + $0x8d0] sm:$0xff] }
  0x63   :  { %v3116_v44 = vpack.c.bf16 %v2016_v35, %v1996_v34  ;;  %v2636_v45 = vcvt.s32.f32 %v1356_v36  ;;  %v2656_v46 = vcvt.s32.f32 %v1376_v37  ;;  %v697_v47 = vunpack.c.3.s8 %v137_v29 }
  0x64   :  { %3665 = vmatpush.bf16.msrb.mxu0 %v2956_v39  ;;  %v3276_v49 = vpack.c.bf16 %v2336_v41, %v2316_v40  ;;  %v1957_v50 = vcvt.s32.f32 %v677_v42  ;;  %v997_v51 = vunpack.c.2.s8 %v217_v38  ;;  %v1017_v52 = vunpack.c.3.s8 %v217_v38 }
  0x65   :  { %3678 = vmatpush.bf16.msrb.mxu1 %v3116_v44  ;;  %v3436_v53 = vpack.c.bf16 %v2656_v46, %v2636_v45  ;;  %v1977_v54 = vcvt.s32.f32 %v697_v47  ;;  %v1317_v55 = vunpack.c.2.s8 %v297_v43  ;;  %v1337_v56 = vunpack.c.3.s8 %v297_v43 }
  0x66   :  { %3691 = vmatpush.bf16.msrb.mxu2 %v3276_v49  ;;  %v2277_v58 = vcvt.s32.f32 %v997_v51  ;;  %v2297_v59 = vcvt.s32.f32 %v1017_v52  ;;  %v1637_v60 = vunpack.c.2.s8 %v377_v48  ;;  %v1657_v61 = vunpack.c.3.s8 %v377_v48 }
  0x67   :  { %3704 = vmatpush.bf16.msrb.mxu3 %v3436_v53  ;;  %v3097_v63 = vpack.c.bf16 %v1977_v54, %v1957_v50  ;;  %v2597_v0 = vcvt.s32.f32 %v1317_v55  ;;  %v2617_v1 = vcvt.s32.f32 %v1337_v56  ;;  %v637_v2 = vunpack.c.0.s8 %v137_v29  ;;  %3666 = vmatmul.bf16.vlgmr.msrb.gmra.mxu0 %v5071_v57 }
  0x68   :  { %v3257_v4 = vpack.c.bf16 %v2297_v59, %v2277_v58  ;;  %v2917_v5 = vcvt.s32.f32 %v1637_v60  ;;  %v2937_v6 = vcvt.s32.f32 %v1657_v61  ;;  %v657_v7 = vunpack.c.1.s8 %v137_v29  ;;  %3679 = vmatmul.bf16.vlgmr.msrb.gmra.mxu1 %v5073_v62  ;;  %v97_v58 = vld [vmem:[#allocation5 + $0xb0] sm:$0xff] }
  0x69   :  { %3710 = vmatpush.bf16.msra.mxu0 %v3097_v63  ;;  %v3417_v9 = vpack.c.bf16 %v2617_v1, %v2597_v0  ;;  %3692 = vmatmul.bf16.vlgmr.msrb.gmra.mxu2 %v5075_v3  ;;  %v1917_v10 = vcvt.s32.f32 %v637_v2  ;;  %v957_v11 = vunpack.c.0.s8 %v217_v38  ;;  %v977_v12 = vunpack.c.1.s8 %v217_v38 }
  0x6a   :  { %3723 = vmatpush.bf16.msra.mxu1 %v3257_v4  ;;  %v3577_v14 = vpack.c.bf16 %v2937_v6, %v2917_v5  ;;  %3705 = vmatmul.bf16.vlgmr.msrb.gmra.mxu3 %v5077_v8  ;;  %v1937_v15 = vcvt.s32.f32 %v657_v7  ;;  %v1277_v16 = vunpack.c.0.s8 %v297_v43  ;;  %v1297_v17 = vunpack.c.1.s8 %v297_v43  ;;  %v177_v5 = vld [vmem:[#allocation5 + $0x330] sm:$0xff] }
  0x6b   :  { %3736 = vmatpush.bf16.msra.mxu2 %v3417_v9  ;;  %v2237_v18 = vcvt.s32.f32 %v957_v11  ;;  %v2257_v19 = vcvt.s32.f32 %v977_v12  ;;  %v1597_v20 = vunpack.c.0.s8 %v377_v48  ;;  %v1617_v21 = vunpack.c.1.s8 %v377_v48  ;;  %v257_v11 = vld [vmem:[#allocation5 + $0x5b0] sm:$0xff] }
  0x6c   :  { %3749 = vmatpush.bf16.msra.mxu3 %v3577_v14  ;;  %v3077_v23 = vpack.c.bf16 %v1937_v15, %v1917_v10  ;;  %v2557_v24 = vcvt.s32.f32 %v1277_v16  ;;  %v2577_v25 = vcvt.s32.f32 %v1297_v17  ;;  %v597_v26 = vunpack.c.2.s8 %v117_v13  ;;  %v337_v16 = vld [vmem:[#allocation5 + $0x830] sm:$0xff] }
  0x6d   :  { %v3237_v28 = vpack.c.bf16 %v2257_v19, %v2237_v18  ;;  %v2877_v29 = vcvt.s32.f32 %v1597_v20  ;;  %v2897_v30 = vcvt.s32.f32 %v1617_v21  ;;  %v617_v31 = vunpack.c.3.s8 %v117_v13 }
  0x6e   :  { %3711 = vmatpush.bf16.msra.mxu0 %v3077_v23  ;;  %v3397_v33 = vpack.c.bf16 %v2577_v25, %v2557_v24  ;;  %v1877_v34 = vcvt.s32.f32 %v597_v26  ;;  %v917_v35 = vunpack.c.2.s8 %v197_v22  ;;  %v937_v36 = vunpack.c.3.s8 %v197_v22 }
  0x6f   :  { %3724 = vmatpush.bf16.msra.mxu1 %v3237_v28  ;;  %v3557_v37 = vpack.c.bf16 %v2897_v30, %v2877_v29  ;;  %v1897_v38 = vcvt.s32.f32 %v617_v31  ;;  %v1237_v39 = vunpack.c.2.s8 %v277_v27  ;;  %v1257_v40 = vunpack.c.3.s8 %v277_v27 }
  0x70   :  { %3737 = vmatpush.bf16.msra.mxu2 %v3397_v33  ;;  %v2197_v41 = vcvt.s32.f32 %v917_v35  ;;  %v2217_v42 = vcvt.s32.f32 %v937_v36  ;;  %v1557_v43 = vunpack.c.2.s8 %v357_v32  ;;  %v1577_v44 = vunpack.c.3.s8 %v357_v32 }
  0x71   :  { %3750 = vmatpush.bf16.msra.mxu3 %v3557_v37  ;;  %v3057_v45 = vpack.c.bf16 %v1897_v38, %v1877_v34  ;;  %v2517_v46 = vcvt.s32.f32 %v1237_v39  ;;  %v2537_v47 = vcvt.s32.f32 %v1257_v40  ;;  %v557_v48 = vunpack.c.0.s8 %v117_v13 }
  0x72   :  { %v3217_v49 = vpack.c.bf16 %v2217_v42, %v2197_v41  ;;  %v2837_v50 = vcvt.s32.f32 %v1557_v43  ;;  %v2857_v51 = vcvt.s32.f32 %v1577_v44  ;;  %v577_v52 = vunpack.c.1.s8 %v117_v13  ;;  %v77_v41 = vld [vmem:[#allocation5 + $0x10] sm:$0xff] }
  0x73   :  { %3712 = vmatpush.bf16.msra.mxu0 %v3057_v45  ;;  %v3377_v53 = vpack.c.bf16 %v2537_v47, %v2517_v46  ;;  %v1837_v54 = vcvt.s32.f32 %v557_v48  ;;  %v877_v55 = vunpack.c.0.s8 %v197_v22  ;;  %v897_v56 = vunpack.c.1.s8 %v197_v22 }
  0x74   :  { %3725 = vmatpush.bf16.msra.mxu1 %v3217_v49  ;;  %v3537_v59 = vpack.c.bf16 %v2857_v51, %v2837_v50  ;;  %v1857_v60 = vcvt.s32.f32 %v577_v52  ;;  %v1197_v61 = vunpack.c.0.s8 %v277_v27  ;;  %v1217_v63 = vunpack.c.1.s8 %v277_v27  ;;  %v157_v50 = vld [vmem:[#allocation5 + $0x290] sm:$0xff] }
  0x75   :  { %3738 = vmatpush.bf16.msra.mxu2 %v3377_v53  ;;  %v2157_v0 = vcvt.s32.f32 %v877_v55  ;;  %v2177_v1 = vcvt.s32.f32 %v897_v56  ;;  %v1517_v2 = vunpack.c.0.s8 %v357_v32  ;;  %v1537_v4 = vunpack.c.1.s8 %v357_v32  ;;  %v237_v55 = vld [vmem:[#allocation5 + $0x510] sm:$0xff] }
  0x76   :  { %3751 = vmatpush.bf16.msra.mxu3 %v3537_v59  ;;  %v3037_v6 = vpack.c.bf16 %v1857_v60, %v1837_v54  ;;  %v2477_v7 = vcvt.s32.f32 %v1197_v61  ;;  %v2497_v9 = vcvt.s32.f32 %v1217_v63  ;;  %v517_v10 = vunpack.c.2.s8 %v97_v58  ;;  %v317_v61 = vld [vmem:[#allocation5 + $0x790] sm:$0xff] }
  0x77   :  { %v3197_v12 = vpack.c.bf16 %v2177_v1, %v2157_v0  ;;  %v2797_v13 = vcvt.s32.f32 %v1517_v2  ;;  %v2817_v14 = vcvt.s32.f32 %v1537_v4  ;;  %v537_v15 = vunpack.c.3.s8 %v97_v58 }
  0x78   :  { %3713 = vmatpush.bf16.msra.mxu0 %v3037_v6  ;;  %v3357_v17 = vpack.c.bf16 %v2497_v9, %v2477_v7  ;;  %v1797_v18 = vcvt.s32.f32 %v517_v10  ;;  %v837_v19 = vunpack.c.2.s8 %v177_v5  ;;  %v857_v20 = vunpack.c.3.s8 %v177_v5 }
  0x79   :  { %3726 = vmatpush.bf16.msra.mxu1 %v3197_v12  ;;  %v3517_v21 = vpack.c.bf16 %v2817_v14, %v2797_v13  ;;  %v1817_v22 = vcvt.s32.f32 %v537_v15  ;;  %v1157_v23 = vunpack.c.2.s8 %v257_v11  ;;  %v1177_v24 = vunpack.c.3.s8 %v257_v11 }
  0x7a   :  { %3739 = vmatpush.bf16.msra.mxu2 %v3357_v17  ;;  %v2117_v25 = vcvt.s32.f32 %v837_v19  ;;  %v2137_v26 = vcvt.s32.f32 %v857_v20  ;;  %v1477_v27 = vunpack.c.2.s8 %v337_v16  ;;  %v1497_v28 = vunpack.c.3.s8 %v337_v16 }
  0x7b   :  { %3752 = vmatpush.bf16.msra.mxu3 %v3517_v21  ;;  %v3017_v29 = vpack.c.bf16 %v1817_v22, %v1797_v18  ;;  %v2437_v30 = vcvt.s32.f32 %v1157_v23  ;;  %v2457_v31 = vcvt.s32.f32 %v1177_v24  ;;  %v477_v32 = vunpack.c.0.s8 %v97_v58 }
  0x7c   :  { %v3177_v33 = vpack.c.bf16 %v2137_v26, %v2117_v25  ;;  %v2757_v34 = vcvt.s32.f32 %v1477_v27  ;;  %v2777_v35 = vcvt.s32.f32 %v1497_v28  ;;  %v497_v36 = vunpack.c.1.s8 %v97_v58  ;;  %v138_v25 = vld [vmem:[#allocation5 + $0x1f8] sm:$0xff] }
  0x7d   :  { %3714 = vmatpush.bf16.msra.mxu0 %v3017_v29  ;;  %v3337_v37 = vpack.c.bf16 %v2457_v31, %v2437_v30  ;;  %v1757_v38 = vcvt.s32.f32 %v477_v32  ;;  %v797_v39 = vunpack.c.0.s8 %v177_v5  ;;  %v817_v40 = vunpack.c.1.s8 %v177_v5 }
  0x7e   :  { %3727 = vmatpush.bf16.msra.mxu1 %v3177_v33  ;;  %v3497_v42 = vpack.c.bf16 %v2777_v35, %v2757_v34  ;;  %v1777_v43 = vcvt.s32.f32 %v497_v36  ;;  %v1117_v44 = vunpack.c.0.s8 %v257_v11  ;;  %v1137_v45 = vunpack.c.1.s8 %v257_v11  ;;  %v218_v34 = vld [vmem:[#allocation5 + $0x478] sm:$0xff] }
  0x7f   :  { %3740 = vmatpush.bf16.msra.mxu2 %v3337_v37  ;;  %v2077_v46 = vcvt.s32.f32 %v797_v39  ;;  %v2097_v47 = vcvt.s32.f32 %v817_v40  ;;  %v1437_v48 = vunpack.c.0.s8 %v337_v16  ;;  %v1457_v49 = vunpack.c.1.s8 %v337_v16  ;;  %v298_v39 = vld [vmem:[#allocation5 + $0x6f8] sm:$0xff] }
  0x80   :  { %3753 = vmatpush.bf16.msra.mxu3 %v3497_v42  ;;  %v2997_v51 = vpack.c.bf16 %v1777_v43, %v1757_v38  ;;  %v2397_v52 = vcvt.s32.f32 %v1117_v44  ;;  %v2417_v53 = vcvt.s32.f32 %v1137_v45  ;;  %v437_v54 = vunpack.c.2.s8 %v77_v41  ;;  %v378_v44 = vld [vmem:[#allocation5 + $0x978] sm:$0xff] }
  0x81   :  { %v3157_v56 = vpack.c.bf16 %v2097_v47, %v2077_v46  ;;  %v2717_v58 = vcvt.s32.f32 %v1437_v48  ;;  %v2737_v59 = vcvt.s32.f32 %v1457_v49  ;;  %v457_v60 = vunpack.c.3.s8 %v77_v41 }
  0x82   :  { %3715 = vmatpush.bf16.msra.mxu0 %v2997_v51  ;;  %v3317_v63 = vpack.c.bf16 %v2417_v53, %v2397_v52  ;;  %v1717_v0 = vcvt.s32.f32 %v437_v54  ;;  %v757_v1 = vunpack.c.2.s8 %v157_v50  ;;  %v777_v2 = vunpack.c.3.s8 %v157_v50 }
  0x83   :  { %3728 = vmatpush.bf16.msra.mxu1 %v3157_v56  ;;  %v3477_v4 = vpack.c.bf16 %v2737_v59, %v2717_v58  ;;  %v1737_v5 = vcvt.s32.f32 %v457_v60  ;;  %v1077_v6 = vunpack.c.2.s8 %v237_v55  ;;  %v1097_v7 = vunpack.c.3.s8 %v237_v55 }
  0x84   :  { %3741 = vmatpush.bf16.msra.mxu2 %v3317_v63  ;;  %v2037_v9 = vcvt.s32.f32 %v757_v1  ;;  %v2057_v10 = vcvt.s32.f32 %v777_v2  ;;  %v1397_v11 = vunpack.c.2.s8 %v317_v61  ;;  %v1417_v12 = vunpack.c.3.s8 %v317_v61 }
  0x85   :  { %3754 = vmatpush.bf16.msra.mxu3 %v3477_v4  ;;  %v2977_v13 = vpack.c.bf16 %v1737_v5, %v1717_v0  ;;  %v2357_v14 = vcvt.s32.f32 %v1077_v6  ;;  %v2377_v15 = vcvt.s32.f32 %v1097_v7  ;;  %v397_v16 = vunpack.c.0.s8 %v77_v41 }
  0x86   :  { %v3137_v17 = vpack.c.bf16 %v2057_v10, %v2037_v9  ;;  %v2677_v18 = vcvt.s32.f32 %v1397_v11  ;;  %v2697_v19 = vcvt.s32.f32 %v1417_v12  ;;  %v417_v20 = vunpack.c.1.s8 %v77_v41  ;;  %v118_v9 = vld [vmem:[#allocation5 + $0x158] sm:$0xff] }
  0x87   :  { %3716 = vmatpush.bf16.msra.mxu0 %v2977_v13  ;;  %v3297_v21 = vpack.c.bf16 %v2377_v15, %v2357_v14  ;;  %v1677_v22 = vcvt.s32.f32 %v397_v16  ;;  %v717_v23 = vunpack.c.0.s8 %v157_v50  ;;  %v737_v24 = vunpack.c.1.s8 %v157_v50  ;;  %v198_v16 = vld [vmem:[#allocation5 + $0x3d8] sm:$0xff] }
  0x88   :  { %3729 = vmatpush.bf16.msra.mxu1 %v3137_v17  ;;  %v3457_v26 = vpack.c.bf16 %v2697_v19, %v2677_v18  ;;  %v1697_v27 = vcvt.s32.f32 %v417_v20  ;;  %v1037_v28 = vunpack.c.0.s8 %v237_v55  ;;  %v1057_v29 = vunpack.c.1.s8 %v237_v55 }
  0x89   :  { %3742 = vmatpush.bf16.msra.mxu2 %v3297_v21  ;;  %v1997_v30 = vcvt.s32.f32 %v717_v23  ;;  %v2017_v31 = vcvt.s32.f32 %v737_v24  ;;  %v1357_v32 = vunpack.c.0.s8 %v317_v61  ;;  %v1377_v33 = vunpack.c.1.s8 %v317_v61  ;;  %v278_v21 = vld [vmem:[#allocation5 + $0x658] sm:$0xff] }
  0x8a   :  { %3755 = vmatpush.bf16.msra.mxu3 %v3457_v26  ;;  %v2957_v35 = vpack.c.bf16 %v1697_v27, %v1677_v22  ;;  %v2317_v36 = vcvt.s32.f32 %v1037_v28  ;;  %v2337_v37 = vcvt.s32.f32 %v1057_v29  ;;  %v678_v38 = vunpack.c.2.s8 %v138_v25 }
  0x8b   :  { %v3117_v40 = vpack.c.bf16 %v2017_v31, %v1997_v30  ;;  %v2637_v41 = vcvt.s32.f32 %v1357_v32  ;;  %v2657_v42 = vcvt.s32.f32 %v1377_v33  ;;  %v698_v43 = vunpack.c.3.s8 %v138_v25 }
  0x8c   :  { %3717 = vmatpush.bf16.msra.mxu0 %v2957_v35  ;;  %v3277_v45 = vpack.c.bf16 %v2337_v37, %v2317_v36  ;;  %v1958_v46 = vcvt.s32.f32 %v678_v38  ;;  %v998_v47 = vunpack.c.2.s8 %v218_v34  ;;  %v1018_v48 = vunpack.c.3.s8 %v218_v34 }
  0x8d   :  { %3730 = vmatpush.bf16.msra.mxu1 %v3117_v40  ;;  %v3437_v49 = vpack.c.bf16 %v2657_v42, %v2637_v41  ;;  %v1978_v50 = vcvt.s32.f32 %v698_v43  ;;  %v1318_v51 = vunpack.c.2.s8 %v298_v39  ;;  %v1338_v52 = vunpack.c.3.s8 %v298_v39 }
  0x8e   :  { %3743 = vmatpush.bf16.msra.mxu2 %v3277_v45  ;;  %v2278_v53 = vcvt.s32.f32 %v998_v47  ;;  %v2298_v54 = vcvt.s32.f32 %v1018_v48  ;;  %v1638_v55 = vunpack.c.2.s8 %v378_v44  ;;  %v1658_v56 = vunpack.c.3.s8 %v378_v44 }
  0x8f   :  { %3756 = vmatpush.bf16.msra.mxu3 %v3437_v49  ;;  %v3098_v58 = vpack.c.bf16 %v1978_v50, %v1958_v46  ;;  %v2598_v59 = vcvt.s32.f32 %v1318_v51  ;;  %v2618_v60 = vcvt.s32.f32 %v1338_v52  ;;  %v638_v61 = vunpack.c.0.s8 %v138_v25  ;;  %3718 = vmatmul.bf16.vlgmr.msra.gmra.mxu0 %v5071_v57  ;;  %v98_v49 = vld [vmem:[#allocation5 + $0xb8] sm:$0xff] }
  0x90   :  { %v3258_v63 = vpack.c.bf16 %v2298_v54, %v2278_v53  ;;  %v2918_v0 = vcvt.s32.f32 %v1638_v55  ;;  %v2938_v1 = vcvt.s32.f32 %v1658_v56  ;;  %v658_v2 = vunpack.c.1.s8 %v138_v25  ;;  %3731 = vmatmul.bf16.vlgmr.msra.gmra.mxu1 %v5073_v62  ;;  %v358_v25 = vld [vmem:[#allocation5 + $0x8d8] sm:$0xff] }
  0x91   :  { %3762 = vmatpush.bf16.msrb.mxu0 %v3098_v58  ;;  %v3418_v4 = vpack.c.bf16 %v2618_v60, %v2598_v59  ;;  %v1918_v5 = vcvt.s32.f32 %v638_v61  ;;  %v958_v6 = vunpack.c.0.s8 %v218_v34  ;;  %v978_v7 = vunpack.c.1.s8 %v218_v34  ;;  %3744 = vmatmul.bf16.vlgmr.msra.gmra.mxu2 %v5075_v3  ;;  %v178_v59 = vld [vmem:[#allocation5 + $0x338] sm:$0xff] }
  0x92   :  { %3775 = vmatpush.bf16.msrb.mxu1 %v3258_v63  ;;  %v3578_v10 = vpack.c.bf16 %v2938_v1, %v2918_v0  ;;  %v1938_v11 = vcvt.s32.f32 %v658_v2  ;;  %v1278_v12 = vunpack.c.0.s8 %v298_v39  ;;  %v1298_v13 = vunpack.c.1.s8 %v298_v39  ;;  %3757 = vmatmul.bf16.vlgmr.msra.gmra.mxu3 %v5077_v8  ;;  %v258_v1 = vld [vmem:[#allocation5 + $0x5b8] sm:$0xff] }
  0x93   :  { %3788 = vmatpush.bf16.msrb.mxu2 %v3418_v4  ;;  %v2238_v57 = vcvt.s32.f32 %v958_v6  ;;  %v2258_v14 = vcvt.s32.f32 %v978_v7  ;;  %v1598_v15 = vunpack.c.0.s8 %v378_v44  ;;  %v1618_v62 = vunpack.c.1.s8 %v378_v44  ;;  %v338_v7 = vld [vmem:[#allocation5 + $0x838] sm:$0xff] }
  0x94   :  { %3801 = vmatpush.bf16.msrb.mxu3 %v3578_v10  ;;  %v3078_v17 = vpack.c.bf16 %v1938_v11, %v1918_v5  ;;  %v2558_v18 = vcvt.s32.f32 %v1278_v12  ;;  %v2578_v19 = vcvt.s32.f32 %v1298_v13  ;;  %v598_v20 = vunpack.c.2.s8 %v118_v9 }
  0x95   :  { %v3238_v3 = vpack.c.bf16 %v2258_v14, %v2238_v57  ;;  %v2878_v22 = vcvt.s32.f32 %v1598_v15  ;;  %v2898_v23 = vcvt.s32.f32 %v1618_v62  ;;  %v618_v24 = vunpack.c.3.s8 %v118_v9 }
  0x96   :  { %3763 = vmatpush.bf16.msrb.mxu0 %v3078_v17  ;;  %v3398_v26 = vpack.c.bf16 %v2578_v19, %v2558_v18  ;;  %v1878_v8 = vcvt.s32.f32 %v598_v20  ;;  %v918_v27 = vunpack.c.2.s8 %v198_v16  ;;  %v938_v28 = vunpack.c.3.s8 %v198_v16 }
  0x97   :  { %3776 = vmatpush.bf16.msrb.mxu1 %v3238_v3  ;;  %v3558_v29 = vpack.c.bf16 %v2898_v23, %v2878_v22  ;;  %v1898_v30 = vcvt.s32.f32 %v618_v24  ;;  %v1238_v31 = vunpack.c.2.s8 %v278_v21  ;;  %v1258_v32 = vunpack.c.3.s8 %v278_v21 }
  0x98   :  { %3789 = vmatpush.bf16.msrb.mxu2 %v3398_v26  ;;  %v2198_v33 = vcvt.s32.f32 %v918_v27  ;;  %v2218_v34 = vcvt.s32.f32 %v938_v28  ;;  %v1558_v35 = vunpack.c.2.s8 %v358_v25  ;;  %v1578_v36 = vunpack.c.3.s8 %v358_v25 }
  0x99   :  { %3802 = vmatpush.bf16.msrb.mxu3 %v3558_v29  ;;  %v3058_v37 = vpack.c.bf16 %v1898_v30, %v1878_v8  ;;  %v2518_v38 = vcvt.s32.f32 %v1238_v31  ;;  %v2538_v39 = vcvt.s32.f32 %v1258_v32  ;;  %v558_v40 = vunpack.c.0.s8 %v118_v9  ;;  %v78_v29 = vld [vmem:[#allocation5 + $0x18] sm:$0xff] }
  0x9a   :  { %v3218_v41 = vpack.c.bf16 %v2218_v34, %v2198_v33  ;;  %v2838_v42 = vcvt.s32.f32 %v1558_v35  ;;  %v2858_v43 = vcvt.s32.f32 %v1578_v36  ;;  %v578_v44 = vunpack.c.1.s8 %v118_v9 }
  0x9b   :  { %3764 = vmatpush.bf16.msrb.mxu0 %v3058_v37  ;;  %v3378_v45 = vpack.c.bf16 %v2538_v39, %v2518_v38  ;;  %v1838_v46 = vcvt.s32.f32 %v558_v40  ;;  %v878_v47 = vunpack.c.0.s8 %v198_v16  ;;  %v898_v48 = vunpack.c.1.s8 %v198_v16  ;;  %v158_v38 = vld [vmem:[#allocation5 + $0x298] sm:$0xff] }
  0x9c   :  { %3777 = vmatpush.bf16.msrb.mxu1 %v3218_v41  ;;  %v3538_v50 = vpack.c.bf16 %v2858_v43, %v2838_v42  ;;  %v1858_v51 = vcvt.s32.f32 %v578_v44  ;;  %v1198_v52 = vunpack.c.0.s8 %v278_v21  ;;  %v1218_v53 = vunpack.c.1.s8 %v278_v21  ;;  %v238_v43 = vld [vmem:[#allocation5 + $0x518] sm:$0xff] }
  0x9d   :  { %3790 = vmatpush.bf16.msrb.mxu2 %v3378_v45  ;;  %v2158_v54 = vcvt.s32.f32 %v878_v47  ;;  %v2178_v55 = vcvt.s32.f32 %v898_v48  ;;  %v1518_v56 = vunpack.c.0.s8 %v358_v25  ;;  %v1538_v58 = vunpack.c.1.s8 %v358_v25  ;;  %v318_v48 = vld [vmem:[#allocation5 + $0x798] sm:$0xff] }
  0x9e   :  { %3803 = vmatpush.bf16.msrb.mxu3 %v3538_v50  ;;  %v3038_v60 = vpack.c.bf16 %v1858_v51, %v1838_v46  ;;  %v2478_v61 = vcvt.s32.f32 %v1198_v52  ;;  %v2498_v63 = vcvt.s32.f32 %v1218_v53  ;;  %v518_v0 = vunpack.c.2.s8 %v98_v49 }
  0x9f   :  { %v3198_v2 = vpack.c.bf16 %v2178_v55, %v2158_v54  ;;  %v2798_v4 = vcvt.s32.f32 %v1518_v56  ;;  %v2818_v5 = vcvt.s32.f32 %v1538_v58  ;;  %v538_v6 = vunpack.c.3.s8 %v98_v49 }
  0xa0   :  { %3765 = vmatpush.bf16.msrb.mxu0 %v3038_v60  ;;  %v3358_v9 = vpack.c.bf16 %v2498_v63, %v2478_v61  ;;  %v1798_v10 = vcvt.s32.f32 %v518_v0  ;;  %v838_v11 = vunpack.c.2.s8 %v178_v59  ;;  %v858_v12 = vunpack.c.3.s8 %v178_v59 }
  0xa1   :  { %3778 = vmatpush.bf16.msrb.mxu1 %v3198_v2  ;;  %v3518_v13 = vpack.c.bf16 %v2818_v5, %v2798_v4  ;;  %v1818_v57 = vcvt.s32.f32 %v538_v6  ;;  %v1158_v14 = vunpack.c.2.s8 %v258_v1  ;;  %v1178_v15 = vunpack.c.3.s8 %v258_v1 }
  0xa2   :  { %3791 = vmatpush.bf16.msrb.mxu2 %v3358_v9  ;;  %v2118_v62 = vcvt.s32.f32 %v838_v11  ;;  %v2138_v16 = vcvt.s32.f32 %v858_v12  ;;  %v1478_v17 = vunpack.c.2.s8 %v338_v7  ;;  %v1498_v18 = vunpack.c.3.s8 %v338_v7 }
  0xa3   :  { %3804 = vmatpush.bf16.msrb.mxu3 %v3518_v13  ;;  %v3018_v19 = vpack.c.bf16 %v1818_v57, %v1798_v10  ;;  %v2438_v20 = vcvt.s32.f32 %v1158_v14  ;;  %v2458_v21 = vcvt.s32.f32 %v1178_v15  ;;  %v478_v3 = vunpack.c.0.s8 %v98_v49  ;;  %v5091_v13 = vld [vmem:[#allocation5 + $0x200] sm:$0xff] }
  0xa4   :  { %v3178_v22 = vpack.c.bf16 %v2138_v16, %v2118_v62  ;;  %v2758_v23 = vcvt.s32.f32 %v1478_v17  ;;  %v2778_v24 = vcvt.s32.f32 %v1498_v18  ;;  %v498_v25 = vunpack.c.1.s8 %v98_v49 }
  0xa5   :  { %3766 = vmatpush.bf16.msrb.mxu0 %v3018_v19  ;;  %v3338_v26 = vpack.c.bf16 %v2458_v21, %v2438_v20  ;;  %v1758_v8 = vcvt.s32.f32 %v478_v3  ;;  %v798_v27 = vunpack.c.0.s8 %v178_v59  ;;  %v818_v28 = vunpack.c.1.s8 %v178_v59  ;;  %v219_v20 = vld [vmem:[#allocation5 + $0x480] sm:$0xff] }
  0xa6   :  { %3779 = vmatpush.bf16.msrb.mxu1 %v3178_v22  ;;  %v3498_v30 = vpack.c.bf16 %v2778_v24, %v2758_v23  ;;  %v1778_v31 = vcvt.s32.f32 %v498_v25  ;;  %v1118_v32 = vunpack.c.0.s8 %v258_v1  ;;  %v1138_v33 = vunpack.c.1.s8 %v258_v1  ;;  %v299_v24 = vld [vmem:[#allocation5 + $0x700] sm:$0xff] }
  0xa7   :  { %3792 = vmatpush.bf16.msrb.mxu2 %v3338_v26  ;;  %v2078_v34 = vcvt.s32.f32 %v798_v27  ;;  %v2098_v35 = vcvt.s32.f32 %v818_v28  ;;  %v1438_v36 = vunpack.c.0.s8 %v338_v7  ;;  %v1458_v37 = vunpack.c.1.s8 %v338_v7  ;;  %v379_v28 = vld [vmem:[#allocation5 + $0x980] sm:$0xff] }
  0xa8   :  { %3805 = vmatpush.bf16.msrb.mxu3 %v3498_v30  ;;  %v2998_v39 = vpack.c.bf16 %v1778_v31, %v1758_v8  ;;  %v2398_v40 = vcvt.s32.f32 %v1118_v32  ;;  %v2418_v41 = vcvt.s32.f32 %v1138_v33  ;;  %v438_v42 = vunpack.c.2.s8 %v78_v29 }
  0xa9   :  { %v3158_v44 = vpack.c.bf16 %v2098_v35, %v2078_v34  ;;  %v2718_v45 = vcvt.s32.f32 %v1438_v36  ;;  %v2738_v46 = vcvt.s32.f32 %v1458_v37  ;;  %v458_v47 = vunpack.c.3.s8 %v78_v29 }
  0xaa   :  { %3767 = vmatpush.bf16.msrb.mxu0 %v2998_v39  ;;  %v3318_v49 = vpack.c.bf16 %v2418_v41, %v2398_v40  ;;  %v1718_v50 = vcvt.s32.f32 %v438_v42  ;;  %v758_v51 = vunpack.c.2.s8 %v158_v38  ;;  %v778_v52 = vunpack.c.3.s8 %v158_v38 }
  0xab   :  { %3780 = vmatpush.bf16.msrb.mxu1 %v3158_v44  ;;  %v3478_v53 = vpack.c.bf16 %v2738_v46, %v2718_v45  ;;  %v1738_v54 = vcvt.s32.f32 %v458_v47  ;;  %v1078_v55 = vunpack.c.2.s8 %v238_v43  ;;  %v1098_v56 = vunpack.c.3.s8 %v238_v43  ;;  %v5096_v45 = vld [vmem:[#allocation1] sm:$0xff] }
  0xac   :  { %3793 = vmatpush.bf16.msrb.mxu2 %v3318_v49  ;;  %v2038_v58 = vcvt.s32.f32 %v758_v51  ;;  %v2058_v59 = vcvt.s32.f32 %v778_v52  ;;  %v1398_v60 = vunpack.c.2.s8 %v318_v48  ;;  %v1418_v61 = vunpack.c.3.s8 %v318_v48  ;;  %v5103_v52 = vld [vmem:[#allocation1 + $0x12] sm:$0xff] }
  0xad   :  { %3806 = vmatpush.bf16.msrb.mxu3 %v3478_v53  ;;  %v2978_v63 = vpack.c.bf16 %v1738_v54, %v1718_v50  ;;  %v2358_v0 = vcvt.s32.f32 %v1078_v55  ;;  %v2378_v1 = vcvt.s32.f32 %v1098_v56  ;;  %v398_v2 = vunpack.c.0.s8 %v78_v29  ;;  %v5100_v50 = vld [vmem:[#allocation1 + $0x9] sm:$0xff] }
  0xae   :  { %v3138_v4 = vpack.c.bf16 %v2058_v59, %v2038_v58  ;;  %v2678_v5 = vcvt.s32.f32 %v1398_v60  ;;  %v2698_v6 = vcvt.s32.f32 %v1418_v61  ;;  %v418_v7 = vunpack.c.1.s8 %v78_v29  ;;  %v119_v56 = vld [vmem:[#allocation5 + $0x160] sm:$0xff]  ;;  %v5106_v59 = vld [vmem:[#allocation1 + $0x1b] sm:$0xff] }
  0xaf   :  { %3768 = vmatpush.bf16.msrb.mxu0 %v2978_v63  ;;  %v3298_v9 = vpack.c.bf16 %v2378_v1, %v2358_v0  ;;  %v1678_v10 = vcvt.s32.f32 %v398_v2  ;;  %v718_v11 = vunpack.c.0.s8 %v158_v38  ;;  %v738_v12 = vunpack.c.1.s8 %v158_v38 }
  0xb0   :  { %3781 = vmatpush.bf16.msrb.mxu1 %v3138_v4  ;;  %v3458_v57 = vpack.c.bf16 %v2698_v6, %v2678_v5  ;;  %v1698_v14 = vcvt.s32.f32 %v418_v7  ;;  %v1038_v15 = vunpack.c.0.s8 %v238_v43  ;;  %v1058_v62 = vunpack.c.1.s8 %v238_v43  ;;  %v199_v5 = vld [vmem:[#allocation5 + $0x3e0] sm:$0xff] }
  0xb1   :  { %3794 = vmatpush.bf16.msrb.mxu2 %v3298_v9  ;;  %v1998_v16 = vcvt.s32.f32 %v718_v11  ;;  %v2018_v17 = vcvt.s32.f32 %v738_v12  ;;  %v1358_v18 = vunpack.c.0.s8 %v318_v48  ;;  %v1378_v19 = vunpack.c.1.s8 %v318_v48  ;;  %v279_v11 = vld [vmem:[#allocation5 + $0x660] sm:$0xff] }
  0xb2   :  { %3807 = vmatpush.bf16.msrb.mxu3 %v3458_v57  ;;  %v2958_v21 = vpack.c.bf16 %v1698_v14, %v1678_v10  ;;  %v2318_v3 = vcvt.s32.f32 %v1038_v15  ;;  %v2338_v22 = vcvt.s32.f32 %v1058_v62  ;;  %v679_v23 = vunpack.c.2.s8 %v5091_v13  ;;  %v359_v15 = vld [vmem:[#allocation5 + $0x8e0] sm:$0xff] }
  0xb3   :  { %v3118_v25 = vpack.c.bf16 %v2018_v17, %v1998_v16  ;;  %v2638_v26 = vcvt.s32.f32 %v1358_v18  ;;  %v2658_v8 = vcvt.s32.f32 %v1378_v19  ;;  %v699_v27 = vunpack.c.3.s8 %v5091_v13 }
  0xb4   :  { %3769 = vmatpush.bf16.msrb.mxu0 %v2958_v21  ;;  %v3278_v29 = vpack.c.bf16 %v2338_v22, %v2318_v3  ;;  %v1959_v30 = vcvt.s32.f32 %v679_v23  ;;  %v999_v31 = vunpack.c.2.s8 %v219_v20  ;;  %v1019_v32 = vunpack.c.3.s8 %v219_v20 }
  0xb5   :  { %3782 = vmatpush.bf16.msrb.mxu1 %v3118_v25  ;;  %v3438_v33 = vpack.c.bf16 %v2658_v8, %v2638_v26  ;;  %v1979_v34 = vcvt.s32.f32 %v699_v27  ;;  %v1319_v35 = vunpack.c.2.s8 %v299_v24  ;;  %v1339_v36 = vunpack.c.3.s8 %v299_v24 }
  0xb6   :  { %3795 = vmatpush.bf16.msrb.mxu2 %v3278_v29  ;;  %v2279_v37 = vcvt.s32.f32 %v999_v31  ;;  %v2299_v38 = vcvt.s32.f32 %v1019_v32  ;;  %v1639_v39 = vunpack.c.2.s8 %v379_v28  ;;  %v1659_v40 = vunpack.c.3.s8 %v379_v28 }
  0xb7   :  { %3808 = vmatpush.bf16.msrb.mxu3 %v3438_v33  ;;  %v3099_v41 = vpack.c.bf16 %v1979_v34, %v1959_v30  ;;  %v2599_v42 = vcvt.s32.f32 %v1319_v35  ;;  %v2619_v43 = vcvt.s32.f32 %v1339_v36  ;;  %v639_v44 = vunpack.c.0.s8 %v5091_v13  ;;  %3770 = vmatmul.bf16.vlgmr.msrb.gmra.mxu0 %v5096_v45 }
  0xb8   :  { %v3259_v46 = vpack.c.bf16 %v2299_v38, %v2279_v37  ;;  %v2919_v47 = vcvt.s32.f32 %v1639_v39  ;;  %v2939_v48 = vcvt.s32.f32 %v1659_v40  ;;  %v659_v49 = vunpack.c.1.s8 %v5091_v13  ;;  %3783 = vmatmul.bf16.vlgmr.msrb.gmra.mxu1 %v5100_v50  ;;  %v99_v37 = vld [vmem:[#allocation5 + $0xc0] sm:$0xff] }
  0xb9   :  { %3814 = vmatpush.bf16.msra.mxu0 %v3099_v41  ;;  %v3419_v51 = vpack.c.bf16 %v2619_v43, %v2599_v42  ;;  %3796 = vmatmul.bf16.vlgmr.msrb.gmra.mxu2 %v5103_v52  ;;  %v1919_v53 = vcvt.s32.f32 %v639_v44  ;;  %v959_v54 = vunpack.c.0.s8 %v219_v20  ;;  %v979_v55 = vunpack.c.1.s8 %v219_v20 }
  0xba   :  { %3827 = vmatpush.bf16.msra.mxu1 %v3259_v46  ;;  %v3579_v58 = vpack.c.bf16 %v2939_v48, %v2919_v47  ;;  %3809 = vmatmul.bf16.vlgmr.msrb.gmra.mxu3 %v5106_v59  ;;  %v1939_v60 = vcvt.s32.f32 %v659_v49  ;;  %v1279_v61 = vunpack.c.0.s8 %v299_v24  ;;  %v1299_v63 = vunpack.c.1.s8 %v299_v24  ;;  %v179_v47 = vld [vmem:[#allocation5 + $0x340] sm:$0xff] }
  0xbb   :  { %3840 = vmatpush.bf16.msra.mxu2 %v3419_v51  ;;  %v2239_v0 = vcvt.s32.f32 %v959_v54  ;;  %v2259_v1 = vcvt.s32.f32 %v979_v55  ;;  %v1599_v2 = vunpack.c.0.s8 %v379_v28  ;;  %v1619_v4 = vunpack.c.1.s8 %v379_v28  ;;  %v259_v54 = vld [vmem:[#allocation5 + $0x5c0] sm:$0xff] }
  0xbc   :  { %3853 = vmatpush.bf16.msra.mxu3 %v3579_v58  ;;  %v3079_v6 = vpack.c.bf16 %v1939_v60, %v1919_v53  ;;  %v2559_v7 = vcvt.s32.f32 %v1279_v61  ;;  %v2579_v9 = vcvt.s32.f32 %v1299_v63  ;;  %v599_v10 = vunpack.c.2.s8 %v119_v56  ;;  %v339_v61 = vld [vmem:[#allocation5 + $0x840] sm:$0xff] }
  0xbd   :  { %v3239_v12 = vpack.c.bf16 %v2259_v1, %v2239_v0  ;;  %v2879_v13 = vcvt.s32.f32 %v1599_v2  ;;  %v2899_v57 = vcvt.s32.f32 %v1619_v4  ;;  %v619_v14 = vunpack.c.3.s8 %v119_v56 }
  0xbe   :  { %3815 = vmatpush.bf16.msra.mxu0 %v3079_v6  ;;  %v3399_v62 = vpack.c.bf16 %v2579_v9, %v2559_v7  ;;  %v1879_v16 = vcvt.s32.f32 %v599_v10  ;;  %v919_v17 = vunpack.c.2.s8 %v199_v5  ;;  %v939_v18 = vunpack.c.3.s8 %v199_v5 }
  0xbf   :  { %3828 = vmatpush.bf16.msra.mxu1 %v3239_v12  ;;  %v3559_v19 = vpack.c.bf16 %v2899_v57, %v2879_v13  ;;  %v1899_v20 = vcvt.s32.f32 %v619_v14  ;;  %v1239_v21 = vunpack.c.2.s8 %v279_v11  ;;  %v1259_v3 = vunpack.c.3.s8 %v279_v11 }
  0xc0   :  { %3841 = vmatpush.bf16.msra.mxu2 %v3399_v62  ;;  %v2199_v22 = vcvt.s32.f32 %v919_v17  ;;  %v2219_v23 = vcvt.s32.f32 %v939_v18  ;;  %v1559_v24 = vunpack.c.2.s8 %v359_v15  ;;  %v1579_v25 = vunpack.c.3.s8 %v359_v15 }
  0xc1   :  { %3854 = vmatpush.bf16.msra.mxu3 %v3559_v19  ;;  %v3059_v26 = vpack.c.bf16 %v1899_v20, %v1879_v16  ;;  %v2519_v8 = vcvt.s32.f32 %v1239_v21  ;;  %v2539_v27 = vcvt.s32.f32 %v1259_v3  ;;  %v559_v28 = vunpack.c.0.s8 %v119_v56 }
  0xc2   :  { %v3219_v29 = vpack.c.bf16 %v2219_v23, %v2199_v22  ;;  %v2839_v30 = vcvt.s32.f32 %v1559_v24  ;;  %v2859_v31 = vcvt.s32.f32 %v1579_v25  ;;  %v579_v32 = vunpack.c.1.s8 %v119_v56  ;;  %v79_v22 = vld [vmem:[#allocation5 + $0x20] sm:$0xff] }
  0xc3   :  { %3816 = vmatpush.bf16.msra.mxu0 %v3059_v26  ;;  %v3379_v33 = vpack.c.bf16 %v2539_v27, %v2519_v8  ;;  %v1839_v34 = vcvt.s32.f32 %v559_v28  ;;  %v879_v35 = vunpack.c.0.s8 %v199_v5  ;;  %v899_v36 = vunpack.c.1.s8 %v199_v5 }
  0xc4   :  { %3829 = vmatpush.bf16.msra.mxu1 %v3219_v29  ;;  %v3539_v38 = vpack.c.bf16 %v2859_v31, %v2839_v30  ;;  %v1859_v39 = vcvt.s32.f32 %v579_v32  ;;  %v1199_v40 = vunpack.c.0.s8 %v279_v11  ;;  %v1219_v41 = vunpack.c.1.s8 %v279_v11  ;;  %v159_v30 = vld [vmem:[#allocation5 + $0x2a0] sm:$0xff] }
  0xc5   :  { %3842 = vmatpush.bf16.msra.mxu2 %v3379_v33  ;;  %v2159_v42 = vcvt.s32.f32 %v879_v35  ;;  %v2179_v43 = vcvt.s32.f32 %v899_v36  ;;  %v1519_v44 = vunpack.c.0.s8 %v359_v15  ;;  %v1539_v46 = vunpack.c.1.s8 %v359_v15  ;;  %v239_v35 = vld [vmem:[#allocation5 + $0x520] sm:$0xff] }
  0xc6   :  { %3855 = vmatpush.bf16.msra.mxu3 %v3539_v38  ;;  %v3039_v48 = vpack.c.bf16 %v1859_v39, %v1839_v34  ;;  %v2479_v49 = vcvt.s32.f32 %v1199_v40  ;;  %v2499_v51 = vcvt.s32.f32 %v1219_v41  ;;  %v519_v53 = vunpack.c.2.s8 %v99_v37  ;;  %v319_v40 = vld [vmem:[#allocation5 + $0x7a0] sm:$0xff] }
  0xc7   :  { %v3199_v55 = vpack.c.bf16 %v2179_v43, %v2159_v42  ;;  %v2799_v56 = vcvt.s32.f32 %v1519_v44  ;;  %v2819_v58 = vcvt.s32.f32 %v1539_v46  ;;  %v539_v60 = vunpack.c.3.s8 %v99_v37 }
  0xc8   :  { %3817 = vmatpush.bf16.msra.mxu0 %v3039_v48  ;;  %v3359_v63 = vpack.c.bf16 %v2499_v51, %v2479_v49  ;;  %v1799_v0 = vcvt.s32.f32 %v519_v53  ;;  %v839_v1 = vunpack.c.2.s8 %v179_v47  ;;  %v859_v2 = vunpack.c.3.s8 %v179_v47 }
  0xc9   :  { %3830 = vmatpush.bf16.msra.mxu1 %v3199_v55  ;;  %v3519_v4 = vpack.c.bf16 %v2819_v58, %v2799_v56  ;;  %v1819_v5 = vcvt.s32.f32 %v539_v60  ;;  %v1159_v6 = vunpack.c.2.s8 %v259_v54  ;;  %v1179_v7 = vunpack.c.3.s8 %v259_v54 }
  0xca   :  { %3843 = vmatpush.bf16.msra.mxu2 %v3359_v63  ;;  %v2119_v9 = vcvt.s32.f32 %v839_v1  ;;  %v2139_v10 = vcvt.s32.f32 %v859_v2  ;;  %v1479_v11 = vunpack.c.2.s8 %v339_v61  ;;  %v1499_v12 = vunpack.c.3.s8 %v339_v61 }
  0xcb   :  { %3856 = vmatpush.bf16.msra.mxu3 %v3519_v4  ;;  %v3019_v13 = vpack.c.bf16 %v1819_v5, %v1799_v0  ;;  %v2439_v57 = vcvt.s32.f32 %v1159_v6  ;;  %v2459_v14 = vcvt.s32.f32 %v1179_v7  ;;  %v479_v15 = vunpack.c.0.s8 %v99_v37 }
  0xcc   :  { %v3179_v62 = vpack.c.bf16 %v2139_v10, %v2119_v9  ;;  %v2759_v16 = vcvt.s32.f32 %v1479_v11  ;;  %v2779_v17 = vcvt.s32.f32 %v1499_v12  ;;  %v499_v18 = vunpack.c.1.s8 %v99_v37  ;;  %v140_v9 = vld [vmem:[#allocation5 + $0x208] sm:$0xff] }
  0xcd   :  { %3818 = vmatpush.bf16.msra.mxu0 %v3019_v13  ;;  %v3339_v19 = vpack.c.bf16 %v2459_v14, %v2439_v57  ;;  %v1759_v20 = vcvt.s32.f32 %v479_v15  ;;  %v799_v21 = vunpack.c.0.s8 %v179_v47  ;;  %v819_v3 = vunpack.c.1.s8 %v179_v47 }
  0xce   :  { %3831 = vmatpush.bf16.msra.mxu1 %v3179_v62  ;;  %v3499_v23 = vpack.c.bf16 %v2779_v17, %v2759_v16  ;;  %v1779_v24 = vcvt.s32.f32 %v499_v18  ;;  %v1119_v25 = vunpack.c.0.s8 %v259_v54  ;;  %v1139_v26 = vunpack.c.1.s8 %v259_v54  ;;  %v220_v16 = vld [vmem:[#allocation5 + $0x488] sm:$0xff] }
  0xcf   :  { %3844 = vmatpush.bf16.msra.mxu2 %v3339_v19  ;;  %v2079_v8 = vcvt.s32.f32 %v799_v21  ;;  %v2099_v27 = vcvt.s32.f32 %v819_v3  ;;  %v1439_v28 = vunpack.c.0.s8 %v339_v61  ;;  %v1459_v29 = vunpack.c.1.s8 %v339_v61  ;;  %v300_v21 = vld [vmem:[#allocation5 + $0x708] sm:$0xff] }
  0xd0   :  { %3857 = vmatpush.bf16.msra.mxu3 %v3499_v23  ;;  %v2999_v31 = vpack.c.bf16 %v1779_v24, %v1759_v20  ;;  %v2399_v32 = vcvt.s32.f32 %v1119_v25  ;;  %v2419_v33 = vcvt.s32.f32 %v1139_v26  ;;  %v439_v34 = vunpack.c.2.s8 %v79_v22  ;;  %v380_v25 = vld [vmem:[#allocation5 + $0x988] sm:$0xff] }
  0xd1   :  { %v3159_v36 = vpack.c.bf16 %v2099_v27, %v2079_v8  ;;  %v2719_v37 = vcvt.s32.f32 %v1439_v28  ;;  %v2739_v38 = vcvt.s32.f32 %v1459_v29  ;;  %v459_v39 = vunpack.c.3.s8 %v79_v22 }
  0xd2   :  { %3819 = vmatpush.bf16.msra.mxu0 %v2999_v31  ;;  %v3319_v41 = vpack.c.bf16 %v2419_v33, %v2399_v32  ;;  %v1719_v42 = vcvt.s32.f32 %v439_v34  ;;  %v759_v43 = vunpack.c.2.s8 %v159_v30  ;;  %v779_v44 = vunpack.c.3.s8 %v159_v30 }
  0xd3   :  { %3832 = vmatpush.bf16.msra.mxu1 %v3159_v36  ;;  %v3479_v46 = vpack.c.bf16 %v2739_v38, %v2719_v37  ;;  %v1739_v47 = vcvt.s32.f32 %v459_v39  ;;  %v1079_v48 = vunpack.c.2.s8 %v239_v35  ;;  %v1099_v49 = vunpack.c.3.s8 %v239_v35 }
  0xd4   :  { %3845 = vmatpush.bf16.msra.mxu2 %v3319_v41  ;;  %v2039_v51 = vcvt.s32.f32 %v759_v43  ;;  %v2059_v53 = vcvt.s32.f32 %v779_v44  ;;  %v1399_v54 = vunpack.c.2.s8 %v319_v40  ;;  %v1419_v55 = vunpack.c.3.s8 %v319_v40 }
  0xd5   :  { %3858 = vmatpush.bf16.msra.mxu3 %v3479_v46  ;;  %v2979_v56 = vpack.c.bf16 %v1739_v47, %v1719_v42  ;;  %v2359_v58 = vcvt.s32.f32 %v1079_v48  ;;  %v2379_v60 = vcvt.s32.f32 %v1099_v49  ;;  %v399_v61 = vunpack.c.0.s8 %v79_v22 }
  0xd6   :  { %v3139_v63 = vpack.c.bf16 %v2059_v53, %v2039_v51  ;;  %v2679_v0 = vcvt.s32.f32 %v1399_v54  ;;  %v2699_v1 = vcvt.s32.f32 %v1419_v55  ;;  %v419_v2 = vunpack.c.1.s8 %v79_v22  ;;  %v120_v51 = vld [vmem:[#allocation5 + $0x168] sm:$0xff] }
  0xd7   :  { %3820 = vmatpush.bf16.msra.mxu0 %v2979_v56  ;;  %v3299_v4 = vpack.c.bf16 %v2379_v60, %v2359_v58  ;;  %v1679_v5 = vcvt.s32.f32 %v399_v61  ;;  %v719_v6 = vunpack.c.0.s8 %v159_v30  ;;  %v739_v7 = vunpack.c.1.s8 %v159_v30  ;;  %v5113_v58 = vpop.f32.mrf.mxu0  ;;  %v5115_v60 = vpop.f32.mrf.mxu1 }
  0xd8   :  { %3833 = vmatpush.bf16.msra.mxu1 %v3139_v63  ;;  %v3459_v10 = vpack.c.bf16 %v2699_v1, %v2679_v0  ;;  %v1699_v11 = vcvt.s32.f32 %v419_v2  ;;  %v1039_v12 = vunpack.c.0.s8 %v239_v35  ;;  %v1059_v13 = vunpack.c.1.s8 %v239_v35  ;;  %v200_v2 = vld [vmem:[#allocation5 + $0x3e8] sm:$0xff] }
  0xd9   :  { %3846 = vmatpush.bf16.msra.mxu2 %v3299_v4  ;;  %v1999_v57 = vcvt.s32.f32 %v719_v6  ;;  %v2019_v14 = vcvt.s32.f32 %v739_v7  ;;  %v1359_v15 = vunpack.c.0.s8 %v319_v40  ;;  %v1379_v62 = vunpack.c.1.s8 %v319_v40 }
  0xda   :  { %3859 = vmatpush.bf16.msra.mxu3 %v3459_v10  ;;  %v2959_v17 = vpack.c.bf16 %v1699_v11, %v1679_v5  ;;  %v2319_v18 = vcvt.s32.f32 %v1039_v12  ;;  %v2339_v19 = vcvt.s32.f32 %v1059_v13  ;;  %v680_v20 = vunpack.c.2.s8 %v140_v9 }
  0xdb   :  { %v3119_v3 = vpack.c.bf16 %v2019_v14, %v1999_v57  ;;  %v2639_v22 = vcvt.s32.f32 %v1359_v15  ;;  %v2659_v23 = vcvt.s32.f32 %v1379_v62  ;;  %v700_v24 = vunpack.c.3.s8 %v140_v9  ;;  %v360_v57 = vld [vmem:[#allocation5 + $0x8e8] sm:$0xff] }
  0xdc   :  { %3821 = vmatpush.bf16.msra.mxu0 %v2959_v17  ;;  %v3279_v26 = vpack.c.bf16 %v2339_v19, %v2319_v18  ;;  %v1960_v8 = vcvt.s32.f32 %v680_v20  ;;  %v1000_v27 = vunpack.c.2.s8 %v220_v16  ;;  %v1020_v28 = vunpack.c.3.s8 %v220_v16 }
  0xdd   :  { %3834 = vmatpush.bf16.msra.mxu1 %v3119_v3  ;;  %v3439_v29 = vpack.c.bf16 %v2659_v23, %v2639_v22  ;;  %v1980_v30 = vcvt.s32.f32 %v700_v24  ;;  %v1320_v31 = vunpack.c.2.s8 %v300_v21  ;;  %v1340_v32 = vunpack.c.3.s8 %v300_v21 }
  0xde   :  { %3847 = vmatpush.bf16.msra.mxu2 %v3279_v26  ;;  %v2280_v33 = vcvt.s32.f32 %v1000_v27  ;;  %v2300_v34 = vcvt.s32.f32 %v1020_v28  ;;  %v1640_v35 = vunpack.c.2.s8 %v380_v25  ;;  %v1660_v36 = vunpack.c.3.s8 %v380_v25 }
  0xdf   :  { %3860 = vmatpush.bf16.msra.mxu3 %v3439_v29  ;;  %v3100_v37 = vpack.c.bf16 %v1980_v30, %v1960_v8  ;;  %v2600_v38 = vcvt.s32.f32 %v1320_v31  ;;  %v2620_v39 = vcvt.s32.f32 %v1340_v32  ;;  %v640_v40 = vunpack.c.0.s8 %v140_v9  ;;  %3822 = vmatmul.bf16.vlgmr.msra.gmra.mxu0 %v5096_v45  ;;  %v3617_v31 = vpop.f32.mrf.mxu0  ;;  %v3630_v32 = vpop.f32.mrf.mxu1 }
  0xe0   :  { %v3260_v41 = vpack.c.bf16 %v2300_v34, %v2280_v33  ;;  %v2920_v42 = vcvt.s32.f32 %v1640_v35  ;;  %v2940_v43 = vcvt.s32.f32 %v1660_v36  ;;  %v660_v44 = vunpack.c.1.s8 %v140_v9  ;;  %3835 = vmatmul.bf16.vlgmr.msra.gmra.mxu1 %v5100_v50  ;;  %v280_v9 = vld [vmem:[#allocation5 + $0x668] sm:$0xff] }
  0xe1   :  { %3866 = vmatpush.bf16.msrb.mxu0 %v3100_v37  ;;  %v3420_v46 = vpack.c.bf16 %v2620_v39, %v2600_v38  ;;  %v1920_v47 = vcvt.s32.f32 %v640_v40  ;;  %v960_v48 = vunpack.c.0.s8 %v220_v16  ;;  %v980_v49 = vunpack.c.1.s8 %v220_v16  ;;  %3848 = vmatmul.bf16.vlgmr.msra.gmra.mxu2 %v5103_v52  ;;  %v100_v37 = vld [vmem:[#allocation5 + $0xc8] sm:$0xff] }
  0xe2   :  { %3879 = vmatpush.bf16.msrb.mxu1 %v3260_v41  ;;  %v3580_v53 = vpack.c.bf16 %v2940_v43, %v2920_v42  ;;  %v1940_v54 = vcvt.s32.f32 %v660_v44  ;;  %v1280_v55 = vunpack.c.0.s8 %v300_v21  ;;  %v1300_v56 = vunpack.c.1.s8 %v300_v21  ;;  %3861 = vmatmul.bf16.vlgmr.msra.gmra.mxu3 %v5106_v59  ;;  %v5117_v42 = vpop.f32.mrf.mxu2  ;;  %v5119_v43 = vpop.f32.mrf.mxu3 }
  0xe3   :  { %3892 = vmatpush.bf16.msrb.mxu2 %v3420_v46  ;;  %v2240_v61 = vcvt.s32.f32 %v960_v48  ;;  %v2260_v63 = vcvt.s32.f32 %v980_v49  ;;  %v1600_v0 = vunpack.c.0.s8 %v380_v25  ;;  %v1620_v1 = vunpack.c.1.s8 %v380_v25  ;;  %v180_v49 = vld [vmem:[#allocation5 + $0x348] sm:$0xff] }
  0xe4   :  { %3905 = vmatpush.bf16.msrb.mxu3 %v3580_v53  ;;  %v3080_v4 = vpack.c.bf16 %v1940_v54, %v1920_v47  ;;  %v2560_v5 = vcvt.s32.f32 %v1280_v55  ;;  %v2580_v6 = vcvt.s32.f32 %v1300_v56  ;;  %v600_v7 = vunpack.c.2.s8 %v120_v51  ;;  %v260_v56 = vld [vmem:[#allocation5 + $0x5c8] sm:$0xff] }
  0xe5   :  { %v3240_v10 = vpack.c.bf16 %v2260_v63, %v2240_v61  ;;  %v2880_v11 = vcvt.s32.f32 %v1600_v0  ;;  %v2900_v12 = vcvt.s32.f32 %v1620_v1  ;;  %v620_v13 = vunpack.c.3.s8 %v120_v51 }
  0xe6   :  { %3867 = vmatpush.bf16.msrb.mxu0 %v3080_v4  ;;  %v3400_v14 = vpack.c.bf16 %v2580_v6, %v2560_v5  ;;  %v1880_v15 = vcvt.s32.f32 %v600_v7  ;;  %v920_v62 = vunpack.c.2.s8 %v200_v2  ;;  %v940_v16 = vunpack.c.3.s8 %v200_v2 }
  0xe7   :  { %3880 = vmatpush.bf16.msrb.mxu1 %v3240_v10  ;;  %v3560_v17 = vpack.c.bf16 %v2900_v12, %v2880_v11  ;;  %v1900_v18 = vcvt.s32.f32 %v620_v13  ;;  %v1240_v19 = vunpack.c.2.s8 %v280_v9  ;;  %v1260_v20 = vunpack.c.3.s8 %v280_v9 }
  0xe8   :  { %3893 = vmatpush.bf16.msrb.mxu2 %v3400_v14  ;;  %v2200_v21 = vcvt.s32.f32 %v920_v62  ;;  %v2220_v3 = vcvt.s32.f32 %v940_v16  ;;  %v1560_v22 = vunpack.c.2.s8 %v360_v57  ;;  %v1580_v23 = vunpack.c.3.s8 %v360_v57 }
  0xe9   :  { %3906 = vmatpush.bf16.msrb.mxu3 %v3560_v17  ;;  %v3060_v24 = vpack.c.bf16 %v1900_v18, %v1880_v15  ;;  %v2520_v25 = vcvt.s32.f32 %v1240_v19  ;;  %v2540_v26 = vcvt.s32.f32 %v1260_v20  ;;  %v560_v8 = vunpack.c.0.s8 %v120_v51 }
  0xea   :  { %v3220_v27 = vpack.c.bf16 %v2220_v3, %v2200_v21  ;;  %v2840_v28 = vcvt.s32.f32 %v1560_v22  ;;  %v2860_v29 = vcvt.s32.f32 %v1580_v23  ;;  %v580_v30 = vunpack.c.1.s8 %v120_v51  ;;  %v3643_v22 = vpop.f32.mrf.mxu2  ;;  %v3656_v23 = vpop.f32.mrf.mxu3 }
  0xeb   :  { %3868 = vmatpush.bf16.msrb.mxu0 %v3060_v24  ;;  %v3380_v33 = vpack.c.bf16 %v2540_v26, %v2520_v25  ;;  %v1840_v34 = vcvt.s32.f32 %v560_v8  ;;  %v880_v35 = vunpack.c.0.s8 %v200_v2  ;;  %v900_v36 = vunpack.c.1.s8 %v200_v2  ;;  %v340_v2 = vld [vmem:[#allocation5 + $0x848] sm:$0xff] }
  0xec   :  { %3881 = vmatpush.bf16.msrb.mxu1 %v3220_v27  ;;  %v3540_v38 = vpack.c.bf16 %v2860_v29, %v2840_v28  ;;  %v1860_v39 = vcvt.s32.f32 %v580_v30  ;;  %v1200_v40 = vunpack.c.0.s8 %v280_v9  ;;  %v1220_v41 = vunpack.c.1.s8 %v280_v9  ;;  %v80_v27 = vld [vmem:[#allocation5 + $0x28] sm:$0xff] }
  0xed   :  { %3894 = vmatpush.bf16.msrb.mxu2 %v3380_v33  ;;  %v2160_v44 = vcvt.s32.f32 %v880_v35  ;;  %v2180_v46 = vcvt.s32.f32 %v900_v36  ;;  %v1520_v47 = vunpack.c.0.s8 %v360_v57  ;;  %v1540_v48 = vunpack.c.1.s8 %v360_v57  ;;  %v160_v36 = vld [vmem:[#allocation5 + $0x2a8] sm:$0xff] }
  0xee   :  { %3907 = vmatpush.bf16.msrb.mxu3 %v3540_v38  ;;  %v3040_v51 = vpack.c.bf16 %v1860_v39, %v1840_v34  ;;  %v2480_v53 = vcvt.s32.f32 %v1200_v40  ;;  %v2500_v54 = vcvt.s32.f32 %v1220_v41  ;;  %v520_v55 = vunpack.c.2.s8 %v100_v37  ;;  %v240_v41 = vld [vmem:[#allocation5 + $0x528] sm:$0xff] }
  0xef   :  { %v3200_v61 = vpack.c.bf16 %v2180_v46, %v2160_v44  ;;  %v2800_v63 = vcvt.s32.f32 %v1520_v47  ;;  %v2820_v0 = vcvt.s32.f32 %v1540_v48  ;;  %v540_v1 = vunpack.c.3.s8 %v100_v37 }
  0xf0   :  { %3869 = vmatpush.bf16.msrb.mxu0 %v3040_v51  ;;  %v3360_v4 = vpack.c.bf16 %v2500_v54, %v2480_v53  ;;  %v1800_v5 = vcvt.s32.f32 %v520_v55  ;;  %v840_v6 = vunpack.c.2.s8 %v180_v49  ;;  %v860_v7 = vunpack.c.3.s8 %v180_v49 }
  0xf1   :  { %3882 = vmatpush.bf16.msrb.mxu1 %v3200_v61  ;;  %v3520_v9 = vpack.c.bf16 %v2820_v0, %v2800_v63  ;;  %v1820_v10 = vcvt.s32.f32 %v540_v1  ;;  %v1160_v11 = vunpack.c.2.s8 %v260_v56  ;;  %v1180_v12 = vunpack.c.3.s8 %v260_v56 }
  0xf2   :  { %3895 = vmatpush.bf16.msrb.mxu2 %v3360_v4  ;;  %v2120_v13 = vcvt.s32.f32 %v840_v6  ;;  %v2140_v57 = vcvt.s32.f32 %v860_v7  ;;  %v1480_v14 = vunpack.c.2.s8 %v340_v2  ;;  %v1500_v15 = vunpack.c.3.s8 %v340_v2 }
  0xf3   :  { %3908 = vmatpush.bf16.msrb.mxu3 %v3520_v9  ;;  %v3020_v62 = vpack.c.bf16 %v1820_v10, %v1800_v5  ;;  %v2440_v16 = vcvt.s32.f32 %v1160_v11  ;;  %v2460_v17 = vcvt.s32.f32 %v1180_v12  ;;  %v480_v18 = vunpack.c.0.s8 %v100_v37  ;;  %v5125_v11 = vpop.f32.mrf.mxu0  ;;  %v5127_v12 = vpop.f32.mrf.mxu1 }
  0xf4   :  { %v3180_v19 = vpack.c.bf16 %v2140_v57, %v2120_v13  ;;  %v2760_v20 = vcvt.s32.f32 %v1480_v14  ;;  %v2780_v21 = vcvt.s32.f32 %v1500_v15  ;;  %v500_v3 = vunpack.c.1.s8 %v100_v37 }
  0xf5   :  { %3870 = vmatpush.bf16.msrb.mxu0 %v3020_v62  ;;  %v3340_v24 = vpack.c.bf16 %v2460_v17, %v2440_v16  ;;  %v1760_v25 = vcvt.s32.f32 %v480_v18  ;;  %v800_v26 = vunpack.c.0.s8 %v180_v49  ;;  %v820_v8 = vunpack.c.1.s8 %v180_v49  ;;  %v320_v49 = vld [vmem:[#allocation5 + $0x7a8] sm:$0xff] }
  0xf6   :  { %3883 = vmatpush.bf16.msrb.mxu1 %v3180_v19  ;;  %v3500_v28 = vpack.c.bf16 %v2780_v21, %v2760_v20  ;;  %v1780_v29 = vcvt.s32.f32 %v500_v3  ;;  %v1120_v30 = vunpack.c.0.s8 %v260_v56  ;;  %v1140_v31 = vunpack.c.1.s8 %v260_v56  ;;  %v5129_v19 = vld [vmem:[#allocation5 + $0x210] sm:$0xff] }
  0xf7   :  { %3896 = vmatpush.bf16.msrb.mxu2 %v3340_v24  ;;  %v2080_v32 = vcvt.s32.f32 %v800_v26  ;;  %v2100_v33 = vcvt.s32.f32 %v820_v8  ;;  %v1440_v34 = vunpack.c.0.s8 %v340_v2  ;;  %v1460_v35 = vunpack.c.1.s8 %v340_v2 }
  0xf8   :  { %3909 = vmatpush.bf16.msrb.mxu3 %v3500_v28  ;;  %v3000_v37 = vpack.c.bf16 %v1780_v29, %v1760_v25  ;;  %v2400_v38 = vcvt.s32.f32 %v1120_v30  ;;  %v2420_v39 = vcvt.s32.f32 %v1140_v31  ;;  %v440_v40 = vunpack.c.2.s8 %v80_v27  ;;  %v5131_v25 = vld [vmem:[#allocation5 + $0x490] sm:$0xff]  ;;  %v5136_v30 = vpop.f32.mrf.mxu2  ;;  %v5138_v31 = vpop.f32.mrf.mxu3 }
  0xf9   :  { %v3160_v44 = vpack.c.bf16 %v2100_v33, %v2080_v32  ;;  %v2720_v46 = vcvt.s32.f32 %v1440_v34  ;;  %v2740_v47 = vcvt.s32.f32 %v1460_v35  ;;  %v460_v48 = vunpack.c.3.s8 %v80_v27  ;;  %v5134_v29 = vld [vmem:[#allocation5 + $0x710] sm:$0xff] }
  0xfa   :  { %3871 = vmatpush.bf16.msrb.mxu0 %v3000_v37  ;;  %v3320_v51 = vpack.c.bf16 %v2420_v39, %v2400_v38  ;;  %v1720_v53 = vcvt.s32.f32 %v440_v40  ;;  %v760_v54 = vunpack.c.2.s8 %v160_v36  ;;  %v780_v55 = vunpack.c.3.s8 %v160_v36 }
  0xfb   :  { %3884 = vmatpush.bf16.msrb.mxu1 %v3160_v44  ;;  %v3480_v56 = vpack.c.bf16 %v2740_v47, %v2720_v46  ;;  %v1740_v61 = vcvt.s32.f32 %v460_v48  ;;  %v1080_v63 = vunpack.c.2.s8 %v240_v41  ;;  %v1100_v0 = vunpack.c.3.s8 %v240_v41  ;;  %v5147_v48 = vld [vmem:[#allocation7] sm:$0xff] }
  0xfc   :  { %3897 = vmatpush.bf16.msrb.mxu2 %v3320_v51  ;;  %v2040_v1 = vcvt.s32.f32 %v760_v54  ;;  %v2060_v2 = vcvt.s32.f32 %v780_v55  ;;  %v1400_v4 = vunpack.c.2.s8 %v320_v49  ;;  %v1420_v5 = vunpack.c.3.s8 %v320_v49  ;;  %v3682_v51 = vpop.f32.mrf.mxu1 }
  0xfd   :  { %3910 = vmatpush.bf16.msrb.mxu3 %v3480_v56  ;;  %v2980_v6 = vpack.c.bf16 %v1740_v61, %v1720_v53  ;;  %v2360_v7 = vcvt.s32.f32 %v1080_v63  ;;  %v2380_v9 = vcvt.s32.f32 %v1100_v0  ;;  %v5123_v10 = vadd.f32 %v5115_v60, %v5113_v58  ;;  %v5151_v61 = vld [vmem:[#allocation8] sm:$0xff] }
  0xfe   :  { %v3140_v13 = vpack.c.bf16 %v2060_v2, %v2040_v1  ;;  %v2680_v57 = vcvt.s32.f32 %v1400_v4  ;;  %v2700_v14 = vcvt.s32.f32 %v1420_v5  ;;  %v400_v15 = vunpack.c.0.s8 %v80_v27 }
  0xff   :  { %3872 = vmatpush.bf16.msrb.mxu0 %v2980_v6  ;;  %v3300_v62 = vpack.c.bf16 %v2380_v9, %v2360_v7  ;;  %v420_v16 = vunpack.c.1.s8 %v80_v27  ;;  %v720_v17 = vunpack.c.0.s8 %v160_v36  ;;  %v740_v18 = vunpack.c.1.s8 %v160_v36  ;;  %v5141_v36 = vld [vmem:[#allocation5 + $0x990] sm:$0xff] }
 0x100   :  { %3885 = vmatpush.bf16.msrb.mxu1 %v3140_v13  ;;  %v3460_v20 = vpack.c.bf16 %v2700_v14, %v2680_v57  ;;  %v1680_v21 = vcvt.s32.f32 %v400_v15  ;;  %v1040_v58 = vunpack.c.0.s8 %v240_v41  ;;  %v1060_v60 = vunpack.c.1.s8 %v240_v41 }
 0x101   :  { %3898 = vmatpush.bf16.msrb.mxu2 %v3300_v62  ;;  %v1700_v3 = vcvt.s32.f32 %v420_v16  ;;  %v2000_v22 = vcvt.s32.f32 %v720_v17  ;;  %v2020_v23 = vcvt.s32.f32 %v740_v18  ;;  %v1360_v24 = vunpack.c.0.s8 %v320_v49 }
 0x102   :  { %3911 = vmatpush.bf16.msrb.mxu3 %v3460_v20  ;;  %v2320_v26 = vcvt.s32.f32 %v1040_v58  ;;  %v2340_v8 = vcvt.s32.f32 %v1060_v60  ;;  %v1380_v27 = vunpack.c.1.s8 %v320_v49  ;;  %v681_v28 = vunpack.c.2.s8 %v5129_v19  ;;  %v3669_v49 = vpop.f32.mrf.mxu0 }
 0x103   :  { %v2960_v32 = vpack.c.bf16 %v1700_v3, %v1680_v21  ;;  %v3120_v33 = vpack.c.bf16 %v2020_v23, %v2000_v22  ;;  %v2640_v34 = vcvt.s32.f32 %v1360_v24  ;;  %v701_v35 = vunpack.c.3.s8 %v5129_v19  ;;  %v121_v21 = vld [vmem:[#allocation5 + $0x170] sm:$0xff] }
 0x104   :  { %v3280_v37 = vpack.c.bf16 %v2340_v8, %v2320_v26  ;;  %v2660_v38 = vcvt.s32.f32 %v1380_v27  ;;  %v1961_v39 = vcvt.s32.f32 %v681_v28  ;;  %v1001_v40 = vunpack.c.2.s8 %v5131_v25  ;;  %v201_v24 = vld [vmem:[#allocation5 + $0x3f0] sm:$0xff] }
 0x105   :  { %3873 = vmatpush.bf16.msrb.mxu0 %v2960_v32  ;;  %3886 = vmatpush.bf16.msrb.mxu1 %v3120_v33  ;;  %v1981_v41 = vcvt.s32.f32 %v701_v35  ;;  %v1021_v44 = vunpack.c.3.s8 %v5131_v25  ;;  %v1321_v46 = vunpack.c.2.s8 %v5134_v29  ;;  %v1341_v47 = vunpack.c.3.s8 %v5134_v29 }
 0x106   :  { %3899 = vmatpush.bf16.msrb.mxu2 %v3280_v37  ;;  %v3440_v53 = vpack.c.bf16 %v2660_v38, %v2640_v34  ;;  %v2281_v54 = vcvt.s32.f32 %v1001_v40  ;;  %v1641_v55 = vunpack.c.2.s8 %v5141_v36  ;;  %v1661_v56 = vunpack.c.3.s8 %v5141_v36 }
 0x107   :  { %v3101_v63 = vpack.c.bf16 %v1981_v41, %v1961_v39  ;;  %v2301_v0 = vcvt.s32.f32 %v1021_v44  ;;  %v2601_v1 = vcvt.s32.f32 %v1321_v46  ;;  %v2621_v2 = vcvt.s32.f32 %v1341_v47 }
 0x108   :  { %3912 = vmatpush.bf16.msrb.mxu3 %v3440_v53  ;;  %v2921_v4 = vcvt.s32.f32 %v1641_v55  ;;  %v2941_v5 = vcvt.s32.f32 %v1661_v56  ;;  %v3642_v6 = vadd.f32 %v5117_v42, %v5123_v10  ;;  %v4652_v7 = vperm.slane %v5147_v48, 0  ;;  %3874 = vmatmul.bf16.vlgmr.msrb.gmra.mxu0 %v5096_v45  ;;  %v3695_v10 = vpop.f32.mrf.mxu2  ;;  %v3708_v45 = vpop.f32.mrf.mxu3 }
 0x109   :  { %3918 = vmatpush.bf16.msra.mxu0 %v3101_v63  ;;  %v3261_v9 = vpack.c.bf16 %v2301_v0, %v2281_v54  ;;  %v3421_v13 = vpack.c.bf16 %v2621_v2, %v2601_v1  ;;  %3900 = vmatmul.bf16.vlgmr.msrb.gmra.mxu2 %v5103_v52  ;;  %v4718_v57 = vperm.slane %v5151_v61, 0  ;;  %v641_v14 = vunpack.c.0.s8 %v5129_v19  ;;  %v181_v45 = vld [vmem:[#allocation5 + $0x350] sm:$0xff] }
 0x10a   :  { %v3581_v15 = vpack.c.bf16 %v2941_v5, %v2921_v4  ;;  %v3655_v62 = vadd.f32 %v5119_v43, %v3642_v6  ;;  %v661_v16 = vunpack.c.1.s8 %v5129_v19  ;;  %v961_v42 = vunpack.c.0.s8 %v5131_v25  ;;  %3887 = vmatmul.bf16.vlgmr.msrb.gmra.mxu1 %v5100_v50 }
 0x10b   :  { %3931 = vmatpush.bf16.msra.mxu1 %v3261_v9  ;;  %3944 = vmatpush.bf16.msra.mxu2 %v3421_v13  ;;  %v1921_v17 = vcvt.s32.f32 %v641_v14  ;;  %v981_v52 = vunpack.c.1.s8 %v5131_v25  ;;  %v1281_v18 = vunpack.c.0.s8 %v5134_v29  ;;  %v1301_v20 = vunpack.c.1.s8 %v5134_v29  ;;  %v281_v25 = vld [vmem:[#allocation5 + $0x670] sm:$0xff] }
 0x10c   :  { %3957 = vmatpush.bf16.msra.mxu3 %v3581_v15  ;;  %v4692_v43 = vmul.f32 %v4652_v7, %v3655_v62  ;;  %v1941_v58 = vcvt.s32.f32 %v661_v16  ;;  %v2241_v19 = vcvt.s32.f32 %v961_v42  ;;  %v1601_v60 = vunpack.c.0.s8 %v5141_v36  ;;  %v361_v29 = vld [vmem:[#allocation5 + $0x8f0] sm:$0xff] }
 0x10d   :  { %3913 = vmatmul.bf16.vlgmr.msrb.gmra.mxu3 %v5106_v59  ;;  %v2261_v50 = vcvt.s32.f32 %v981_v52  ;;  %v2561_v3 = vcvt.s32.f32 %v1281_v18  ;;  %v2581_v22 = vcvt.s32.f32 %v1301_v20  ;;  %v1621_v23 = vunpack.c.1.s8 %v5141_v36  ;;  %v5172_v9 = vld [vmem:[#allocation5 + $0xd0] sm:$0xff] }
 0x10e   :  { %v5170_v26 = vadd.f32 %v4718_v57, %v4692_v43  ;;  %v3081_v8 = vpack.c.bf16 %v1941_v58, %v1921_v17  ;;  %v2881_v27 = vcvt.s32.f32 %v1601_v60  ;;  %v601_v28 = vunpack.c.2.s8 %v121_v21 }
 0x10f   :  { %v3241_v32 = vpack.c.bf16 %v2261_v50, %v2241_v19  ;;  %v3401_v33 = vpack.c.bf16 %v2581_v22, %v2561_v3  ;;  %v2901_v34 = vcvt.s32.f32 %v1621_v23  ;;  %v621_v35 = vunpack.c.3.s8 %v121_v21  ;;  %v341_v50 = vld [vmem:[#allocation5 + $0x850] sm:$0xff] }
 0x110   :  { %3919 = vmatpush.bf16.msra.mxu0 %v3081_v8  ;;  %v1881_v37 = vcvt.s32.f32 %v601_v28  ;;  %v921_v59 = vunpack.c.2.s8 %v201_v24  ;;  %v941_v38 = vunpack.c.3.s8 %v201_v24  ;;  %v1241_v39 = vunpack.c.2.s8 %v281_v25 }
 0x111   :  { %3932 = vmatpush.bf16.msra.mxu1 %v3241_v32  ;;  %3945 = vmatpush.bf16.msra.mxu2 %v3401_v33  ;;  %v3561_v36 = vpack.c.bf16 %v2901_v34, %v2881_v27  ;;  %v1901_v40 = vcvt.s32.f32 %v621_v35  ;;  %v1261_v41 = vunpack.c.3.s8 %v281_v25  ;;  %v1561_v44 = vunpack.c.2.s8 %v361_v29 }
 0x112   :  { %v2201_v46 = vcvt.s32.f32 %v921_v59  ;;  %v2221_v47 = vcvt.s32.f32 %v941_v38  ;;  %v2521_v49 = vcvt.s32.f32 %v1241_v39  ;;  %v1581_v51 = vunpack.c.3.s8 %v361_v29 }
 0x113   :  { %3958 = vmatpush.bf16.msra.mxu3 %v3561_v36  ;;  %v3061_v53 = vpack.c.bf16 %v1901_v40, %v1881_v37  ;;  %v2541_v54 = vcvt.s32.f32 %v1261_v41  ;;  %v2841_v55 = vcvt.s32.f32 %v1561_v44  ;;  %v561_v56 = vunpack.c.0.s8 %v121_v21 }
 0x114   :  { %v3221_v63 = vpack.c.bf16 %v2221_v47, %v2201_v46  ;;  %v2861_v0 = vcvt.s32.f32 %v1581_v51  ;;  %v581_v1 = vunpack.c.1.s8 %v121_v21  ;;  %v881_v2 = vunpack.c.0.s8 %v201_v24  ;;  %v261_v21 = vld [vmem:[#allocation5 + $0x5d0] sm:$0xff] }
 0x115   :  { %3920 = vmatpush.bf16.msra.mxu0 %v3061_v53  ;;  %v3381_v4 = vpack.c.bf16 %v2541_v54, %v2521_v49  ;;  %v1841_v5 = vcvt.s32.f32 %v561_v56  ;;  %v901_v6 = vunpack.c.1.s8 %v201_v24  ;;  %v1201_v7 = vunpack.c.0.s8 %v281_v25  ;;  %v81_v56 = vld [vmem:[#allocation5 + $0x30] sm:$0xff] }
 0x116   :  { %3933 = vmatpush.bf16.msra.mxu1 %v3221_v63  ;;  %v3541_v13 = vpack.c.bf16 %v2861_v0, %v2841_v55  ;;  %v1861_v57 = vcvt.s32.f32 %v581_v1  ;;  %v2161_v14 = vcvt.s32.f32 %v881_v2  ;;  %v1221_v15 = vunpack.c.1.s8 %v281_v25 }
 0x117   :  { %3946 = vmatpush.bf16.msra.mxu2 %v3381_v4  ;;  %v2181_v62 = vcvt.s32.f32 %v901_v6  ;;  %v2481_v16 = vcvt.s32.f32 %v1201_v7  ;;  %v1521_v42 = vunpack.c.0.s8 %v361_v29  ;;  %v1541_v10 = vunpack.c.1.s8 %v361_v29  ;;  %v161_v7 = vld [vmem:[#allocation5 + $0x2b0] sm:$0xff] }
 0x118   :  { %3959 = vmatpush.bf16.msra.mxu3 %v3541_v13  ;;  %v3041_v17 = vpack.c.bf16 %v1861_v57, %v1841_v5  ;;  %v2501_v52 = vcvt.s32.f32 %v1221_v15  ;;  %v3681_v18 = vadd.f32 %v5127_v12, %v5125_v11  ;;  %v521_v20 = vunpack.c.2.s8 %v5172_v9  ;;  %v241_v15 = vld [vmem:[#allocation5 + $0x530] sm:$0xff] }
 0x119   :  { %v3201_v43 = vpack.c.bf16 %v2181_v62, %v2161_v14  ;;  %v2801_v58 = vcvt.s32.f32 %v1521_v42  ;;  %v2821_v19 = vcvt.s32.f32 %v1541_v10  ;;  %v541_v60 = vunpack.c.3.s8 %v5172_v9 }
 0x11a   :  { %3921 = vmatpush.bf16.msra.mxu0 %v3041_v17  ;;  %v3361_v3 = vpack.c.bf16 %v2501_v52, %v2481_v16  ;;  %v1801_v22 = vcvt.s32.f32 %v521_v20  ;;  %v841_v23 = vunpack.c.2.s8 %v181_v45  ;;  %v861_v24 = vunpack.c.3.s8 %v181_v45 }
 0x11b   :  { %3934 = vmatpush.bf16.msra.mxu1 %v3201_v43  ;;  %v3521_v25 = vpack.c.bf16 %v2821_v19, %v2801_v58  ;;  %v1821_v8 = vcvt.s32.f32 %v541_v60  ;;  %v1161_v27 = vunpack.c.2.s8 %v261_v21  ;;  %v1181_v28 = vunpack.c.3.s8 %v261_v21 }
 0x11c   :  { %3947 = vmatpush.bf16.msra.mxu2 %v3361_v3  ;;  %v2121_v11 = vcvt.s32.f32 %v841_v23  ;;  %v2141_v12 = vcvt.s32.f32 %v861_v24  ;;  %v1481_v29 = vunpack.c.2.s8 %v341_v50  ;;  %v1501_v32 = vunpack.c.3.s8 %v341_v50 }
 0x11d   :  { %3960 = vmatpush.bf16.msra.mxu3 %v3521_v25  ;;  %v3021_v33 = vpack.c.bf16 %v1821_v8, %v1801_v22  ;;  %v2441_v34 = vcvt.s32.f32 %v1161_v27  ;;  %v2461_v35 = vcvt.s32.f32 %v1181_v28  ;;  %v3694_v37 = vadd.f32 %v5136_v30, %v3681_v18 }
 0x11e   :  { %v3181_v59 = vpack.c.bf16 %v2141_v12, %v2121_v11  ;;  %v2761_v38 = vcvt.s32.f32 %v1481_v29  ;;  %v2781_v39 = vcvt.s32.f32 %v1501_v32  ;;  %v4653_v36 = vperm.slane %v5147_v48, 1 }
 0x11f   :  { %3922 = vmatpush.bf16.msra.mxu0 %v3021_v33  ;;  %v3341_v40 = vpack.c.bf16 %v2461_v35, %v2441_v34  ;;  %v3707_v41 = vadd.f32 %v5138_v31, %v3694_v37  ;;  %v4719_v44 = vperm.slane %v5151_v61, 1  ;;  %v481_v47 = vunpack.c.0.s8 %v5172_v9 }
 0x120   :  { %3935 = vmatpush.bf16.msra.mxu1 %v3181_v59  ;;  %v3501_v46 = vpack.c.bf16 %v2781_v39, %v2761_v38  ;;  %v501_v49 = vunpack.c.1.s8 %v5172_v9  ;;  %v801_v51 = vunpack.c.0.s8 %v181_v45  ;;  %v821_v53 = vunpack.c.1.s8 %v181_v45  ;;  %v321_v45 = vld [vmem:[#allocation5 + $0x7b0] sm:$0xff]  ;;  %v142_v38 = vld [vmem:[#allocation5 + $0x218] sm:$0xff] }
 0x121   :  { %3948 = vmatpush.bf16.msra.mxu2 %v3341_v40  ;;  %v4693_v30 = vmul.f32 %v4653_v36, %v3707_v41  ;;  %v1121_v54 = vunpack.c.0.s8 %v261_v21  ;;  %v1141_v55 = vunpack.c.1.s8 %v261_v21  ;;  %v1761_v63 = vcvt.s32.f32 %v481_v47 }
 0x122   :  { %3961 = vmatpush.bf16.msra.mxu3 %v3501_v46  ;;  %v1781_v0 = vcvt.s32.f32 %v501_v49  ;;  %v2081_v31 = vcvt.s32.f32 %v801_v51  ;;  %v1441_v1 = vunpack.c.0.s8 %v341_v50  ;;  %v2101_v4 = vcvt.s32.f32 %v821_v53 }
 0x123   :  { %v4759_v2 = vadd.f32 %v4719_v44, %v4693_v30  ;;  %v2401_v5 = vcvt.s32.f32 %v1121_v54  ;;  %v2421_v6 = vcvt.s32.f32 %v1141_v55  ;;  %v1461_v57 = vunpack.c.1.s8 %v341_v50  ;;  %v222_v44 = vld [vmem:[#allocation5 + $0x498] sm:$0xff] }
 0x124   :  { %v3001_v13 = vpack.c.bf16 %v1781_v0, %v1761_v63  ;;  %v2721_v9 = vcvt.s32.f32 %v1441_v1  ;;  %v441_v14 = vunpack.c.2.s8 %v81_v56  ;;  %v3161_v16 = vpack.c.bf16 %v2101_v4, %v2081_v31  ;;  %v302_v30 = vld [vmem:[#allocation5 + $0x718] sm:$0xff] }
 0x125   :  { %v4798_v62 = vrot.slane %v4759_v2, 6  ;;  %v3321_v42 = vpack.c.bf16 %v2421_v6, %v2401_v5  ;;  %v461_v10 = vunpack.c.3.s8 %v81_v56  ;;  %v2741_v17 = vcvt.s32.f32 %v1461_v57  ;;  %v5188_v63 = vld [vmem:[#allocation5 + $0x998] sm:$0xff] }
 0x126   :  { %3923 = vmatpush.bf16.msra.mxu0 %v3001_v13  ;;  %v1721_v52 = vcvt.s32.f32 %v441_v14  ;;  %v761_v18 = vunpack.c.2.s8 %v161_v7  ;;  %v781_v20 = vunpack.c.3.s8 %v161_v7  ;;  %3936 = vmatpush.bf16.msra.mxu1 %v3161_v16  ;;  %v1081_v58 = vunpack.c.2.s8 %v241_v15 }
 0x127   :  { %v5186_v21 = vsel %vm4813_vm0, %v5170_v26, %v4798_v62  ;;  %3949 = vmatpush.bf16.msra.mxu2 %v3321_v42  ;;  %v1741_v43 = vcvt.s32.f32 %v461_v10  ;;  %v1101_v19 = vunpack.c.3.s8 %v241_v15  ;;  %v3481_v60 = vpack.c.bf16 %v2741_v17, %v2721_v9  ;;  %v5192_v10 = vld [vmem:[#allocation1] sm:$0xff] }
 0x128   :  { %v2041_v50 = vcvt.s32.f32 %v761_v18  ;;  %v2061_v3 = vcvt.s32.f32 %v781_v20  ;;  %v1401_v22 = vunpack.c.2.s8 %v321_v45  ;;  %v2361_v24 = vcvt.s32.f32 %v1081_v58  ;;  %v5195_v20 = vld [vmem:[#allocation1 + $0x9] sm:$0xff] }
 0x129   :  { %v2981_v23 = vpack.c.bf16 %v1741_v43, %v1721_v52  ;;  %v2381_v25 = vcvt.s32.f32 %v1101_v19  ;;  %v1421_v8 = vunpack.c.3.s8 %v321_v45  ;;  %3962 = vmatpush.bf16.msra.mxu3 %v3481_v60  ;;  %v401_v11 = vunpack.c.0.s8 %v81_v56 }
 0x12a   :  { %v3141_v27 = vpack.c.bf16 %v2061_v3, %v2041_v50  ;;  %v2681_v28 = vcvt.s32.f32 %v1401_v22  ;;  %v421_v12 = vunpack.c.1.s8 %v81_v56  ;;  %v721_v32 = vunpack.c.0.s8 %v161_v7  ;;  %v5198_v50 = vld [vmem:[#allocation1 + $0x12] sm:$0xff] }
 0x12b   :  { %3924 = vmatpush.bf16.msra.mxu0 %v2981_v23  ;;  %v3301_v26 = vpack.c.bf16 %v2381_v25, %v2361_v24  ;;  %v2701_v29 = vcvt.s32.f32 %v1421_v8  ;;  %v741_v33 = vunpack.c.1.s8 %v161_v7  ;;  %v1681_v34 = vcvt.s32.f32 %v401_v11  ;;  %v122_v25 = vld [vmem:[#allocation5 + $0x178] sm:$0xff] }
 0x12c   :  { %3937 = vmatpush.bf16.msra.mxu1 %v3141_v27  ;;  %v1701_v35 = vcvt.s32.f32 %v421_v12  ;;  %v1041_v37 = vunpack.c.0.s8 %v241_v15  ;;  %v1061_v59 = vunpack.c.1.s8 %v241_v15  ;;  %v2001_v36 = vcvt.s32.f32 %v721_v32  ;;  %v202_v12 = vld [vmem:[#allocation5 + $0x3f8] sm:$0xff]  ;;  %v5207_v32 = vpop.f32.mrf.mxu1 }
 0x12d   :  { %3950 = vmatpush.bf16.msra.mxu2 %v3301_v26  ;;  %v3461_v39 = vpack.c.bf16 %v2701_v29, %v2681_v28  ;;  %v2021_v40 = vcvt.s32.f32 %v741_v33  ;;  %v1361_v41 = vunpack.c.0.s8 %v321_v45  ;;  %v1381_v51 = vunpack.c.1.s8 %v321_v45  ;;  %v5202_v26 = vld [vmem:[#allocation1 + $0x1b] sm:$0xff]  ;;  %v5205_v29 = vpop.f32.mrf.mxu0 }
 0x12e   :  { %v2961_v46 = vpack.c.bf16 %v1701_v35, %v1681_v34  ;;  %v2321_v47 = vcvt.s32.f32 %v1041_v37  ;;  %v2341_v49 = vcvt.s32.f32 %v1061_v59  ;;  %v682_v55 = vunpack.c.2.s8 %v142_v38  ;;  %v282_v59 = vld [vmem:[#allocation5 + $0x678] sm:$0xff] }
 0x12f   :  { %3963 = vmatpush.bf16.msra.mxu3 %v3461_v39  ;;  %v3121_v53 = vpack.c.bf16 %v2021_v40, %v2001_v36  ;;  %v2641_v54 = vcvt.s32.f32 %v1361_v41  ;;  %v702_v56 = vunpack.c.3.s8 %v142_v38  ;;  %v2661_v31 = vcvt.s32.f32 %v1381_v51  ;;  %v362_v41 = vld [vmem:[#allocation5 + $0x8f8] sm:$0xff] }
 0x130   :  { %3925 = vmatpush.bf16.msra.mxu0 %v2961_v46  ;;  %v3281_v0 = vpack.c.bf16 %v2341_v49, %v2321_v47  ;;  %v1002_v1 = vunpack.c.2.s8 %v222_v44  ;;  %v1022_v2 = vunpack.c.3.s8 %v222_v44  ;;  %v1962_v4 = vcvt.s32.f32 %v682_v55 }
 0x131   :  { %3938 = vmatpush.bf16.msra.mxu1 %v3121_v53  ;;  %v1982_v5 = vcvt.s32.f32 %v702_v56  ;;  %v1322_v6 = vunpack.c.2.s8 %v302_v30  ;;  %v1342_v7 = vunpack.c.3.s8 %v302_v30  ;;  %v3441_v13 = vpack.c.bf16 %v2661_v31, %v2641_v54 }
 0x132   :  { %3951 = vmatpush.bf16.msra.mxu2 %v3281_v0  ;;  %v2282_v57 = vcvt.s32.f32 %v1002_v1  ;;  %v2302_v9 = vcvt.s32.f32 %v1022_v2  ;;  %v1642_v14 = vunpack.c.2.s8 %v5188_v63  ;;  %v1662_v42 = vunpack.c.3.s8 %v5188_v63 }
 0x133   :  { %v3102_v15 = vpack.c.bf16 %v1982_v5, %v1962_v4  ;;  %v2602_v62 = vcvt.s32.f32 %v1322_v6  ;;  %v2622_v16 = vcvt.s32.f32 %v1342_v7  ;;  %3926 = vmatmul.bf16.vlgmr.msra.gmra.mxu0 %v5192_v10  ;;  %3964 = vmatpush.bf16.msra.mxu3 %v3441_v13  ;;  %v642_v52 = vunpack.c.0.s8 %v142_v38 }
 0x134   :  { %v3262_v45 = vpack.c.bf16 %v2302_v9, %v2282_v57  ;;  %v2922_v17 = vcvt.s32.f32 %v1642_v14  ;;  %v662_v18 = vunpack.c.1.s8 %v142_v38  ;;  %3939 = vmatmul.bf16.vlgmr.msra.gmra.mxu1 %v5195_v20  ;;  %v2942_v58 = vcvt.s32.f32 %v1662_v42 }
 0x135   :  { %3970 = vmatpush.bf16.msrb.mxu0 %v3102_v15  ;;  %v3422_v43 = vpack.c.bf16 %v2622_v16, %v2602_v62  ;;  %v962_v19 = vunpack.c.0.s8 %v222_v44  ;;  %v982_v60 = vunpack.c.1.s8 %v222_v44  ;;  %3952 = vmatmul.bf16.vlgmr.msra.gmra.mxu2 %v5198_v50  ;;  %v1922_v3 = vcvt.s32.f32 %v642_v52  ;;  %v3721_v62 = vpop.f32.mrf.mxu0  ;;  %v3734_v16 = vpop.f32.mrf.mxu1 }
 0x136   :  { %3983 = vmatpush.bf16.msrb.mxu1 %v3262_v45  ;;  %v1942_v22 = vcvt.s32.f32 %v662_v18  ;;  %v1282_v23 = vunpack.c.0.s8 %v302_v30  ;;  %v1302_v24 = vunpack.c.1.s8 %v302_v30  ;;  %v3582_v8 = vpack.c.bf16 %v2942_v58, %v2922_v17  ;;  %3965 = vmatmul.bf16.vlgmr.msra.gmra.mxu3 %v5202_v26  ;;  %v102_v18 = vld [vmem:[#allocation5 + $0xd8] sm:$0xff] }
 0x137   :  { %3996 = vmatpush.bf16.msrb.mxu2 %v3422_v43  ;;  %v2242_v27 = vcvt.s32.f32 %v962_v19  ;;  %v2262_v28 = vcvt.s32.f32 %v982_v60  ;;  %v1602_v11 = vunpack.c.0.s8 %v5188_v63  ;;  %v1622_v37 = vunpack.c.1.s8 %v5188_v63 }
 0x138   :  { %v3082_v33 = vpack.c.bf16 %v1942_v22, %v1922_v3  ;;  %v2562_v34 = vcvt.s32.f32 %v1282_v23  ;;  %v2582_v35 = vcvt.s32.f32 %v1302_v24  ;;  %4009 = vmatpush.bf16.msrb.mxu3 %v3582_v8  ;;  %v602_v36 = vunpack.c.2.s8 %v122_v25  ;;  %v182_v3 = vld [vmem:[#allocation5 + $0x358] sm:$0xff]  ;;  %v5210_v22 = vpop.f32.mrf.mxu2  ;;  %v5212_v23 = vpop.f32.mrf.mxu3 }
 0x139   :  { %v3242_v38 = vpack.c.bf16 %v2262_v28, %v2242_v27  ;;  %v2882_v39 = vcvt.s32.f32 %v1602_v11  ;;  %v622_v40 = vunpack.c.3.s8 %v122_v25  ;;  %v2902_v46 = vcvt.s32.f32 %v1622_v37  ;;  %v262_v28 = vld [vmem:[#allocation5 + $0x5d8] sm:$0xff] }
 0x13a   :  { %3971 = vmatpush.bf16.msrb.mxu0 %v3082_v33  ;;  %v3402_v44 = vpack.c.bf16 %v2582_v35, %v2562_v34  ;;  %v922_v47 = vunpack.c.2.s8 %v202_v12  ;;  %v942_v49 = vunpack.c.3.s8 %v202_v12  ;;  %v1882_v51 = vcvt.s32.f32 %v602_v36  ;;  %v342_v35 = vld [vmem:[#allocation5 + $0x858] sm:$0xff] }
 0x13b   :  { %3984 = vmatpush.bf16.msrb.mxu1 %v3242_v38  ;;  %v1902_v30 = vcvt.s32.f32 %v622_v40  ;;  %v1242_v53 = vunpack.c.2.s8 %v282_v59  ;;  %v1262_v54 = vunpack.c.3.s8 %v282_v59  ;;  %v3562_v55 = vpack.c.bf16 %v2902_v46, %v2882_v39 }
 0x13c   :  { %3997 = vmatpush.bf16.msrb.mxu2 %v3402_v44  ;;  %v2202_v56 = vcvt.s32.f32 %v922_v47  ;;  %v2222_v63 = vcvt.s32.f32 %v942_v49  ;;  %v1562_v0 = vunpack.c.2.s8 %v362_v41  ;;  %v1582_v4 = vunpack.c.3.s8 %v362_v41 }
 0x13d   :  { %v3062_v31 = vpack.c.bf16 %v1902_v30, %v1882_v51  ;;  %v2522_v1 = vcvt.s32.f32 %v1242_v53  ;;  %v2542_v2 = vcvt.s32.f32 %v1262_v54  ;;  %4010 = vmatpush.bf16.msrb.mxu3 %v3562_v55  ;;  %v562_v7 = vunpack.c.0.s8 %v122_v25 }
 0x13e   :  { %v3222_v5 = vpack.c.bf16 %v2222_v63, %v2202_v56  ;;  %v2842_v6 = vcvt.s32.f32 %v1562_v0  ;;  %v582_v13 = vunpack.c.1.s8 %v122_v25  ;;  %v2862_v9 = vcvt.s32.f32 %v1582_v4 }
 0x13f   :  { %3972 = vmatpush.bf16.msrb.mxu0 %v3062_v31  ;;  %v3382_v57 = vpack.c.bf16 %v2542_v2, %v2522_v1  ;;  %v882_v14 = vunpack.c.0.s8 %v202_v12  ;;  %v902_v15 = vunpack.c.1.s8 %v202_v12  ;;  %v1842_v42 = vcvt.s32.f32 %v562_v7 }
 0x140   :  { %3985 = vmatpush.bf16.msrb.mxu1 %v3222_v5  ;;  %v1862_v45 = vcvt.s32.f32 %v582_v13  ;;  %v1202_v17 = vunpack.c.0.s8 %v282_v59  ;;  %v1222_v52 = vunpack.c.1.s8 %v282_v59  ;;  %v3542_v43 = vpack.c.bf16 %v2862_v9, %v2842_v6  ;;  %v3747_v6 = vpop.f32.mrf.mxu2  ;;  %v3760_v7 = vpop.f32.mrf.mxu3 }
 0x141   :  { %3998 = vmatpush.bf16.msrb.mxu2 %v3382_v57  ;;  %v2162_v58 = vcvt.s32.f32 %v882_v14  ;;  %v2182_v19 = vcvt.s32.f32 %v902_v15  ;;  %v1522_v60 = vunpack.c.0.s8 %v362_v41  ;;  %v1542_v27 = vunpack.c.1.s8 %v362_v41  ;;  %v82_v15 = vld [vmem:[#allocation5 + $0x38] sm:$0xff] }
 0x142   :  { %v3042_v24 = vpack.c.bf16 %v1862_v45, %v1842_v42  ;;  %v2482_v25 = vcvt.s32.f32 %v1202_v17  ;;  %v2502_v8 = vcvt.s32.f32 %v1222_v52  ;;  %4011 = vmatpush.bf16.msrb.mxu3 %v3542_v43  ;;  %v522_v33 = vunpack.c.2.s8 %v102_v18  ;;  %v162_v17 = vld [vmem:[#allocation5 + $0x2b8] sm:$0xff] }
 0x143   :  { %v3202_v11 = vpack.c.bf16 %v2182_v19, %v2162_v58  ;;  %v2802_v12 = vcvt.s32.f32 %v1522_v60  ;;  %v542_v34 = vunpack.c.3.s8 %v102_v18  ;;  %v2822_v59 = vcvt.s32.f32 %v1542_v27  ;;  %v242_v19 = vld [vmem:[#allocation5 + $0x538] sm:$0xff] }
 0x144   :  { %3973 = vmatpush.bf16.msrb.mxu0 %v3042_v24  ;;  %v3362_v37 = vpack.c.bf16 %v2502_v8, %v2482_v25  ;;  %v842_v38 = vunpack.c.2.s8 %v182_v3  ;;  %v862_v39 = vunpack.c.3.s8 %v182_v3  ;;  %v1802_v36 = vcvt.s32.f32 %v522_v33  ;;  %v322_v8 = vld [vmem:[#allocation5 + $0x7b8] sm:$0xff] }
 0x145   :  { %3986 = vmatpush.bf16.msrb.mxu1 %v3202_v11  ;;  %v1822_v40 = vcvt.s32.f32 %v542_v34  ;;  %v1162_v44 = vunpack.c.2.s8 %v262_v28  ;;  %v1182_v46 = vunpack.c.3.s8 %v262_v28  ;;  %v3522_v47 = vpack.c.bf16 %v2822_v59, %v2802_v12 }
 0x146   :  { %3999 = vmatpush.bf16.msrb.mxu2 %v3362_v37  ;;  %v2122_v41 = vcvt.s32.f32 %v842_v38  ;;  %v2142_v49 = vcvt.s32.f32 %v862_v39  ;;  %v1482_v51 = vunpack.c.2.s8 %v342_v35  ;;  %v1502_v55 = vunpack.c.3.s8 %v342_v35 }
 0x147   :  { %v3022_v30 = vpack.c.bf16 %v1822_v40, %v1802_v36  ;;  %v2442_v53 = vcvt.s32.f32 %v1162_v44  ;;  %v2462_v54 = vcvt.s32.f32 %v1182_v46  ;;  %4012 = vmatpush.bf16.msrb.mxu3 %v3522_v47  ;;  %v482_v0 = vunpack.c.0.s8 %v102_v18 }
 0x148   :  { %v3182_v56 = vpack.c.bf16 %v2142_v49, %v2122_v41  ;;  %v2762_v63 = vcvt.s32.f32 %v1482_v51  ;;  %v502_v31 = vunpack.c.1.s8 %v102_v18  ;;  %v2782_v2 = vcvt.s32.f32 %v1502_v55 }
 0x149   :  { %3974 = vmatpush.bf16.msrb.mxu0 %v3022_v30  ;;  %v3342_v1 = vpack.c.bf16 %v2462_v54, %v2442_v53  ;;  %v802_v4 = vunpack.c.0.s8 %v182_v3  ;;  %v822_v5 = vunpack.c.1.s8 %v182_v3  ;;  %v1762_v13 = vcvt.s32.f32 %v482_v0  ;;  %v5216_v53 = vpop.f32.mrf.mxu0  ;;  %v5218_v54 = vpop.f32.mrf.mxu1 }
 0x14a   :  { %3987 = vmatpush.bf16.msrb.mxu1 %v3182_v56  ;;  %v1782_v57 = vcvt.s32.f32 %v502_v31  ;;  %v1122_v9 = vunpack.c.0.s8 %v262_v28  ;;  %v1142_v14 = vunpack.c.1.s8 %v262_v28  ;;  %v3502_v62 = vpack.c.bf16 %v2782_v2, %v2762_v63 }
 0x14b   :  { %4000 = vmatpush.bf16.msrb.mxu2 %v3342_v1  ;;  %v2082_v16 = vcvt.s32.f32 %v802_v4  ;;  %v2102_v42 = vcvt.s32.f32 %v822_v5  ;;  %v1442_v45 = vunpack.c.0.s8 %v342_v35  ;;  %v1462_v58 = vunpack.c.1.s8 %v342_v35  ;;  %v5220_v5 = vld [vmem:[#allocation5 + $0x220] sm:$0xff] }
 0x14c   :  { %v3002_v52 = vpack.c.bf16 %v1782_v57, %v1762_v13  ;;  %v2402_v18 = vcvt.s32.f32 %v1122_v9  ;;  %v2422_v43 = vcvt.s32.f32 %v1142_v14  ;;  %4013 = vmatpush.bf16.msrb.mxu3 %v3502_v62  ;;  %v442_v24 = vunpack.c.2.s8 %v82_v15  ;;  %v5222_v13 = vld [vmem:[#allocation5 + $0x4a0] sm:$0xff] }
 0x14d   :  { %v3162_v60 = vpack.c.bf16 %v2102_v42, %v2082_v16  ;;  %v2722_v3 = vcvt.s32.f32 %v1442_v45  ;;  %v462_v25 = vunpack.c.3.s8 %v82_v15  ;;  %v2742_v28 = vcvt.s32.f32 %v1462_v58 }
 0x14e   :  { %3975 = vmatpush.bf16.msrb.mxu0 %v3002_v52  ;;  %v3322_v27 = vpack.c.bf16 %v2422_v43, %v2402_v18  ;;  %v762_v11 = vunpack.c.2.s8 %v162_v17  ;;  %v782_v12 = vunpack.c.3.s8 %v162_v17  ;;  %v1722_v33 = vcvt.s32.f32 %v442_v24  ;;  %v5228_v52 = vld [vmem:[#allocation5 + $0x9a0] sm:$0xff]  ;;  %v5230_v18 = vpop.f32.mrf.mxu2  ;;  %v5232_v43 = vpop.f32.mrf.mxu3 }
 0x14f   :  { %3988 = vmatpush.bf16.msrb.mxu1 %v3162_v60  ;;  %v1742_v34 = vcvt.s32.f32 %v462_v25  ;;  %v1082_v37 = vunpack.c.2.s8 %v242_v19  ;;  %v1102_v59 = vunpack.c.3.s8 %v242_v19  ;;  %v3482_v38 = vpack.c.bf16 %v2742_v28, %v2722_v3 }
 0x150   :  { %4001 = vmatpush.bf16.msrb.mxu2 %v3322_v27  ;;  %v2042_v35 = vcvt.s32.f32 %v762_v11  ;;  %v2062_v39 = vcvt.s32.f32 %v782_v12  ;;  %v1402_v36 = vunpack.c.2.s8 %v322_v8  ;;  %v1422_v47 = vunpack.c.3.s8 %v322_v8 }
 0x151   :  { %v2982_v40 = vpack.c.bf16 %v1742_v34, %v1722_v33  ;;  %v2362_v44 = vcvt.s32.f32 %v1082_v37  ;;  %v2382_v46 = vcvt.s32.f32 %v1102_v59  ;;  %4014 = vmatpush.bf16.msrb.mxu3 %v3482_v38  ;;  %v3733_v51 = vadd.f32 %v5207_v32, %v5205_v29  ;;  %v3773_v34 = vpop.f32.mrf.mxu0  ;;  %v3786_v37 = vpop.f32.mrf.mxu1 }
 0x152   :  { %v3142_v41 = vpack.c.bf16 %v2062_v39, %v2042_v35  ;;  %v2682_v49 = vcvt.s32.f32 %v1402_v36  ;;  %v402_v30 = vunpack.c.0.s8 %v82_v15  ;;  %v2702_v56 = vcvt.s32.f32 %v1422_v47 }
 0x153   :  { %3976 = vmatpush.bf16.msrb.mxu0 %v2982_v40  ;;  %v3302_v55 = vpack.c.bf16 %v2382_v46, %v2362_v44  ;;  %v422_v63 = vunpack.c.1.s8 %v82_v15  ;;  %v722_v0 = vunpack.c.0.s8 %v162_v17  ;;  %v742_v1 = vunpack.c.1.s8 %v162_v17  ;;  %v5224_v15 = vld [vmem:[#allocation5 + $0x720] sm:$0xff] }
 0x154   :  { %3989 = vmatpush.bf16.msrb.mxu1 %v3142_v41  ;;  %v1682_v31 = vcvt.s32.f32 %v402_v30  ;;  %v1042_v2 = vunpack.c.0.s8 %v242_v19  ;;  %v1062_v4 = vunpack.c.1.s8 %v242_v19  ;;  %v3462_v6 = vpack.c.bf16 %v2702_v56, %v2682_v49 }
 0x155   :  { %4002 = vmatpush.bf16.msrb.mxu2 %v3302_v55  ;;  %v1702_v29 = vcvt.s32.f32 %v422_v63  ;;  %v2002_v32 = vcvt.s32.f32 %v722_v0  ;;  %v1362_v7 = vunpack.c.0.s8 %v322_v8  ;;  %v2022_v57 = vcvt.s32.f32 %v742_v1 }
 0x156   :  { %v2322_v9 = vcvt.s32.f32 %v1042_v2  ;;  %v2342_v14 = vcvt.s32.f32 %v1062_v4  ;;  %v1382_v62 = vunpack.c.1.s8 %v322_v8  ;;  %4015 = vmatpush.bf16.msrb.mxu3 %v3462_v6  ;;  %v683_v45 = vunpack.c.2.s8 %v5220_v5  ;;  %v3799_v1 = vpop.f32.mrf.mxu2  ;;  %v3812_v2 = vpop.f32.mrf.mxu3 }
 0x157   :  { %v2962_v16 = vpack.c.bf16 %v1702_v29, %v1682_v31  ;;  %v2642_v42 = vcvt.s32.f32 %v1362_v7  ;;  %v703_v17 = vunpack.c.3.s8 %v5220_v5  ;;  %v3122_v58 = vpack.c.bf16 %v2022_v57, %v2002_v32  ;;  %v123_v31 = vld [vmem:[#allocation5 + $0x180] sm:$0xff] }
 0x158   :  { %v3282_v19 = vpack.c.bf16 %v2342_v14, %v2322_v9  ;;  %v2662_v60 = vcvt.s32.f32 %v1382_v62  ;;  %v1003_v3 = vunpack.c.2.s8 %v5222_v13  ;;  %v1963_v24 = vcvt.s32.f32 %v683_v45  ;;  %v203_v9 = vld [vmem:[#allocation5 + $0x400] sm:$0xff] }
 0x159   :  { %3977 = vmatpush.bf16.msrb.mxu0 %v2962_v16  ;;  %v1983_v25 = vcvt.s32.f32 %v703_v17  ;;  %v1023_v8 = vunpack.c.3.s8 %v5222_v13  ;;  %v1323_v27 = vunpack.c.2.s8 %v5224_v15  ;;  %3990 = vmatpush.bf16.msrb.mxu1 %v3122_v58  ;;  %v1343_v12 = vunpack.c.3.s8 %v5224_v15  ;;  %v183_v1 = vld [vmem:[#allocation5 + $0x360] sm:$0xff] }
 0x15a   :  { %4003 = vmatpush.bf16.msrb.mxu2 %v3282_v19  ;;  %v3442_v28 = vpack.c.bf16 %v2662_v60, %v2642_v42  ;;  %v2283_v11 = vcvt.s32.f32 %v1003_v3  ;;  %v1643_v33 = vunpack.c.2.s8 %v5228_v52  ;;  %v1663_v39 = vunpack.c.3.s8 %v5228_v52  ;;  %v283_v42 = vld [vmem:[#allocation5 + $0x680] sm:$0xff] }
 0x15b   :  { %v3103_v59 = vpack.c.bf16 %v1983_v25, %v1963_v24  ;;  %v2303_v38 = vcvt.s32.f32 %v1023_v8  ;;  %v2603_v35 = vcvt.s32.f32 %v1323_v27  ;;  %v2623_v36 = vcvt.s32.f32 %v1343_v12  ;;  %v363_v60 = vld [vmem:[#allocation5 + $0x900] sm:$0xff] }
 0x15c   :  { %4016 = vmatpush.bf16.msrb.mxu3 %v3442_v28  ;;  %v2923_v40 = vcvt.s32.f32 %v1643_v33  ;;  %v3746_v44 = vadd.f32 %v5210_v22, %v3733_v51  ;;  %v4654_v46 = vperm.slane %v5147_v48, 2  ;;  %3978 = vmatmul.bf16.vlgmr.msrb.gmra.mxu0 %v5192_v10  ;;  %v2943_v41 = vcvt.s32.f32 %v1663_v39 }
 0x15d   :  { %4022 = vmatpush.bf16.msra.mxu0 %v3103_v59  ;;  %v3263_v47 = vpack.c.bf16 %v2303_v38, %v2283_v11  ;;  %4004 = vmatmul.bf16.vlgmr.msrb.gmra.mxu2 %v5198_v50  ;;  %v4720_v49 = vperm.slane %v5151_v61, 2  ;;  %v643_v30 = vunpack.c.0.s8 %v5220_v5  ;;  %v3423_v55 = vpack.c.bf16 %v2623_v36, %v2603_v35 }
 0x15e   :  { %v3759_v56 = vadd.f32 %v5212_v23, %v3746_v44  ;;  %v663_v63 = vunpack.c.1.s8 %v5220_v5  ;;  %v963_v22 = vunpack.c.0.s8 %v5222_v13  ;;  %3991 = vmatmul.bf16.vlgmr.msrb.gmra.mxu1 %v5195_v20  ;;  %v3583_v48 = vpack.c.bf16 %v2943_v41, %v2923_v40 }
 0x15f   :  { %4035 = vmatpush.bf16.msra.mxu1 %v3263_v47  ;;  %4017 = vmatmul.bf16.vlgmr.msrb.gmra.mxu3 %v5202_v26  ;;  %v1923_v51 = vcvt.s32.f32 %v643_v30  ;;  %v983_v0 = vunpack.c.1.s8 %v5222_v13  ;;  %v1283_v61 = vunpack.c.0.s8 %v5224_v15  ;;  %v1303_v6 = vunpack.c.1.s8 %v5224_v15 }
 0x160   :  { %4048 = vmatpush.bf16.msra.mxu2 %v3423_v55  ;;  %v4694_v23 = vmul.f32 %v4654_v46, %v3759_v56  ;;  %v1943_v4 = vcvt.s32.f32 %v663_v63  ;;  %v2243_v5 = vcvt.s32.f32 %v963_v22  ;;  %4061 = vmatpush.bf16.msra.mxu3 %v3583_v48  ;;  %v1603_v7 = vunpack.c.0.s8 %v5228_v52  ;;  %v5259_v22 = vld [vmem:[#allocation5 + $0xe0] sm:$0xff] }
 0x161   :  { %v2263_v29 = vcvt.s32.f32 %v983_v0  ;;  %v2563_v32 = vcvt.s32.f32 %v1283_v61  ;;  %v1623_v57 = vunpack.c.1.s8 %v5228_v52  ;;  %v2583_v62 = vcvt.s32.f32 %v1303_v6 }
 0x162   :  { %v5256_v13 = vadd.f32 %v4720_v49, %v4694_v23  ;;  %v3083_v14 = vpack.c.bf16 %v1943_v4, %v1923_v51  ;;  %v603_v16 = vunpack.c.2.s8 %v123_v31  ;;  %v2883_v17 = vcvt.s32.f32 %v1603_v7 }
 0x163   :  { %v3243_v45 = vpack.c.bf16 %v2263_v29, %v2243_v5  ;;  %v2903_v58 = vcvt.s32.f32 %v1623_v57  ;;  %v623_v19 = vunpack.c.3.s8 %v123_v31  ;;  %v3403_v3 = vpack.c.bf16 %v2583_v62, %v2563_v32  ;;  %v263_v5 = vld [vmem:[#allocation5 + $0x5e0] sm:$0xff] }
 0x164   :  { %v4799_v15 = vrot.slane %v5256_v13, 4  ;;  %4023 = vmatpush.bf16.msra.mxu0 %v3083_v14  ;;  %v1883_v24 = vcvt.s32.f32 %v603_v16  ;;  %v923_v25 = vunpack.c.2.s8 %v203_v9  ;;  %v943_v27 = vunpack.c.3.s8 %v203_v9  ;;  %v343_v16 = vld [vmem:[#allocation5 + $0x860] sm:$0xff] }
 0x165   :  { %4036 = vmatpush.bf16.msra.mxu1 %v3243_v45  ;;  %v3563_v52 = vpack.c.bf16 %v2903_v58, %v2883_v17  ;;  %v1903_v8 = vcvt.s32.f32 %v623_v19  ;;  %v1243_v28 = vunpack.c.2.s8 %v283_v42  ;;  %4049 = vmatpush.bf16.msra.mxu2 %v3403_v3  ;;  %v1263_v12 = vunpack.c.3.s8 %v283_v42 }
 0x166   :  { %v2203_v11 = vcvt.s32.f32 %v923_v25  ;;  %v1563_v33 = vunpack.c.2.s8 %v363_v60  ;;  %v1583_v34 = vunpack.c.3.s8 %v363_v60  ;;  %v2223_v59 = vcvt.s32.f32 %v943_v27 }
 0x167   :  { %4062 = vmatpush.bf16.msra.mxu3 %v3563_v52  ;;  %v3063_v37 = vpack.c.bf16 %v1903_v8, %v1883_v24  ;;  %v2523_v38 = vcvt.s32.f32 %v1243_v28  ;;  %v563_v35 = vunpack.c.0.s8 %v123_v31  ;;  %v2543_v39 = vcvt.s32.f32 %v1263_v12 }
 0x168   :  { %v2843_v36 = vcvt.s32.f32 %v1563_v33  ;;  %v2863_v40 = vcvt.s32.f32 %v1583_v34  ;;  %v583_v44 = vunpack.c.1.s8 %v123_v31  ;;  %v3223_v46 = vpack.c.bf16 %v2223_v59, %v2203_v11  ;;  %v5266_v11 = vld [vmem:[#allocation7] sm:$0xff]  ;;  %v5269_v59 = vld [vmem:[#allocation8] sm:$0xff] }
 0x169   :  { %4024 = vmatpush.bf16.msra.mxu0 %v3063_v37  ;;  %v1843_v47 = vcvt.s32.f32 %v563_v35  ;;  %v883_v41 = vunpack.c.0.s8 %v203_v9  ;;  %v903_v49 = vunpack.c.1.s8 %v203_v9  ;;  %v3383_v30 = vpack.c.bf16 %v2543_v39, %v2523_v38 }
 0x16a   :  { %v3543_v55 = vpack.c.bf16 %v2863_v40, %v2843_v36  ;;  %v1863_v56 = vcvt.s32.f32 %v583_v44  ;;  %v1203_v63 = vunpack.c.0.s8 %v283_v42  ;;  %4037 = vmatpush.bf16.msra.mxu1 %v3223_v46  ;;  %v1223_v0 = vunpack.c.1.s8 %v283_v42 }
 0x16b   :  { %v2163_v48 = vcvt.s32.f32 %v883_v41  ;;  %v2183_v51 = vcvt.s32.f32 %v903_v49  ;;  %v1523_v61 = vunpack.c.0.s8 %v363_v60  ;;  %4050 = vmatpush.bf16.msra.mxu2 %v3383_v30  ;;  %v1543_v23 = vunpack.c.1.s8 %v363_v60  ;;  %v83_v30 = vld [vmem:[#allocation5 + $0x40] sm:$0xff] }
 0x16c   :  { %4063 = vmatpush.bf16.msra.mxu3 %v3543_v55  ;;  %v3043_v31 = vpack.c.bf16 %v1863_v56, %v1843_v47  ;;  %v2483_v2 = vcvt.s32.f32 %v1203_v63  ;;  %v3785_v4 = vadd.f32 %v5218_v54, %v5216_v53  ;;  %v2503_v29 = vcvt.s32.f32 %v1223_v0 }
 0x16d   :  { %v3203_v6 = vpack.c.bf16 %v2183_v51, %v2163_v48  ;;  %v2803_v32 = vcvt.s32.f32 %v1523_v61  ;;  %v523_v7 = vunpack.c.2.s8 %v5259_v22  ;;  %v2823_v57 = vcvt.s32.f32 %v1543_v23 }
 0x16e   :  { %4025 = vmatpush.bf16.msra.mxu0 %v3043_v31  ;;  %v543_v9 = vunpack.c.3.s8 %v5259_v22  ;;  %v843_v14 = vunpack.c.2.s8 %v183_v1  ;;  %v863_v62 = vunpack.c.3.s8 %v183_v1  ;;  %v3363_v42 = vpack.c.bf16 %v2503_v29, %v2483_v2  ;;  %v163_v31 = vld [vmem:[#allocation5 + $0x2c0] sm:$0xff] }
 0x16f   :  { %4038 = vmatpush.bf16.msra.mxu1 %v3203_v6  ;;  %v1803_v45 = vcvt.s32.f32 %v523_v7  ;;  %v1163_v17 = vunpack.c.2.s8 %v263_v5  ;;  %v1183_v58 = vunpack.c.3.s8 %v263_v5  ;;  %v3523_v19 = vpack.c.bf16 %v2823_v57, %v2803_v32  ;;  %v243_v2 = vld [vmem:[#allocation5 + $0x540] sm:$0xff] }
 0x170   :  { %v1823_v53 = vcvt.s32.f32 %v543_v9  ;;  %v2123_v54 = vcvt.s32.f32 %v843_v14  ;;  %v2143_v60 = vcvt.s32.f32 %v863_v62  ;;  %4051 = vmatpush.bf16.msra.mxu2 %v3363_v42  ;;  %v1483_v25 = vunpack.c.2.s8 %v343_v16  ;;  %v323_v62 = vld [vmem:[#allocation5 + $0x7c0] sm:$0xff] }
 0x171   :  { %v2443_v3 = vcvt.s32.f32 %v1163_v17  ;;  %v2463_v24 = vcvt.s32.f32 %v1183_v58  ;;  %v1503_v52 = vunpack.c.3.s8 %v343_v16  ;;  %4064 = vmatpush.bf16.msra.mxu3 %v3523_v19  ;;  %v3798_v28 = vadd.f32 %v5230_v18, %v3785_v4 }
 0x172   :  { %v3023_v8 = vpack.c.bf16 %v1823_v53, %v1803_v45  ;;  %v3183_v27 = vpack.c.bf16 %v2143_v60, %v2123_v54  ;;  %v4655_v12 = vperm.slane %v5266_v11, 3  ;;  %v2763_v34 = vcvt.s32.f32 %v1483_v25 }
 0x173   :  { %v3343_v33 = vpack.c.bf16 %v2463_v24, %v2443_v3  ;;  %v2783_v37 = vcvt.s32.f32 %v1503_v52  ;;  %v4721_v38 = vperm.slane %v5269_v59, 3  ;;  %v3811_v35 = vadd.f32 %v5232_v43, %v3798_v28 }
 0x174   :  { %4026 = vmatpush.bf16.msra.mxu0 %v3023_v8  ;;  %4039 = vmatpush.bf16.msra.mxu1 %v3183_v27  ;;  %v483_v39 = vunpack.c.0.s8 %v5259_v22  ;;  %v503_v36 = vunpack.c.1.s8 %v5259_v22  ;;  %v803_v40 = vunpack.c.0.s8 %v183_v1  ;;  %v823_v44 = vunpack.c.1.s8 %v183_v1 }
 0x175   :  { %4052 = vmatpush.bf16.msra.mxu2 %v3343_v33  ;;  %v3503_v18 = vpack.c.bf16 %v2783_v37, %v2763_v34  ;;  %v4695_v46 = vmul.f32 %v4655_v12, %v3811_v35  ;;  %v1123_v41 = vunpack.c.0.s8 %v263_v5  ;;  %v1143_v49 = vunpack.c.1.s8 %v263_v5  ;;  %v144_v34 = vld [vmem:[#allocation5 + $0x228] sm:$0xff] }
 0x176   :  { %v1763_v47 = vcvt.s32.f32 %v483_v39  ;;  %v1783_v55 = vcvt.s32.f32 %v503_v36  ;;  %v2083_v56 = vcvt.s32.f32 %v803_v40  ;;  %v2103_v63 = vcvt.s32.f32 %v823_v44  ;;  %v224_v44 = vld [vmem:[#allocation5 + $0x4a8] sm:$0xff] }
 0x177   :  { %4065 = vmatpush.bf16.msra.mxu3 %v3503_v18  ;;  %v1443_v43 = vunpack.c.0.s8 %v343_v16  ;;  %v4761_v48 = vadd.f32 %v4721_v38, %v4695_v46  ;;  %v2403_v51 = vcvt.s32.f32 %v1123_v41  ;;  %v2423_v0 = vcvt.s32.f32 %v1143_v49 }
 0x178   :  { %v1463_v61 = vunpack.c.1.s8 %v343_v16  ;;  %v3003_v23 = vpack.c.bf16 %v1783_v55, %v1763_v47  ;;  %v3163_v22 = vpack.c.bf16 %v2103_v63, %v2083_v56  ;;  %v443_v1 = vunpack.c.2.s8 %v83_v30 }
 0x179   :  { %v2723_v4 = vcvt.s32.f32 %v1443_v43  ;;  %v4800_v6 = vrot.slane %v4761_v48, 2  ;;  %v3323_v29 = vpack.c.bf16 %v2423_v0, %v2403_v51  ;;  %v463_v5 = vunpack.c.3.s8 %v83_v30  ;;  %v384_v48 = vld [vmem:[#allocation5 + $0x9a8] sm:$0xff] }
 0x17a   :  { %v2743_v32 = vcvt.s32.f32 %v1463_v61  ;;  %4027 = vmatpush.bf16.msra.mxu0 %v3003_v23  ;;  %4040 = vmatpush.bf16.msra.mxu1 %v3163_v22  ;;  %v1723_v7 = vcvt.s32.f32 %v443_v1  ;;  %v763_v57 = vunpack.c.2.s8 %v163_v31  ;;  %v783_v9 = vunpack.c.3.s8 %v163_v31 }
 0x17b   :  { %v1083_v14 = vunpack.c.2.s8 %v243_v2  ;;  %v4816_v16 = vsel %vm4815_vm1, %v4799_v15, %v4800_v6  ;;  %4053 = vmatpush.bf16.msra.mxu2 %v3323_v29  ;;  %v1743_v45 = vcvt.s32.f32 %v463_v5  ;;  %v1103_v17 = vunpack.c.3.s8 %v243_v2 }
 0x17c   :  { %v3483_v42 = vpack.c.bf16 %v2743_v32, %v2723_v4  ;;  %v4818_v58 = vsel %vm4817_vm2, %v5186_v21, %v4816_v16  ;;  %v2043_v19 = vcvt.s32.f32 %v763_v57  ;;  %v2063_v53 = vcvt.s32.f32 %v783_v9 }
 0x17d   :  { %v2363_v54 = vcvt.s32.f32 %v1083_v14  ;;  %4836 = vst [vmem:[#allocation10] sm:$0xff] %v4818_v58  ;;  %v2983_v60 = vpack.c.bf16 %v1743_v45, %v1723_v7  ;;  %v2383_v3 = vcvt.s32.f32 %v1103_v17  ;;  %v1403_v24 = vunpack.c.2.s8 %v323_v62 }
 0x17e   :  { %4066 = vmatpush.bf16.msra.mxu3 %v3483_v42  ;;  %v1423_v25 = vunpack.c.3.s8 %v323_v62  ;;  %v3143_v52 = vpack.c.bf16 %v2063_v53, %v2043_v19  ;;  %v403_v13 = vunpack.c.0.s8 %v83_v30  ;;  %v423_v8 = vunpack.c.1.s8 %v83_v30  ;;  %v304_v30 = vld [vmem:[#allocation5 + $0x728] sm:$0xff] }
 0x17f   :  { %v723_v15 = vunpack.c.0.s8 %v163_v31  ;;  %4028 = vmatpush.bf16.msra.mxu0 %v2983_v60  ;;  %v3303_v27 = vpack.c.bf16 %v2383_v3, %v2363_v54  ;;  %v2683_v28 = vcvt.s32.f32 %v1403_v24  ;;  %v743_v33 = vunpack.c.1.s8 %v163_v31  ;;  %v124_v24 = vld [vmem:[#allocation5 + $0x188] sm:$0xff] }
 0x180   :  { %v2703_v12 = vcvt.s32.f32 %v1423_v25  ;;  %4041 = vmatpush.bf16.msra.mxu1 %v3143_v52  ;;  %v1683_v21 = vcvt.s32.f32 %v403_v13  ;;  %v1703_v37 = vcvt.s32.f32 %v423_v8  ;;  %v1043_v35 = vunpack.c.0.s8 %v243_v2  ;;  %v204_v8 = vld [vmem:[#allocation5 + $0x408] sm:$0xff] }
 0x181   :  { %v2003_v38 = vcvt.s32.f32 %v723_v15  ;;  %4054 = vmatpush.bf16.msra.mxu2 %v3303_v27  ;;  %v2023_v18 = vcvt.s32.f32 %v743_v33  ;;  %v1063_v36 = vunpack.c.1.s8 %v243_v2  ;;  %v1363_v40 = vunpack.c.0.s8 %v323_v62  ;;  %v5286_v15 = vpop.f32.mrf.mxu1 }
 0x182   :  { %v3463_v39 = vpack.c.bf16 %v2703_v12, %v2683_v28  ;;  %v2963_v46 = vpack.c.bf16 %v1703_v37, %v1683_v21  ;;  %v2323_v47 = vcvt.s32.f32 %v1043_v35  ;;  %v1383_v41 = vunpack.c.1.s8 %v323_v62  ;;  %v364_v35 = vld [vmem:[#allocation5 + $0x908] sm:$0xff] }
 0x183   :  { %v684_v49 = vunpack.c.2.s8 %v144_v34  ;;  %v3123_v55 = vpack.c.bf16 %v2023_v18, %v2003_v38  ;;  %v2343_v56 = vcvt.s32.f32 %v1063_v36  ;;  %v2643_v63 = vcvt.s32.f32 %v1363_v40 }
 0x184   :  { %4067 = vmatpush.bf16.msra.mxu3 %v3463_v39  ;;  %v704_v43 = vunpack.c.3.s8 %v144_v34  ;;  %4029 = vmatpush.bf16.msra.mxu0 %v2963_v46  ;;  %v2663_v51 = vcvt.s32.f32 %v1383_v41  ;;  %v1004_v61 = vunpack.c.2.s8 %v224_v44  ;;  %v1024_v31 = vunpack.c.3.s8 %v224_v44 }
 0x185   :  { %v1964_v0 = vcvt.s32.f32 %v684_v49  ;;  %4042 = vmatpush.bf16.msra.mxu1 %v3123_v55  ;;  %v3283_v2 = vpack.c.bf16 %v2343_v56, %v2323_v47  ;;  %v1324_v22 = vunpack.c.2.s8 %v304_v30  ;;  %v1344_v4 = vunpack.c.3.s8 %v304_v30 }
 0x186   :  { %v1984_v23 = vcvt.s32.f32 %v704_v43  ;;  %v3443_v1 = vpack.c.bf16 %v2663_v51, %v2643_v63  ;;  %v2284_v6 = vcvt.s32.f32 %v1004_v61  ;;  %v2304_v29 = vcvt.s32.f32 %v1024_v31 }
 0x187   :  { %v1644_v32 = vunpack.c.2.s8 %v384_v48  ;;  %4055 = vmatpush.bf16.msra.mxu2 %v3283_v2  ;;  %v2604_v7 = vcvt.s32.f32 %v1324_v22  ;;  %v2624_v57 = vcvt.s32.f32 %v1344_v4  ;;  %v1664_v9 = vunpack.c.3.s8 %v384_v48  ;;  %4030 = vmatmul.bf16.vlgmr.msra.gmra.mxu0 %v5192_v10 }
 0x188   :  { %v3104_v5 = vpack.c.bf16 %v1984_v23, %v1964_v0  ;;  %4068 = vmatpush.bf16.msra.mxu3 %v3443_v1  ;;  %v3264_v14 = vpack.c.bf16 %v2304_v29, %v2284_v6  ;;  %v644_v16 = vunpack.c.0.s8 %v144_v34  ;;  %v664_v42 = vunpack.c.1.s8 %v144_v34  ;;  %4043 = vmatmul.bf16.vlgmr.msra.gmra.mxu1 %v5195_v20  ;;  %v5284_v20 = vpop.f32.mrf.mxu0  ;;  %v284_v34 = vld [vmem:[#allocation5 + $0x688] sm:$0xff] }
 0x189   :  { %v2924_v62 = vcvt.s32.f32 %v1644_v32  ;;  %v3424_v45 = vpack.c.bf16 %v2624_v57, %v2604_v7  ;;  %v2944_v17 = vcvt.s32.f32 %v1664_v9  ;;  %v964_v58 = vunpack.c.0.s8 %v224_v44  ;;  %v3838_v6 = vpop.f32.mrf.mxu1  ;;  %v104_v57 = vld [vmem:[#allocation5 + $0xe8] sm:$0xff] }
 0x18a   :  { %4074 = vmatpush.bf16.msrb.mxu0 %v3104_v5  ;;  %v984_v19 = vunpack.c.1.s8 %v224_v44  ;;  %4087 = vmatpush.bf16.msrb.mxu1 %v3264_v14  ;;  %v1924_v53 = vcvt.s32.f32 %v644_v16  ;;  %v1944_v54 = vcvt.s32.f32 %v664_v42  ;;  %v1284_v60 = vunpack.c.0.s8 %v304_v30  ;;  %v184_v42 = vld [vmem:[#allocation5 + $0x368] sm:$0xff] }
 0x18b   :  { %v1304_v3 = vunpack.c.1.s8 %v304_v30  ;;  %4056 = vmatmul.bf16.vlgmr.msra.gmra.mxu2 %v5198_v50  ;;  %v3584_v10 = vpack.c.bf16 %v2944_v17, %v2924_v62  ;;  %v2244_v25 = vcvt.s32.f32 %v964_v58  ;;  %v1604_v13 = vunpack.c.0.s8 %v384_v48  ;;  %4069 = vmatmul.bf16.vlgmr.msra.gmra.mxu3 %v5202_v26  ;;  %v5290_v17 = vpop.f32.mrf.mxu3 }
 0x18c   :  { %4100 = vmatpush.bf16.msrb.mxu2 %v3424_v45  ;;  %v2264_v52 = vcvt.s32.f32 %v984_v19  ;;  %v3084_v27 = vpack.c.bf16 %v1944_v54, %v1924_v53  ;;  %v2564_v28 = vcvt.s32.f32 %v1284_v60  ;;  %v1624_v33 = vunpack.c.1.s8 %v384_v48  ;;  %v5288_v45 = vpop.f32.mrf.mxu2  ;;  %v264_v60 = vld [vmem:[#allocation5 + $0x5e8] sm:$0xff] }
 0x18d   :  { %v2584_v12 = vcvt.s32.f32 %v1304_v3  ;;  %4113 = vmatpush.bf16.msrb.mxu3 %v3584_v10  ;;  %v2884_v50 = vcvt.s32.f32 %v1604_v13  ;;  %v604_v37 = vunpack.c.2.s8 %v124_v24  ;;  %v624_v38 = vunpack.c.3.s8 %v124_v24 }
 0x18e   :  { %v3244_v21 = vpack.c.bf16 %v2264_v52, %v2244_v25  ;;  %4075 = vmatpush.bf16.msrb.mxu0 %v3084_v27  ;;  %v2904_v18 = vcvt.s32.f32 %v1624_v33  ;;  %v924_v36 = vunpack.c.2.s8 %v204_v8  ;;  %v944_v26 = vunpack.c.3.s8 %v204_v8  ;;  %v344_v52 = vld [vmem:[#allocation5 + $0x868] sm:$0xff] }
 0x18f   :  { %v3404_v39 = vpack.c.bf16 %v2584_v12, %v2564_v28  ;;  %v1884_v40 = vcvt.s32.f32 %v604_v37  ;;  %v1904_v44 = vcvt.s32.f32 %v624_v38  ;;  %v1244_v46 = vunpack.c.2.s8 %v284_v34 }
 0x190   :  { %4088 = vmatpush.bf16.msrb.mxu1 %v3244_v21  ;;  %v1264_v47 = vunpack.c.3.s8 %v284_v34  ;;  %v3564_v41 = vpack.c.bf16 %v2904_v18, %v2884_v50  ;;  %v2204_v49 = vcvt.s32.f32 %v924_v36  ;;  %v2224_v30 = vcvt.s32.f32 %v944_v26  ;;  %v3825_v1 = vpop.f32.mrf.mxu0 }
 0x191   :  { %4101 = vmatpush.bf16.msrb.mxu2 %v3404_v39  ;;  %v1564_v55 = vunpack.c.2.s8 %v364_v35  ;;  %v3064_v56 = vpack.c.bf16 %v1904_v44, %v1884_v40  ;;  %v2524_v63 = vcvt.s32.f32 %v1244_v46  ;;  %v1584_v48 = vunpack.c.3.s8 %v364_v35 }
 0x192   :  { %v2544_v43 = vcvt.s32.f32 %v1264_v47  ;;  %4114 = vmatpush.bf16.msrb.mxu3 %v3564_v41  ;;  %v3224_v51 = vpack.c.bf16 %v2224_v30, %v2204_v49  ;;  %v564_v61 = vunpack.c.0.s8 %v124_v24  ;;  %v584_v31 = vunpack.c.1.s8 %v124_v24 }
 0x193   :  { %v2844_v0 = vcvt.s32.f32 %v1564_v55  ;;  %4076 = vmatpush.bf16.msrb.mxu0 %v3064_v56  ;;  %v2864_v23 = vcvt.s32.f32 %v1584_v48  ;;  %v884_v22 = vunpack.c.0.s8 %v204_v8  ;;  %v904_v4 = vunpack.c.1.s8 %v204_v8 }
 0x194   :  { %v3384_v2 = vpack.c.bf16 %v2544_v43, %v2524_v63  ;;  %4089 = vmatpush.bf16.msrb.mxu1 %v3224_v51  ;;  %v1844_v29 = vcvt.s32.f32 %v564_v61  ;;  %v1864_v32 = vcvt.s32.f32 %v584_v31  ;;  %v1204_v5 = vunpack.c.0.s8 %v284_v34  ;;  %v3851_v56 = vpop.f32.mrf.mxu2  ;;  %v3864_v63 = vpop.f32.mrf.mxu3  ;;  %v84_v61 = vld [vmem:[#allocation5 + $0x48] sm:$0xff] }
 0x195   :  { %v1224_v7 = vunpack.c.1.s8 %v284_v34  ;;  %v3544_v9 = vpack.c.bf16 %v2864_v23, %v2844_v0  ;;  %v2164_v14 = vcvt.s32.f32 %v884_v22  ;;  %v2184_v62 = vcvt.s32.f32 %v904_v4  ;;  %v164_v4 = vld [vmem:[#allocation5 + $0x2c8] sm:$0xff] }
 0x196   :  { %4102 = vmatpush.bf16.msrb.mxu2 %v3384_v2  ;;  %v1524_v16 = vunpack.c.0.s8 %v364_v35  ;;  %v3044_v58 = vpack.c.bf16 %v1864_v32, %v1844_v29  ;;  %v2484_v19 = vcvt.s32.f32 %v1204_v5  ;;  %v1544_v54 = vunpack.c.1.s8 %v364_v35  ;;  %v244_v5 = vld [vmem:[#allocation5 + $0x548] sm:$0xff] }
 0x197   :  { %v2504_v53 = vcvt.s32.f32 %v1224_v7  ;;  %4115 = vmatpush.bf16.msrb.mxu3 %v3544_v9  ;;  %v3204_v3 = vpack.c.bf16 %v2184_v62, %v2164_v14  ;;  %v524_v10 = vunpack.c.2.s8 %v104_v57  ;;  %v544_v25 = vunpack.c.3.s8 %v104_v57  ;;  %v324_v62 = vld [vmem:[#allocation5 + $0x7c8] sm:$0xff] }
 0x198   :  { %v2804_v24 = vcvt.s32.f32 %v1524_v16  ;;  %4077 = vmatpush.bf16.msrb.mxu0 %v3044_v58  ;;  %v2824_v8 = vcvt.s32.f32 %v1544_v54  ;;  %v844_v27 = vunpack.c.2.s8 %v184_v42  ;;  %v864_v28 = vunpack.c.3.s8 %v184_v42 }
 0x199   :  { %v3364_v13 = vpack.c.bf16 %v2504_v53, %v2484_v19  ;;  %4090 = vmatpush.bf16.msrb.mxu1 %v3204_v3  ;;  %v1804_v12 = vcvt.s32.f32 %v524_v10  ;;  %v1824_v33 = vcvt.s32.f32 %v544_v25  ;;  %v1164_v34 = vunpack.c.2.s8 %v264_v60 }
 0x19a   :  { %v1184_v21 = vunpack.c.3.s8 %v264_v60  ;;  %v3524_v50 = vpack.c.bf16 %v2824_v8, %v2804_v24  ;;  %v2124_v37 = vcvt.s32.f32 %v844_v27  ;;  %v2144_v38 = vcvt.s32.f32 %v864_v28 }
 0x19b   :  { %4103 = vmatpush.bf16.msrb.mxu2 %v3364_v13  ;;  %v1484_v35 = vunpack.c.2.s8 %v344_v52  ;;  %v3024_v39 = vpack.c.bf16 %v1824_v33, %v1804_v12  ;;  %v2444_v18 = vcvt.s32.f32 %v1164_v34  ;;  %v1504_v26 = vunpack.c.3.s8 %v344_v52  ;;  %v5292_v12 = vpop.f32.mrf.mxu0  ;;  %v5294_v33 = vpop.f32.mrf.mxu1 }
 0x19c   :  { %v2464_v36 = vcvt.s32.f32 %v1184_v21  ;;  %4116 = vmatpush.bf16.msrb.mxu3 %v3524_v50  ;;  %v3184_v40 = vpack.c.bf16 %v2144_v38, %v2124_v37  ;;  %v484_v46 = vunpack.c.0.s8 %v104_v57  ;;  %v504_v47 = vunpack.c.1.s8 %v104_v57 }
 0x19d   :  { %v2764_v44 = vcvt.s32.f32 %v1484_v35  ;;  %4078 = vmatpush.bf16.msrb.mxu0 %v3024_v39  ;;  %v2784_v49 = vcvt.s32.f32 %v1504_v26  ;;  %v804_v30 = vunpack.c.0.s8 %v184_v42  ;;  %v824_v55 = vunpack.c.1.s8 %v184_v42 }
 0x19e   :  { %v3344_v41 = vpack.c.bf16 %v2464_v36, %v2444_v18  ;;  %4091 = vmatpush.bf16.msrb.mxu1 %v3184_v40  ;;  %v1764_v43 = vcvt.s32.f32 %v484_v46  ;;  %v1784_v48 = vcvt.s32.f32 %v504_v47  ;;  %v1124_v51 = vunpack.c.0.s8 %v264_v60  ;;  %v5298_v46 = vld [vmem:[#allocation5 + $0x230] sm:$0xff] }
 0x19f   :  { %v1144_v0 = vunpack.c.1.s8 %v264_v60  ;;  %v3504_v31 = vpack.c.bf16 %v2784_v49, %v2764_v44  ;;  %v2084_v2 = vcvt.s32.f32 %v804_v30  ;;  %v2104_v23 = vcvt.s32.f32 %v824_v55  ;;  %v5300_v55 = vld [vmem:[#allocation5 + $0x4b0] sm:$0xff] }
 0x1a0   :  { %4104 = vmatpush.bf16.msrb.mxu2 %v3344_v41  ;;  %v1444_v22 = vunpack.c.0.s8 %v344_v52  ;;  %v3004_v1 = vpack.c.bf16 %v1784_v48, %v1764_v43  ;;  %v2404_v6 = vcvt.s32.f32 %v1124_v51  ;;  %v1464_v32 = vunpack.c.1.s8 %v344_v52  ;;  %v5302_v43 = vld [vmem:[#allocation5 + $0x730] sm:$0xff] }
 0x1a1   :  { %v2424_v29 = vcvt.s32.f32 %v1144_v0  ;;  %4117 = vmatpush.bf16.msrb.mxu3 %v3504_v31  ;;  %v3164_v7 = vpack.c.bf16 %v2104_v23, %v2084_v2  ;;  %v444_v9 = vunpack.c.2.s8 %v84_v61  ;;  %v464_v14 = vunpack.c.3.s8 %v84_v61  ;;  %v5306_v31 = vld [vmem:[#allocation5 + $0x9b0] sm:$0xff]  ;;  %v5308_v2 = vpop.f32.mrf.mxu2  ;;  %v5310_v23 = vpop.f32.mrf.mxu3 }
 0x1a2   :  { %v2724_v57 = vcvt.s32.f32 %v1444_v22  ;;  %4079 = vmatpush.bf16.msrb.mxu0 %v3004_v1  ;;  %v2744_v42 = vcvt.s32.f32 %v1464_v32  ;;  %v764_v58 = vunpack.c.2.s8 %v164_v4  ;;  %v784_v19 = vunpack.c.3.s8 %v164_v4 }
 0x1a3   :  { %v3324_v16 = vpack.c.bf16 %v2424_v29, %v2404_v6  ;;  %4092 = vmatpush.bf16.msrb.mxu1 %v3164_v7  ;;  %v1724_v53 = vcvt.s32.f32 %v444_v9  ;;  %v1744_v54 = vcvt.s32.f32 %v464_v14  ;;  %v1084_v60 = vunpack.c.2.s8 %v244_v5  ;;  %v3890_v9 = vpop.f32.mrf.mxu1 }
 0x1a4   :  { %v1104_v3 = vunpack.c.3.s8 %v244_v5  ;;  %v3484_v24 = vpack.c.bf16 %v2744_v42, %v2724_v57  ;;  %v2044_v10 = vcvt.s32.f32 %v764_v58  ;;  %v2064_v25 = vcvt.s32.f32 %v784_v19  ;;  %v3877_v57 = vpop.f32.mrf.mxu0 }
 0x1a5   :  { %4105 = vmatpush.bf16.msrb.mxu2 %v3324_v16  ;;  %v1404_v52 = vunpack.c.2.s8 %v324_v62  ;;  %v2984_v13 = vpack.c.bf16 %v1744_v54, %v1724_v53  ;;  %v2364_v8 = vcvt.s32.f32 %v1084_v60  ;;  %v1424_v28 = vunpack.c.3.s8 %v324_v62 }
 0x1a6   :  { %v2384_v27 = vcvt.s32.f32 %v1104_v3  ;;  %4118 = vmatpush.bf16.msrb.mxu3 %v3484_v24  ;;  %v3144_v34 = vpack.c.bf16 %v2064_v25, %v2044_v10  ;;  %v3837_v50 = vadd.f32 %v5286_v15, %v5284_v20  ;;  %v404_v37 = vunpack.c.0.s8 %v84_v61  ;;  %v5320_v25 = vld [vmem:[#allocation1] sm:$0xff] }
 0x1a7   :  { %v2684_v21 = vcvt.s32.f32 %v1404_v52  ;;  %4080 = vmatpush.bf16.msrb.mxu0 %v2984_v13  ;;  %v2704_v35 = vcvt.s32.f32 %v1424_v28  ;;  %v424_v39 = vunpack.c.1.s8 %v84_v61  ;;  %v724_v18 = vunpack.c.0.s8 %v164_v4 }
 0x1a8   :  { %v3304_v38 = vpack.c.bf16 %v2384_v27, %v2364_v8  ;;  %4093 = vmatpush.bf16.msrb.mxu1 %v3144_v34  ;;  %v1684_v36 = vcvt.s32.f32 %v404_v37  ;;  %v744_v26 = vunpack.c.1.s8 %v164_v4  ;;  %v1044_v40 = vunpack.c.0.s8 %v244_v5  ;;  %v5323_v8 = vld [vmem:[#allocation1 + $0x12] sm:$0xff]  ;;  %v5331_v37 = vld [vmem:[#allocation1 + $0x9] sm:$0xff] }
 0x1a9   :  { %v1064_v44 = vunpack.c.1.s8 %v244_v5  ;;  %v3464_v47 = vpack.c.bf16 %v2704_v35, %v2684_v21  ;;  %v1704_v41 = vcvt.s32.f32 %v424_v39  ;;  %v2004_v49 = vcvt.s32.f32 %v724_v18  ;;  %v5334_v35 = vld [vmem:[#allocation1 + $0x1b] sm:$0xff] }
 0x1aa   :  { %4106 = vmatpush.bf16.msrb.mxu2 %v3304_v38  ;;  %v1364_v30 = vunpack.c.0.s8 %v324_v62  ;;  %v2024_v20 = vcvt.s32.f32 %v744_v26  ;;  %v2324_v15 = vcvt.s32.f32 %v1044_v40  ;;  %v1384_v63 = vunpack.c.1.s8 %v324_v62  ;;  %v3903_v26 = vpop.f32.mrf.mxu2  ;;  %v3916_v40 = vpop.f32.mrf.mxu3 }
 0x1ab   :  { %v2344_v56 = vcvt.s32.f32 %v1064_v44  ;;  %4119 = vmatpush.bf16.msrb.mxu3 %v3464_v47  ;;  %v2964_v48 = vpack.c.bf16 %v1704_v41, %v1684_v36  ;;  %v685_v0 = vunpack.c.2.s8 %v5298_v46  ;;  %v705_v61 = vunpack.c.3.s8 %v5298_v46  ;;  %v185_v40 = vld [vmem:[#allocation5 + $0x370] sm:$0xff] }
 0x1ac   :  { %v2644_v51 = vcvt.s32.f32 %v1364_v30  ;;  %v3124_v22 = vpack.c.bf16 %v2024_v20, %v2004_v49  ;;  %v2664_v1 = vcvt.s32.f32 %v1384_v63  ;;  %v1005_v6 = vunpack.c.2.s8 %v5300_v55 }
 0x1ad   :  { %v3284_v4 = vpack.c.bf16 %v2344_v56, %v2324_v15  ;;  %4081 = vmatpush.bf16.msrb.mxu0 %v2964_v48  ;;  %v1965_v29 = vcvt.s32.f32 %v685_v0  ;;  %v1985_v32 = vcvt.s32.f32 %v705_v61  ;;  %v1025_v5 = vunpack.c.3.s8 %v5300_v55  ;;  %v205_v56 = vld [vmem:[#allocation5 + $0x410] sm:$0xff] }
 0x1ae   :  { %v1325_v7 = vunpack.c.2.s8 %v5302_v43  ;;  %4094 = vmatpush.bf16.msrb.mxu1 %v3124_v22  ;;  %v3444_v14 = vpack.c.bf16 %v2664_v1, %v2644_v51  ;;  %v2285_v62 = vcvt.s32.f32 %v1005_v6  ;;  %v1345_v16 = vunpack.c.3.s8 %v5302_v43  ;;  %v285_v0 = vld [vmem:[#allocation5 + $0x690] sm:$0xff] }
 0x1af   :  { %4107 = vmatpush.bf16.msrb.mxu2 %v3284_v4  ;;  %v1645_v42 = vunpack.c.2.s8 %v5306_v31  ;;  %v3105_v58 = vpack.c.bf16 %v1985_v32, %v1965_v29  ;;  %v2305_v19 = vcvt.s32.f32 %v1025_v5  ;;  %v1665_v54 = vunpack.c.3.s8 %v5306_v31  ;;  %v365_v6 = vld [vmem:[#allocation5 + $0x910] sm:$0xff] }
 0x1b0   :  { %v2605_v53 = vcvt.s32.f32 %v1325_v7  ;;  %4120 = vmatpush.bf16.msrb.mxu3 %v3444_v14  ;;  %v2625_v60 = vcvt.s32.f32 %v1345_v16  ;;  %v3850_v24 = vadd.f32 %v5288_v45, %v3837_v50  ;;  %v4656_v10 = vperm.slane %v5266_v11, 4  ;;  %4082 = vmatmul.bf16.vlgmr.msrb.gmra.mxu0 %v5320_v25 }
 0x1b1   :  { %v2925_v3 = vcvt.s32.f32 %v1645_v42  ;;  %4126 = vmatpush.bf16.msra.mxu0 %v3105_v58  ;;  %v3265_v52 = vpack.c.bf16 %v2305_v19, %v2285_v62  ;;  %v2945_v13 = vcvt.s32.f32 %v1665_v54  ;;  %v4722_v27 = vperm.slane %v5269_v59, 4  ;;  %4095 = vmatmul.bf16.vlgmr.msrb.gmra.mxu1 %v5331_v37 }
 0x1b2   :  { %4108 = vmatmul.bf16.vlgmr.msrb.gmra.mxu2 %v5323_v8  ;;  %v645_v28 = vunpack.c.0.s8 %v5298_v46  ;;  %v3425_v34 = vpack.c.bf16 %v2625_v60, %v2605_v53  ;;  %v3863_v45 = vadd.f32 %v5290_v17, %v3850_v24  ;;  %v665_v21 = vunpack.c.1.s8 %v5298_v46  ;;  %v125_v17 = vld [vmem:[#allocation5 + $0x190] sm:$0xff] }
 0x1b3   :  { %v965_v50 = vunpack.c.0.s8 %v5300_v55  ;;  %4139 = vmatpush.bf16.msra.mxu1 %v3265_v52  ;;  %v3585_v38 = vpack.c.bf16 %v2945_v13, %v2925_v3  ;;  %4121 = vmatmul.bf16.vlgmr.msrb.gmra.mxu3 %v5334_v35  ;;  %v985_v18 = vunpack.c.1.s8 %v5300_v55  ;;  %v1285_v36 = vunpack.c.0.s8 %v5302_v43 }
 0x1b4   :  { %v1925_v39 = vcvt.s32.f32 %v645_v28  ;;  %4152 = vmatpush.bf16.msra.mxu2 %v3425_v34  ;;  %v4696_v44 = vmul.f32 %v4656_v10, %v3863_v45  ;;  %v1945_v46 = vcvt.s32.f32 %v665_v21  ;;  %v1305_v41 = vunpack.c.1.s8 %v5302_v43 }
 0x1b5   :  { %v2245_v47 = vcvt.s32.f32 %v965_v50  ;;  %4165 = vmatpush.bf16.msra.mxu3 %v3585_v38  ;;  %v2265_v49 = vcvt.s32.f32 %v985_v18  ;;  %v2565_v30 = vcvt.s32.f32 %v1285_v36  ;;  %v1605_v20 = vunpack.c.0.s8 %v5306_v31  ;;  %v105_v38 = vld [vmem:[#allocation5 + $0xf0] sm:$0xff] }
 0x1b6   :  { %v1625_v15 = vunpack.c.1.s8 %v5306_v31  ;;  %v5342_v55 = vadd.f32 %v4722_v27, %v4696_v44  ;;  %v3085_v63 = vpack.c.bf16 %v1945_v46, %v1925_v39  ;;  %v2585_v48 = vcvt.s32.f32 %v1305_v41  ;;  %v265_v41 = vld [vmem:[#allocation5 + $0x5f0] sm:$0xff] }
 0x1b7   :  { %v605_v51 = vunpack.c.2.s8 %v125_v17  ;;  %v3245_v61 = vpack.c.bf16 %v2265_v49, %v2245_v47  ;;  %v2885_v22 = vcvt.s32.f32 %v1605_v20  ;;  %v625_v1 = vunpack.c.3.s8 %v125_v17 }
 0x1b8   :  { %v2905_v4 = vcvt.s32.f32 %v1625_v15  ;;  %4127 = vmatpush.bf16.msra.mxu0 %v3085_v63  ;;  %v3405_v43 = vpack.c.bf16 %v2585_v48, %v2565_v30  ;;  %v925_v32 = vunpack.c.2.s8 %v205_v56  ;;  %v945_v5 = vunpack.c.3.s8 %v205_v56 }
 0x1b9   :  { %v1885_v29 = vcvt.s32.f32 %v605_v51  ;;  %4140 = vmatpush.bf16.msra.mxu1 %v3245_v61  ;;  %v1905_v31 = vcvt.s32.f32 %v625_v1  ;;  %v1245_v57 = vunpack.c.2.s8 %v285_v0  ;;  %v1265_v9 = vunpack.c.3.s8 %v285_v0 }
 0x1ba   :  { %v3565_v7 = vpack.c.bf16 %v2905_v4, %v2885_v22  ;;  %4153 = vmatpush.bf16.msra.mxu2 %v3405_v43  ;;  %v2205_v14 = vcvt.s32.f32 %v925_v32  ;;  %v2225_v62 = vcvt.s32.f32 %v945_v5  ;;  %v1565_v16 = vunpack.c.2.s8 %v365_v6 }
 0x1bb   :  { %v1585_v42 = vunpack.c.3.s8 %v365_v6  ;;  %v3065_v58 = vpack.c.bf16 %v1905_v31, %v1885_v29  ;;  %v2525_v19 = vcvt.s32.f32 %v1245_v57  ;;  %v2545_v53 = vcvt.s32.f32 %v1265_v9 }
 0x1bc   :  { %4166 = vmatpush.bf16.msra.mxu3 %v3565_v7  ;;  %v565_v54 = vunpack.c.0.s8 %v125_v17  ;;  %v3225_v60 = vpack.c.bf16 %v2225_v62, %v2205_v14  ;;  %v2845_v3 = vcvt.s32.f32 %v1565_v16  ;;  %v585_v10 = vunpack.c.1.s8 %v125_v17 }
 0x1bd   :  { %v2865_v24 = vcvt.s32.f32 %v1585_v42  ;;  %4128 = vmatpush.bf16.msra.mxu0 %v3065_v58  ;;  %v3385_v52 = vpack.c.bf16 %v2545_v53, %v2525_v19  ;;  %v885_v27 = vunpack.c.0.s8 %v205_v56  ;;  %v905_v28 = vunpack.c.1.s8 %v205_v56  ;;  %v5346_v56 = vld [vmem:[#allocation5 + $0x870] sm:$0xff] }
 0x1be   :  { %v1845_v13 = vcvt.s32.f32 %v565_v54  ;;  %4141 = vmatpush.bf16.msra.mxu1 %v3225_v60  ;;  %v1865_v45 = vcvt.s32.f32 %v585_v10  ;;  %v1205_v21 = vunpack.c.0.s8 %v285_v0  ;;  %v1225_v50 = vunpack.c.1.s8 %v285_v0 }
 0x1bf   :  { %v3545_v34 = vpack.c.bf16 %v2865_v24, %v2845_v3  ;;  %4154 = vmatpush.bf16.msra.mxu2 %v3385_v52  ;;  %v2165_v39 = vcvt.s32.f32 %v885_v27  ;;  %v2185_v18 = vcvt.s32.f32 %v905_v28  ;;  %v1525_v36 = vunpack.c.0.s8 %v365_v6  ;;  %v85_v52 = vld [vmem:[#allocation5 + $0x50] sm:$0xff] }
 0x1c0   :  { %v1545_v26 = vunpack.c.1.s8 %v365_v6  ;;  %v3045_v44 = vpack.c.bf16 %v1865_v45, %v1845_v13  ;;  %v2485_v17 = vcvt.s32.f32 %v1205_v21  ;;  %v2505_v46 = vcvt.s32.f32 %v1225_v50  ;;  %v165_v21 = vld [vmem:[#allocation5 + $0x2d0] sm:$0xff] }
 0x1c1   :  { %4167 = vmatpush.bf16.msra.mxu3 %v3545_v34  ;;  %v3889_v47 = vadd.f32 %v5294_v33, %v5292_v12  ;;  %v3205_v49 = vpack.c.bf16 %v2185_v18, %v2165_v39  ;;  %v2805_v30 = vcvt.s32.f32 %v1525_v36  ;;  %v525_v15 = vunpack.c.2.s8 %v105_v38  ;;  %v245_v36 = vld [vmem:[#allocation5 + $0x550] sm:$0xff] }
 0x1c2   :  { %v2825_v20 = vcvt.s32.f32 %v1545_v26  ;;  %4129 = vmatpush.bf16.msra.mxu0 %v3045_v44  ;;  %v3365_v63 = vpack.c.bf16 %v2505_v46, %v2485_v17  ;;  %v545_v48 = vunpack.c.3.s8 %v105_v38  ;;  %v845_v51 = vunpack.c.2.s8 %v185_v40  ;;  %v325_v46 = vld [vmem:[#allocation5 + $0x7d0] sm:$0xff] }
 0x1c3   :  { %v865_v0 = vunpack.c.3.s8 %v185_v40  ;;  %4142 = vmatpush.bf16.msra.mxu1 %v3205_v49  ;;  %v1805_v22 = vcvt.s32.f32 %v525_v15  ;;  %v1165_v4 = vunpack.c.2.s8 %v265_v41  ;;  %v1185_v1 = vunpack.c.3.s8 %v265_v41 }
 0x1c4   :  { %v3525_v61 = vpack.c.bf16 %v2825_v20, %v2805_v30  ;;  %4155 = vmatpush.bf16.msra.mxu2 %v3365_v63  ;;  %v1825_v6 = vcvt.s32.f32 %v545_v48  ;;  %v2125_v12 = vcvt.s32.f32 %v845_v51  ;;  %v1485_v43 = vunpack.c.2.s8 %v5346_v56 }
 0x1c5   :  { %v2145_v33 = vcvt.s32.f32 %v865_v0  ;;  %v2445_v29 = vcvt.s32.f32 %v1165_v4  ;;  %v2465_v32 = vcvt.s32.f32 %v1185_v1  ;;  %v1505_v5 = vunpack.c.3.s8 %v5346_v56 }
 0x1c6   :  { %4168 = vmatpush.bf16.msra.mxu3 %v3525_v61  ;;  %v3902_v7 = vadd.f32 %v5308_v2, %v3889_v47  ;;  %v3025_v31 = vpack.c.bf16 %v1825_v6, %v1805_v22  ;;  %v2765_v9 = vcvt.s32.f32 %v1485_v43  ;;  %v4657_v14 = vperm.slane %v5266_v11, 5 }
 0x1c7   :  { %v3185_v57 = vpack.c.bf16 %v2145_v33, %v2125_v12  ;;  %v3345_v62 = vpack.c.bf16 %v2465_v32, %v2445_v29  ;;  %v2785_v16 = vcvt.s32.f32 %v1505_v5  ;;  %v4723_v58 = vperm.slane %v5269_v59, 5 }
 0x1c8   :  { %v3915_v42 = vadd.f32 %v5310_v23, %v3902_v7  ;;  %4130 = vmatpush.bf16.msra.mxu0 %v3025_v31  ;;  %v485_v19 = vunpack.c.0.s8 %v105_v38  ;;  %v505_v53 = vunpack.c.1.s8 %v105_v38  ;;  %v805_v54 = vunpack.c.0.s8 %v185_v40 }
 0x1c9   :  { %4143 = vmatpush.bf16.msra.mxu1 %v3185_v57  ;;  %v825_v60 = vunpack.c.1.s8 %v185_v40  ;;  %4156 = vmatpush.bf16.msra.mxu2 %v3345_v62  ;;  %v3505_v3 = vpack.c.bf16 %v2785_v16, %v2765_v9  ;;  %v1125_v24 = vunpack.c.0.s8 %v265_v41  ;;  %v1145_v10 = vunpack.c.1.s8 %v265_v41  ;;  %v146_v62 = vld [vmem:[#allocation5 + $0x238] sm:$0xff] }
 0x1ca   :  { %v4697_v2 = vmul.f32 %v4657_v14, %v3915_v42  ;;  %v1765_v13 = vcvt.s32.f32 %v485_v19  ;;  %v1785_v11 = vcvt.s32.f32 %v505_v53  ;;  %v2085_v27 = vcvt.s32.f32 %v805_v54  ;;  %v226_v53 = vld [vmem:[#allocation5 + $0x4b8] sm:$0xff] }
 0x1cb   :  { %v2105_v28 = vcvt.s32.f32 %v825_v60  ;;  %4169 = vmatpush.bf16.msra.mxu3 %v3505_v3  ;;  %v2405_v34 = vcvt.s32.f32 %v1125_v24  ;;  %v2425_v59 = vcvt.s32.f32 %v1145_v10  ;;  %v1445_v45 = vunpack.c.0.s8 %v5346_v56  ;;  %v306_v24 = vld [vmem:[#allocation5 + $0x738] sm:$0xff] }
 0x1cc   :  { %v4763_v23 = vadd.f32 %v4723_v58, %v4697_v2  ;;  %v3005_v50 = vpack.c.bf16 %v1785_v11, %v1765_v13  ;;  %v1465_v39 = vunpack.c.1.s8 %v5346_v56  ;;  %v445_v18 = vunpack.c.2.s8 %v85_v52 }
 0x1cd   :  { %v3165_v38 = vpack.c.bf16 %v2105_v28, %v2085_v27  ;;  %v3325_v40 = vpack.c.bf16 %v2425_v59, %v2405_v34  ;;  %v2725_v44 = vcvt.s32.f32 %v1445_v45  ;;  %v465_v17 = vunpack.c.3.s8 %v85_v52  ;;  %v386_v27 = vld [vmem:[#allocation5 + $0x9b8] sm:$0xff] }
 0x1ce   :  { %v4801_v26 = vrot.slane %v4763_v23, 6  ;;  %4131 = vmatpush.bf16.msra.mxu0 %v3005_v50  ;;  %v2745_v47 = vcvt.s32.f32 %v1465_v39  ;;  %v1725_v41 = vcvt.s32.f32 %v445_v18  ;;  %v765_v49 = vunpack.c.2.s8 %v165_v21 }
 0x1cf   :  { %4144 = vmatpush.bf16.msra.mxu1 %v3165_v38  ;;  %v785_v30 = vunpack.c.3.s8 %v165_v21  ;;  %4157 = vmatpush.bf16.msra.mxu2 %v3325_v40  ;;  %v1745_v15 = vcvt.s32.f32 %v465_v17  ;;  %v1085_v56 = vunpack.c.2.s8 %v245_v36  ;;  %v1105_v63 = vunpack.c.3.s8 %v245_v36 }
 0x1d0   :  { %v5358_v20 = vsel %vm4813_vm0, %v5342_v55, %v4801_v26  ;;  %v3485_v48 = vpack.c.bf16 %v2745_v47, %v2725_v44  ;;  %v2045_v51 = vcvt.s32.f32 %v765_v49  ;;  %v1405_v61 = vunpack.c.2.s8 %v325_v46 }
 0x1d1   :  { %v2065_v0 = vcvt.s32.f32 %v785_v30  ;;  %v2985_v22 = vpack.c.bf16 %v1745_v15, %v1725_v41  ;;  %v2365_v4 = vcvt.s32.f32 %v1085_v56  ;;  %v2385_v1 = vcvt.s32.f32 %v1105_v63 }
 0x1d2   :  { %v1425_v6 = vunpack.c.3.s8 %v325_v46  ;;  %4170 = vmatpush.bf16.msra.mxu3 %v3485_v48  ;;  %v2685_v33 = vcvt.s32.f32 %v1405_v61  ;;  %v405_v43 = vunpack.c.0.s8 %v85_v52  ;;  %v425_v29 = vunpack.c.1.s8 %v85_v52 }
 0x1d3   :  { %v3145_v12 = vpack.c.bf16 %v2065_v0, %v2045_v51  ;;  %4132 = vmatpush.bf16.msra.mxu0 %v2985_v22  ;;  %v3305_v55 = vpack.c.bf16 %v2385_v1, %v2365_v4  ;;  %v725_v5 = vunpack.c.0.s8 %v165_v21  ;;  %v745_v7 = vunpack.c.1.s8 %v165_v21  ;;  %v126_v4 = vld [vmem:[#allocation5 + $0x198] sm:$0xff] }
 0x1d4   :  { %v2705_v32 = vcvt.s32.f32 %v1425_v6  ;;  %v1685_v31 = vcvt.s32.f32 %v405_v43  ;;  %v1705_v57 = vcvt.s32.f32 %v425_v29  ;;  %v1045_v9 = vunpack.c.0.s8 %v245_v36  ;;  %v206_v43 = vld [vmem:[#allocation5 + $0x418] sm:$0xff]  ;;  %v5364_v29 = vpop.f32.mrf.mxu0 }
 0x1d5   :  { %4145 = vmatpush.bf16.msra.mxu1 %v3145_v12  ;;  %v1065_v14 = vunpack.c.1.s8 %v245_v36  ;;  %4158 = vmatpush.bf16.msra.mxu2 %v3305_v55  ;;  %v2005_v42 = vcvt.s32.f32 %v725_v5  ;;  %v2025_v58 = vcvt.s32.f32 %v745_v7  ;;  %v1365_v19 = vunpack.c.0.s8 %v325_v46  ;;  %v5366_v55 = vpop.f32.mrf.mxu1 }
 0x1d6   :  { %v3465_v16 = vpack.c.bf16 %v2705_v32, %v2685_v33  ;;  %v2965_v54 = vpack.c.bf16 %v1705_v57, %v1685_v31  ;;  %v2325_v60 = vcvt.s32.f32 %v1045_v9  ;;  %v1385_v2 = vunpack.c.1.s8 %v325_v46  ;;  %v286_v57 = vld [vmem:[#allocation5 + $0x698] sm:$0xff] }
 0x1d7   :  { %v2345_v3 = vcvt.s32.f32 %v1065_v14  ;;  %v3125_v10 = vpack.c.bf16 %v2025_v58, %v2005_v42  ;;  %v2645_v52 = vcvt.s32.f32 %v1365_v19  ;;  %v686_v13 = vunpack.c.2.s8 %v146_v62  ;;  %v366_v42 = vld [vmem:[#allocation5 + $0x918] sm:$0xff] }
 0x1d8   :  { %4171 = vmatpush.bf16.msra.mxu3 %v3465_v16  ;;  %v706_v11 = vunpack.c.3.s8 %v146_v62  ;;  %4133 = vmatpush.bf16.msra.mxu0 %v2965_v54  ;;  %v2665_v23 = vcvt.s32.f32 %v1385_v2  ;;  %v1006_v34 = vunpack.c.2.s8 %v226_v53  ;;  %v1026_v59 = vunpack.c.3.s8 %v226_v53 }
 0x1d9   :  { %v3285_v28 = vpack.c.bf16 %v2345_v3, %v2325_v60  ;;  %4146 = vmatpush.bf16.msra.mxu1 %v3125_v10  ;;  %v1966_v45 = vcvt.s32.f32 %v686_v13  ;;  %v1326_v50 = vunpack.c.2.s8 %v306_v24  ;;  %v1346_v38 = vunpack.c.3.s8 %v306_v24 }
 0x1da   :  { %v1986_v21 = vcvt.s32.f32 %v706_v11  ;;  %v3445_v39 = vpack.c.bf16 %v2665_v23, %v2645_v52  ;;  %v2286_v18 = vcvt.s32.f32 %v1006_v34  ;;  %v2306_v36 = vcvt.s32.f32 %v1026_v59 }
 0x1db   :  { %4159 = vmatpush.bf16.msra.mxu2 %v3285_v28  ;;  %v1646_v26 = vunpack.c.2.s8 %v386_v27  ;;  %v2606_v44 = vcvt.s32.f32 %v1326_v50  ;;  %v2626_v17 = vcvt.s32.f32 %v1346_v38  ;;  %v1666_v46 = vunpack.c.3.s8 %v386_v27  ;;  %4134 = vmatmul.bf16.vlgmr.msra.gmra.mxu0 %v5320_v25 }
 0x1dc   :  { %v3106_v40 = vpack.c.bf16 %v1986_v21, %v1966_v45  ;;  %4172 = vmatpush.bf16.msra.mxu3 %v3445_v39  ;;  %v3266_v47 = vpack.c.bf16 %v2306_v36, %v2286_v18  ;;  %v646_v49 = vunpack.c.0.s8 %v146_v62  ;;  %v666_v30 = vunpack.c.1.s8 %v146_v62  ;;  %4147 = vmatmul.bf16.vlgmr.msra.gmra.mxu1 %v5331_v37 }
 0x1dd   :  { %v2926_v41 = vcvt.s32.f32 %v1646_v26  ;;  %v3426_v15 = vpack.c.bf16 %v2626_v17, %v2606_v44  ;;  %v2946_v56 = vcvt.s32.f32 %v1666_v46  ;;  %v966_v63 = vunpack.c.0.s8 %v226_v53  ;;  %v3929_v26 = vpop.f32.mrf.mxu0 }
 0x1de   :  { %4178 = vmatpush.bf16.msrb.mxu0 %v3106_v40  ;;  %v986_v48 = vunpack.c.1.s8 %v226_v53  ;;  %4160 = vmatmul.bf16.vlgmr.msra.gmra.mxu2 %v5323_v8  ;;  %v1926_v51 = vcvt.s32.f32 %v646_v49  ;;  %v1946_v0 = vcvt.s32.f32 %v666_v30  ;;  %v1286_v61 = vunpack.c.0.s8 %v306_v24  ;;  %v3942_v40 = vpop.f32.mrf.mxu1 }
 0x1df   :  { %4191 = vmatpush.bf16.msrb.mxu1 %v3266_v47  ;;  %v1306_v22 = vunpack.c.1.s8 %v306_v24  ;;  %4204 = vmatpush.bf16.msrb.mxu2 %v3426_v15  ;;  %v3586_v1 = vpack.c.bf16 %v2946_v56, %v2926_v41  ;;  %v2246_v6 = vcvt.s32.f32 %v966_v63  ;;  %v1606_v33 = vunpack.c.0.s8 %v386_v27  ;;  %v106_v41 = vld [vmem:[#allocation5 + $0xf8] sm:$0xff] }
 0x1e0   :  { %v2266_v12 = vcvt.s32.f32 %v986_v48  ;;  %4173 = vmatmul.bf16.vlgmr.msra.gmra.mxu3 %v5334_v35  ;;  %v3086_v32 = vpack.c.bf16 %v1946_v0, %v1926_v51  ;;  %v2566_v5 = vcvt.s32.f32 %v1286_v61  ;;  %v1626_v31 = vunpack.c.1.s8 %v386_v27  ;;  %v186_v63 = vld [vmem:[#allocation5 + $0x378] sm:$0xff]  ;;  %v5368_v48 = vpop.f32.mrf.mxu2  ;;  %v5370_v51 = vpop.f32.mrf.mxu3 }
 0x1e1   :  { %v2586_v7 = vcvt.s32.f32 %v1306_v22  ;;  %4217 = vmatpush.bf16.msrb.mxu3 %v3586_v1  ;;  %v2886_v14 = vcvt.s32.f32 %v1606_v33  ;;  %v606_v62 = vunpack.c.2.s8 %v126_v4  ;;  %v626_v16 = vunpack.c.3.s8 %v126_v4  ;;  %v266_v1 = vld [vmem:[#allocation5 + $0x5f8] sm:$0xff] }
 0x1e2   :  { %v3246_v9 = vpack.c.bf16 %v2266_v12, %v2246_v6  ;;  %4179 = vmatpush.bf16.msrb.mxu0 %v3086_v32  ;;  %v2906_v19 = vcvt.s32.f32 %v1626_v31  ;;  %v926_v53 = vunpack.c.2.s8 %v206_v43  ;;  %v946_v54 = vunpack.c.3.s8 %v206_v43  ;;  %v346_v32 = vld [vmem:[#allocation5 + $0x878] sm:$0xff] }
 0x1e3   :  { %v3406_v58 = vpack.c.bf16 %v2586_v7, %v2566_v5  ;;  %v1886_v60 = vcvt.s32.f32 %v606_v62  ;;  %v1906_v3 = vcvt.s32.f32 %v626_v16  ;;  %v1246_v2 = vunpack.c.2.s8 %v286_v57 }
 0x1e4   :  { %4192 = vmatpush.bf16.msrb.mxu1 %v3246_v9  ;;  %v1266_v24 = vunpack.c.3.s8 %v286_v57  ;;  %v3566_v10 = vpack.c.bf16 %v2906_v19, %v2886_v14  ;;  %v2206_v52 = vcvt.s32.f32 %v926_v53  ;;  %v2226_v13 = vcvt.s32.f32 %v946_v54 }
 0x1e5   :  { %4205 = vmatpush.bf16.msrb.mxu2 %v3406_v58  ;;  %v1566_v11 = vunpack.c.2.s8 %v366_v42  ;;  %v3066_v27 = vpack.c.bf16 %v1906_v3, %v1886_v60  ;;  %v2526_v28 = vcvt.s32.f32 %v1246_v2  ;;  %v1586_v34 = vunpack.c.3.s8 %v366_v42 }
 0x1e6   :  { %v2546_v23 = vcvt.s32.f32 %v1266_v24  ;;  %4218 = vmatpush.bf16.msrb.mxu3 %v3566_v10  ;;  %v3226_v59 = vpack.c.bf16 %v2226_v13, %v2206_v52  ;;  %v566_v21 = vunpack.c.0.s8 %v126_v4  ;;  %v586_v50 = vunpack.c.1.s8 %v126_v4 }
 0x1e7   :  { %v2846_v45 = vcvt.s32.f32 %v1566_v11  ;;  %4180 = vmatpush.bf16.msrb.mxu0 %v3066_v27  ;;  %v2866_v39 = vcvt.s32.f32 %v1586_v34  ;;  %v886_v18 = vunpack.c.0.s8 %v206_v43  ;;  %v906_v36 = vunpack.c.1.s8 %v206_v43 }
 0x1e8   :  { %v3386_v38 = vpack.c.bf16 %v2546_v23, %v2526_v28  ;;  %4193 = vmatpush.bf16.msrb.mxu1 %v3226_v59  ;;  %v1846_v44 = vcvt.s32.f32 %v566_v21  ;;  %v1866_v17 = vcvt.s32.f32 %v586_v50  ;;  %v1206_v46 = vunpack.c.0.s8 %v286_v57  ;;  %v3955_v34 = vpop.f32.mrf.mxu2  ;;  %v3968_v59 = vpop.f32.mrf.mxu3 }
 0x1e9   :  { %v1226_v47 = vunpack.c.1.s8 %v286_v57  ;;  %v3546_v49 = vpack.c.bf16 %v2866_v39, %v2846_v45  ;;  %v2166_v30 = vcvt.s32.f32 %v886_v18  ;;  %v2186_v15 = vcvt.s32.f32 %v906_v36  ;;  %v86_v39 = vld [vmem:[#allocation5 + $0x58] sm:$0xff]  ;;  %v5380_v34 = vld [vmem:[#allocation5 + $0x4c0] sm:$0xff] }
 0x1ea   :  { %4206 = vmatpush.bf16.msrb.mxu2 %v3386_v38  ;;  %v1526_v56 = vunpack.c.0.s8 %v366_v42  ;;  %v3046_v0 = vpack.c.bf16 %v1866_v17, %v1846_v44  ;;  %v2486_v61 = vcvt.s32.f32 %v1206_v46  ;;  %v1546_v4 = vunpack.c.1.s8 %v366_v42  ;;  %v166_v44 = vld [vmem:[#allocation5 + $0x2d8] sm:$0xff] }
 0x1eb   :  { %v2506_v22 = vcvt.s32.f32 %v1226_v47  ;;  %4219 = vmatpush.bf16.msrb.mxu3 %v3546_v49  ;;  %v3206_v6 = vpack.c.bf16 %v2186_v15, %v2166_v30  ;;  %v526_v33 = vunpack.c.2.s8 %v106_v41  ;;  %v546_v43 = vunpack.c.3.s8 %v106_v41  ;;  %v246_v49 = vld [vmem:[#allocation5 + $0x558] sm:$0xff] }
 0x1ec   :  { %v2806_v12 = vcvt.s32.f32 %v1526_v56  ;;  %4181 = vmatpush.bf16.msrb.mxu0 %v3046_v0  ;;  %v2826_v7 = vcvt.s32.f32 %v1546_v4  ;;  %v846_v31 = vunpack.c.2.s8 %v186_v63  ;;  %v866_v57 = vunpack.c.3.s8 %v186_v63  ;;  %v326_v0 = vld [vmem:[#allocation5 + $0x7d8] sm:$0xff] }
 0x1ed   :  { %v3366_v5 = vpack.c.bf16 %v2506_v22, %v2486_v61  ;;  %4194 = vmatpush.bf16.msrb.mxu1 %v3206_v6  ;;  %v1806_v9 = vcvt.s32.f32 %v526_v33  ;;  %v1826_v14 = vcvt.s32.f32 %v546_v43  ;;  %v1166_v62 = vunpack.c.2.s8 %v266_v1 }
 0x1ee   :  { %v1186_v16 = vunpack.c.3.s8 %v266_v1  ;;  %v3526_v58 = vpack.c.bf16 %v2826_v7, %v2806_v12  ;;  %v2126_v42 = vcvt.s32.f32 %v846_v31  ;;  %v2146_v19 = vcvt.s32.f32 %v866_v57 }
 0x1ef   :  { %4207 = vmatpush.bf16.msrb.mxu2 %v3366_v5  ;;  %v1486_v53 = vunpack.c.2.s8 %v346_v32  ;;  %v3026_v54 = vpack.c.bf16 %v1826_v14, %v1806_v9  ;;  %v2446_v60 = vcvt.s32.f32 %v1166_v62  ;;  %v1506_v2 = vunpack.c.3.s8 %v346_v32 }
 0x1f0   :  { %v2466_v3 = vcvt.s32.f32 %v1186_v16  ;;  %4220 = vmatpush.bf16.msrb.mxu3 %v3526_v58  ;;  %v3186_v24 = vpack.c.bf16 %v2146_v19, %v2126_v42  ;;  %v486_v52 = vunpack.c.0.s8 %v106_v41  ;;  %v506_v13 = vunpack.c.1.s8 %v106_v41 }
 0x1f1   :  { %v2766_v10 = vcvt.s32.f32 %v1486_v53  ;;  %4182 = vmatpush.bf16.msrb.mxu0 %v3026_v54  ;;  %v2786_v27 = vcvt.s32.f32 %v1506_v2  ;;  %v806_v28 = vunpack.c.0.s8 %v186_v63  ;;  %v826_v23 = vunpack.c.1.s8 %v186_v63  ;;  %v5374_v53 = vpop.f32.mrf.mxu0  ;;  %v5376_v54 = vpop.f32.mrf.mxu1 }
 0x1f2   :  { %v3346_v11 = vpack.c.bf16 %v2466_v3, %v2446_v60  ;;  %4195 = vmatpush.bf16.msrb.mxu1 %v3186_v24  ;;  %v1766_v45 = vcvt.s32.f32 %v486_v52  ;;  %v1786_v21 = vcvt.s32.f32 %v506_v13  ;;  %v1126_v50 = vunpack.c.0.s8 %v266_v1 }
 0x1f3   :  { %v1146_v38 = vunpack.c.1.s8 %v266_v1  ;;  %v3506_v18 = vpack.c.bf16 %v2786_v27, %v2766_v10  ;;  %v2086_v36 = vcvt.s32.f32 %v806_v28  ;;  %v2106_v26 = vcvt.s32.f32 %v826_v23  ;;  %v5378_v27 = vld [vmem:[#allocation5 + $0x240] sm:$0xff] }
 0x1f4   :  { %4208 = vmatpush.bf16.msrb.mxu2 %v3346_v11  ;;  %v1446_v40 = vunpack.c.0.s8 %v346_v32  ;;  %v3006_v17 = vpack.c.bf16 %v1786_v21, %v1766_v45  ;;  %v2406_v46 = vcvt.s32.f32 %v1126_v50  ;;  %v1466_v41 = vunpack.c.1.s8 %v346_v32 }
 0x1f5   :  { %v2426_v47 = vcvt.s32.f32 %v1146_v38  ;;  %4221 = vmatpush.bf16.msrb.mxu3 %v3506_v18  ;;  %v3166_v30 = vpack.c.bf16 %v2106_v26, %v2086_v36  ;;  %v446_v56 = vunpack.c.2.s8 %v86_v39  ;;  %v466_v63 = vunpack.c.3.s8 %v86_v39  ;;  %v5382_v38 = vld [vmem:[#allocation5 + $0x740] sm:$0xff] }
 0x1f6   :  { %v2726_v15 = vcvt.s32.f32 %v1446_v40  ;;  %4183 = vmatpush.bf16.msrb.mxu0 %v3006_v17  ;;  %v2746_v22 = vcvt.s32.f32 %v1466_v41  ;;  %v766_v4 = vunpack.c.2.s8 %v166_v44  ;;  %v786_v1 = vunpack.c.3.s8 %v166_v44  ;;  %v5386_v40 = vld [vmem:[#allocation5 + $0x9c0] sm:$0xff]  ;;  %v5390_v17 = vpop.f32.mrf.mxu3 }
 0x1f7   :  { %v3326_v61 = vpack.c.bf16 %v2426_v47, %v2406_v46  ;;  %4196 = vmatpush.bf16.msrb.mxu1 %v3166_v30  ;;  %v1726_v6 = vcvt.s32.f32 %v446_v56  ;;  %v1746_v12 = vcvt.s32.f32 %v466_v63  ;;  %v1086_v33 = vunpack.c.2.s8 %v246_v49 }
 0x1f8   :  { %v1106_v43 = vunpack.c.3.s8 %v246_v49  ;;  %v3486_v5 = vpack.c.bf16 %v2746_v22, %v2726_v15  ;;  %v2046_v32 = vcvt.s32.f32 %v766_v4  ;;  %v2066_v7 = vcvt.s32.f32 %v786_v1 }
 0x1f9   :  { %4209 = vmatpush.bf16.msrb.mxu2 %v3326_v61  ;;  %v1406_v31 = vunpack.c.2.s8 %v326_v0  ;;  %v2986_v57 = vpack.c.bf16 %v1746_v12, %v1726_v6  ;;  %v2366_v9 = vcvt.s32.f32 %v1086_v33  ;;  %v1426_v62 = vunpack.c.3.s8 %v326_v0  ;;  %v3981_v1 = vpop.f32.mrf.mxu0  ;;  %v3994_v6 = vpop.f32.mrf.mxu1 }
 0x1fa   :  { %v2386_v14 = vcvt.s32.f32 %v1106_v43  ;;  %4222 = vmatpush.bf16.msrb.mxu3 %v3486_v5  ;;  %v3146_v16 = vpack.c.bf16 %v2066_v7, %v2046_v32  ;;  %v3941_v42 = vadd.f32 %v5366_v55, %v5364_v29  ;;  %v406_v19 = vunpack.c.0.s8 %v86_v39 }
 0x1fb   :  { %v2686_v58 = vcvt.s32.f32 %v1406_v31  ;;  %4184 = vmatpush.bf16.msrb.mxu0 %v2986_v57  ;;  %v2706_v3 = vcvt.s32.f32 %v1426_v62  ;;  %v426_v2 = vunpack.c.1.s8 %v86_v39  ;;  %v726_v24 = vunpack.c.0.s8 %v166_v44  ;;  %v5399_v57 = vld [vmem:[#allocation7] sm:$0xff] }
 0x1fc   :  { %v3306_v60 = vpack.c.bf16 %v2386_v14, %v2366_v9  ;;  %4197 = vmatpush.bf16.msrb.mxu1 %v3146_v16  ;;  %v1686_v10 = vcvt.s32.f32 %v406_v19  ;;  %v746_v52 = vunpack.c.1.s8 %v166_v44  ;;  %v1046_v13 = vunpack.c.0.s8 %v246_v49  ;;  %v5388_v44 = vpop.f32.mrf.mxu2  ;;  %v5404_v16 = vld [vmem:[#allocation8] sm:$0xff] }
 0x1fd   :  { %v1066_v11 = vunpack.c.1.s8 %v246_v49  ;;  %v3466_v28 = vpack.c.bf16 %v2706_v3, %v2686_v58  ;;  %v1706_v29 = vcvt.s32.f32 %v426_v2  ;;  %v2006_v55 = vcvt.s32.f32 %v726_v24 }
 0x1fe   :  { %4210 = vmatpush.bf16.msrb.mxu2 %v3306_v60  ;;  %v1366_v23 = vunpack.c.0.s8 %v326_v0  ;;  %v2026_v59 = vcvt.s32.f32 %v746_v52  ;;  %v2326_v45 = vcvt.s32.f32 %v1046_v13  ;;  %v1386_v50 = vunpack.c.1.s8 %v326_v0  ;;  %v4020_v13 = vpop.f32.mrf.mxu3 }
 0x1ff   :  { %v2346_v21 = vcvt.s32.f32 %v1066_v11  ;;  %4223 = vmatpush.bf16.msrb.mxu3 %v3466_v28  ;;  %v2966_v39 = vpack.c.bf16 %v1706_v29, %v1686_v10  ;;  %v687_v36 = vunpack.c.2.s8 %v5378_v27  ;;  %v707_v26 = vunpack.c.3.s8 %v5378_v27  ;;  %v127_v10 = vld [vmem:[#allocation5 + $0x1a0] sm:$0xff] }
 0x200   :  { %v2646_v18 = vcvt.s32.f32 %v1366_v23  ;;  %v3126_v46 = vpack.c.bf16 %v2026_v59, %v2006_v55  ;;  %v2666_v41 = vcvt.s32.f32 %v1386_v50  ;;  %v1007_v49 = vunpack.c.2.s8 %v5380_v34  ;;  %v207_v23 = vld [vmem:[#allocation5 + $0x420] sm:$0xff] }
 0x201   :  { %v3286_v47 = vpack.c.bf16 %v2346_v21, %v2326_v45  ;;  %4185 = vmatpush.bf16.msrb.mxu0 %v2966_v39  ;;  %v1967_v30 = vcvt.s32.f32 %v687_v36  ;;  %v1987_v15 = vcvt.s32.f32 %v707_v26  ;;  %v1027_v56 = vunpack.c.3.s8 %v5380_v34  ;;  %v287_v50 = vld [vmem:[#allocation5 + $0x6a0] sm:$0xff] }
 0x202   :  { %v1327_v63 = vunpack.c.2.s8 %v5382_v38  ;;  %4198 = vmatpush.bf16.msrb.mxu1 %v3126_v46  ;;  %v3446_v0 = vpack.c.bf16 %v2666_v41, %v2646_v18  ;;  %v2287_v61 = vcvt.s32.f32 %v1007_v49  ;;  %v1347_v22 = vunpack.c.3.s8 %v5382_v38  ;;  %v367_v46 = vld [vmem:[#allocation5 + $0x920] sm:$0xff] }
 0x203   :  { %4211 = vmatpush.bf16.msrb.mxu2 %v3286_v47  ;;  %v1647_v4 = vunpack.c.2.s8 %v5386_v40  ;;  %v3107_v12 = vpack.c.bf16 %v1987_v15, %v1967_v30  ;;  %v2307_v33 = vcvt.s32.f32 %v1027_v56  ;;  %v1667_v5 = vunpack.c.3.s8 %v5386_v40 }
 0x204   :  { %v2607_v43 = vcvt.s32.f32 %v1327_v63  ;;  %4224 = vmatpush.bf16.msrb.mxu3 %v3446_v0  ;;  %v2627_v32 = vcvt.s32.f32 %v1347_v22  ;;  %v3954_v31 = vadd.f32 %v5368_v48, %v3941_v42  ;;  %v4658_v9 = vperm.slane %v5399_v57, 6  ;;  %4186 = vmatmul.bf16.vlgmr.msrb.gmra.mxu0 %v5320_v25  ;;  %v4007_v52 = vpop.f32.mrf.mxu2 }
 0x205   :  { %v2927_v7 = vcvt.s32.f32 %v1647_v4  ;;  %4230 = vmatpush.bf16.msra.mxu0 %v3107_v12  ;;  %v3267_v14 = vpack.c.bf16 %v2307_v33, %v2287_v61  ;;  %v2947_v62 = vcvt.s32.f32 %v1667_v5  ;;  %v4724_v58 = vperm.slane %v5404_v16, 6  ;;  %4199 = vmatmul.bf16.vlgmr.msrb.gmra.mxu1 %v5331_v37 }
 0x206   :  { %4212 = vmatmul.bf16.vlgmr.msrb.gmra.mxu2 %v5323_v8  ;;  %v647_v19 = vunpack.c.0.s8 %v5378_v27  ;;  %v3427_v60 = vpack.c.bf16 %v2627_v32, %v2607_v43  ;;  %v3967_v48 = vadd.f32 %v5370_v51, %v3954_v31  ;;  %v667_v42 = vunpack.c.1.s8 %v5378_v27 }
 0x207   :  { %v967_v3 = vunpack.c.0.s8 %v5380_v34  ;;  %4243 = vmatpush.bf16.msra.mxu1 %v3267_v14  ;;  %v3587_v25 = vpack.c.bf16 %v2947_v62, %v2927_v7  ;;  %4225 = vmatmul.bf16.vlgmr.msrb.gmra.mxu3 %v5334_v35  ;;  %v987_v2 = vunpack.c.1.s8 %v5380_v34  ;;  %v1287_v24 = vunpack.c.0.s8 %v5382_v38 }
 0x208   :  { %v1927_v8 = vcvt.s32.f32 %v647_v19  ;;  %4256 = vmatpush.bf16.msra.mxu2 %v3427_v60  ;;  %v4698_v51 = vmul.f32 %v4658_v9, %v3967_v48  ;;  %v1947_v11 = vcvt.s32.f32 %v667_v42  ;;  %v1307_v28 = vunpack.c.1.s8 %v5382_v38  ;;  %v107_v48 = vld [vmem:[#allocation5 + $0x100] sm:$0xff] }
 0x209   :  { %v2247_v27 = vcvt.s32.f32 %v967_v3  ;;  %4269 = vmatpush.bf16.msra.mxu3 %v3587_v25  ;;  %v2267_v37 = vcvt.s32.f32 %v987_v2  ;;  %v2567_v29 = vcvt.s32.f32 %v1287_v24  ;;  %v1607_v55 = vunpack.c.0.s8 %v5386_v40  ;;  %v187_v2 = vld [vmem:[#allocation5 + $0x380] sm:$0xff] }
 0x20a   :  { %v1627_v35 = vunpack.c.1.s8 %v5386_v40  ;;  %v5418_v34 = vadd.f32 %v4724_v58, %v4698_v51  ;;  %v3087_v59 = vpack.c.bf16 %v1947_v11, %v1927_v8  ;;  %v2587_v45 = vcvt.s32.f32 %v1307_v28  ;;  %v267_v51 = vld [vmem:[#allocation5 + $0x600] sm:$0xff] }
 0x20b   :  { %v607_v21 = vunpack.c.2.s8 %v127_v10  ;;  %v3247_v39 = vpack.c.bf16 %v2267_v37, %v2247_v27  ;;  %v2887_v18 = vcvt.s32.f32 %v1607_v55  ;;  %v627_v26 = vunpack.c.3.s8 %v127_v10 }
 0x20c   :  { %v2907_v36 = vcvt.s32.f32 %v1627_v35  ;;  %v4802_v38 = vrot.slane %v5418_v34, 4  ;;  %4231 = vmatpush.bf16.msra.mxu0 %v3087_v59  ;;  %v3407_v47 = vpack.c.bf16 %v2587_v45, %v2567_v29  ;;  %v927_v49 = vunpack.c.2.s8 %v207_v23  ;;  %v347_v59 = vld [vmem:[#allocation5 + $0x880] sm:$0xff] }
 0x20d   :  { %v1887_v41 = vcvt.s32.f32 %v607_v21  ;;  %4244 = vmatpush.bf16.msra.mxu1 %v3247_v39  ;;  %v1907_v30 = vcvt.s32.f32 %v627_v26  ;;  %v947_v15 = vunpack.c.3.s8 %v207_v23  ;;  %v1247_v56 = vunpack.c.2.s8 %v287_v50 }
 0x20e   :  { %v3567_v40 = vpack.c.bf16 %v2907_v36, %v2887_v18  ;;  %4257 = vmatpush.bf16.msra.mxu2 %v3407_v47  ;;  %v2207_v63 = vcvt.s32.f32 %v927_v49  ;;  %v1267_v0 = vunpack.c.3.s8 %v287_v50  ;;  %v1567_v61 = vunpack.c.2.s8 %v367_v46 }
 0x20f   :  { %v1587_v22 = vunpack.c.3.s8 %v367_v46  ;;  %v3067_v4 = vpack.c.bf16 %v1907_v30, %v1887_v41  ;;  %v2227_v1 = vcvt.s32.f32 %v947_v15  ;;  %v2527_v6 = vcvt.s32.f32 %v1247_v56 }
 0x210   :  { %4270 = vmatpush.bf16.msra.mxu3 %v3567_v40  ;;  %v567_v12 = vunpack.c.0.s8 %v127_v10  ;;  %v2547_v33 = vcvt.s32.f32 %v1267_v0  ;;  %v2847_v43 = vcvt.s32.f32 %v1567_v61  ;;  %v587_v32 = vunpack.c.1.s8 %v127_v10 }
 0x211   :  { %v2867_v5 = vcvt.s32.f32 %v1587_v22  ;;  %4232 = vmatpush.bf16.msra.mxu0 %v3067_v4  ;;  %v3227_v7 = vpack.c.bf16 %v2227_v1, %v2207_v63  ;;  %v887_v9 = vunpack.c.0.s8 %v207_v23  ;;  %v907_v14 = vunpack.c.1.s8 %v207_v23 }
 0x212   :  { %v1847_v31 = vcvt.s32.f32 %v567_v12  ;;  %v3387_v62 = vpack.c.bf16 %v2547_v33, %v2527_v6  ;;  %v1867_v19 = vcvt.s32.f32 %v587_v32  ;;  %v1207_v60 = vunpack.c.0.s8 %v287_v50 }
 0x213   :  { %v3547_v58 = vpack.c.bf16 %v2867_v5, %v2847_v43  ;;  %4245 = vmatpush.bf16.msra.mxu1 %v3227_v7  ;;  %v2167_v42 = vcvt.s32.f32 %v887_v9  ;;  %v2187_v3 = vcvt.s32.f32 %v907_v14  ;;  %v1227_v25 = vunpack.c.1.s8 %v287_v50 }
 0x214   :  { %v1527_v8 = vunpack.c.0.s8 %v367_v46  ;;  %4258 = vmatpush.bf16.msra.mxu2 %v3387_v62  ;;  %v3047_v24 = vpack.c.bf16 %v1867_v19, %v1847_v31  ;;  %v2487_v10 = vcvt.s32.f32 %v1207_v60  ;;  %v1547_v52 = vunpack.c.1.s8 %v367_v46 }
 0x215   :  { %4271 = vmatpush.bf16.msra.mxu3 %v3547_v58  ;;  %v3993_v13 = vadd.f32 %v5376_v54, %v5374_v53  ;;  %v3207_v11 = vpack.c.bf16 %v2187_v3, %v2167_v42  ;;  %v2507_v27 = vcvt.s32.f32 %v1227_v25  ;;  %v527_v37 = vunpack.c.2.s8 %v107_v48  ;;  %v167_v58 = vld [vmem:[#allocation5 + $0x2e0] sm:$0xff] }
 0x216   :  { %v2807_v28 = vcvt.s32.f32 %v1527_v8  ;;  %4233 = vmatpush.bf16.msra.mxu0 %v3047_v24  ;;  %v2827_v29 = vcvt.s32.f32 %v1547_v52  ;;  %v547_v55 = vunpack.c.3.s8 %v107_v48  ;;  %v847_v35 = vunpack.c.2.s8 %v187_v2  ;;  %v247_v42 = vld [vmem:[#allocation5 + $0x560] sm:$0xff] }
 0x217   :  { %v867_v23 = vunpack.c.3.s8 %v187_v2  ;;  %4246 = vmatpush.bf16.msra.mxu1 %v3207_v11  ;;  %v3367_v45 = vpack.c.bf16 %v2507_v27, %v2487_v10  ;;  %v1807_v21 = vcvt.s32.f32 %v527_v37  ;;  %v1167_v50 = vunpack.c.2.s8 %v267_v51  ;;  %v327_v24 = vld [vmem:[#allocation5 + $0x7e0] sm:$0xff] }
 0x218   :  { %v1187_v39 = vunpack.c.3.s8 %v267_v51  ;;  %v3527_v18 = vpack.c.bf16 %v2827_v29, %v2807_v28  ;;  %v1827_v36 = vcvt.s32.f32 %v547_v55  ;;  %v2127_v26 = vcvt.s32.f32 %v847_v35 }
 0x219   :  { %v2147_v53 = vcvt.s32.f32 %v867_v23  ;;  %4259 = vmatpush.bf16.msra.mxu2 %v3367_v45  ;;  %v2447_v54 = vcvt.s32.f32 %v1167_v50  ;;  %v1487_v47 = vunpack.c.2.s8 %v347_v59  ;;  %v1507_v41 = vunpack.c.3.s8 %v347_v59 }
 0x21a   :  { %v2467_v46 = vcvt.s32.f32 %v1187_v39  ;;  %4272 = vmatpush.bf16.msra.mxu3 %v3527_v18  ;;  %v3027_v49 = vpack.c.bf16 %v1827_v36, %v1807_v21  ;;  %v4006_v30 = vadd.f32 %v5388_v44, %v3993_v13  ;;  %v4659_v15 = vperm.slane %v5399_v57, 7  ;;  %v87_v44 = vld [vmem:[#allocation5 + $0x60] sm:$0xff] }
 0x21b   :  { %v3187_v40 = vpack.c.bf16 %v2147_v53, %v2127_v26  ;;  %v2767_v63 = vcvt.s32.f32 %v1487_v47  ;;  %v2787_v0 = vcvt.s32.f32 %v1507_v41  ;;  %v4725_v61 = vperm.slane %v5404_v16, 7 }
 0x21c   :  { %v3347_v56 = vpack.c.bf16 %v2467_v46, %v2447_v54  ;;  %4234 = vmatpush.bf16.msra.mxu0 %v3027_v49  ;;  %v4019_v22 = vadd.f32 %v5390_v17, %v4006_v30  ;;  %v487_v4 = vunpack.c.0.s8 %v107_v48  ;;  %v507_v1 = vunpack.c.1.s8 %v107_v48 }
 0x21d   :  { %4247 = vmatpush.bf16.msra.mxu1 %v3187_v40  ;;  %v807_v6 = vunpack.c.0.s8 %v187_v2  ;;  %v3507_v12 = vpack.c.bf16 %v2787_v0, %v2767_v63  ;;  %v827_v33 = vunpack.c.1.s8 %v187_v2  ;;  %v1127_v43 = vunpack.c.0.s8 %v267_v51  ;;  %v148_v40 = vld [vmem:[#allocation5 + $0x248] sm:$0xff] }
 0x21e   :  { %4260 = vmatpush.bf16.msra.mxu2 %v3347_v56  ;;  %v1147_v5 = vunpack.c.1.s8 %v267_v51  ;;  %v4699_v32 = vmul.f32 %v4659_v15, %v4019_v22  ;;  %v1767_v57 = vcvt.s32.f32 %v487_v4  ;;  %v1787_v7 = vcvt.s32.f32 %v507_v1  ;;  %v5432_v63 = vld [vmem:[#allocation5 + $0x4c8] sm:$0xff] }
 0x21f   :  { %v2087_v31 = vcvt.s32.f32 %v807_v6  ;;  %4273 = vmatpush.bf16.msra.mxu3 %v3507_v12  ;;  %v2107_v9 = vcvt.s32.f32 %v827_v33  ;;  %v2407_v16 = vcvt.s32.f32 %v1127_v43  ;;  %v1447_v62 = vunpack.c.0.s8 %v347_v59  ;;  %v5434_v1 = vld [vmem:[#allocation5 + $0x748] sm:$0xff] }
 0x220   :  { %v2427_v14 = vcvt.s32.f32 %v1147_v5  ;;  %v4765_v17 = vadd.f32 %v4725_v61, %v4699_v32  ;;  %v3007_v19 = vpack.c.bf16 %v1787_v7, %v1767_v57  ;;  %v1467_v60 = vunpack.c.1.s8 %v347_v59  ;;  %v388_v7 = vld [vmem:[#allocation5 + $0x9c8] sm:$0xff] }
 0x221   :  { %v447_v48 = vunpack.c.2.s8 %v87_v44  ;;  %v3167_v3 = vpack.c.bf16 %v2107_v9, %v2087_v31  ;;  %v2727_v8 = vcvt.s32.f32 %v1447_v62  ;;  %v467_v2 = vunpack.c.3.s8 %v87_v44 }
 0x222   :  { %v3327_v25 = vpack.c.bf16 %v2427_v14, %v2407_v16  ;;  %v4803_v10 = vrot.slane %v4765_v17, 2  ;;  %4235 = vmatpush.bf16.msra.mxu0 %v3007_v19  ;;  %v2747_v52 = vcvt.s32.f32 %v1467_v60  ;;  %v767_v51 = vunpack.c.2.s8 %v167_v58 }
 0x223   :  { %v1727_v13 = vcvt.s32.f32 %v447_v48  ;;  %4248 = vmatpush.bf16.msra.mxu1 %v3167_v3  ;;  %v1747_v11 = vcvt.s32.f32 %v467_v2  ;;  %v787_v27 = vunpack.c.3.s8 %v167_v58  ;;  %v1087_v28 = vunpack.c.2.s8 %v247_v42 }
 0x224   :  { %4261 = vmatpush.bf16.msra.mxu2 %v3327_v25  ;;  %v1107_v37 = vunpack.c.3.s8 %v247_v42  ;;  %v4820_v29 = vsel %vm4815_vm1, %v4802_v38, %v4803_v10  ;;  %v3487_v55 = vpack.c.bf16 %v2747_v52, %v2727_v8  ;;  %v2047_v35 = vcvt.s32.f32 %v767_v51  ;;  %v5440_v10 = vld [vmem:[#allocation1] sm:$0xff] }
 0x225   :  { %v1407_v23 = vunpack.c.2.s8 %v327_v24  ;;  %v4821_v59 = vsel %vm4817_vm2, %v5358_v20, %v4820_v29  ;;  %v2987_v45 = vpack.c.bf16 %v1747_v11, %v1727_v13  ;;  %v2067_v21 = vcvt.s32.f32 %v787_v27  ;;  %v5444_v27 = vld [vmem:[#allocation1 + $0x9] sm:$0xff] }
 0x226   :  { %v2367_v50 = vcvt.s32.f32 %v1087_v28  ;;  %4837 = vst [vmem:[#allocation10 + $0x8] sm:$0xff] %v4821_v59  ;;  %4274 = vmatpush.bf16.msra.mxu3 %v3487_v55  ;;  %v2387_v39 = vcvt.s32.f32 %v1107_v37  ;;  %v1427_v18 = vunpack.c.3.s8 %v327_v24  ;;  %v407_v26 = vunpack.c.0.s8 %v87_v44 }
 0x227   :  { %v2687_v36 = vcvt.s32.f32 %v1407_v23  ;;  %4236 = vmatpush.bf16.msra.mxu0 %v2987_v45  ;;  %v3147_v53 = vpack.c.bf16 %v2067_v21, %v2047_v35  ;;  %v427_v34 = vunpack.c.1.s8 %v87_v44  ;;  %v727_v54 = vunpack.c.0.s8 %v167_v58  ;;  %v128_v35 = vld [vmem:[#allocation5 + $0x1a8] sm:$0xff] }
 0x228   :  { %v747_v38 = vunpack.c.1.s8 %v167_v58  ;;  %v3307_v46 = vpack.c.bf16 %v2387_v39, %v2367_v50  ;;  %v2707_v47 = vcvt.s32.f32 %v1427_v18  ;;  %v1687_v41 = vcvt.s32.f32 %v407_v26  ;;  %v5448_v23 = vld [vmem:[#allocation1 + $0x12] sm:$0xff]  ;;  %v5455_v18 = vld [vmem:[#allocation1 + $0x1b] sm:$0xff]  ;;  %v5460_v26 = vpop.f32.mrf.mxu1 }
 0x229   :  { %v1047_v49 = vunpack.c.0.s8 %v247_v42  ;;  %4249 = vmatpush.bf16.msra.mxu1 %v3147_v53  ;;  %v1707_v20 = vcvt.s32.f32 %v427_v34  ;;  %v2007_v30 = vcvt.s32.f32 %v727_v54  ;;  %v1067_v56 = vunpack.c.1.s8 %v247_v42  ;;  %v5453_v39 = vld [vmem:[#allocation5 + $0x428] sm:$0xff] }
 0x22a   :  { %v2027_v15 = vcvt.s32.f32 %v747_v38  ;;  %4262 = vmatpush.bf16.msra.mxu2 %v3307_v46  ;;  %v3467_v0 = vpack.c.bf16 %v2707_v47, %v2687_v36  ;;  %v1367_v22 = vunpack.c.0.s8 %v327_v24  ;;  %v1387_v4 = vunpack.c.1.s8 %v327_v24  ;;  %v5458_v36 = vpop.f32.mrf.mxu0 }
 0x22b   :  { %v2327_v61 = vcvt.s32.f32 %v1047_v49  ;;  %v2967_v6 = vpack.c.bf16 %v1707_v20, %v1687_v41  ;;  %v2347_v33 = vcvt.s32.f32 %v1067_v56  ;;  %v688_v43 = vunpack.c.2.s8 %v148_v40 }
 0x22c   :  { %v3127_v12 = vpack.c.bf16 %v2027_v15, %v2007_v30  ;;  %4275 = vmatpush.bf16.msra.mxu3 %v3467_v0  ;;  %v2647_v5 = vcvt.s32.f32 %v1367_v22  ;;  %v2667_v44 = vcvt.s32.f32 %v1387_v4  ;;  %v708_v32 = vunpack.c.3.s8 %v148_v40 }
 0x22d   :  { %v1008_v57 = vunpack.c.2.s8 %v5432_v63  ;;  %4237 = vmatpush.bf16.msra.mxu0 %v2967_v6  ;;  %v3287_v31 = vpack.c.bf16 %v2347_v33, %v2327_v61  ;;  %v1968_v9 = vcvt.s32.f32 %v688_v43  ;;  %v1028_v16 = vunpack.c.3.s8 %v5432_v63 }
 0x22e   :  { %4250 = vmatpush.bf16.msra.mxu1 %v3127_v12  ;;  %v1328_v14 = vunpack.c.2.s8 %v5434_v1  ;;  %v3447_v62 = vpack.c.bf16 %v2667_v44, %v2647_v5  ;;  %v1988_v58 = vcvt.s32.f32 %v708_v32  ;;  %v1348_v19 = vunpack.c.3.s8 %v5434_v1 }
 0x22f   :  { %v2288_v17 = vcvt.s32.f32 %v1008_v57  ;;  %4263 = vmatpush.bf16.msra.mxu2 %v3287_v31  ;;  %v2308_v60 = vcvt.s32.f32 %v1028_v16  ;;  %v1648_v42 = vunpack.c.2.s8 %v388_v7  ;;  %v1668_v3 = vunpack.c.3.s8 %v388_v7 }
 0x230   :  { %v2608_v48 = vcvt.s32.f32 %v1328_v14  ;;  %4276 = vmatpush.bf16.msra.mxu3 %v3447_v62  ;;  %v3108_v25 = vpack.c.bf16 %v1988_v58, %v1968_v9  ;;  %v2628_v8 = vcvt.s32.f32 %v1348_v19  ;;  %v648_v2 = vunpack.c.0.s8 %v148_v40  ;;  %4238 = vmatmul.bf16.vlgmr.msra.gmra.mxu0 %v5440_v10  ;;  %v4046_v19 = vpop.f32.mrf.mxu1 }
 0x231   :  { %v668_v24 = vunpack.c.1.s8 %v148_v40  ;;  %v3268_v52 = vpack.c.bf16 %v2308_v60, %v2288_v17  ;;  %v2928_v13 = vcvt.s32.f32 %v1648_v42  ;;  %v2948_v51 = vcvt.s32.f32 %v1668_v3  ;;  %4251 = vmatmul.bf16.vlgmr.msra.gmra.mxu1 %v5444_v27  ;;  %v288_v40 = vld [vmem:[#allocation5 + $0x6a8] sm:$0xff] }
 0x232   :  { %v968_v11 = vunpack.c.0.s8 %v5432_v63  ;;  %4282 = vmatpush.bf16.msrb.mxu0 %v3108_v25  ;;  %v3428_v28 = vpack.c.bf16 %v2628_v8, %v2608_v48  ;;  %v1928_v37 = vcvt.s32.f32 %v648_v2  ;;  %v988_v55 = vunpack.c.1.s8 %v5432_v63  ;;  %4264 = vmatmul.bf16.vlgmr.msra.gmra.mxu2 %v5448_v23  ;;  %v368_v63 = vld [vmem:[#allocation5 + $0x928] sm:$0xff]  ;;  %v4033_v17 = vpop.f32.mrf.mxu0 }
 0x233   :  { %v1948_v29 = vcvt.s32.f32 %v668_v24  ;;  %4295 = vmatpush.bf16.msrb.mxu1 %v3268_v52  ;;  %v3588_v59 = vpack.c.bf16 %v2948_v51, %v2928_v13  ;;  %v1288_v21 = vunpack.c.0.s8 %v5434_v1  ;;  %v1308_v50 = vunpack.c.1.s8 %v5434_v1  ;;  %4277 = vmatmul.bf16.vlgmr.msra.gmra.mxu3 %v5455_v18  ;;  %v108_v25 = vld [vmem:[#allocation5 + $0x108] sm:$0xff]  ;;  %v5466_v51 = vpop.f32.mrf.mxu2 }
 0x234   :  { %v2248_v45 = vcvt.s32.f32 %v968_v11  ;;  %4308 = vmatpush.bf16.msrb.mxu2 %v3428_v28  ;;  %v2268_v34 = vcvt.s32.f32 %v988_v55  ;;  %v1608_v54 = vunpack.c.0.s8 %v388_v7  ;;  %v1628_v38 = vunpack.c.1.s8 %v388_v7  ;;  %v188_v13 = vld [vmem:[#allocation5 + $0x388] sm:$0xff]  ;;  %v5468_v11 = vpop.f32.mrf.mxu3 }
 0x235   :  { %v3088_v53 = vpack.c.bf16 %v1948_v29, %v1928_v37  ;;  %4321 = vmatpush.bf16.msrb.mxu3 %v3588_v59  ;;  %v2568_v46 = vcvt.s32.f32 %v1288_v21  ;;  %v2588_v47 = vcvt.s32.f32 %v1308_v50  ;;  %v608_v41 = vunpack.c.2.s8 %v128_v35  ;;  %v268_v50 = vld [vmem:[#allocation5 + $0x608] sm:$0xff] }
 0x236   :  { %v628_v49 = vunpack.c.3.s8 %v128_v35  ;;  %v3248_v20 = vpack.c.bf16 %v2268_v34, %v2248_v45  ;;  %v2888_v30 = vcvt.s32.f32 %v1608_v54  ;;  %v2908_v15 = vcvt.s32.f32 %v1628_v38  ;;  %v348_v38 = vld [vmem:[#allocation5 + $0x888] sm:$0xff] }
 0x237   :  { %4283 = vmatpush.bf16.msrb.mxu0 %v3088_v53  ;;  %v928_v56 = vunpack.c.2.s8 %v5453_v39  ;;  %v3408_v0 = vpack.c.bf16 %v2588_v47, %v2568_v46  ;;  %v1888_v61 = vcvt.s32.f32 %v608_v41  ;;  %v948_v4 = vunpack.c.3.s8 %v5453_v39  ;;  %v168_v19 = vld [vmem:[#allocation5 + $0x2e8] sm:$0xff] }
 0x238   :  { %v1908_v22 = vcvt.s32.f32 %v628_v49  ;;  %4296 = vmatpush.bf16.msrb.mxu1 %v3248_v20  ;;  %v3568_v1 = vpack.c.bf16 %v2908_v15, %v2888_v30  ;;  %v1248_v12 = vunpack.c.2.s8 %v288_v40  ;;  %v1268_v33 = vunpack.c.3.s8 %v288_v40 }
 0x239   :  { %v2208_v6 = vcvt.s32.f32 %v928_v56  ;;  %4309 = vmatpush.bf16.msrb.mxu2 %v3408_v0  ;;  %v2228_v5 = vcvt.s32.f32 %v948_v4  ;;  %v1568_v44 = vunpack.c.2.s8 %v368_v63  ;;  %v1588_v32 = vunpack.c.3.s8 %v368_v63 }
 0x23a   :  { %v3068_v43 = vpack.c.bf16 %v1908_v22, %v1888_v61  ;;  %4322 = vmatpush.bf16.msrb.mxu3 %v3568_v1  ;;  %v2528_v57 = vcvt.s32.f32 %v1248_v12  ;;  %v2548_v7 = vcvt.s32.f32 %v1268_v33  ;;  %v568_v31 = vunpack.c.0.s8 %v128_v35 }
 0x23b   :  { %v588_v9 = vunpack.c.1.s8 %v128_v35  ;;  %v3228_v16 = vpack.c.bf16 %v2228_v5, %v2208_v6  ;;  %v2848_v14 = vcvt.s32.f32 %v1568_v44  ;;  %v2868_v62 = vcvt.s32.f32 %v1588_v32  ;;  %v4059_v44 = vpop.f32.mrf.mxu2 }
 0x23c   :  { %4284 = vmatpush.bf16.msrb.mxu0 %v3068_v43  ;;  %v888_v58 = vunpack.c.0.s8 %v5453_v39  ;;  %v3388_v60 = vpack.c.bf16 %v2548_v7, %v2528_v57  ;;  %v1848_v48 = vcvt.s32.f32 %v568_v31  ;;  %v908_v3 = vunpack.c.1.s8 %v5453_v39  ;;  %v4072_v32 = vpop.f32.mrf.mxu3 }
 0x23d   :  { %v1868_v42 = vcvt.s32.f32 %v588_v9  ;;  %4297 = vmatpush.bf16.msrb.mxu1 %v3228_v16  ;;  %v3548_v8 = vpack.c.bf16 %v2868_v62, %v2848_v14  ;;  %v1208_v24 = vunpack.c.0.s8 %v288_v40  ;;  %v1228_v52 = vunpack.c.1.s8 %v288_v40  ;;  %v88_v16 = vld [vmem:[#allocation5 + $0x68] sm:$0xff] }
 0x23e   :  { %v2168_v2 = vcvt.s32.f32 %v888_v58  ;;  %4310 = vmatpush.bf16.msrb.mxu2 %v3388_v60  ;;  %v2188_v37 = vcvt.s32.f32 %v908_v3  ;;  %v1528_v29 = vunpack.c.0.s8 %v368_v63  ;;  %v1548_v55 = vunpack.c.1.s8 %v368_v63 }
 0x23f   :  { %v3048_v28 = vpack.c.bf16 %v1868_v42, %v1848_v48  ;;  %4323 = vmatpush.bf16.msrb.mxu3 %v3548_v8  ;;  %v2488_v35 = vcvt.s32.f32 %v1208_v24  ;;  %v2508_v59 = vcvt.s32.f32 %v1228_v52  ;;  %v528_v45 = vunpack.c.2.s8 %v108_v25  ;;  %v248_v52 = vld [vmem:[#allocation5 + $0x568] sm:$0xff] }
 0x240   :  { %v548_v21 = vunpack.c.3.s8 %v108_v25  ;;  %v3208_v39 = vpack.c.bf16 %v2188_v37, %v2168_v2  ;;  %v2808_v53 = vcvt.s32.f32 %v1528_v29  ;;  %v2828_v34 = vcvt.s32.f32 %v1548_v55  ;;  %v328_v55 = vld [vmem:[#allocation5 + $0x7e8] sm:$0xff] }
 0x241   :  { %4285 = vmatpush.bf16.msrb.mxu0 %v3048_v28  ;;  %v848_v54 = vunpack.c.2.s8 %v188_v13  ;;  %v3368_v46 = vpack.c.bf16 %v2508_v59, %v2488_v35  ;;  %v1808_v47 = vcvt.s32.f32 %v528_v45  ;;  %v868_v49 = vunpack.c.3.s8 %v188_v13 }
 0x242   :  { %v1828_v41 = vcvt.s32.f32 %v548_v21  ;;  %4298 = vmatpush.bf16.msrb.mxu1 %v3208_v39  ;;  %v3528_v40 = vpack.c.bf16 %v2828_v34, %v2808_v53  ;;  %v1168_v30 = vunpack.c.2.s8 %v268_v50  ;;  %v1188_v15 = vunpack.c.3.s8 %v268_v50 }
 0x243   :  { %v2128_v20 = vcvt.s32.f32 %v848_v54  ;;  %4311 = vmatpush.bf16.msrb.mxu2 %v3368_v46  ;;  %v2148_v63 = vcvt.s32.f32 %v868_v49  ;;  %v1488_v0 = vunpack.c.2.s8 %v348_v38  ;;  %v1508_v61 = vunpack.c.3.s8 %v348_v38 }
 0x244   :  { %v3028_v56 = vpack.c.bf16 %v1828_v41, %v1808_v47  ;;  %4324 = vmatpush.bf16.msrb.mxu3 %v3528_v40  ;;  %v2448_v22 = vcvt.s32.f32 %v1168_v30  ;;  %v2468_v4 = vcvt.s32.f32 %v1188_v15  ;;  %v488_v1 = vunpack.c.0.s8 %v108_v25  ;;  %v5472_v30 = vpop.f32.mrf.mxu0  ;;  %v5474_v15 = vpop.f32.mrf.mxu1 }
 0x245   :  { %v508_v6 = vunpack.c.1.s8 %v108_v25  ;;  %v3188_v12 = vpack.c.bf16 %v2148_v63, %v2128_v20  ;;  %v2768_v33 = vcvt.s32.f32 %v1488_v0  ;;  %v2788_v43 = vcvt.s32.f32 %v1508_v61 }
 0x246   :  { %4286 = vmatpush.bf16.msrb.mxu0 %v3028_v56  ;;  %v808_v5 = vunpack.c.0.s8 %v188_v13  ;;  %v3348_v57 = vpack.c.bf16 %v2468_v4, %v2448_v22  ;;  %v1768_v7 = vcvt.s32.f32 %v488_v1  ;;  %v828_v9 = vunpack.c.1.s8 %v188_v13 }
 0x247   :  { %v1788_v31 = vcvt.s32.f32 %v508_v6  ;;  %4299 = vmatpush.bf16.msrb.mxu1 %v3188_v12  ;;  %v3508_v14 = vpack.c.bf16 %v2788_v43, %v2768_v33  ;;  %v1128_v58 = vunpack.c.0.s8 %v268_v50  ;;  %v1148_v17 = vunpack.c.1.s8 %v268_v50  ;;  %v5476_v12 = vld [vmem:[#allocation5 + $0x250] sm:$0xff] }
 0x248   :  { %v2088_v62 = vcvt.s32.f32 %v808_v5  ;;  %4312 = vmatpush.bf16.msrb.mxu2 %v3348_v57  ;;  %v2108_v48 = vcvt.s32.f32 %v828_v9  ;;  %v1448_v42 = vunpack.c.0.s8 %v348_v38  ;;  %v1468_v3 = vunpack.c.1.s8 %v348_v38 }
 0x249   :  { %v3008_v60 = vpack.c.bf16 %v1788_v31, %v1768_v7  ;;  %4325 = vmatpush.bf16.msrb.mxu3 %v3508_v14  ;;  %v2408_v25 = vcvt.s32.f32 %v1128_v58  ;;  %v2428_v8 = vcvt.s32.f32 %v1148_v17  ;;  %v448_v2 = vunpack.c.2.s8 %v88_v16  ;;  %v5478_v7 = vld [vmem:[#allocation5 + $0x4d0] sm:$0xff]  ;;  %v5483_v58 = vpop.f32.mrf.mxu2  ;;  %v5485_v17 = vpop.f32.mrf.mxu3 }
 0x24a   :  { %v468_v24 = vunpack.c.3.s8 %v88_v16  ;;  %v3168_v13 = vpack.c.bf16 %v2108_v48, %v2088_v62  ;;  %v2728_v28 = vcvt.s32.f32 %v1448_v42  ;;  %v2748_v37 = vcvt.s32.f32 %v1468_v3  ;;  %v5481_v62 = vld [vmem:[#allocation5 + $0x750] sm:$0xff] }
 0x24b   :  { %4287 = vmatpush.bf16.msrb.mxu0 %v3008_v60  ;;  %v768_v29 = vunpack.c.2.s8 %v168_v19  ;;  %v3328_v35 = vpack.c.bf16 %v2428_v8, %v2408_v25  ;;  %v1728_v59 = vcvt.s32.f32 %v448_v2  ;;  %v788_v21 = vunpack.c.3.s8 %v168_v19  ;;  %v5488_v3 = vld [vmem:[#allocation5 + $0x9d0] sm:$0xff] }
 0x24c   :  { %v1748_v45 = vcvt.s32.f32 %v468_v24  ;;  %4300 = vmatpush.bf16.msrb.mxu1 %v3168_v13  ;;  %v3488_v50 = vpack.c.bf16 %v2748_v37, %v2728_v28  ;;  %v1088_v53 = vunpack.c.2.s8 %v248_v52  ;;  %v1108_v34 = vunpack.c.3.s8 %v248_v52 }
 0x24d   :  { %v2048_v39 = vcvt.s32.f32 %v768_v29  ;;  %4313 = vmatpush.bf16.msrb.mxu2 %v3328_v35  ;;  %v2068_v38 = vcvt.s32.f32 %v788_v21  ;;  %v1408_v46 = vunpack.c.2.s8 %v328_v55  ;;  %v1428_v47 = vunpack.c.3.s8 %v328_v55  ;;  %v5494_v29 = vld [vmem:[#allocation7 + $0x8] sm:$0xff]  ;;  %v4098_v35 = vpop.f32.mrf.mxu1 }
 0x24e   :  { %v2988_v54 = vpack.c.bf16 %v1748_v45, %v1728_v59  ;;  %4326 = vmatpush.bf16.msrb.mxu3 %v3488_v50  ;;  %v2368_v41 = vcvt.s32.f32 %v1088_v53  ;;  %v2388_v49 = vcvt.s32.f32 %v1108_v34  ;;  %v4045_v40 = vadd.f32 %v5460_v26, %v5458_v36 }
 0x24f   :  { %v408_v20 = vunpack.c.0.s8 %v88_v16  ;;  %v3148_v56 = vpack.c.bf16 %v2068_v38, %v2048_v39  ;;  %v2688_v63 = vcvt.s32.f32 %v1408_v46  ;;  %v2708_v0 = vcvt.s32.f32 %v1428_v47  ;;  %v5498_v39 = vld [vmem:[#allocation8 + $0x8] sm:$0xff] }
 0x250   :  { %4288 = vmatpush.bf16.msrb.mxu0 %v2988_v54  ;;  %v428_v61 = vunpack.c.1.s8 %v88_v16  ;;  %v3308_v22 = vpack.c.bf16 %v2388_v49, %v2368_v41  ;;  %v728_v1 = vunpack.c.0.s8 %v168_v19  ;;  %v748_v6 = vunpack.c.1.s8 %v168_v19 }
 0x251   :  { %v1688_v4 = vcvt.s32.f32 %v408_v20  ;;  %4301 = vmatpush.bf16.msrb.mxu1 %v3148_v56  ;;  %v3468_v33 = vpack.c.bf16 %v2708_v0, %v2688_v63  ;;  %v1048_v36 = vunpack.c.0.s8 %v248_v52  ;;  %v1068_v26 = vunpack.c.1.s8 %v248_v52 }
 0x252   :  { %v1708_v43 = vcvt.s32.f32 %v428_v61  ;;  %4314 = vmatpush.bf16.msrb.mxu2 %v3308_v22  ;;  %v2008_v5 = vcvt.s32.f32 %v728_v1  ;;  %v2028_v44 = vcvt.s32.f32 %v748_v6  ;;  %v1368_v32 = vunpack.c.0.s8 %v328_v55  ;;  %v4124_v1 = vpop.f32.mrf.mxu3 }
 0x253   :  { %v1388_v57 = vunpack.c.1.s8 %v328_v55  ;;  %4327 = vmatpush.bf16.msrb.mxu3 %v3468_v33  ;;  %v2328_v9 = vcvt.s32.f32 %v1048_v36  ;;  %v2348_v16 = vcvt.s32.f32 %v1068_v26  ;;  %v689_v14 = vunpack.c.2.s8 %v5476_v12  ;;  %v4085_v55 = vpop.f32.mrf.mxu0  ;;  %v129_v36 = vld [vmem:[#allocation5 + $0x1b0] sm:$0xff] }
 0x254   :  { %v2968_v31 = vpack.c.bf16 %v1708_v43, %v1688_v4  ;;  %v3128_v19 = vpack.c.bf16 %v2028_v44, %v2008_v5  ;;  %v2648_v60 = vcvt.s32.f32 %v1368_v32  ;;  %v709_v42 = vunpack.c.3.s8 %v5476_v12  ;;  %v4111_v4 = vpop.f32.mrf.mxu2  ;;  %v209_v32 = vld [vmem:[#allocation5 + $0x430] sm:$0xff] }
 0x255   :  { %v2668_v48 = vcvt.s32.f32 %v1388_v57  ;;  %v3288_v25 = vpack.c.bf16 %v2348_v16, %v2328_v9  ;;  %v1969_v8 = vcvt.s32.f32 %v689_v14  ;;  %v1009_v2 = vunpack.c.2.s8 %v5478_v7  ;;  %v289_v16 = vld [vmem:[#allocation5 + $0x6b0] sm:$0xff] }
 0x256   :  { %4289 = vmatpush.bf16.msrb.mxu0 %v2968_v31  ;;  %v1029_v24 = vunpack.c.3.s8 %v5478_v7  ;;  %4302 = vmatpush.bf16.msrb.mxu1 %v3128_v19  ;;  %v1989_v13 = vcvt.s32.f32 %v709_v42  ;;  %v1329_v28 = vunpack.c.2.s8 %v5481_v62  ;;  %v1349_v37 = vunpack.c.3.s8 %v5481_v62  ;;  %v189_v1 = vld [vmem:[#allocation5 + $0x390] sm:$0xff] }
 0x257   :  { %v3448_v52 = vpack.c.bf16 %v2668_v48, %v2648_v60  ;;  %4315 = vmatpush.bf16.msrb.mxu2 %v3288_v25  ;;  %v2289_v59 = vcvt.s32.f32 %v1009_v2  ;;  %v1649_v21 = vunpack.c.2.s8 %v5488_v3  ;;  %v1669_v50 = vunpack.c.3.s8 %v5488_v3 }
 0x258   :  { %v2309_v45 = vcvt.s32.f32 %v1029_v24  ;;  %v3109_v53 = vpack.c.bf16 %v1989_v13, %v1969_v8  ;;  %v2609_v34 = vcvt.s32.f32 %v1329_v28  ;;  %v2629_v54 = vcvt.s32.f32 %v1349_v37 }
 0x259   :  { %4328 = vmatpush.bf16.msrb.mxu3 %v3448_v52  ;;  %v4058_v38 = vadd.f32 %v5466_v51, %v4045_v40  ;;  %4290 = vmatmul.bf16.vlgmr.msrb.gmra.mxu0 %v5440_v10  ;;  %v2929_v47 = vcvt.s32.f32 %v1649_v21  ;;  %v2949_v41 = vcvt.s32.f32 %v1669_v50  ;;  %v4660_v49 = vperm.slane %v5494_v29, 0 }
 0x25a   :  { %v3269_v46 = vpack.c.bf16 %v2309_v45, %v2289_v59  ;;  %4303 = vmatmul.bf16.vlgmr.msrb.gmra.mxu1 %v5444_v27  ;;  %4334 = vmatpush.bf16.msra.mxu0 %v3109_v53  ;;  %v3429_v20 = vpack.c.bf16 %v2629_v54, %v2609_v34  ;;  %v4726_v63 = vperm.slane %v5498_v39, 0  ;;  %v649_v0 = vunpack.c.0.s8 %v5476_v12 }
 0x25b   :  { %4316 = vmatmul.bf16.vlgmr.msrb.gmra.mxu2 %v5448_v23  ;;  %v4071_v56 = vadd.f32 %v5468_v11, %v4058_v38  ;;  %v3589_v51 = vpack.c.bf16 %v2949_v41, %v2929_v47  ;;  %v669_v40 = vunpack.c.1.s8 %v5476_v12  ;;  %v969_v61 = vunpack.c.0.s8 %v5478_v7 }
 0x25c   :  { %4347 = vmatpush.bf16.msra.mxu1 %v3269_v46  ;;  %4329 = vmatmul.bf16.vlgmr.msrb.gmra.mxu3 %v5455_v18  ;;  %v989_v22 = vunpack.c.1.s8 %v5478_v7  ;;  %v1929_v33 = vcvt.s32.f32 %v649_v0  ;;  %v1289_v11 = vunpack.c.0.s8 %v5481_v62  ;;  %v1309_v43 = vunpack.c.1.s8 %v5481_v62  ;;  %v369_v62 = vld [vmem:[#allocation5 + $0x930] sm:$0xff] }
 0x25d   :  { %4360 = vmatpush.bf16.msra.mxu2 %v3429_v20  ;;  %v4700_v6 = vmul.f32 %v4660_v49, %v4071_v56  ;;  %4373 = vmatpush.bf16.msra.mxu3 %v3589_v51  ;;  %v1949_v26 = vcvt.s32.f32 %v669_v40  ;;  %v2249_v5 = vcvt.s32.f32 %v969_v61  ;;  %v1609_v12 = vunpack.c.0.s8 %v5488_v3  ;;  %v109_v51 = vld [vmem:[#allocation5 + $0x110] sm:$0xff] }
 0x25e   :  { %v2269_v44 = vcvt.s32.f32 %v989_v22  ;;  %v2569_v7 = vcvt.s32.f32 %v1289_v11  ;;  %v2589_v31 = vcvt.s32.f32 %v1309_v43  ;;  %v1629_v9 = vunpack.c.1.s8 %v5488_v3 }
 0x25f   :  { %v5515_v57 = vadd.f32 %v4726_v63, %v4700_v6  ;;  %v3089_v14 = vpack.c.bf16 %v1949_v26, %v1929_v33  ;;  %v2889_v60 = vcvt.s32.f32 %v1609_v12  ;;  %v609_v48 = vunpack.c.2.s8 %v129_v36 }
 0x260   :  { %v3249_v19 = vpack.c.bf16 %v2269_v44, %v2249_v5  ;;  %v3409_v42 = vpack.c.bf16 %v2589_v31, %v2569_v7  ;;  %v2909_v25 = vcvt.s32.f32 %v1629_v9  ;;  %v629_v8 = vunpack.c.3.s8 %v129_v36 }
 0x261   :  { %v929_v2 = vunpack.c.2.s8 %v209_v32  ;;  %4335 = vmatpush.bf16.msra.mxu0 %v3089_v14  ;;  %v1889_v24 = vcvt.s32.f32 %v609_v48  ;;  %v949_v52 = vunpack.c.3.s8 %v209_v32  ;;  %v1249_v13 = vunpack.c.2.s8 %v289_v16 }
 0x262   :  { %4348 = vmatpush.bf16.msra.mxu1 %v3249_v19  ;;  %v1269_v28 = vunpack.c.3.s8 %v289_v16  ;;  %4361 = vmatpush.bf16.msra.mxu2 %v3409_v42  ;;  %v3569_v37 = vpack.c.bf16 %v2909_v25, %v2889_v60  ;;  %v1909_v55 = vcvt.s32.f32 %v629_v8  ;;  %v1569_v35 = vunpack.c.2.s8 %v369_v62 }
 0x263   :  { %v2209_v3 = vcvt.s32.f32 %v929_v2  ;;  %v2229_v59 = vcvt.s32.f32 %v949_v52  ;;  %v2529_v45 = vcvt.s32.f32 %v1249_v13  ;;  %v1589_v50 = vunpack.c.3.s8 %v369_v62 }
 0x264   :  { %v2549_v21 = vcvt.s32.f32 %v1269_v28  ;;  %4374 = vmatpush.bf16.msra.mxu3 %v3569_v37  ;;  %v3069_v53 = vpack.c.bf16 %v1909_v55, %v1889_v24  ;;  %v2849_v34 = vcvt.s32.f32 %v1569_v35  ;;  %v569_v54 = vunpack.c.0.s8 %v129_v36 }
 0x265   :  { %v589_v38 = vunpack.c.1.s8 %v129_v36  ;;  %v3229_v46 = vpack.c.bf16 %v2229_v59, %v2209_v3  ;;  %v2869_v41 = vcvt.s32.f32 %v1589_v50  ;;  %v889_v49 = vunpack.c.0.s8 %v209_v32  ;;  %v269_v36 = vld [vmem:[#allocation5 + $0x610] sm:$0xff] }
 0x266   :  { %v3389_v47 = vpack.c.bf16 %v2549_v21, %v2529_v45  ;;  %4336 = vmatpush.bf16.msra.mxu0 %v3069_v53  ;;  %v1849_v20 = vcvt.s32.f32 %v569_v54  ;;  %v909_v63 = vunpack.c.1.s8 %v209_v32  ;;  %v1209_v0 = vunpack.c.0.s8 %v289_v16 }
 0x267   :  { %v1869_v56 = vcvt.s32.f32 %v589_v38  ;;  %4349 = vmatpush.bf16.msra.mxu1 %v3229_v46  ;;  %v3549_v40 = vpack.c.bf16 %v2869_v41, %v2849_v34  ;;  %v2169_v61 = vcvt.s32.f32 %v889_v49  ;;  %v1229_v22 = vunpack.c.1.s8 %v289_v16  ;;  %v349_v16 = vld [vmem:[#allocation5 + $0x890] sm:$0xff] }
 0x268   :  { %4362 = vmatpush.bf16.msra.mxu2 %v3389_v47  ;;  %v1529_v4 = vunpack.c.0.s8 %v369_v62  ;;  %v2189_v33 = vcvt.s32.f32 %v909_v63  ;;  %v2489_v11 = vcvt.s32.f32 %v1209_v0  ;;  %v1549_v43 = vunpack.c.1.s8 %v369_v62 }
 0x269   :  { %v3049_v6 = vpack.c.bf16 %v1869_v56, %v1849_v20  ;;  %4375 = vmatpush.bf16.msra.mxu3 %v3549_v40  ;;  %v2509_v26 = vcvt.s32.f32 %v1229_v22  ;;  %v4097_v44 = vadd.f32 %v5474_v15, %v5472_v30  ;;  %v529_v12 = vunpack.c.2.s8 %v109_v51  ;;  %v89_v20 = vld [vmem:[#allocation5 + $0x70] sm:$0xff] }
 0x26a   :  { %v2809_v5 = vcvt.s32.f32 %v1529_v4  ;;  %v3209_v32 = vpack.c.bf16 %v2189_v33, %v2169_v61  ;;  %v2829_v7 = vcvt.s32.f32 %v1549_v43  ;;  %v549_v31 = vunpack.c.3.s8 %v109_v51  ;;  %v169_v61 = vld [vmem:[#allocation5 + $0x2f0] sm:$0xff] }
 0x26b   :  { %4337 = vmatpush.bf16.msra.mxu0 %v3049_v6  ;;  %v849_v9 = vunpack.c.2.s8 %v189_v1  ;;  %v3369_v14 = vpack.c.bf16 %v2509_v26, %v2489_v11  ;;  %v1809_v19 = vcvt.s32.f32 %v529_v12  ;;  %v869_v60 = vunpack.c.3.s8 %v189_v1  ;;  %v249_v6 = vld [vmem:[#allocation5 + $0x570] sm:$0xff] }
 0x26c   :  { %v1169_v48 = vunpack.c.2.s8 %v269_v36  ;;  %4350 = vmatpush.bf16.msra.mxu1 %v3209_v32  ;;  %v3529_v62 = vpack.c.bf16 %v2829_v7, %v2809_v5  ;;  %v1829_v42 = vcvt.s32.f32 %v549_v31  ;;  %v1189_v8 = vunpack.c.3.s8 %v269_v36  ;;  %v329_v12 = vld [vmem:[#allocation5 + $0x7f0] sm:$0xff] }
 0x26d   :  { %v2129_v25 = vcvt.s32.f32 %v849_v9  ;;  %4363 = vmatpush.bf16.msra.mxu2 %v3369_v14  ;;  %v2149_v2 = vcvt.s32.f32 %v869_v60  ;;  %v1489_v30 = vunpack.c.2.s8 %v349_v16  ;;  %v1509_v15 = vunpack.c.3.s8 %v349_v16 }
 0x26e   :  { %v2449_v24 = vcvt.s32.f32 %v1169_v48  ;;  %4376 = vmatpush.bf16.msra.mxu3 %v3529_v62  ;;  %v3029_v52 = vpack.c.bf16 %v1829_v42, %v1809_v19  ;;  %v2469_v13 = vcvt.s32.f32 %v1189_v8  ;;  %v4110_v28 = vadd.f32 %v5483_v58, %v4097_v44 }
 0x26f   :  { %v4661_v37 = vperm.slane %v5494_v29, 1  ;;  %v3189_v55 = vpack.c.bf16 %v2149_v2, %v2129_v25  ;;  %v2769_v3 = vcvt.s32.f32 %v1489_v30  ;;  %v2789_v35 = vcvt.s32.f32 %v1509_v15 }
 0x270   :  { %v4727_v59 = vperm.slane %v5498_v39, 1  ;;  %4338 = vmatpush.bf16.msra.mxu0 %v3029_v52  ;;  %v3349_v45 = vpack.c.bf16 %v2469_v13, %v2449_v24  ;;  %v4123_v21 = vadd.f32 %v5485_v17, %v4110_v28  ;;  %v489_v50 = vunpack.c.0.s8 %v109_v51 }
 0x271   :  { %v509_v53 = vunpack.c.1.s8 %v109_v51  ;;  %4351 = vmatpush.bf16.msra.mxu1 %v3189_v55  ;;  %v3509_v34 = vpack.c.bf16 %v2789_v35, %v2769_v3  ;;  %v809_v54 = vunpack.c.0.s8 %v189_v1  ;;  %v829_v38 = vunpack.c.1.s8 %v189_v1  ;;  %v150_v35 = vld [vmem:[#allocation5 + $0x258] sm:$0xff] }
 0x272   :  { %v1129_v46 = vunpack.c.0.s8 %v269_v36  ;;  %4364 = vmatpush.bf16.msra.mxu2 %v3349_v45  ;;  %v4701_v58 = vmul.f32 %v4661_v37, %v4123_v21  ;;  %v1769_v47 = vcvt.s32.f32 %v489_v50  ;;  %v1149_v49 = vunpack.c.1.s8 %v269_v36 }
 0x273   :  { %v1789_v41 = vcvt.s32.f32 %v509_v53  ;;  %4377 = vmatpush.bf16.msra.mxu3 %v3509_v34  ;;  %v2089_v56 = vcvt.s32.f32 %v809_v54  ;;  %v2109_v63 = vcvt.s32.f32 %v829_v38  ;;  %v1449_v40 = vunpack.c.0.s8 %v349_v16  ;;  %v230_v53 = vld [vmem:[#allocation5 + $0x4d8] sm:$0xff] }
 0x274   :  { %v2409_v0 = vcvt.s32.f32 %v1129_v46  ;;  %v4767_v17 = vadd.f32 %v4727_v59, %v4701_v58  ;;  %v2429_v51 = vcvt.s32.f32 %v1149_v49  ;;  %v1469_v4 = vunpack.c.1.s8 %v349_v16  ;;  %v310_v58 = vld [vmem:[#allocation5 + $0x758] sm:$0xff] }
 0x275   :  { %v3009_v22 = vpack.c.bf16 %v1789_v41, %v1769_v47  ;;  %v3169_v33 = vpack.c.bf16 %v2109_v63, %v2089_v56  ;;  %v2729_v1 = vcvt.s32.f32 %v1449_v40  ;;  %v449_v11 = vunpack.c.2.s8 %v89_v20 }
 0x276   :  { %v469_v43 = vunpack.c.3.s8 %v89_v20  ;;  %v4804_v26 = vrot.slane %v4767_v17, 6  ;;  %v3329_v5 = vpack.c.bf16 %v2429_v51, %v2409_v0  ;;  %v2749_v36 = vcvt.s32.f32 %v1469_v4 }
 0x277   :  { %4339 = vmatpush.bf16.msra.mxu0 %v3009_v22  ;;  %v769_v44 = vunpack.c.2.s8 %v169_v61  ;;  %4352 = vmatpush.bf16.msra.mxu1 %v3169_v33  ;;  %v1729_v32 = vcvt.s32.f32 %v449_v11  ;;  %v789_v31 = vunpack.c.3.s8 %v169_v61  ;;  %v1089_v9 = vunpack.c.2.s8 %v249_v6 }
 0x278   :  { %v1749_v7 = vcvt.s32.f32 %v469_v43  ;;  %v5526_v14 = vsel %vm4813_vm0, %v5515_v57, %v4804_v26  ;;  %4365 = vmatpush.bf16.msra.mxu2 %v3329_v5  ;;  %v3489_v16 = vpack.c.bf16 %v2749_v36, %v2729_v1  ;;  %v1109_v60 = vunpack.c.3.s8 %v249_v6 }
 0x279   :  { %v2049_v19 = vcvt.s32.f32 %v769_v44  ;;  %v2069_v62 = vcvt.s32.f32 %v789_v31  ;;  %v2369_v42 = vcvt.s32.f32 %v1089_v9  ;;  %v1409_v25 = vunpack.c.2.s8 %v329_v12 }
 0x27a   :  { %v2989_v48 = vpack.c.bf16 %v1749_v7, %v1729_v32  ;;  %4378 = vmatpush.bf16.msra.mxu3 %v3489_v16  ;;  %v2389_v8 = vcvt.s32.f32 %v1109_v60  ;;  %v1429_v2 = vunpack.c.3.s8 %v329_v12  ;;  %v409_v24 = vunpack.c.0.s8 %v89_v20 }
 0x27b   :  { %v429_v30 = vunpack.c.1.s8 %v89_v20  ;;  %v3149_v15 = vpack.c.bf16 %v2069_v62, %v2049_v19  ;;  %v2689_v52 = vcvt.s32.f32 %v1409_v25  ;;  %v729_v13 = vunpack.c.0.s8 %v169_v61  ;;  %v130_v25 = vld [vmem:[#allocation5 + $0x1b8] sm:$0xff] }
 0x27c   :  { %4340 = vmatpush.bf16.msra.mxu0 %v2989_v48  ;;  %v749_v28 = vunpack.c.1.s8 %v169_v61  ;;  %v3309_v57 = vpack.c.bf16 %v2389_v8, %v2369_v42  ;;  %v2709_v37 = vcvt.s32.f32 %v1429_v2  ;;  %v1689_v55 = vcvt.s32.f32 %v409_v24  ;;  %v390_v61 = vld [vmem:[#allocation5 + $0x9d8] sm:$0xff] }
 0x27d   :  { %v1709_v3 = vcvt.s32.f32 %v429_v30  ;;  %4353 = vmatpush.bf16.msra.mxu1 %v3149_v15  ;;  %v2009_v59 = vcvt.s32.f32 %v729_v13  ;;  %v1049_v21 = vunpack.c.0.s8 %v249_v6  ;;  %v1069_v50 = vunpack.c.1.s8 %v249_v6  ;;  %v210_v30 = vld [vmem:[#allocation5 + $0x438] sm:$0xff]  ;;  %v5534_v15 = vpop.f32.mrf.mxu1 }
 0x27e   :  { %v2029_v45 = vcvt.s32.f32 %v749_v28  ;;  %4366 = vmatpush.bf16.msra.mxu2 %v3309_v57  ;;  %v3469_v34 = vpack.c.bf16 %v2709_v37, %v2689_v52  ;;  %v1369_v38 = vunpack.c.0.s8 %v329_v12  ;;  %v1389_v46 = vunpack.c.1.s8 %v329_v12 }
 0x27f   :  { %v2969_v54 = vpack.c.bf16 %v1709_v3, %v1689_v55  ;;  %v2329_v41 = vcvt.s32.f32 %v1049_v21  ;;  %v2349_v49 = vcvt.s32.f32 %v1069_v50  ;;  %v690_v20 = vunpack.c.2.s8 %v150_v35  ;;  %v370_v50 = vld [vmem:[#allocation5 + $0x938] sm:$0xff] }
 0x280   :  { %v3129_v47 = vpack.c.bf16 %v2029_v45, %v2009_v59  ;;  %4379 = vmatpush.bf16.msra.mxu3 %v3469_v34  ;;  %v2649_v56 = vcvt.s32.f32 %v1369_v38  ;;  %v2669_v63 = vcvt.s32.f32 %v1389_v46  ;;  %v710_v0 = vunpack.c.3.s8 %v150_v35 }
 0x281   :  { %4341 = vmatpush.bf16.msra.mxu0 %v2969_v54  ;;  %v1010_v40 = vunpack.c.2.s8 %v230_v53  ;;  %v3289_v17 = vpack.c.bf16 %v2349_v49, %v2329_v41  ;;  %v1970_v22 = vcvt.s32.f32 %v690_v20  ;;  %v1030_v51 = vunpack.c.3.s8 %v230_v53 }
 0x282   :  { %4354 = vmatpush.bf16.msra.mxu1 %v3129_v47  ;;  %v1330_v4 = vunpack.c.2.s8 %v310_v58  ;;  %v3449_v6 = vpack.c.bf16 %v2669_v63, %v2649_v56  ;;  %v1990_v33 = vcvt.s32.f32 %v710_v0  ;;  %v1350_v11 = vunpack.c.3.s8 %v310_v58 }
 0x283   :  { %v2290_v1 = vcvt.s32.f32 %v1010_v40  ;;  %4367 = vmatpush.bf16.msra.mxu2 %v3289_v17  ;;  %v2310_v43 = vcvt.s32.f32 %v1030_v51  ;;  %v1650_v5 = vunpack.c.2.s8 %v390_v61  ;;  %v1670_v36 = vunpack.c.3.s8 %v390_v61 }
 0x284   :  { %v2610_v26 = vcvt.s32.f32 %v1330_v4  ;;  %4342 = vmatmul.bf16.vlgmr.msra.gmra.mxu0 %v5440_v10  ;;  %4380 = vmatpush.bf16.msra.mxu3 %v3449_v6  ;;  %v3110_v44 = vpack.c.bf16 %v1990_v33, %v1970_v22  ;;  %v2630_v12 = vcvt.s32.f32 %v1350_v11  ;;  %v650_v32 = vunpack.c.0.s8 %v150_v35 }
 0x285   :  { %v670_v7 = vunpack.c.1.s8 %v150_v35  ;;  %4355 = vmatmul.bf16.vlgmr.msra.gmra.mxu1 %v5444_v27  ;;  %v3270_v31 = vpack.c.bf16 %v2310_v43, %v2290_v1  ;;  %v2930_v9 = vcvt.s32.f32 %v1650_v5  ;;  %v2950_v16 = vcvt.s32.f32 %v1670_v36  ;;  %v5532_v27 = vpop.f32.mrf.mxu0  ;;  %v290_v35 = vld [vmem:[#allocation5 + $0x6b8] sm:$0xff]  ;;  %v4150_v1 = vpop.f32.mrf.mxu1 }
 0x286   :  { %v970_v19 = vunpack.c.0.s8 %v230_v53  ;;  %4386 = vmatpush.bf16.msrb.mxu0 %v3110_v44  ;;  %v3430_v60 = vpack.c.bf16 %v2630_v12, %v2610_v26  ;;  %v1930_v48 = vcvt.s32.f32 %v650_v32  ;;  %v990_v42 = vunpack.c.1.s8 %v230_v53  ;;  %4368 = vmatmul.bf16.vlgmr.msra.gmra.mxu2 %v5448_v23  ;;  %v110_v36 = vld [vmem:[#allocation5 + $0x118] sm:$0xff] }
 0x287   :  { %v1950_v62 = vcvt.s32.f32 %v670_v7  ;;  %4399 = vmatpush.bf16.msrb.mxu1 %v3270_v31  ;;  %v3590_v10 = vpack.c.bf16 %v2950_v16, %v2930_v9  ;;  %v1290_v2 = vunpack.c.0.s8 %v310_v58  ;;  %v1310_v24 = vunpack.c.1.s8 %v310_v58  ;;  %4381 = vmatmul.bf16.vlgmr.msra.gmra.mxu3 %v5455_v18  ;;  %v190_v31 = vld [vmem:[#allocation5 + $0x398] sm:$0xff]  ;;  %v5536_v9 = vpop.f32.mrf.mxu2  ;;  %v5538_v16 = vpop.f32.mrf.mxu3 }
 0x288   :  { %v2250_v8 = vcvt.s32.f32 %v970_v19  ;;  %4412 = vmatpush.bf16.msrb.mxu2 %v3430_v60  ;;  %v2270_v13 = vcvt.s32.f32 %v990_v42  ;;  %v1610_v28 = vunpack.c.0.s8 %v390_v61  ;;  %v1630_v57 = vunpack.c.1.s8 %v390_v61 }
 0x289   :  { %v3090_v52 = vpack.c.bf16 %v1950_v62, %v1930_v48  ;;  %4425 = vmatpush.bf16.msrb.mxu3 %v3590_v10  ;;  %v2570_v37 = vcvt.s32.f32 %v1290_v2  ;;  %v2590_v23 = vcvt.s32.f32 %v1310_v24  ;;  %v610_v55 = vunpack.c.2.s8 %v130_v25  ;;  %v270_v2 = vld [vmem:[#allocation5 + $0x618] sm:$0xff] }
 0x28a   :  { %v630_v3 = vunpack.c.3.s8 %v130_v25  ;;  %v3250_v59 = vpack.c.bf16 %v2270_v13, %v2250_v8  ;;  %v2890_v45 = vcvt.s32.f32 %v1610_v28  ;;  %v2910_v21 = vcvt.s32.f32 %v1630_v57  ;;  %v350_v28 = vld [vmem:[#allocation5 + $0x898] sm:$0xff] }
 0x28b   :  { %4387 = vmatpush.bf16.msrb.mxu0 %v3090_v52  ;;  %v930_v18 = vunpack.c.2.s8 %v210_v30  ;;  %v3410_v53 = vpack.c.bf16 %v2590_v23, %v2570_v37  ;;  %v1890_v34 = vcvt.s32.f32 %v610_v55  ;;  %v950_v38 = vunpack.c.3.s8 %v210_v30 }
 0x28c   :  { %v1910_v54 = vcvt.s32.f32 %v630_v3  ;;  %4400 = vmatpush.bf16.msrb.mxu1 %v3250_v59  ;;  %v3570_v46 = vpack.c.bf16 %v2910_v21, %v2890_v45  ;;  %v1250_v47 = vunpack.c.2.s8 %v290_v35  ;;  %v1270_v41 = vunpack.c.3.s8 %v290_v35 }
 0x28d   :  { %v2210_v58 = vcvt.s32.f32 %v930_v18  ;;  %4413 = vmatpush.bf16.msrb.mxu2 %v3410_v53  ;;  %v2230_v20 = vcvt.s32.f32 %v950_v38  ;;  %v1570_v56 = vunpack.c.2.s8 %v370_v50  ;;  %v1590_v63 = vunpack.c.3.s8 %v370_v50  ;;  %v4137_v33 = vpop.f32.mrf.mxu0 }
 0x28e   :  { %v3070_v49 = vpack.c.bf16 %v1910_v54, %v1890_v34  ;;  %4426 = vmatpush.bf16.msrb.mxu3 %v3570_v46  ;;  %v2530_v0 = vcvt.s32.f32 %v1250_v47  ;;  %v2550_v40 = vcvt.s32.f32 %v1270_v41  ;;  %v570_v61 = vunpack.c.0.s8 %v130_v25  ;;  %v170_v33 = vld [vmem:[#allocation5 + $0x2f8] sm:$0xff] }
 0x28f   :  { %v590_v17 = vunpack.c.1.s8 %v130_v25  ;;  %v3230_v22 = vpack.c.bf16 %v2230_v20, %v2210_v58  ;;  %v2850_v51 = vcvt.s32.f32 %v1570_v56  ;;  %v2870_v4 = vcvt.s32.f32 %v1590_v63  ;;  %v4163_v20 = vpop.f32.mrf.mxu2  ;;  %v4176_v56 = vpop.f32.mrf.mxu3 }
 0x290   :  { %4388 = vmatpush.bf16.msrb.mxu0 %v3070_v49  ;;  %v890_v6 = vunpack.c.0.s8 %v210_v30  ;;  %v3390_v11 = vpack.c.bf16 %v2550_v40, %v2530_v0  ;;  %v1850_v43 = vcvt.s32.f32 %v570_v61  ;;  %v910_v5 = vunpack.c.1.s8 %v210_v30 }
 0x291   :  { %v1870_v26 = vcvt.s32.f32 %v590_v17  ;;  %4401 = vmatpush.bf16.msrb.mxu1 %v3230_v22  ;;  %v3550_v44 = vpack.c.bf16 %v2870_v4, %v2850_v51  ;;  %v1210_v32 = vunpack.c.0.s8 %v290_v35  ;;  %v1230_v7 = vunpack.c.1.s8 %v290_v35  ;;  %v90_v17 = vld [vmem:[#allocation5 + $0x78] sm:$0xff] }
 0x292   :  { %v2170_v12 = vcvt.s32.f32 %v890_v6  ;;  %4414 = vmatpush.bf16.msrb.mxu2 %v3390_v11  ;;  %v2190_v60 = vcvt.s32.f32 %v910_v5  ;;  %v1530_v48 = vunpack.c.0.s8 %v370_v50  ;;  %v1550_v62 = vunpack.c.1.s8 %v370_v50 }
 0x293   :  { %v3050_v19 = vpack.c.bf16 %v1870_v26, %v1850_v43  ;;  %4427 = vmatpush.bf16.msrb.mxu3 %v3550_v44  ;;  %v2490_v42 = vcvt.s32.f32 %v1210_v32  ;;  %v2510_v25 = vcvt.s32.f32 %v1230_v7  ;;  %v530_v10 = vunpack.c.2.s8 %v110_v36  ;;  %v250_v32 = vld [vmem:[#allocation5 + $0x578] sm:$0xff] }
 0x294   :  { %v550_v8 = vunpack.c.3.s8 %v110_v36  ;;  %v3210_v24 = vpack.c.bf16 %v2190_v60, %v2170_v12  ;;  %v2810_v30 = vcvt.s32.f32 %v1530_v48  ;;  %v2830_v52 = vcvt.s32.f32 %v1550_v62  ;;  %v330_v48 = vld [vmem:[#allocation5 + $0x7f8] sm:$0xff] }
 0x295   :  { %4389 = vmatpush.bf16.msrb.mxu0 %v3050_v19  ;;  %v850_v13 = vunpack.c.2.s8 %v190_v31  ;;  %v3370_v57 = vpack.c.bf16 %v2510_v25, %v2490_v42  ;;  %v1810_v37 = vcvt.s32.f32 %v530_v10  ;;  %v870_v55 = vunpack.c.3.s8 %v190_v31 }
 0x296   :  { %v1830_v23 = vcvt.s32.f32 %v550_v8  ;;  %4402 = vmatpush.bf16.msrb.mxu1 %v3210_v24  ;;  %v3530_v3 = vpack.c.bf16 %v2830_v52, %v2810_v30  ;;  %v1170_v59 = vunpack.c.2.s8 %v270_v2  ;;  %v1190_v45 = vunpack.c.3.s8 %v270_v2 }
 0x297   :  { %v2130_v35 = vcvt.s32.f32 %v850_v13  ;;  %4415 = vmatpush.bf16.msrb.mxu2 %v3370_v57  ;;  %v2150_v18 = vcvt.s32.f32 %v870_v55  ;;  %v1490_v50 = vunpack.c.2.s8 %v350_v28  ;;  %v1510_v53 = vunpack.c.3.s8 %v350_v28 }
 0x298   :  { %v3030_v21 = vpack.c.bf16 %v1830_v23, %v1810_v37  ;;  %4428 = vmatpush.bf16.msrb.mxu3 %v3530_v3  ;;  %v2450_v34 = vcvt.s32.f32 %v1170_v59  ;;  %v2470_v54 = vcvt.s32.f32 %v1190_v45  ;;  %v490_v38 = vunpack.c.0.s8 %v110_v36  ;;  %v5544_v59 = vpop.f32.mrf.mxu1 }
 0x299   :  { %v510_v46 = vunpack.c.1.s8 %v110_v36  ;;  %v3190_v58 = vpack.c.bf16 %v2150_v18, %v2130_v35  ;;  %v2770_v47 = vcvt.s32.f32 %v1490_v50  ;;  %v2790_v41 = vcvt.s32.f32 %v1510_v53  ;;  %v5542_v35 = vpop.f32.mrf.mxu0 }
 0x29a   :  { %4390 = vmatpush.bf16.msrb.mxu0 %v3030_v21  ;;  %v810_v49 = vunpack.c.0.s8 %v190_v31  ;;  %v3350_v63 = vpack.c.bf16 %v2470_v54, %v2450_v34  ;;  %v1770_v0 = vcvt.s32.f32 %v490_v38  ;;  %v830_v61 = vunpack.c.1.s8 %v190_v31 }
 0x29b   :  { %v1790_v40 = vcvt.s32.f32 %v510_v46  ;;  %4403 = vmatpush.bf16.msrb.mxu1 %v3190_v58  ;;  %v3510_v22 = vpack.c.bf16 %v2790_v41, %v2770_v47  ;;  %v1130_v4 = vunpack.c.0.s8 %v270_v2  ;;  %v1150_v6 = vunpack.c.1.s8 %v270_v2  ;;  %v5546_v46 = vld [vmem:[#allocation5 + $0x260] sm:$0xff] }
 0x29c   :  { %v2090_v51 = vcvt.s32.f32 %v810_v49  ;;  %4416 = vmatpush.bf16.msrb.mxu2 %v3350_v63  ;;  %v2110_v11 = vcvt.s32.f32 %v830_v61  ;;  %v1450_v43 = vunpack.c.0.s8 %v350_v28  ;;  %v1470_v26 = vunpack.c.1.s8 %v350_v28  ;;  %v5548_v63 = vld [vmem:[#allocation5 + $0x4e0] sm:$0xff] }
 0x29d   :  { %v3010_v1 = vpack.c.bf16 %v1790_v40, %v1770_v0  ;;  %4429 = vmatpush.bf16.msrb.mxu3 %v3510_v22  ;;  %v2410_v5 = vcvt.s32.f32 %v1130_v4  ;;  %v2430_v36 = vcvt.s32.f32 %v1150_v6  ;;  %v450_v44 = vunpack.c.2.s8 %v90_v17  ;;  %v5551_v22 = vld [vmem:[#allocation5 + $0x760] sm:$0xff]  ;;  %v5555_v4 = vpop.f32.mrf.mxu3 }
 0x29e   :  { %v470_v12 = vunpack.c.3.s8 %v90_v17  ;;  %v3170_v7 = vpack.c.bf16 %v2110_v11, %v2090_v51  ;;  %v2730_v31 = vcvt.s32.f32 %v1450_v43  ;;  %v2750_v19 = vcvt.s32.f32 %v1470_v26  ;;  %v5553_v51 = vpop.f32.mrf.mxu2  ;;  %v5558_v43 = vld [vmem:[#allocation5 + $0x9e0] sm:$0xff] }
 0x29f   :  { %4391 = vmatpush.bf16.msrb.mxu0 %v3010_v1  ;;  %v770_v60 = vunpack.c.2.s8 %v170_v33  ;;  %v3330_v62 = vpack.c.bf16 %v2430_v36, %v2410_v5  ;;  %v1730_v42 = vcvt.s32.f32 %v450_v44  ;;  %v790_v10 = vunpack.c.3.s8 %v170_v33 }
 0x2a0   :  { %v1750_v25 = vcvt.s32.f32 %v470_v12  ;;  %4404 = vmatpush.bf16.msrb.mxu1 %v3170_v7  ;;  %v3490_v8 = vpack.c.bf16 %v2750_v19, %v2730_v31  ;;  %v1090_v24 = vunpack.c.2.s8 %v250_v32  ;;  %v1110_v30 = vunpack.c.3.s8 %v250_v32 }
 0x2a1   :  { %v2050_v2 = vcvt.s32.f32 %v770_v60  ;;  %4417 = vmatpush.bf16.msrb.mxu2 %v3330_v62  ;;  %v2070_v13 = vcvt.s32.f32 %v790_v10  ;;  %v1410_v28 = vunpack.c.2.s8 %v330_v48  ;;  %v1430_v57 = vunpack.c.3.s8 %v330_v48  ;;  %v4189_v19 = vpop.f32.mrf.mxu0  ;;  %v4202_v60 = vpop.f32.mrf.mxu1 }
 0x2a2   :  { %v2990_v52 = vpack.c.bf16 %v1750_v25, %v1730_v42  ;;  %4430 = vmatpush.bf16.msrb.mxu3 %v3490_v8  ;;  %v2370_v37 = vcvt.s32.f32 %v1090_v24  ;;  %v2390_v23 = vcvt.s32.f32 %v1110_v30  ;;  %v4149_v55 = vadd.f32 %v5534_v15, %v5532_v27  ;;  %v5567_v30 = vld [vmem:[#allocation1] sm:$0xff] }
 0x2a3   :  { %v410_v3 = vunpack.c.0.s8 %v90_v17  ;;  %v3150_v45 = vpack.c.bf16 %v2070_v13, %v2050_v2  ;;  %v2690_v21 = vcvt.s32.f32 %v1410_v28  ;;  %v2710_v18 = vcvt.s32.f32 %v1430_v57 }
 0x2a4   :  { %4392 = vmatpush.bf16.msrb.mxu0 %v2990_v52  ;;  %v430_v50 = vunpack.c.1.s8 %v90_v17  ;;  %v3310_v53 = vpack.c.bf16 %v2390_v23, %v2370_v37  ;;  %v730_v54 = vunpack.c.0.s8 %v170_v33  ;;  %v750_v38 = vunpack.c.1.s8 %v170_v33  ;;  %v5571_v37 = vld [vmem:[#allocation1 + $0x9] sm:$0xff] }
 0x2a5   :  { %v1690_v34 = vcvt.s32.f32 %v410_v3  ;;  %4405 = vmatpush.bf16.msrb.mxu1 %v3150_v45  ;;  %v3470_v58 = vpack.c.bf16 %v2710_v18, %v2690_v21  ;;  %v1050_v27 = vunpack.c.0.s8 %v250_v32  ;;  %v1070_v15 = vunpack.c.1.s8 %v250_v32  ;;  %v5574_v3 = vld [vmem:[#allocation1 + $0x12] sm:$0xff]  ;;  %v5580_v18 = vld [vmem:[#allocation1 + $0x1b] sm:$0xff] }
 0x2a6   :  { %v1710_v47 = vcvt.s32.f32 %v430_v50  ;;  %4418 = vmatpush.bf16.msrb.mxu2 %v3310_v53  ;;  %v2010_v41 = vcvt.s32.f32 %v730_v54  ;;  %v2030_v49 = vcvt.s32.f32 %v750_v38  ;;  %v1370_v20 = vunpack.c.0.s8 %v330_v48  ;;  %v4228_v54 = vpop.f32.mrf.mxu3 }
 0x2a7   :  { %v1390_v56 = vunpack.c.1.s8 %v330_v48  ;;  %4431 = vmatpush.bf16.msrb.mxu3 %v3470_v58  ;;  %v2330_v40 = vcvt.s32.f32 %v1050_v27  ;;  %v2350_v61 = vcvt.s32.f32 %v1070_v15  ;;  %v691_v17 = vunpack.c.2.s8 %v5546_v46 }
 0x2a8   :  { %v2970_v0 = vpack.c.bf16 %v1710_v47, %v1690_v34  ;;  %v3130_v6 = vpack.c.bf16 %v2030_v49, %v2010_v41  ;;  %v2650_v33 = vcvt.s32.f32 %v1370_v20  ;;  %v711_v11 = vunpack.c.3.s8 %v5546_v46  ;;  %v4215_v34 = vpop.f32.mrf.mxu2  ;;  %v131_v47 = vld [vmem:[#allocation5 + $0x1c0] sm:$0xff] }
 0x2a9   :  { %v2670_v1 = vcvt.s32.f32 %v1390_v56  ;;  %v3290_v26 = vpack.c.bf16 %v2350_v61, %v2330_v40  ;;  %v1971_v5 = vcvt.s32.f32 %v691_v17  ;;  %v1011_v36 = vunpack.c.2.s8 %v5548_v63  ;;  %v291_v40 = vld [vmem:[#allocation5 + $0x6c0] sm:$0xff] }
 0x2aa   :  { %4393 = vmatpush.bf16.msrb.mxu0 %v2970_v0  ;;  %v1031_v44 = vunpack.c.3.s8 %v5548_v63  ;;  %4406 = vmatpush.bf16.msrb.mxu1 %v3130_v6  ;;  %v1991_v32 = vcvt.s32.f32 %v711_v11  ;;  %v1331_v7 = vunpack.c.2.s8 %v5551_v22  ;;  %v1351_v31 = vunpack.c.3.s8 %v5551_v22  ;;  %v211_v0 = vld [vmem:[#allocation5 + $0x440] sm:$0xff] }
 0x2ab   :  { %v3450_v12 = vpack.c.bf16 %v2670_v1, %v2650_v33  ;;  %4419 = vmatpush.bf16.msrb.mxu2 %v3290_v26  ;;  %v2291_v48 = vcvt.s32.f32 %v1011_v36  ;;  %v1651_v42 = vunpack.c.2.s8 %v5558_v43  ;;  %v1671_v25 = vunpack.c.3.s8 %v5558_v43 }
 0x2ac   :  { %v2311_v62 = vcvt.s32.f32 %v1031_v44  ;;  %v3111_v10 = vpack.c.bf16 %v1991_v32, %v1971_v5  ;;  %v2611_v8 = vcvt.s32.f32 %v1331_v7  ;;  %v2631_v2 = vcvt.s32.f32 %v1351_v31 }
 0x2ad   :  { %4432 = vmatpush.bf16.msrb.mxu3 %v3450_v12  ;;  %v4162_v24 = vadd.f32 %v5536_v9, %v4149_v55  ;;  %4394 = vmatmul.bf16.vlgmr.msrb.gmra.mxu0 %v5567_v30  ;;  %v2931_v13 = vcvt.s32.f32 %v1651_v42  ;;  %v2951_v28 = vcvt.s32.f32 %v1671_v25  ;;  %v4662_v57 = vperm.slane %v5494_v29, 2 }
 0x2ae   :  { %v3271_v52 = vpack.c.bf16 %v2311_v62, %v2291_v48  ;;  %4407 = vmatmul.bf16.vlgmr.msrb.gmra.mxu1 %v5571_v37  ;;  %4438 = vmatpush.bf16.msra.mxu0 %v3111_v10  ;;  %v3431_v23 = vpack.c.bf16 %v2631_v2, %v2611_v8  ;;  %v4728_v55 = vperm.slane %v5498_v39, 2  ;;  %v651_v45 = vunpack.c.0.s8 %v5546_v46 }
 0x2af   :  { %4420 = vmatmul.bf16.vlgmr.msrb.gmra.mxu2 %v5574_v3  ;;  %v4175_v9 = vadd.f32 %v5538_v16, %v4162_v24  ;;  %v3591_v21 = vpack.c.bf16 %v2951_v28, %v2931_v13  ;;  %v671_v29 = vunpack.c.1.s8 %v5546_v46  ;;  %v971_v50 = vunpack.c.0.s8 %v5548_v63 }
 0x2b0   :  { %4451 = vmatpush.bf16.msra.mxu1 %v3271_v52  ;;  %4433 = vmatmul.bf16.vlgmr.msrb.gmra.mxu3 %v5580_v18  ;;  %v991_v53 = vunpack.c.1.s8 %v5548_v63  ;;  %v1931_v38 = vcvt.s32.f32 %v651_v45  ;;  %v1291_v39 = vunpack.c.0.s8 %v5551_v22  ;;  %v1311_v58 = vunpack.c.1.s8 %v5551_v22  ;;  %v371_v22 = vld [vmem:[#allocation5 + $0x940] sm:$0xff] }
 0x2b1   :  { %4464 = vmatpush.bf16.msra.mxu2 %v3431_v23  ;;  %v4702_v16 = vmul.f32 %v4662_v57, %v4175_v9  ;;  %4477 = vmatpush.bf16.msra.mxu3 %v3591_v21  ;;  %v1951_v27 = vcvt.s32.f32 %v671_v29  ;;  %v2251_v15 = vcvt.s32.f32 %v971_v50  ;;  %v1611_v46 = vunpack.c.0.s8 %v5558_v43  ;;  %v5593_v45 = vld [vmem:[#allocation5 + $0x120] sm:$0xff] }
 0x2b2   :  { %v2271_v41 = vcvt.s32.f32 %v991_v53  ;;  %v2571_v20 = vcvt.s32.f32 %v1291_v39  ;;  %v2591_v56 = vcvt.s32.f32 %v1311_v58  ;;  %v1631_v63 = vunpack.c.1.s8 %v5558_v43  ;;  %v191_v39 = vld [vmem:[#allocation5 + $0x3a0] sm:$0xff] }
 0x2b3   :  { %v5589_v49 = vadd.f32 %v4728_v55, %v4702_v16  ;;  %v3091_v61 = vpack.c.bf16 %v1951_v27, %v1931_v38  ;;  %v2891_v6 = vcvt.s32.f32 %v1611_v46  ;;  %v611_v33 = vunpack.c.2.s8 %v131_v47 }
 0x2b4   :  { %v3251_v17 = vpack.c.bf16 %v2271_v41, %v2251_v15  ;;  %v3411_v11 = vpack.c.bf16 %v2591_v56, %v2571_v20  ;;  %v2911_v26 = vcvt.s32.f32 %v1631_v63  ;;  %v631_v5 = vunpack.c.3.s8 %v131_v47  ;;  %v271_v41 = vld [vmem:[#allocation5 + $0x620] sm:$0xff] }
 0x2b5   :  { %v4805_v1 = vrot.slane %v5589_v49, 4  ;;  %4439 = vmatpush.bf16.msra.mxu0 %v3091_v61  ;;  %v1891_v36 = vcvt.s32.f32 %v611_v33  ;;  %v931_v44 = vunpack.c.2.s8 %v211_v0  ;;  %v951_v12 = vunpack.c.3.s8 %v211_v0 }
 0x2b6   :  { %4452 = vmatpush.bf16.msra.mxu1 %v3251_v17  ;;  %v1251_v32 = vunpack.c.2.s8 %v291_v40  ;;  %4465 = vmatpush.bf16.msra.mxu2 %v3411_v11  ;;  %v3571_v43 = vpack.c.bf16 %v2911_v26, %v2891_v6  ;;  %v1911_v7 = vcvt.s32.f32 %v631_v5  ;;  %v1271_v31 = vunpack.c.3.s8 %v291_v40 }
 0x2b7   :  { %v1571_v19 = vunpack.c.2.s8 %v371_v22  ;;  %v2211_v60 = vcvt.s32.f32 %v931_v44  ;;  %v2231_v48 = vcvt.s32.f32 %v951_v12  ;;  %v1591_v42 = vunpack.c.3.s8 %v371_v22 }
 0x2b8   :  { %v2531_v62 = vcvt.s32.f32 %v1251_v32  ;;  %4478 = vmatpush.bf16.msra.mxu3 %v3571_v43  ;;  %v3071_v25 = vpack.c.bf16 %v1911_v7, %v1891_v36  ;;  %v2551_v10 = vcvt.s32.f32 %v1271_v31  ;;  %v571_v2 = vunpack.c.0.s8 %v131_v47 }
 0x2b9   :  { %v2851_v8 = vcvt.s32.f32 %v1571_v19  ;;  %v3231_v24 = vpack.c.bf16 %v2231_v48, %v2211_v60  ;;  %v2871_v52 = vcvt.s32.f32 %v1591_v42  ;;  %v591_v13 = vunpack.c.1.s8 %v131_v47  ;;  %v5600_v60 = vld [vmem:[#allocation7 + $0x8] sm:$0xff] }
 0x2ba   :  { %v891_v28 = vunpack.c.0.s8 %v211_v0  ;;  %4440 = vmatpush.bf16.msra.mxu0 %v3071_v25  ;;  %v3391_v57 = vpack.c.bf16 %v2551_v10, %v2531_v62  ;;  %v1851_v23 = vcvt.s32.f32 %v571_v2  ;;  %v911_v9 = vunpack.c.1.s8 %v211_v0  ;;  %v351_v0 = vld [vmem:[#allocation5 + $0x8a0] sm:$0xff] }
 0x2bb   :  { %v1211_v55 = vunpack.c.0.s8 %v291_v40  ;;  %4453 = vmatpush.bf16.msra.mxu1 %v3231_v24  ;;  %v3551_v21 = vpack.c.bf16 %v2871_v52, %v2851_v8  ;;  %v1871_v29 = vcvt.s32.f32 %v591_v13  ;;  %v1231_v53 = vunpack.c.1.s8 %v291_v40  ;;  %v5604_v25 = vld [vmem:[#allocation8 + $0x8] sm:$0xff] }
 0x2bc   :  { %v2171_v50 = vcvt.s32.f32 %v891_v28  ;;  %4466 = vmatpush.bf16.msra.mxu2 %v3391_v57  ;;  %v2191_v34 = vcvt.s32.f32 %v911_v9  ;;  %v1531_v16 = vunpack.c.0.s8 %v371_v22  ;;  %v1551_v38 = vunpack.c.1.s8 %v371_v22  ;;  %v91_v9 = vld [vmem:[#allocation5 + $0x80] sm:$0xff] }
 0x2bd   :  { %v2491_v54 = vcvt.s32.f32 %v1211_v55  ;;  %4479 = vmatpush.bf16.msra.mxu3 %v3551_v21  ;;  %v3051_v58 = vpack.c.bf16 %v1871_v29, %v1851_v23  ;;  %v2511_v47 = vcvt.s32.f32 %v1231_v53  ;;  %v4201_v27 = vadd.f32 %v5544_v59, %v5542_v35 }
 0x2be   :  { %v531_v15 = vunpack.c.2.s8 %v5593_v45  ;;  %v3211_v46 = vpack.c.bf16 %v2191_v34, %v2171_v50  ;;  %v2811_v20 = vcvt.s32.f32 %v1531_v16  ;;  %v2831_v56 = vcvt.s32.f32 %v1551_v38  ;;  %v171_v16 = vld [vmem:[#allocation5 + $0x300] sm:$0xff] }
 0x2bf   :  { %v551_v63 = vunpack.c.3.s8 %v5593_v45  ;;  %4441 = vmatpush.bf16.msra.mxu0 %v3051_v58  ;;  %v3371_v40 = vpack.c.bf16 %v2511_v47, %v2491_v54  ;;  %v851_v17 = vunpack.c.2.s8 %v191_v39  ;;  %v871_v6 = vunpack.c.3.s8 %v191_v39  ;;  %v251_v38 = vld [vmem:[#allocation5 + $0x580] sm:$0xff] }
 0x2c0   :  { %v1811_v61 = vcvt.s32.f32 %v531_v15  ;;  %4454 = vmatpush.bf16.msra.mxu1 %v3211_v46  ;;  %v3531_v33 = vpack.c.bf16 %v2831_v56, %v2811_v20  ;;  %v1171_v11 = vunpack.c.2.s8 %v271_v41  ;;  %v1191_v26 = vunpack.c.3.s8 %v271_v41 }
 0x2c1   :  { %v1831_v22 = vcvt.s32.f32 %v551_v63  ;;  %4467 = vmatpush.bf16.msra.mxu2 %v3371_v40  ;;  %v2131_v35 = vcvt.s32.f32 %v851_v17  ;;  %v2151_v59 = vcvt.s32.f32 %v871_v6  ;;  %v1491_v5 = vunpack.c.2.s8 %v351_v0 }
 0x2c2   :  { %v1511_v36 = vunpack.c.3.s8 %v351_v0  ;;  %4480 = vmatpush.bf16.msra.mxu3 %v3531_v33  ;;  %v2451_v12 = vcvt.s32.f32 %v1171_v11  ;;  %v2471_v32 = vcvt.s32.f32 %v1191_v26  ;;  %v4214_v43 = vadd.f32 %v5553_v51, %v4201_v27 }
 0x2c3   :  { %v3031_v44 = vpack.c.bf16 %v1831_v22, %v1811_v61  ;;  %v3191_v7 = vpack.c.bf16 %v2151_v59, %v2131_v35  ;;  %v2771_v31 = vcvt.s32.f32 %v1491_v5  ;;  %v4663_v48 = vperm.slane %v5600_v60, 3  ;;  %v331_v61 = vld [vmem:[#allocation5 + $0x800] sm:$0xff] }
 0x2c4   :  { %v2791_v19 = vcvt.s32.f32 %v1511_v36  ;;  %v3351_v62 = vpack.c.bf16 %v2471_v32, %v2451_v12  ;;  %v4227_v42 = vadd.f32 %v5555_v4, %v4214_v43  ;;  %v4729_v10 = vperm.slane %v5604_v25, 3 }
 0x2c5   :  { %4442 = vmatpush.bf16.msra.mxu0 %v3031_v44  ;;  %v491_v8 = vunpack.c.0.s8 %v5593_v45  ;;  %4455 = vmatpush.bf16.msra.mxu1 %v3191_v7  ;;  %v511_v51 = vunpack.c.1.s8 %v5593_v45  ;;  %v811_v24 = vunpack.c.0.s8 %v191_v39  ;;  %v831_v52 = vunpack.c.1.s8 %v191_v39 }
 0x2c6   :  { %v3511_v2 = vpack.c.bf16 %v2791_v19, %v2771_v31  ;;  %4468 = vmatpush.bf16.msra.mxu2 %v3351_v62  ;;  %v4703_v13 = vmul.f32 %v4663_v48, %v4227_v42  ;;  %v1131_v57 = vunpack.c.0.s8 %v271_v41  ;;  %v1151_v23 = vunpack.c.1.s8 %v271_v41  ;;  %v152_v48 = vld [vmem:[#allocation5 + $0x268] sm:$0xff] }
 0x2c7   :  { %v1771_v28 = vcvt.s32.f32 %v491_v8  ;;  %v1791_v4 = vcvt.s32.f32 %v511_v51  ;;  %v2091_v55 = vcvt.s32.f32 %v811_v24  ;;  %v2111_v21 = vcvt.s32.f32 %v831_v52  ;;  %v232_v52 = vld [vmem:[#allocation5 + $0x4e8] sm:$0xff] }
 0x2c8   :  { %4481 = vmatpush.bf16.msra.mxu3 %v3511_v2  ;;  %v1451_v29 = vunpack.c.0.s8 %v351_v0  ;;  %v4769_v50 = vadd.f32 %v4729_v10, %v4703_v13  ;;  %v2411_v53 = vcvt.s32.f32 %v1131_v57  ;;  %v2431_v34 = vcvt.s32.f32 %v1151_v23 }
 0x2c9   :  { %v1471_v54 = vunpack.c.1.s8 %v351_v0  ;;  %v3011_v45 = vpack.c.bf16 %v1791_v4, %v1771_v28  ;;  %v3171_v58 = vpack.c.bf16 %v2111_v21, %v2091_v55  ;;  %v451_v47 = vunpack.c.2.s8 %v91_v9 }
 0x2ca   :  { %v2731_v39 = vcvt.s32.f32 %v1451_v29  ;;  %v4806_v27 = vrot.slane %v4769_v50, 2  ;;  %v3331_v15 = vpack.c.bf16 %v2431_v34, %v2411_v53  ;;  %v471_v41 = vunpack.c.3.s8 %v91_v9  ;;  %v392_v50 = vld [vmem:[#allocation5 + $0x9e8] sm:$0xff] }
 0x2cb   :  { %v2751_v46 = vcvt.s32.f32 %v1471_v54  ;;  %4443 = vmatpush.bf16.msra.mxu0 %v3011_v45  ;;  %4456 = vmatpush.bf16.msra.mxu1 %v3171_v58  ;;  %v1731_v20 = vcvt.s32.f32 %v451_v47  ;;  %v771_v56 = vunpack.c.2.s8 %v171_v16  ;;  %v791_v63 = vunpack.c.3.s8 %v171_v16 }
 0x2cc   :  { %v1091_v40 = vunpack.c.2.s8 %v251_v38  ;;  %v4823_v0 = vsel %vm4815_vm1, %v4805_v1, %v4806_v27  ;;  %4469 = vmatpush.bf16.msra.mxu2 %v3331_v15  ;;  %v1751_v6 = vcvt.s32.f32 %v471_v41  ;;  %v1111_v33 = vunpack.c.3.s8 %v251_v38 }
 0x2cd   :  { %v3491_v17 = vpack.c.bf16 %v2751_v46, %v2731_v39  ;;  %v4824_v22 = vsel %vm4817_vm2, %v5526_v14, %v4823_v0  ;;  %v2051_v11 = vcvt.s32.f32 %v771_v56  ;;  %v2071_v26 = vcvt.s32.f32 %v791_v63 }
 0x2ce   :  { %v2371_v35 = vcvt.s32.f32 %v1091_v40  ;;  %4838 = vst [vmem:[#allocation10 + $0x10] sm:$0xff] %v4824_v22  ;;  %v2991_v59 = vpack.c.bf16 %v1751_v6, %v1731_v20  ;;  %v2391_v5 = vcvt.s32.f32 %v1111_v33  ;;  %v1411_v36 = vunpack.c.2.s8 %v331_v61 }
 0x2cf   :  { %4482 = vmatpush.bf16.msra.mxu3 %v3491_v17  ;;  %v1431_v44 = vunpack.c.3.s8 %v331_v61  ;;  %v3151_v12 = vpack.c.bf16 %v2071_v26, %v2051_v11  ;;  %v411_v49 = vunpack.c.0.s8 %v91_v9  ;;  %v431_v32 = vunpack.c.1.s8 %v91_v9  ;;  %v312_v9 = vld [vmem:[#allocation5 + $0x768] sm:$0xff] }
 0x2d0   :  { %v731_v1 = vunpack.c.0.s8 %v171_v16  ;;  %4444 = vmatpush.bf16.msra.mxu0 %v2991_v59  ;;  %v3311_v43 = vpack.c.bf16 %v2391_v5, %v2371_v35  ;;  %v2691_v7 = vcvt.s32.f32 %v1411_v36  ;;  %v751_v19 = vunpack.c.1.s8 %v171_v16  ;;  %v132_v36 = vld [vmem:[#allocation5 + $0x1c8] sm:$0xff] }
 0x2d1   :  { %v2711_v31 = vcvt.s32.f32 %v1431_v44  ;;  %4457 = vmatpush.bf16.msra.mxu1 %v3151_v12  ;;  %v1691_v14 = vcvt.s32.f32 %v411_v49  ;;  %v1711_v62 = vcvt.s32.f32 %v431_v32  ;;  %v1051_v10 = vunpack.c.0.s8 %v251_v38 }
 0x2d2   :  { %v2011_v42 = vcvt.s32.f32 %v731_v1  ;;  %4470 = vmatpush.bf16.msra.mxu2 %v3311_v43  ;;  %v2031_v2 = vcvt.s32.f32 %v751_v19  ;;  %v1071_v51 = vunpack.c.1.s8 %v251_v38  ;;  %v1371_v24 = vunpack.c.0.s8 %v331_v61  ;;  %v212_v1 = vld [vmem:[#allocation5 + $0x448] sm:$0xff]  ;;  %v5618_v43 = vpop.f32.mrf.mxu0 }
 0x2d3   :  { %v3471_v8 = vpack.c.bf16 %v2711_v31, %v2691_v7  ;;  %v2971_v13 = vpack.c.bf16 %v1711_v62, %v1691_v14  ;;  %v2331_v28 = vcvt.s32.f32 %v1051_v10  ;;  %v1391_v57 = vunpack.c.1.s8 %v331_v61  ;;  %v5620_v7 = vpop.f32.mrf.mxu1  ;;  %v292_v62 = vld [vmem:[#allocation5 + $0x6c8] sm:$0xff] }
 0x2d4   :  { %v692_v23 = vunpack.c.2.s8 %v152_v48  ;;  %v3131_v4 = vpack.c.bf16 %v2031_v2, %v2011_v42  ;;  %v2351_v55 = vcvt.s32.f32 %v1071_v51  ;;  %v2651_v21 = vcvt.s32.f32 %v1371_v24  ;;  %v372_v51 = vld [vmem:[#allocation5 + $0x948] sm:$0xff] }
 0x2d5   :  { %4483 = vmatpush.bf16.msra.mxu3 %v3471_v8  ;;  %v712_v29 = vunpack.c.3.s8 %v152_v48  ;;  %4445 = vmatpush.bf16.msra.mxu0 %v2971_v13  ;;  %v2671_v53 = vcvt.s32.f32 %v1391_v57  ;;  %v1012_v54 = vunpack.c.2.s8 %v232_v52  ;;  %v1032_v16 = vunpack.c.3.s8 %v232_v52 }
 0x2d6   :  { %v1972_v34 = vcvt.s32.f32 %v692_v23  ;;  %4458 = vmatpush.bf16.msra.mxu1 %v3131_v4  ;;  %v3291_v38 = vpack.c.bf16 %v2351_v55, %v2331_v28  ;;  %v1332_v58 = vunpack.c.2.s8 %v312_v9  ;;  %v1352_v39 = vunpack.c.3.s8 %v312_v9 }
 0x2d7   :  { %v1992_v45 = vcvt.s32.f32 %v712_v29  ;;  %v3451_v47 = vpack.c.bf16 %v2671_v53, %v2651_v21  ;;  %v2292_v27 = vcvt.s32.f32 %v1012_v54  ;;  %v2312_v15 = vcvt.s32.f32 %v1032_v16 }
 0x2d8   :  { %v1652_v46 = vunpack.c.2.s8 %v392_v50  ;;  %4471 = vmatpush.bf16.msra.mxu2 %v3291_v38  ;;  %v2612_v20 = vcvt.s32.f32 %v1332_v58  ;;  %v2632_v56 = vcvt.s32.f32 %v1352_v39  ;;  %v1672_v63 = vunpack.c.3.s8 %v392_v50  ;;  %4446 = vmatmul.bf16.vlgmr.msra.gmra.mxu0 %v5567_v30 }
 0x2d9   :  { %v3112_v41 = vpack.c.bf16 %v1992_v45, %v1972_v34  ;;  %4484 = vmatpush.bf16.msra.mxu3 %v3451_v47  ;;  %v3272_v40 = vpack.c.bf16 %v2312_v15, %v2292_v27  ;;  %v652_v0 = vunpack.c.0.s8 %v152_v48  ;;  %v672_v17 = vunpack.c.1.s8 %v152_v48  ;;  %4459 = vmatmul.bf16.vlgmr.msra.gmra.mxu1 %v5571_v37 }
 0x2da   :  { %v2932_v61 = vcvt.s32.f32 %v1652_v46  ;;  %v3432_v6 = vpack.c.bf16 %v2632_v56, %v2612_v20  ;;  %v2952_v33 = vcvt.s32.f32 %v1672_v63  ;;  %v972_v22 = vunpack.c.0.s8 %v232_v52 }
 0x2db   :  { %4490 = vmatpush.bf16.msrb.mxu0 %v3112_v41  ;;  %v992_v11 = vunpack.c.1.s8 %v232_v52  ;;  %4503 = vmatpush.bf16.msrb.mxu1 %v3272_v40  ;;  %v1932_v26 = vcvt.s32.f32 %v652_v0  ;;  %v1952_v35 = vcvt.s32.f32 %v672_v17  ;;  %v1292_v59 = vunpack.c.0.s8 %v312_v9  ;;  %v4241_v41 = vpop.f32.mrf.mxu0  ;;  %v4254_v20 = vpop.f32.mrf.mxu1  ;;  %v112_v0 = vld [vmem:[#allocation5 + $0x128] sm:$0xff] }
 0x2dc   :  { %v1312_v5 = vunpack.c.1.s8 %v312_v9  ;;  %4472 = vmatmul.bf16.vlgmr.msra.gmra.mxu2 %v5574_v3  ;;  %v3592_v44 = vpack.c.bf16 %v2952_v33, %v2932_v61  ;;  %v2252_v12 = vcvt.s32.f32 %v972_v22  ;;  %v1612_v32 = vunpack.c.0.s8 %v392_v50  ;;  %4485 = vmatmul.bf16.vlgmr.msra.gmra.mxu3 %v5580_v18 }
 0x2dd   :  { %4516 = vmatpush.bf16.msrb.mxu2 %v3432_v6  ;;  %v2272_v49 = vcvt.s32.f32 %v992_v11  ;;  %v3092_v31 = vpack.c.bf16 %v1952_v35, %v1932_v26  ;;  %v2572_v19 = vcvt.s32.f32 %v1292_v59  ;;  %v1632_v14 = vunpack.c.1.s8 %v392_v50  ;;  %v192_v11 = vld [vmem:[#allocation5 + $0x3a8] sm:$0xff]  ;;  %v5622_v26 = vpop.f32.mrf.mxu2  ;;  %v5624_v35 = vpop.f32.mrf.mxu3 }
 0x2de   :  { %v2592_v48 = vcvt.s32.f32 %v1312_v5  ;;  %4529 = vmatpush.bf16.msrb.mxu3 %v3592_v44  ;;  %v2892_v10 = vcvt.s32.f32 %v1612_v32  ;;  %v612_v8 = vunpack.c.2.s8 %v132_v36  ;;  %v632_v2 = vunpack.c.3.s8 %v132_v36 }
 0x2df   :  { %v3252_v42 = vpack.c.bf16 %v2272_v49, %v2252_v12  ;;  %4491 = vmatpush.bf16.msrb.mxu0 %v3092_v31  ;;  %v2912_v52 = vcvt.s32.f32 %v1632_v14  ;;  %v932_v13 = vunpack.c.2.s8 %v212_v1  ;;  %v952_v28 = vunpack.c.3.s8 %v212_v1  ;;  %v272_v12 = vld [vmem:[#allocation5 + $0x628] sm:$0xff] }
 0x2e0   :  { %v3412_v24 = vpack.c.bf16 %v2592_v48, %v2572_v19  ;;  %v1892_v57 = vcvt.s32.f32 %v612_v8  ;;  %v1912_v23 = vcvt.s32.f32 %v632_v2  ;;  %v1252_v9 = vunpack.c.2.s8 %v292_v62  ;;  %v352_v19 = vld [vmem:[#allocation5 + $0x8a8] sm:$0xff] }
 0x2e1   :  { %4504 = vmatpush.bf16.msrb.mxu1 %v3252_v42  ;;  %v1272_v4 = vunpack.c.3.s8 %v292_v62  ;;  %v3572_v55 = vpack.c.bf16 %v2912_v52, %v2892_v10  ;;  %v2212_v21 = vcvt.s32.f32 %v932_v13  ;;  %v2232_v29 = vcvt.s32.f32 %v952_v28 }
 0x2e2   :  { %4517 = vmatpush.bf16.msrb.mxu2 %v3412_v24  ;;  %v1572_v50 = vunpack.c.2.s8 %v372_v51  ;;  %v3072_v53 = vpack.c.bf16 %v1912_v23, %v1892_v57  ;;  %v2532_v34 = vcvt.s32.f32 %v1252_v9  ;;  %v1592_v16 = vunpack.c.3.s8 %v372_v51 }
 0x2e3   :  { %v2552_v54 = vcvt.s32.f32 %v1272_v4  ;;  %4530 = vmatpush.bf16.msrb.mxu3 %v3572_v55  ;;  %v3232_v38 = vpack.c.bf16 %v2232_v29, %v2212_v21  ;;  %v572_v58 = vunpack.c.0.s8 %v132_v36  ;;  %v592_v39 = vunpack.c.1.s8 %v132_v36 }
 0x2e4   :  { %v2852_v45 = vcvt.s32.f32 %v1572_v50  ;;  %4492 = vmatpush.bf16.msrb.mxu0 %v3072_v53  ;;  %v2872_v27 = vcvt.s32.f32 %v1592_v16  ;;  %v892_v15 = vunpack.c.0.s8 %v212_v1  ;;  %v912_v46 = vunpack.c.1.s8 %v212_v1 }
 0x2e5   :  { %v3392_v47 = vpack.c.bf16 %v2552_v54, %v2532_v34  ;;  %4505 = vmatpush.bf16.msrb.mxu1 %v3232_v38  ;;  %v1852_v56 = vcvt.s32.f32 %v572_v58  ;;  %v1872_v63 = vcvt.s32.f32 %v592_v39  ;;  %v1212_v40 = vunpack.c.0.s8 %v292_v62  ;;  %v4267_v38 = vpop.f32.mrf.mxu2 }
 0x2e6   :  { %v1232_v61 = vunpack.c.1.s8 %v292_v62  ;;  %v3552_v17 = vpack.c.bf16 %v2872_v27, %v2852_v45  ;;  %v2172_v6 = vcvt.s32.f32 %v892_v15  ;;  %v2192_v33 = vcvt.s32.f32 %v912_v46  ;;  %v4280_v45 = vpop.f32.mrf.mxu3  ;;  %v92_v15 = vld [vmem:[#allocation5 + $0x88] sm:$0xff] }
 0x2e7   :  { %4518 = vmatpush.bf16.msrb.mxu2 %v3392_v47  ;;  %v1532_v22 = vunpack.c.0.s8 %v372_v51  ;;  %v3052_v59 = vpack.c.bf16 %v1872_v63, %v1852_v56  ;;  %v2492_v5 = vcvt.s32.f32 %v1212_v40  ;;  %v1552_v44 = vunpack.c.1.s8 %v372_v51  ;;  %v172_v63 = vld [vmem:[#allocation5 + $0x308] sm:$0xff] }
 0x2e8   :  { %v2512_v36 = vcvt.s32.f32 %v1232_v61  ;;  %4531 = vmatpush.bf16.msrb.mxu3 %v3552_v17  ;;  %v3212_v49 = vpack.c.bf16 %v2192_v33, %v2172_v6  ;;  %v532_v1 = vunpack.c.2.s8 %v112_v0  ;;  %v552_v31 = vunpack.c.3.s8 %v112_v0  ;;  %v252_v6 = vld [vmem:[#allocation5 + $0x588] sm:$0xff] }
 0x2e9   :  { %v2812_v32 = vcvt.s32.f32 %v1532_v22  ;;  %4493 = vmatpush.bf16.msrb.mxu0 %v3052_v59  ;;  %v2832_v14 = vcvt.s32.f32 %v1552_v44  ;;  %v852_v62 = vunpack.c.2.s8 %v192_v11  ;;  %v872_v42 = vunpack.c.3.s8 %v192_v11 }
 0x2ea   :  { %v3372_v48 = vpack.c.bf16 %v2512_v36, %v2492_v5  ;;  %4506 = vmatpush.bf16.msrb.mxu1 %v3212_v49  ;;  %v1812_v10 = vcvt.s32.f32 %v532_v1  ;;  %v1832_v8 = vcvt.s32.f32 %v552_v31  ;;  %v1172_v2 = vunpack.c.2.s8 %v272_v12  ;;  %v332_v5 = vld [vmem:[#allocation5 + $0x808] sm:$0xff] }
 0x2eb   :  { %v1192_v24 = vunpack.c.3.s8 %v272_v12  ;;  %v3532_v52 = vpack.c.bf16 %v2832_v14, %v2812_v32  ;;  %v2132_v51 = vcvt.s32.f32 %v852_v62  ;;  %v2152_v13 = vcvt.s32.f32 %v872_v42 }
 0x2ec   :  { %4519 = vmatpush.bf16.msrb.mxu2 %v3372_v48  ;;  %v1492_v28 = vunpack.c.2.s8 %v352_v19  ;;  %v3032_v57 = vpack.c.bf16 %v1832_v8, %v1812_v10  ;;  %v2452_v23 = vcvt.s32.f32 %v1172_v2  ;;  %v1512_v4 = vunpack.c.3.s8 %v352_v19 }
 0x2ed   :  { %v2472_v9 = vcvt.s32.f32 %v1192_v24  ;;  %4532 = vmatpush.bf16.msrb.mxu3 %v3532_v52  ;;  %v3192_v55 = vpack.c.bf16 %v2152_v13, %v2132_v51  ;;  %v492_v29 = vunpack.c.0.s8 %v112_v0  ;;  %v512_v50 = vunpack.c.1.s8 %v112_v0  ;;  %v5626_v52 = vpop.f32.mrf.mxu0  ;;  %v5628_v51 = vpop.f32.mrf.mxu1 }
 0x2ee   :  { %v2772_v21 = vcvt.s32.f32 %v1492_v28  ;;  %4494 = vmatpush.bf16.msrb.mxu0 %v3032_v57  ;;  %v2792_v34 = vcvt.s32.f32 %v1512_v4  ;;  %v812_v54 = vunpack.c.0.s8 %v192_v11  ;;  %v832_v16 = vunpack.c.1.s8 %v192_v11 }
 0x2ef   :  { %v3352_v53 = vpack.c.bf16 %v2472_v9, %v2452_v23  ;;  %4507 = vmatpush.bf16.msrb.mxu1 %v3192_v55  ;;  %v1772_v58 = vcvt.s32.f32 %v492_v29  ;;  %v1792_v39 = vcvt.s32.f32 %v512_v50  ;;  %v1132_v47 = vunpack.c.0.s8 %v272_v12 }
 0x2f0   :  { %v1152_v27 = vunpack.c.1.s8 %v272_v12  ;;  %v3512_v46 = vpack.c.bf16 %v2792_v34, %v2772_v21  ;;  %v2092_v41 = vcvt.s32.f32 %v812_v54  ;;  %v2112_v20 = vcvt.s32.f32 %v832_v16  ;;  %v5632_v54 = vld [vmem:[#allocation5 + $0x270] sm:$0xff] }
 0x2f1   :  { %4520 = vmatpush.bf16.msrb.mxu2 %v3352_v53  ;;  %v1452_v56 = vunpack.c.0.s8 %v352_v19  ;;  %v3012_v40 = vpack.c.bf16 %v1792_v39, %v1772_v58  ;;  %v2412_v61 = vcvt.s32.f32 %v1132_v47  ;;  %v1472_v17 = vunpack.c.1.s8 %v352_v19  ;;  %v5634_v39 = vld [vmem:[#allocation5 + $0x4f0] sm:$0xff] }
 0x2f2   :  { %v2432_v0 = vcvt.s32.f32 %v1152_v27  ;;  %4533 = vmatpush.bf16.msrb.mxu3 %v3512_v46  ;;  %v3172_v33 = vpack.c.bf16 %v2112_v20, %v2092_v41  ;;  %v452_v11 = vunpack.c.2.s8 %v92_v15  ;;  %v472_v59 = vunpack.c.3.s8 %v92_v15 }
 0x2f3   :  { %v2732_v22 = vcvt.s32.f32 %v1452_v56  ;;  %4495 = vmatpush.bf16.msrb.mxu0 %v3012_v40  ;;  %v2752_v44 = vcvt.s32.f32 %v1472_v17  ;;  %v772_v12 = vunpack.c.2.s8 %v172_v63  ;;  %v792_v49 = vunpack.c.3.s8 %v172_v63  ;;  %v5642_v40 = vpop.f32.mrf.mxu2 }
 0x2f4   :  { %v3332_v36 = vpack.c.bf16 %v2432_v0, %v2412_v61  ;;  %4508 = vmatpush.bf16.msrb.mxu1 %v3172_v33  ;;  %v1732_v32 = vcvt.s32.f32 %v452_v11  ;;  %v1752_v1 = vcvt.s32.f32 %v472_v59  ;;  %v1092_v31 = vunpack.c.2.s8 %v252_v6  ;;  %v5644_v61 = vpop.f32.mrf.mxu3 }
 0x2f5   :  { %v1112_v48 = vunpack.c.3.s8 %v252_v6  ;;  %v3492_v14 = vpack.c.bf16 %v2752_v44, %v2732_v22  ;;  %v2052_v19 = vcvt.s32.f32 %v772_v12  ;;  %v2072_v62 = vcvt.s32.f32 %v792_v49  ;;  %v4306_v44 = vpop.f32.mrf.mxu1 }
 0x2f6   :  { %4521 = vmatpush.bf16.msrb.mxu2 %v3332_v36  ;;  %v1412_v42 = vunpack.c.2.s8 %v332_v5  ;;  %v2992_v10 = vpack.c.bf16 %v1752_v1, %v1732_v32  ;;  %v2372_v8 = vcvt.s32.f32 %v1092_v31  ;;  %v1432_v24 = vunpack.c.3.s8 %v332_v5  ;;  %v4293_v36 = vpop.f32.mrf.mxu0 }
 0x2f7   :  { %v2392_v2 = vcvt.s32.f32 %v1112_v48  ;;  %4534 = vmatpush.bf16.msrb.mxu3 %v3492_v14  ;;  %v3152_v13 = vpack.c.bf16 %v2072_v62, %v2052_v19  ;;  %v4253_v57 = vadd.f32 %v5620_v7, %v5618_v43  ;;  %v412_v23 = vunpack.c.0.s8 %v92_v15 }
 0x2f8   :  { %v2692_v28 = vcvt.s32.f32 %v1412_v42  ;;  %4496 = vmatpush.bf16.msrb.mxu0 %v2992_v10  ;;  %v2712_v4 = vcvt.s32.f32 %v1432_v24  ;;  %v432_v55 = vunpack.c.1.s8 %v92_v15  ;;  %v732_v21 = vunpack.c.0.s8 %v172_v63  ;;  %v5636_v15 = vld [vmem:[#allocation5 + $0x770] sm:$0xff] }
 0x2f9   :  { %v3312_v9 = vpack.c.bf16 %v2392_v2, %v2372_v8  ;;  %4509 = vmatpush.bf16.msrb.mxu1 %v3152_v13  ;;  %v1692_v29 = vcvt.s32.f32 %v412_v23  ;;  %v752_v50 = vunpack.c.1.s8 %v172_v63  ;;  %v1052_v53 = vunpack.c.0.s8 %v252_v6  ;;  %v5640_v63 = vld [vmem:[#allocation5 + $0x9f0] sm:$0xff] }
 0x2fa   :  { %v1072_v34 = vunpack.c.1.s8 %v252_v6  ;;  %v3472_v16 = vpack.c.bf16 %v2712_v4, %v2692_v28  ;;  %v1712_v38 = vcvt.s32.f32 %v432_v55  ;;  %v2012_v45 = vcvt.s32.f32 %v732_v21  ;;  %v133_v21 = vld [vmem:[#allocation5 + $0x1d0] sm:$0xff] }
 0x2fb   :  { %4522 = vmatpush.bf16.msrb.mxu2 %v3312_v9  ;;  %v1372_v58 = vunpack.c.0.s8 %v332_v5  ;;  %v2032_v43 = vcvt.s32.f32 %v752_v50  ;;  %v2332_v7 = vcvt.s32.f32 %v1052_v53  ;;  %v1392_v27 = vunpack.c.1.s8 %v332_v5 }
 0x2fc   :  { %v2352_v47 = vcvt.s32.f32 %v1072_v34  ;;  %4535 = vmatpush.bf16.msrb.mxu3 %v3472_v16  ;;  %v2972_v46 = vpack.c.bf16 %v1712_v38, %v1692_v29  ;;  %v693_v20 = vunpack.c.2.s8 %v5632_v54  ;;  %v713_v56 = vunpack.c.3.s8 %v5632_v54  ;;  %v4319_v29 = vpop.f32.mrf.mxu2  ;;  %v4332_v50 = vpop.f32.mrf.mxu3 }
 0x2fd   :  { %v2652_v41 = vcvt.s32.f32 %v1372_v58  ;;  %v3132_v0 = vpack.c.bf16 %v2032_v43, %v2012_v45  ;;  %v2672_v6 = vcvt.s32.f32 %v1392_v27  ;;  %v1013_v33 = vunpack.c.2.s8 %v5634_v39  ;;  %v213_v45 = vld [vmem:[#allocation5 + $0x450] sm:$0xff] }
 0x2fe   :  { %v3292_v17 = vpack.c.bf16 %v2352_v47, %v2332_v7  ;;  %4497 = vmatpush.bf16.msrb.mxu0 %v2972_v46  ;;  %v1973_v22 = vcvt.s32.f32 %v693_v20  ;;  %v1993_v11 = vcvt.s32.f32 %v713_v56  ;;  %v1033_v59 = vunpack.c.3.s8 %v5634_v39  ;;  %v293_v47 = vld [vmem:[#allocation5 + $0x6d0] sm:$0xff] }
 0x2ff   :  { %v1333_v5 = vunpack.c.2.s8 %v5636_v15  ;;  %4510 = vmatpush.bf16.msrb.mxu1 %v3132_v0  ;;  %v3452_v12 = vpack.c.bf16 %v2672_v6, %v2652_v41  ;;  %v2293_v49 = vcvt.s32.f32 %v1013_v33  ;;  %v1353_v32 = vunpack.c.3.s8 %v5636_v15  ;;  %v373_v56 = vld [vmem:[#allocation5 + $0x950] sm:$0xff] }
 0x300   :  { %4523 = vmatpush.bf16.msrb.mxu2 %v3292_v17  ;;  %v1653_v1 = vunpack.c.2.s8 %v5640_v63  ;;  %v3113_v31 = vpack.c.bf16 %v1993_v11, %v1973_v22  ;;  %v2313_v48 = vcvt.s32.f32 %v1033_v59  ;;  %v1673_v19 = vunpack.c.3.s8 %v5640_v63  ;;  %v273_v50 = vld [vmem:[#allocation5 + $0x630] sm:$0xff] }
 0x301   :  { %v2613_v14 = vcvt.s32.f32 %v1333_v5  ;;  %4536 = vmatpush.bf16.msrb.mxu3 %v3452_v12  ;;  %v2633_v62 = vcvt.s32.f32 %v1353_v32  ;;  %v4266_v10 = vadd.f32 %v5622_v26, %v4253_v57  ;;  %v4664_v8 = vperm.slane %v5600_v60, 4  ;;  %4498 = vmatmul.bf16.vlgmr.msrb.gmra.mxu0 %v5567_v30 }
 0x302   :  { %v2933_v42 = vcvt.s32.f32 %v1653_v1  ;;  %4542 = vmatpush.bf16.msra.mxu0 %v3113_v31  ;;  %v3273_v2 = vpack.c.bf16 %v2313_v48, %v2293_v49  ;;  %v2953_v24 = vcvt.s32.f32 %v1673_v19  ;;  %v4730_v13 = vperm.slane %v5604_v25, 4  ;;  %4511 = vmatmul.bf16.vlgmr.msrb.gmra.mxu1 %v5571_v37 }
 0x303   :  { %4524 = vmatmul.bf16.vlgmr.msrb.gmra.mxu2 %v5574_v3  ;;  %v653_v28 = vunpack.c.0.s8 %v5632_v54  ;;  %v3433_v23 = vpack.c.bf16 %v2633_v62, %v2613_v14  ;;  %v4279_v9 = vadd.f32 %v5624_v35, %v4266_v10  ;;  %v673_v4 = vunpack.c.1.s8 %v5632_v54 }
 0x304   :  { %v973_v26 = vunpack.c.0.s8 %v5634_v39  ;;  %4555 = vmatpush.bf16.msra.mxu1 %v3273_v2  ;;  %v3593_v30 = vpack.c.bf16 %v2953_v24, %v2933_v42  ;;  %4537 = vmatmul.bf16.vlgmr.msrb.gmra.mxu3 %v5580_v18  ;;  %v993_v3 = vunpack.c.1.s8 %v5634_v39  ;;  %v1293_v55 = vunpack.c.0.s8 %v5636_v15 }
 0x305   :  { %v1933_v57 = vcvt.s32.f32 %v653_v28  ;;  %4568 = vmatpush.bf16.msra.mxu2 %v3433_v23  ;;  %v4704_v35 = vmul.f32 %v4664_v8, %v4279_v9  ;;  %v1953_v53 = vcvt.s32.f32 %v673_v4  ;;  %v1313_v54 = vunpack.c.1.s8 %v5636_v15  ;;  %v113_v23 = vld [vmem:[#allocation5 + $0x130] sm:$0xff] }
 0x306   :  { %v2253_v34 = vcvt.s32.f32 %v973_v26  ;;  %4581 = vmatpush.bf16.msra.mxu3 %v3593_v30  ;;  %v2273_v37 = vcvt.s32.f32 %v993_v3  ;;  %v2573_v16 = vcvt.s32.f32 %v1293_v55  ;;  %v1613_v38 = vunpack.c.0.s8 %v5640_v63 }
 0x307   :  { %v1633_v18 = vunpack.c.1.s8 %v5640_v63  ;;  %v5668_v58 = vadd.f32 %v4730_v13, %v4704_v35  ;;  %v3093_v39 = vpack.c.bf16 %v1953_v53, %v1933_v57  ;;  %v2593_v43 = vcvt.s32.f32 %v1313_v54  ;;  %v193_v57 = vld [vmem:[#allocation5 + $0x3b0] sm:$0xff] }
 0x308   :  { %v613_v7 = vunpack.c.2.s8 %v133_v21  ;;  %v3253_v27 = vpack.c.bf16 %v2273_v37, %v2253_v34  ;;  %v2893_v46 = vcvt.s32.f32 %v1613_v38  ;;  %v633_v20 = vunpack.c.3.s8 %v133_v21  ;;  %v5672_v37 = vld [vmem:[#allocation5 + $0x8b0] sm:$0xff] }
 0x309   :  { %v2913_v41 = vcvt.s32.f32 %v1633_v18  ;;  %4543 = vmatpush.bf16.msra.mxu0 %v3093_v39  ;;  %v3413_v15 = vpack.c.bf16 %v2593_v43, %v2573_v16  ;;  %v933_v17 = vunpack.c.2.s8 %v213_v45  ;;  %v953_v6 = vunpack.c.3.s8 %v213_v45 }
 0x30a   :  { %v1893_v0 = vcvt.s32.f32 %v613_v7  ;;  %4556 = vmatpush.bf16.msra.mxu1 %v3253_v27  ;;  %v1913_v63 = vcvt.s32.f32 %v633_v20  ;;  %v1253_v22 = vunpack.c.2.s8 %v293_v47  ;;  %v1273_v11 = vunpack.c.3.s8 %v293_v47 }
 0x30b   :  { %v3573_v33 = vpack.c.bf16 %v2913_v41, %v2893_v46  ;;  %4569 = vmatpush.bf16.msra.mxu2 %v3413_v15  ;;  %v2213_v59 = vcvt.s32.f32 %v933_v17  ;;  %v2233_v5 = vcvt.s32.f32 %v953_v6  ;;  %v1573_v36 = vunpack.c.2.s8 %v373_v56 }
 0x30c   :  { %v1593_v44 = vunpack.c.3.s8 %v373_v56  ;;  %v3073_v12 = vpack.c.bf16 %v1913_v63, %v1893_v0  ;;  %v2533_v49 = vcvt.s32.f32 %v1253_v22  ;;  %v2553_v32 = vcvt.s32.f32 %v1273_v11 }
 0x30d   :  { %4582 = vmatpush.bf16.msra.mxu3 %v3573_v33  ;;  %v573_v1 = vunpack.c.0.s8 %v133_v21  ;;  %v3233_v31 = vpack.c.bf16 %v2233_v5, %v2213_v59  ;;  %v2853_v48 = vcvt.s32.f32 %v1573_v36  ;;  %v593_v19 = vunpack.c.1.s8 %v133_v21 }
 0x30e   :  { %v2873_v14 = vcvt.s32.f32 %v1593_v44  ;;  %4544 = vmatpush.bf16.msra.mxu0 %v3073_v12  ;;  %v3393_v62 = vpack.c.bf16 %v2553_v32, %v2533_v49  ;;  %v893_v10 = vunpack.c.0.s8 %v213_v45  ;;  %v913_v8 = vunpack.c.1.s8 %v213_v45 }
 0x30f   :  { %v1853_v42 = vcvt.s32.f32 %v573_v1  ;;  %4557 = vmatpush.bf16.msra.mxu1 %v3233_v31  ;;  %v1873_v24 = vcvt.s32.f32 %v593_v19  ;;  %v1213_v13 = vunpack.c.0.s8 %v293_v47  ;;  %v1233_v28 = vunpack.c.1.s8 %v293_v47  ;;  %v93_v31 = vld [vmem:[#allocation5 + $0x90] sm:$0xff] }
 0x310   :  { %v3553_v2 = vpack.c.bf16 %v2873_v14, %v2853_v48  ;;  %4570 = vmatpush.bf16.msra.mxu2 %v3393_v62  ;;  %v2173_v9 = vcvt.s32.f32 %v893_v10  ;;  %v2193_v4 = vcvt.s32.f32 %v913_v8  ;;  %v1533_v26 = vunpack.c.0.s8 %v373_v56  ;;  %v173_v10 = vld [vmem:[#allocation5 + $0x310] sm:$0xff] }
 0x311   :  { %v1553_v30 = vunpack.c.1.s8 %v373_v56  ;;  %v3053_v3 = vpack.c.bf16 %v1873_v24, %v1853_v42  ;;  %v2493_v55 = vcvt.s32.f32 %v1213_v13  ;;  %v2513_v21 = vcvt.s32.f32 %v1233_v28  ;;  %v253_v28 = vld [vmem:[#allocation5 + $0x590] sm:$0xff] }
 0x312   :  { %4583 = vmatpush.bf16.msra.mxu3 %v3553_v2  ;;  %v4305_v29 = vadd.f32 %v5628_v51, %v5626_v52  ;;  %v3213_v35 = vpack.c.bf16 %v2193_v4, %v2173_v9  ;;  %v2813_v53 = vcvt.s32.f32 %v1533_v26  ;;  %v533_v54 = vunpack.c.2.s8 %v113_v23 }
 0x313   :  { %v2833_v34 = vcvt.s32.f32 %v1553_v30  ;;  %4545 = vmatpush.bf16.msra.mxu0 %v3053_v3  ;;  %v3373_v16 = vpack.c.bf16 %v2513_v21, %v2493_v55  ;;  %v553_v38 = vunpack.c.3.s8 %v113_v23  ;;  %v853_v18 = vunpack.c.2.s8 %v193_v57  ;;  %v333_v30 = vld [vmem:[#allocation5 + $0x810] sm:$0xff] }
 0x314   :  { %v873_v45 = vunpack.c.3.s8 %v193_v57  ;;  %4558 = vmatpush.bf16.msra.mxu1 %v3213_v35  ;;  %v1813_v43 = vcvt.s32.f32 %v533_v54  ;;  %v1173_v7 = vunpack.c.2.s8 %v273_v50  ;;  %v1193_v47 = vunpack.c.3.s8 %v273_v50 }
 0x315   :  { %v3533_v39 = vpack.c.bf16 %v2833_v34, %v2813_v53  ;;  %4571 = vmatpush.bf16.msra.mxu2 %v3373_v16  ;;  %v1833_v27 = vcvt.s32.f32 %v553_v38  ;;  %v2133_v52 = vcvt.s32.f32 %v853_v18  ;;  %v1493_v46 = vunpack.c.2.s8 %v5672_v37 }
 0x316   :  { %v2153_v51 = vcvt.s32.f32 %v873_v45  ;;  %v2453_v41 = vcvt.s32.f32 %v1173_v7  ;;  %v2473_v20 = vcvt.s32.f32 %v1193_v47  ;;  %v1513_v56 = vunpack.c.3.s8 %v5672_v37 }
 0x317   :  { %4584 = vmatpush.bf16.msra.mxu3 %v3533_v39  ;;  %v4318_v15 = vadd.f32 %v5642_v40, %v4305_v29  ;;  %v3033_v0 = vpack.c.bf16 %v1833_v27, %v1813_v43  ;;  %v2773_v6 = vcvt.s32.f32 %v1493_v46  ;;  %v4665_v33 = vperm.slane %v5600_v60, 5 }
 0x318   :  { %v3193_v17 = vpack.c.bf16 %v2153_v51, %v2133_v52  ;;  %v3353_v63 = vpack.c.bf16 %v2473_v20, %v2453_v41  ;;  %v2793_v22 = vcvt.s32.f32 %v1513_v56  ;;  %v4731_v59 = vperm.slane %v5604_v25, 5 }
 0x319   :  { %v4331_v11 = vadd.f32 %v5644_v61, %v4318_v15  ;;  %4546 = vmatpush.bf16.msra.mxu0 %v3033_v0  ;;  %v493_v5 = vunpack.c.0.s8 %v113_v23  ;;  %v513_v36 = vunpack.c.1.s8 %v113_v23  ;;  %v813_v44 = vunpack.c.0.s8 %v193_v57  ;;  %v154_v0 = vld [vmem:[#allocation5 + $0x278] sm:$0xff] }
 0x31a   :  { %4559 = vmatpush.bf16.msra.mxu1 %v3193_v17  ;;  %v833_v12 = vunpack.c.1.s8 %v193_v57  ;;  %4572 = vmatpush.bf16.msra.mxu2 %v3353_v63  ;;  %v3513_v49 = vpack.c.bf16 %v2793_v22, %v2773_v6  ;;  %v1133_v32 = vunpack.c.0.s8 %v273_v50  ;;  %v1153_v1 = vunpack.c.1.s8 %v273_v50  ;;  %v234_v22 = vld [vmem:[#allocation5 + $0x4f8] sm:$0xff] }
 0x31b   :  { %v4705_v40 = vmul.f32 %v4665_v33, %v4331_v11  ;;  %v1773_v48 = vcvt.s32.f32 %v493_v5  ;;  %v1793_v60 = vcvt.s32.f32 %v513_v36  ;;  %v2093_v14 = vcvt.s32.f32 %v813_v44  ;;  %v314_v44 = vld [vmem:[#allocation5 + $0x778] sm:$0xff] }
 0x31c   :  { %v2113_v19 = vcvt.s32.f32 %v833_v12  ;;  %4585 = vmatpush.bf16.msra.mxu3 %v3513_v49  ;;  %v2413_v62 = vcvt.s32.f32 %v1133_v32  ;;  %v2433_v25 = vcvt.s32.f32 %v1153_v1  ;;  %v1453_v42 = vunpack.c.0.s8 %v5672_v37  ;;  %v5686_v1 = vld [vmem:[#allocation5 + $0x9f8] sm:$0xff] }
 0x31d   :  { %v4771_v61 = vadd.f32 %v4731_v59, %v4705_v40  ;;  %v3013_v8 = vpack.c.bf16 %v1793_v60, %v1773_v48  ;;  %v1473_v24 = vunpack.c.1.s8 %v5672_v37  ;;  %v453_v13 = vunpack.c.2.s8 %v93_v31 }
 0x31e   :  { %v3173_v2 = vpack.c.bf16 %v2113_v19, %v2093_v14  ;;  %v3333_v9 = vpack.c.bf16 %v2433_v25, %v2413_v62  ;;  %v2733_v4 = vcvt.s32.f32 %v1453_v42  ;;  %v473_v26 = vunpack.c.3.s8 %v93_v31 }
 0x31f   :  { %v4807_v23 = vrot.slane %v4771_v61, 6  ;;  %4547 = vmatpush.bf16.msra.mxu0 %v3013_v8  ;;  %v2753_v57 = vcvt.s32.f32 %v1473_v24  ;;  %v1733_v3 = vcvt.s32.f32 %v453_v13  ;;  %v773_v55 = vunpack.c.2.s8 %v173_v10 }
 0x320   :  { %4560 = vmatpush.bf16.msra.mxu1 %v3173_v2  ;;  %v793_v21 = vunpack.c.3.s8 %v173_v10  ;;  %4573 = vmatpush.bf16.msra.mxu2 %v3333_v9  ;;  %v1753_v50 = vcvt.s32.f32 %v473_v26  ;;  %v1093_v35 = vunpack.c.2.s8 %v253_v28  ;;  %v1113_v53 = vunpack.c.3.s8 %v253_v28  ;;  %v5690_v9 = vld [vmem:[#allocation1] sm:$0xff] }
 0x321   :  { %v5684_v29 = vsel %vm4813_vm0, %v5668_v58, %v4807_v23  ;;  %v3493_v34 = vpack.c.bf16 %v2753_v57, %v2733_v4  ;;  %v2053_v54 = vcvt.s32.f32 %v773_v55  ;;  %v1413_v16 = vunpack.c.2.s8 %v333_v30 }
 0x322   :  { %v2073_v37 = vcvt.s32.f32 %v793_v21  ;;  %v2993_v38 = vpack.c.bf16 %v1753_v50, %v1733_v3  ;;  %v2373_v18 = vcvt.s32.f32 %v1093_v35  ;;  %v2393_v45 = vcvt.s32.f32 %v1113_v53  ;;  %v5693_v3 = vld [vmem:[#allocation1 + $0x9] sm:$0xff]  ;;  %v5696_v53 = vld [vmem:[#allocation1 + $0x12] sm:$0xff] }
 0x323   :  { %v1433_v39 = vunpack.c.3.s8 %v333_v30  ;;  %4586 = vmatpush.bf16.msra.mxu3 %v3493_v34  ;;  %v2693_v7 = vcvt.s32.f32 %v1413_v16  ;;  %v413_v47 = vunpack.c.0.s8 %v93_v31  ;;  %v433_v27 = vunpack.c.1.s8 %v93_v31 }
 0x324   :  { %v3153_v43 = vpack.c.bf16 %v2073_v37, %v2053_v54  ;;  %4548 = vmatpush.bf16.msra.mxu0 %v2993_v38  ;;  %v3313_v58 = vpack.c.bf16 %v2393_v45, %v2373_v18  ;;  %v733_v51 = vunpack.c.0.s8 %v173_v10  ;;  %v753_v46 = vunpack.c.1.s8 %v173_v10  ;;  %v134_v38 = vld [vmem:[#allocation5 + $0x1d8] sm:$0xff] }
 0x325   :  { %v2713_v52 = vcvt.s32.f32 %v1433_v39  ;;  %v1693_v41 = vcvt.s32.f32 %v413_v47  ;;  %v1713_v20 = vcvt.s32.f32 %v433_v27  ;;  %v1053_v56 = vunpack.c.0.s8 %v253_v28  ;;  %v5700_v47 = vld [vmem:[#allocation1 + $0x1b] sm:$0xff]  ;;  %v5703_v27 = vpop.f32.mrf.mxu0 }
 0x326   :  { %4561 = vmatpush.bf16.msra.mxu1 %v3153_v43  ;;  %v1073_v15 = vunpack.c.1.s8 %v253_v28  ;;  %4574 = vmatpush.bf16.msra.mxu2 %v3313_v58  ;;  %v2013_v6 = vcvt.s32.f32 %v733_v51  ;;  %v2033_v33 = vcvt.s32.f32 %v753_v46  ;;  %v1373_v63 = vunpack.c.0.s8 %v333_v30  ;;  %v5705_v58 = vpop.f32.mrf.mxu1 }
 0x327   :  { %v3473_v17 = vpack.c.bf16 %v2713_v52, %v2693_v7  ;;  %v2973_v11 = vpack.c.bf16 %v1713_v20, %v1693_v41  ;;  %v2333_v59 = vcvt.s32.f32 %v1053_v56  ;;  %v1393_v36 = vunpack.c.1.s8 %v333_v30  ;;  %v214_v7 = vld [vmem:[#allocation5 + $0x458] sm:$0xff] }
 0x328   :  { %v2353_v5 = vcvt.s32.f32 %v1073_v15  ;;  %v3133_v12 = vpack.c.bf16 %v2033_v33, %v2013_v6  ;;  %v2653_v49 = vcvt.s32.f32 %v1373_v63  ;;  %v694_v40 = vunpack.c.2.s8 %v154_v0  ;;  %v294_v20 = vld [vmem:[#allocation5 + $0x6d8] sm:$0xff] }
 0x329   :  { %4587 = vmatpush.bf16.msra.mxu3 %v3473_v17  ;;  %v714_v32 = vunpack.c.3.s8 %v154_v0  ;;  %4549 = vmatpush.bf16.msra.mxu0 %v2973_v11  ;;  %v2673_v48 = vcvt.s32.f32 %v1393_v36  ;;  %v1014_v60 = vunpack.c.2.s8 %v234_v22  ;;  %v1034_v14 = vunpack.c.3.s8 %v234_v22  ;;  %v374_v6 = vld [vmem:[#allocation5 + $0x958] sm:$0xff] }
 0x32a   :  { %v3293_v31 = vpack.c.bf16 %v2353_v5, %v2333_v59  ;;  %4562 = vmatpush.bf16.msra.mxu1 %v3133_v12  ;;  %v1974_v19 = vcvt.s32.f32 %v694_v40  ;;  %v1334_v62 = vunpack.c.2.s8 %v314_v44  ;;  %v1354_v25 = vunpack.c.3.s8 %v314_v44 }
 0x32b   :  { %v1994_v61 = vcvt.s32.f32 %v714_v32  ;;  %v3453_v42 = vpack.c.bf16 %v2673_v48, %v2653_v49  ;;  %v2294_v10 = vcvt.s32.f32 %v1014_v60  ;;  %v2314_v8 = vcvt.s32.f32 %v1034_v14 }
 0x32c   :  { %4575 = vmatpush.bf16.msra.mxu2 %v3293_v31  ;;  %v1654_v2 = vunpack.c.2.s8 %v5686_v1  ;;  %v2614_v13 = vcvt.s32.f32 %v1334_v62  ;;  %v2634_v28 = vcvt.s32.f32 %v1354_v25  ;;  %v1674_v23 = vunpack.c.3.s8 %v5686_v1  ;;  %4550 = vmatmul.bf16.vlgmr.msra.gmra.mxu0 %v5690_v9 }
 0x32d   :  { %v3114_v24 = vpack.c.bf16 %v1994_v61, %v1974_v19  ;;  %4588 = vmatpush.bf16.msra.mxu3 %v3453_v42  ;;  %v3274_v4 = vpack.c.bf16 %v2314_v8, %v2294_v10  ;;  %v654_v30 = vunpack.c.0.s8 %v154_v0  ;;  %v674_v57 = vunpack.c.1.s8 %v154_v0  ;;  %4563 = vmatmul.bf16.vlgmr.msra.gmra.mxu1 %v5693_v3 }
 0x32e   :  { %v2934_v26 = vcvt.s32.f32 %v1654_v2  ;;  %v3434_v55 = vpack.c.bf16 %v2634_v28, %v2614_v13  ;;  %v2954_v21 = vcvt.s32.f32 %v1674_v23  ;;  %v974_v50 = vunpack.c.0.s8 %v234_v22  ;;  %v4345_v13 = vpop.f32.mrf.mxu0 }
 0x32f   :  { %4594 = vmatpush.bf16.msrb.mxu0 %v3114_v24  ;;  %v994_v35 = vunpack.c.1.s8 %v234_v22  ;;  %4576 = vmatmul.bf16.vlgmr.msra.gmra.mxu2 %v5696_v53  ;;  %v1934_v34 = vcvt.s32.f32 %v654_v30  ;;  %v1954_v54 = vcvt.s32.f32 %v674_v57  ;;  %v1294_v37 = vunpack.c.0.s8 %v314_v44  ;;  %v5710_v24 = vpop.f32.mrf.mxu3  ;;  %v114_v30 = vld [vmem:[#allocation5 + $0x138] sm:$0xff]  ;;  %v4358_v57 = vpop.f32.mrf.mxu1 }
 0x330   :  { %4607 = vmatpush.bf16.msrb.mxu1 %v3274_v4  ;;  %v1314_v16 = vunpack.c.1.s8 %v314_v44  ;;  %4620 = vmatpush.bf16.msrb.mxu2 %v3434_v55  ;;  %v3594_v18 = vpack.c.bf16 %v2954_v21, %v2934_v26  ;;  %v2254_v45 = vcvt.s32.f32 %v974_v50  ;;  %v1614_v43 = vunpack.c.0.s8 %v5686_v1 }
 0x331   :  { %v2274_v39 = vcvt.s32.f32 %v994_v35  ;;  %4589 = vmatmul.bf16.vlgmr.msra.gmra.mxu3 %v5700_v47  ;;  %v3094_v52 = vpack.c.bf16 %v1954_v54, %v1934_v34  ;;  %v2574_v51 = vcvt.s32.f32 %v1294_v37  ;;  %v1634_v41 = vunpack.c.1.s8 %v5686_v1  ;;  %v5708_v1 = vpop.f32.mrf.mxu2  ;;  %v194_v34 = vld [vmem:[#allocation5 + $0x3b8] sm:$0xff] }
 0x332   :  { %v2594_v46 = vcvt.s32.f32 %v1314_v16  ;;  %4633 = vmatpush.bf16.msrb.mxu3 %v3594_v18  ;;  %v2894_v15 = vcvt.s32.f32 %v1614_v43  ;;  %v614_v0 = vunpack.c.2.s8 %v134_v38  ;;  %v634_v17 = vunpack.c.3.s8 %v134_v38  ;;  %v274_v18 = vld [vmem:[#allocation5 + $0x638] sm:$0xff] }
 0x333   :  { %v3254_v56 = vpack.c.bf16 %v2274_v39, %v2254_v45  ;;  %4595 = vmatpush.bf16.msrb.mxu0 %v3094_v52  ;;  %v2914_v63 = vcvt.s32.f32 %v1634_v41  ;;  %v934_v22 = vunpack.c.2.s8 %v214_v7  ;;  %v954_v11 = vunpack.c.3.s8 %v214_v7  ;;  %v354_v52 = vld [vmem:[#allocation5 + $0x8b8] sm:$0xff] }
 0x334   :  { %v3414_v33 = vpack.c.bf16 %v2594_v46, %v2574_v51  ;;  %v1894_v59 = vcvt.s32.f32 %v614_v0  ;;  %v1914_v5 = vcvt.s32.f32 %v634_v17  ;;  %v1254_v36 = vunpack.c.2.s8 %v294_v20 }
 0x335   :  { %4608 = vmatpush.bf16.msrb.mxu1 %v3254_v56  ;;  %v1274_v44 = vunpack.c.3.s8 %v294_v20  ;;  %v3574_v12 = vpack.c.bf16 %v2914_v63, %v2894_v15  ;;  %v2214_v49 = vcvt.s32.f32 %v934_v22  ;;  %v2234_v40 = vcvt.s32.f32 %v954_v11 }
 0x336   :  { %4621 = vmatpush.bf16.msrb.mxu2 %v3414_v33  ;;  %v1574_v32 = vunpack.c.2.s8 %v374_v6  ;;  %v3074_v31 = vpack.c.bf16 %v1914_v5, %v1894_v59  ;;  %v2534_v48 = vcvt.s32.f32 %v1254_v36  ;;  %v1594_v14 = vunpack.c.3.s8 %v374_v6 }
 0x337   :  { %v2554_v60 = vcvt.s32.f32 %v1274_v44  ;;  %4634 = vmatpush.bf16.msrb.mxu3 %v3574_v12  ;;  %v3234_v19 = vpack.c.bf16 %v2234_v40, %v2214_v49  ;;  %v574_v62 = vunpack.c.0.s8 %v134_v38  ;;  %v594_v25 = vunpack.c.1.s8 %v134_v38  ;;  %v4384_v12 = vpop.f32.mrf.mxu3  ;;  %v5712_v49 = vpop.f32.mrf.mxu0 }
 0x338   :  { %v2854_v61 = vcvt.s32.f32 %v1574_v32  ;;  %4596 = vmatpush.bf16.msrb.mxu0 %v3074_v31  ;;  %v2874_v10 = vcvt.s32.f32 %v1594_v14  ;;  %v894_v8 = vunpack.c.0.s8 %v214_v7  ;;  %v914_v2 = vunpack.c.1.s8 %v214_v7 }
 0x339   :  { %v3394_v42 = vpack.c.bf16 %v2554_v60, %v2534_v48  ;;  %4609 = vmatpush.bf16.msrb.mxu1 %v3234_v19  ;;  %v1854_v28 = vcvt.s32.f32 %v574_v62  ;;  %v1874_v23 = vcvt.s32.f32 %v594_v25  ;;  %v1214_v4 = vunpack.c.0.s8 %v294_v20  ;;  %v4371_v56 = vpop.f32.mrf.mxu2  ;;  %v5714_v60 = vpop.f32.mrf.mxu1 }
 0x33a   :  { %v1234_v26 = vunpack.c.1.s8 %v294_v20  ;;  %v3554_v55 = vpack.c.bf16 %v2874_v10, %v2854_v61  ;;  %v2174_v21 = vcvt.s32.f32 %v894_v8  ;;  %v2194_v50 = vcvt.s32.f32 %v914_v2  ;;  %v94_v2 = vld [vmem:[#allocation5 + $0x98] sm:$0xff] }
 0x33b   :  { %4622 = vmatpush.bf16.msrb.mxu2 %v3394_v42  ;;  %v1534_v35 = vunpack.c.0.s8 %v374_v6  ;;  %v3054_v54 = vpack.c.bf16 %v1874_v23, %v1854_v28  ;;  %v2494_v37 = vcvt.s32.f32 %v1214_v4  ;;  %v1554_v38 = vunpack.c.1.s8 %v374_v6 }
 0x33c   :  { %v2514_v16 = vcvt.s32.f32 %v1234_v26  ;;  %4635 = vmatpush.bf16.msrb.mxu3 %v3554_v55  ;;  %v3214_v45 = vpack.c.bf16 %v2194_v50, %v2174_v21  ;;  %v534_v43 = vunpack.c.2.s8 %v114_v30  ;;  %v554_v7 = vunpack.c.3.s8 %v114_v30  ;;  %v174_v26 = vld [vmem:[#allocation5 + $0x318] sm:$0xff] }
 0x33d   :  { %v2814_v39 = vcvt.s32.f32 %v1534_v35  ;;  %4597 = vmatpush.bf16.msrb.mxu0 %v3054_v54  ;;  %v2834_v46 = vcvt.s32.f32 %v1554_v38  ;;  %v854_v41 = vunpack.c.2.s8 %v194_v34  ;;  %v874_v20 = vunpack.c.3.s8 %v194_v34  ;;  %v254_v50 = vld [vmem:[#allocation5 + $0x598] sm:$0xff] }
 0x33e   :  { %v3374_v51 = vpack.c.bf16 %v2514_v16, %v2494_v37  ;;  %4610 = vmatpush.bf16.msrb.mxu1 %v3214_v45  ;;  %v1814_v15 = vcvt.s32.f32 %v534_v43  ;;  %v1834_v0 = vcvt.s32.f32 %v554_v7  ;;  %v1174_v17 = vunpack.c.2.s8 %v274_v18  ;;  %v334_v38 = vld [vmem:[#allocation5 + $0x818] sm:$0xff] }
 0x33f   :  { %v1194_v33 = vunpack.c.3.s8 %v274_v18  ;;  %v3534_v6 = vpack.c.bf16 %v2834_v46, %v2814_v39  ;;  %v2134_v63 = vcvt.s32.f32 %v854_v41  ;;  %v2154_v22 = vcvt.s32.f32 %v874_v20  ;;  %v4397_v20 = vpop.f32.mrf.mxu0 }
 0x340   :  { %4623 = vmatpush.bf16.msrb.mxu2 %v3374_v51  ;;  %v1494_v11 = vunpack.c.2.s8 %v354_v52  ;;  %v3034_v59 = vpack.c.bf16 %v1834_v0, %v1814_v15  ;;  %v2454_v5 = vcvt.s32.f32 %v1174_v17  ;;  %v1514_v44 = vunpack.c.3.s8 %v354_v52 }
 0x341   :  { %v2474_v36 = vcvt.s32.f32 %v1194_v33  ;;  %4636 = vmatpush.bf16.msrb.mxu3 %v3534_v6  ;;  %v3194_v40 = vpack.c.bf16 %v2154_v22, %v2134_v63  ;;  %v494_v31 = vunpack.c.0.s8 %v114_v30  ;;  %v514_v48 = vunpack.c.1.s8 %v114_v30  ;;  %v5716_v35 = vpop.f32.mrf.mxu2  ;;  %v4410_v33 = vpop.f32.mrf.mxu1 }
 0x342   :  { %v2774_v32 = vcvt.s32.f32 %v1494_v11  ;;  %4598 = vmatpush.bf16.msrb.mxu0 %v3034_v59  ;;  %v2794_v19 = vcvt.s32.f32 %v1514_v44  ;;  %v814_v61 = vunpack.c.0.s8 %v194_v34  ;;  %v834_v62 = vunpack.c.1.s8 %v194_v34 }
 0x343   :  { %v3354_v14 = vpack.c.bf16 %v2474_v36, %v2454_v5  ;;  %4611 = vmatpush.bf16.msrb.mxu1 %v3194_v40  ;;  %v1774_v25 = vcvt.s32.f32 %v494_v31  ;;  %v1794_v42 = vcvt.s32.f32 %v514_v48  ;;  %v1134_v10 = vunpack.c.0.s8 %v274_v18 }
 0x344   :  { %v1154_v8 = vunpack.c.1.s8 %v274_v18  ;;  %v3514_v13 = vpack.c.bf16 %v2794_v19, %v2774_v32  ;;  %v2094_v28 = vcvt.s32.f32 %v814_v61  ;;  %v2114_v23 = vcvt.s32.f32 %v834_v62 }
 0x345   :  { %4624 = vmatpush.bf16.msrb.mxu2 %v3354_v14  ;;  %v1454_v4 = vunpack.c.0.s8 %v354_v52  ;;  %v3014_v30 = vpack.c.bf16 %v1794_v42, %v1774_v25  ;;  %v2414_v57 = vcvt.s32.f32 %v1134_v10  ;;  %v1474_v21 = vunpack.c.1.s8 %v354_v52  ;;  %v5718_v52 = vpop.f32.mrf.mxu3 }
 0x346   :  { %v2434_v55 = vcvt.s32.f32 %v1154_v8  ;;  %4637 = vmatpush.bf16.msrb.mxu3 %v3514_v13  ;;  %v3174_v34 = vpack.c.bf16 %v2114_v23, %v2094_v28  ;;  %v454_v37 = vunpack.c.2.s8 %v94_v2  ;;  %v474_v16 = vunpack.c.3.s8 %v94_v2 }
 0x347   :  { %v2734_v54 = vcvt.s32.f32 %v1454_v4  ;;  %4599 = vmatpush.bf16.msrb.mxu0 %v3014_v30  ;;  %v2754_v45 = vcvt.s32.f32 %v1474_v21  ;;  %v774_v39 = vunpack.c.2.s8 %v174_v26  ;;  %v794_v43 = vunpack.c.3.s8 %v174_v26  ;;  %v4897_v30 = vld [vmem:[#allocation7 + $0x8] sm:$0xff] }
 0x348   :  { %v3334_v18 = vpack.c.bf16 %v2434_v55, %v2414_v57  ;;  %4612 = vmatpush.bf16.msrb.mxu1 %v3174_v34  ;;  %v1734_v7 = vcvt.s32.f32 %v454_v37  ;;  %v1754_v51 = vcvt.s32.f32 %v474_v16  ;;  %v1094_v46 = vunpack.c.2.s8 %v254_v50 }
 0x349   :  { %v1114_v41 = vunpack.c.3.s8 %v254_v50  ;;  %v3494_v56 = vpack.c.bf16 %v2754_v45, %v2734_v54  ;;  %v2054_v15 = vcvt.s32.f32 %v774_v39  ;;  %v2074_v0 = vcvt.s32.f32 %v794_v43  ;;  %v4423_v62 = vpop.f32.mrf.mxu2 }
 0x34a   :  { %4625 = vmatpush.bf16.msrb.mxu2 %v3334_v18  ;;  %v1414_v17 = vunpack.c.2.s8 %v334_v38  ;;  %v2994_v6 = vpack.c.bf16 %v1754_v51, %v1734_v7  ;;  %v2374_v63 = vcvt.s32.f32 %v1094_v46  ;;  %v1434_v11 = vunpack.c.3.s8 %v334_v38 }
 0x34b   :  { %v2394_v22 = vcvt.s32.f32 %v1114_v41  ;;  %4638 = vmatpush.bf16.msrb.mxu3 %v3494_v56  ;;  %v3154_v59 = vpack.c.bf16 %v2074_v0, %v2054_v15  ;;  %v4357_v36 = vadd.f32 %v5705_v58, %v5703_v27  ;;  %v414_v44 = vunpack.c.0.s8 %v94_v2 }
 0x34c   :  { %v2694_v5 = vcvt.s32.f32 %v1414_v17  ;;  %4600 = vmatpush.bf16.msrb.mxu0 %v2994_v6  ;;  %v2714_v40 = vcvt.s32.f32 %v1434_v11  ;;  %v434_v32 = vunpack.c.1.s8 %v94_v2  ;;  %v734_v31 = vunpack.c.0.s8 %v174_v26 }
 0x34d   :  { %v3314_v12 = vpack.c.bf16 %v2394_v22, %v2374_v63  ;;  %4613 = vmatpush.bf16.msrb.mxu1 %v3154_v59  ;;  %v1694_v48 = vcvt.s32.f32 %v414_v44  ;;  %v754_v14 = vunpack.c.1.s8 %v174_v26  ;;  %v1054_v19 = vunpack.c.0.s8 %v254_v50  ;;  %v4436_v26 = vpop.f32.mrf.mxu3  ;;  %v4648_v22 = vld [vmem:[#allocation7 + $0x10] sm:$0xf] }
 0x34e   :  { %v1074_v61 = vunpack.c.1.s8 %v254_v50  ;;  %v3474_v25 = vpack.c.bf16 %v2714_v40, %v2694_v5  ;;  %v1714_v42 = vcvt.s32.f32 %v434_v32  ;;  %v2014_v10 = vcvt.s32.f32 %v734_v31 }
 0x34f   :  { %4626 = vmatpush.bf16.msrb.mxu2 %v3314_v12  ;;  %v1374_v8 = vunpack.c.0.s8 %v334_v38  ;;  %v2034_v13 = vcvt.s32.f32 %v754_v14  ;;  %v2334_v28 = vcvt.s32.f32 %v1054_v19  ;;  %v1394_v58 = vunpack.c.1.s8 %v334_v38  ;;  %v4898_v38 = vld [vmem:[#allocation8 + $0x8] sm:$0xff]  ;;  %v4714_v12 = vld [vmem:[#allocation8 + $0x10] sm:$0xf] }
 0x350   :  { %v2354_v27 = vcvt.s32.f32 %v1074_v61  ;;  %4639 = vmatpush.bf16.msrb.mxu3 %v3474_v25  ;;  %v2974_v23 = vpack.c.bf16 %v1714_v42, %v1694_v48  ;;  %v4370_v2 = vadd.f32 %v5708_v1, %v4357_v36  ;;  %v4666_v57 = vperm.slane %v4897_v30, 6 }
 0x351   :  { %v2654_v4 = vcvt.s32.f32 %v1374_v8  ;;  %v3134_v55 = vpack.c.bf16 %v2034_v13, %v2014_v10  ;;  %v2674_v50 = vcvt.s32.f32 %v1394_v58  ;;  %v4409_v54 = vadd.f32 %v5714_v60, %v5712_v49 }
 0x352   :  { %v3294_v21 = vpack.c.bf16 %v2354_v27, %v2334_v28  ;;  %4601 = vmatpush.bf16.msrb.mxu0 %v2974_v23  ;;  %v4383_v34 = vadd.f32 %v5710_v24, %v4370_v2  ;;  %v4732_v18 = vperm.slane %v4898_v38, 6  ;;  %v4667_v45 = vperm.slane %v4897_v30, 7 }
 0x353   :  { %4614 = vmatpush.bf16.msrb.mxu1 %v3134_v55  ;;  %v3454_v37 = vpack.c.bf16 %v2674_v50, %v2654_v4  ;;  %v4422_v1 = vadd.f32 %v5716_v35, %v4409_v54  ;;  %v4733_v49 = vperm.slane %v4898_v38, 7  ;;  %v4668_v59 = vperm.slane %v4648_v22, 0 }
 0x354   :  { %4627 = vmatpush.bf16.msrb.mxu2 %v3294_v21  ;;  %v4706_v16 = vmul.f32 %v4666_v57, %v4383_v34  ;;  %v4669_v36 = vperm.slane %v4648_v22, 1  ;;  %v4735_v31 = vperm.slane %v4714_v12, 1  ;;  %v4734_v14 = vperm.slane %v4714_v12, 0 }
 0x355   :  { %4640 = vmatpush.bf16.msrb.mxu3 %v3454_v37  ;;  %4602 = vmatmul.bf16.vlgmr.msrb.gmra.mxu0 %v5690_v9  ;;  %v4447_v39 = vpop.f32.mrf.mxu0  ;;  %v4435_v24 = vadd.f32 %v5718_v52, %v4422_v1  ;;  %v4670_v34 = vperm.slane %v4648_v22, 2  ;;  %v4736_v38 = vperm.slane %v4714_v12, 2  ;;  %v4671_v1 = vperm.slane %v4648_v22, 3 }
 0x356   :  { %4615 = vmatmul.bf16.vlgmr.msrb.gmra.mxu1 %v5693_v3  ;;  %v4460_v60 = vpop.f32.mrf.mxu1  ;;  %v4772_v7 = vadd.f32 %v4732_v18, %v4706_v16 }
 0x357   :  { %4628 = vmatmul.bf16.vlgmr.msrb.gmra.mxu2 %v5696_v53  ;;  %v4461_v43 = vadd.f32 %v4460_v60, %v4447_v39  ;;  %v4707_v51 = vmul.f32 %v4667_v45, %v4435_v24  ;;  %v4737_v60 = vperm.slane %v4714_v12, 3 }
 0x358   :  { %4641 = vmatmul.bf16.vlgmr.msrb.gmra.mxu3 %v5700_v47  ;;  %v4808_v35 = vrot.slane %v4772_v7, 4 }
 0x359   :  { %v4773_v46 = vadd.f32 %v4733_v49, %v4707_v51 }
 0x35b   :  { %v4809_v41 = vrot.slane %v4773_v46, 2 }
 0x35d   :  { %v4449_v20 = vpop.f32.mrf.mxu0  ;;  %v4826_v9 = vsel %vm4815_vm1, %v4808_v35, %v4809_v41 }
 0x35e   :  { %v4462_v15 = vpop.f32.mrf.mxu1  ;;  %v4827_v3 = vsel %vm4817_vm2, %v5684_v29, %v4826_v9 }
 0x35f   :  { %v4473_v56 = vpop.f32.mrf.mxu2  ;;  %v4486_v52 = vpop.f32.mrf.mxu3  ;;  %4839 = vst [vmem:[#allocation10 + $0x18] sm:$0xff] %v4827_v3 }
 0x360   :  { %v4474_v53 = vadd.f32 %v4473_v56, %v4461_v43 }
 0x362   :  { %v4487_v0 = vadd.f32 %v4486_v52, %v4474_v53 }
 0x364   :  { %v4708_v48 = vmul.f32 %v4668_v59, %v4487_v0 }
 0x366   :  { %v4774_v25 = vadd.f32 %v4734_v14, %v4708_v48 }
 0x367   :  { %v4475_v17 = vpop.f32.mrf.mxu2  ;;  %v4488_v33 = vpop.f32.mrf.mxu3 }
 0x37e   :  { %v4499_v47 = vpop.f32.mrf.mxu0 }
 0x37f   :  { %v4512_v6 = vpop.f32.mrf.mxu1 }
 0x380   :  { %v4513_v63 = vadd.f32 %v4512_v6, %v4499_v47 }
 0x386   :  { %v4525_v11 = vpop.f32.mrf.mxu2  ;;  %v4501_v44 = vpop.f32.mrf.mxu0 }
 0x387   :  { %v4526_v5 = vadd.f32 %v4525_v11, %v4513_v63  ;;  %v4538_v40 = vpop.f32.mrf.mxu3  ;;  %v4514_v29 = vpop.f32.mrf.mxu1 }
 0x389   :  { %v4539_v32 = vadd.f32 %v4538_v40, %v4526_v5 }
 0x38b   :  { %v4709_v19 = vmul.f32 %v4669_v36, %v4539_v32 }
 0x38d   :  { %v4775_v61 = vadd.f32 %v4735_v31, %v4709_v19 }
 0x38e   :  { %v4527_v62 = vpop.f32.mrf.mxu2 }
 0x38f   :  { %v4810_v42 = vrot.slane %v4775_v61, 6  ;;  %v4540_v10 = vpop.f32.mrf.mxu3 }
 0x391   :  { %v4828_v8 = vsel %vm4813_vm0, %v4774_v25, %v4810_v42 }
 0x3a9   :  { %v4551_v13 = vpop.f32.mrf.mxu0 }
 0x3aa   :  { %v4564_v28 = vpop.f32.mrf.mxu1 }
 0x3ab   :  { %v4565_v57 = vadd.f32 %v4564_v28, %v4551_v13 }
 0x3b1   :  { %v4553_v58 = vpop.f32.mrf.mxu0 }
 0x3b2   :  { %v4577_v27 = vpop.f32.mrf.mxu2  ;;  %v4566_v23 = vpop.f32.mrf.mxu1 }
 0x3b3   :  { %v4578_v26 = vadd.f32 %v4577_v27, %v4565_v57 }
 0x3b4   :  { %v4590_v4 = vpop.f32.mrf.mxu3 }
 0x3b5   :  { %v4591_v50 = vadd.f32 %v4590_v4, %v4578_v26 }
 0x3b7   :  { %v4710_v16 = vmul.f32 %v4670_v34, %v4591_v50 }
 0x3b9   :  { %v4776_v43 = vadd.f32 %v4736_v38, %v4710_v16 }
 0x3ba   :  { %v4579_v2 = vpop.f32.mrf.mxu2 }
 0x3bb   :  { %v4811_v35 = vrot.slane %v4776_v43, 4 }
 0x3bc   :  { %v4592_v30 = vpop.f32.mrf.mxu3 }
 0x3d2   :  { %v4603_v55 = vpop.f32.mrf.mxu0 }
 0x3d3   :  { %v4616_v21 = vpop.f32.mrf.mxu1 }
 0x3d4   :  { %v4617_v54 = vadd.f32 %v4616_v21, %v4603_v55 }
 0x3da   :  { %v4629_v37 = vpop.f32.mrf.mxu2  ;;  %v4605_v45 = vpop.f32.mrf.mxu0 }
 0x3db   :  { %v4630_v18 = vadd.f32 %v4629_v37, %v4617_v54  ;;  %v4642_v39 = vpop.f32.mrf.mxu3  ;;  %v4618_v24 = vpop.f32.mrf.mxu1 }
 0x3dd   :  { %v4643_v49 = vadd.f32 %v4642_v39, %v4630_v18 }
 0x3df   :  { %v4711_v7 = vmul.f32 %v4671_v1, %v4643_v49 }
 0x3e1   :  { %v4777_v51 = vadd.f32 %v4737_v60, %v4711_v7 }
 0x3e2   :  { %v4631_v46 = vpop.f32.mrf.mxu2 }
 0x3e3   :  { %v4812_v41 = vrot.slane %v4777_v51, 2  ;;  %v4644_v20 = vpop.f32.mrf.mxu3 }
 0x3e5   :  { %v4829_v9 = vsel %vm4815_vm1, %v4811_v35, %v4812_v41 }
 0x3e6   :  { %v4830_v56 = vsel %vm4817_vm2, %v4828_v8, %v4829_v9 }
 0x3e7   :  { %4840 = vst [vmem:[#allocation10 + $0x20] sm:$0xff] %v4830_v56 }
 0x3e8   :  { %4851 = dma.vmem_to_hbm [thread:$0]  %s4847_s3, 640, %s4849_s11, [#allocation4]  }
 0x3e9   :  { %5025 = dma.done.wait [#allocation4], 640  }
 0x3ea   :  { %5026 = vsyncadd [#allocation4], 4294966656 }
 0x3eb   :  { %4856 = vsyncpa [#allocation3], 1 }
 0x3ec   :  { %4857 = vsyncpa [#allocation6], 1 }
 0x3ed   :  { %4858 = vsyncpa [#allocation9], 1 }
 0x3ee   :  { %4859 = vsyncpa [#allocation4], 1 }

</bundles_post_ra>
